<compile_context>
chip_gen: v6e
topology: v6e:2x2x1
jax: 0.10.0
libtpu: 0.0.40
codegen_flags: <defaults>
</compile_context>

<pallas_src>
import jax
import jax.numpy as jnp
from jax import lax
from jax.experimental import pallas as pl
from jax.experimental.pallas import tpu as pltpu

NEG_SLOPE = 0.01   # nnUNet props: nn.LeakyReLU(negative_slope=1e-2)
IN_EPS = 1e-5      # nnUNet props: nn.InstanceNorm3d(eps=1e-5, affine=True)


def _geometry(D, H, W):
    Hp, Wp = H + 2, W + 2
    HpWp = Hp * Wp
    M1 = D * HpWp                      # flat length of one conv-output slab (incl. garbage lanes)
    M2 = M1 + HpWp + Wp + 1            # conv2 computed slightly longer so the pooling
                                       # shift-maxima (offsets 1, Wp, HpWp) stay in bounds
    center = HpWp + Wp + 1             # flat offset of the (1,1,1) centre tap
    Lc = M2 + 2 * HpWp + 2 * Wp + 2    # padded conv2-input scratch length
    return Hp, Wp, HpWp, M1, M2, center, Lc


def _make_kernel(C1, C2, D, H, W):
    Hp, Wp, HpWp, M1, M2, center, Lc = _geometry(D, H, W)
    cnt = float(D * H * W)
    # flat offsets of the 27 taps of a 3x3x3 kernel in padded coordinates
    offsets = [kd * HpWp + kh * Wp + kw
               for kd in range(3) for kh in range(3) for kw in range(3)]

    def fused_conv(load_slab, w_ref, win):
        # im2col with contiguous windows -> one (Cout, 27*Cin) x (27*Cin, win) bf16 MXU matmul
        col = jnp.concatenate([load_slab(off, win) for off in offsets], axis=0)
        return jnp.dot(w_ref[...], col.astype(jnp.bfloat16),
                       preferred_element_type=jnp.float32)

    def inorm_lrelu(a, mask, gamma, beta):
        # single-pass InstanceNorm statistics over the valid lanes only
        av = a[:, :M1] * mask
        s = jnp.sum(av, axis=1, keepdims=True)
        ss = jnp.sum(av * a[:, :M1], axis=1, keepdims=True)
        mean = s / cnt
        var = ss / cnt - mean * mean
        inv = lax.rsqrt(var + IN_EPS)
        y = (a - mean) * (inv * gamma) + beta
        return jnp.where(y >= 0, y, NEG_SLOPE * y)            # LeakyReLU(0.01)

    def kernel(xpad_ref, mask_ref, w1_ref, w2_ref, g1_ref, bt1_ref, g2_ref, bt2_ref,
               out2_ref, pool_ref, c1pad_ref):
        mask = mask_ref[...]                                   # (1, M1)

        # ---- conv1 (C1 -> C1) on the MXU, + InstanceNorm + LeakyReLU ----
        a1 = fused_conv(lambda off, win: xpad_ref[0, :, off:off + win], w1_ref, M1)
        y1 = inorm_lrelu(a1, mask, g1_ref[...], bt1_ref[...])

        # residual add ("concat_1" is an elementwise add); zero the garbage lanes so they act
        # as conv2's zero padding once written into the padded scratch below
        c1 = (y1 + xpad_ref[0, :, center:center + M1]) * mask

        # ---- padded conv2 input: zero ONLY the halos, write the interior once ----
        c1pad_ref[:, 0:center] = jnp.zeros((C1, center), jnp.float32)
        c1pad_ref[:, center + M1:] = jnp.zeros((C1, Lc - center - M1), jnp.float32)
        c1pad_ref[:, center:center + M1] = c1

        # ---- conv2 (C1 -> C2) on the MXU, + InstanceNorm + LeakyReLU ----
        a2 = fused_conv(lambda off, win: c1pad_ref[:, off:off + win], w2_ref, M2)
        y2 = inorm_lrelu(a2, mask, g2_ref[...], bt2_ref[...])
        out2_ref[0] = y2[:, :M1]

        # ---- MaxPool3d(2, 2) from registers: three shifted maxima (W, H, D pairs) ----
        A = M1 + HpWp + Wp
        B = M1 + HpWp
        q = jnp.maximum(y2[:, 0:A], y2[:, 1:A + 1])            # pair along W
        q = jnp.maximum(q[:, 0:B], q[:, Wp:Wp + B])            # pair along H
        q = jnp.maximum(q[:, 0:M1], q[:, HpWp:HpWp + M1])      # pair along D
        pool_ref[0] = q   # pooled values live on the (even d, even h, even w) lattice

    return kernel


def dense_down_block_2(x, params, kernel_size=(3, 3, 3)):
    """Forward of DenseDownBlock_2.  x: (N, C1, D, H, W) float32 (NCDHW).
    Returns (pooled, concat_2), both NCDHW, matching the PyTorch module."""
    assert tuple(kernel_size) == (3, 3, 3), "kernel specialised to 3x3x3 ('same' padding 1)"
    N, C1, D, H, W = x.shape
    C2 = 2 * C1
    assert D % 2 == 0 and H % 2 == 0 and W % 2 == 0, "MaxPool3d(2,2) path assumes even dims"
    Hp, Wp, HpWp, M1, M2, center, Lc = _geometry(D, H, W)
    Lx = (D + 3) * HpWp                 # flattened padded-input length (D padded by (1,2))

    # glue: zero 'same' padding + flatten (D,H,W) onto the lane axis (stays NC-first, no transpose)
    # TODO(synk): at full nnUNet volume sizes, fold this pad into the kernel (halo reads) and tile
    # D on the grid with a two-pass InstanceNorm instead of keeping a whole sample resident.
    xf = x.astype(jnp.float32)
    xpad = jnp.pad(xf, ((0, 0), (0, 0), (1, 2), (1, 1), (1, 1))).reshape(N, C1, Lx)

    # 0/1 mask of lanes that correspond to real voxels (not padding rows/columns)
    jj = jnp.arange(M1, dtype=jnp.int32)
    r = jj % HpWp
    mask = (((r // Wp) < H) & ((r % Wp) < W)).astype(jnp.float32).reshape(1, M1)

    def to_mat(w):   # (Cout, Cin, 3,3,3) -> (Cout, 27*Cin), rows ordered (kd, kh, kw, cin)
        co, ci = w.shape[0], w.shape[1]
        return jnp.transpose(w, (0, 2, 3, 4, 1)).reshape(co, 27 * ci)

    w1m = to_mat(params["w1"]).astype(jnp.bfloat16)
    w2m = to_mat(params["w2"]).astype(jnp.bfloat16)
    g1 = params["gamma1"].reshape(C1, 1).astype(jnp.float32)
    bt1 = params["beta1"].reshape(C1, 1).astype(jnp.float32)
    g2 = params["gamma2"].reshape(C2, 1).astype(jnp.float32)
    bt2 = params["beta2"].reshape(C2, 1).astype(jnp.float32)
    # conv biases b1/b2 are intentionally not passed: InstanceNorm's per-channel mean
    # subtraction cancels a per-channel bias exactly (verified against the reference below).

    kernel = _make_kernel(C1, C2, D, H, W)

    out2k, poolk = pl.pallas_call(
        kernel,
        out_shape=(jax.ShapeDtypeStruct((N, C2, M1), jnp.float32),
                   jax.ShapeDtypeStruct((N, C2, M1), jnp.float32)),
        grid=(N,),
        in_specs=[pl.BlockSpec((1, C1, Lx), lambda n: (n, 0, 0)),
                  pl.BlockSpec((1, M1), lambda n: (0, 0)),
                  pl.BlockSpec((C1, 27 * C1), lambda n: (0, 0)),
                  pl.BlockSpec((C2, 27 * C1), lambda n: (0, 0)),
                  pl.BlockSpec((C1, 1), lambda n: (0, 0)),
                  pl.BlockSpec((C1, 1), lambda n: (0, 0)),
                  pl.BlockSpec((C2, 1), lambda n: (0, 0)),
                  pl.BlockSpec((C2, 1), lambda n: (0, 0))],
        out_specs=(pl.BlockSpec((1, C2, M1), lambda n: (n, 0, 0)),
                   pl.BlockSpec((1, C2, M1), lambda n: (n, 0, 0))),
        scratch_shapes=[pltpu.VMEM((C1, Lc), jnp.float32)],
        compiler_params=pltpu.CompilerParams(
            dimension_semantics=("parallel",),     # per-sample IN -> samples split across TCs
            vmem_limit_bytes=32 * 1024 * 1024),
    )(xpad, mask, w1m, w2m, g1, bt1, g2, bt2)

    # glue: un-flatten and drop the padding-column garbage lanes / gather the pooled lattice
    out2 = out2k.reshape(N, C2, D, Hp, Wp)[:, :, :, :H, :W]
    pooled = poolk.reshape(N, C2, D, Hp, Wp)[:, :, 0:D:2, 0:H:2, 0:W:2]
    return pooled, out2


def _reference(x, params, bf16_matmul_inputs=False):
    """Pure-JAX reference of the PyTorch forward (NCDHW).  If bf16_matmul_inputs is True the
    conv operands are rounded to bf16 exactly like the kernel feeds the MXU (f32 accumulation)."""
    f32 = jnp.float32

    def q(v):
        v = v.astype(f32)
        return v.astype(jnp.bfloat16).astype(f32) if bf16_matmul_inputs else v

    def conv3d(inp, w, b):
        out = lax.conv_general_dilated(
            q(inp), q(w), window_strides=(1, 1, 1),
            padding=((1, 1), (1, 1), (1, 1)),
            dimension_numbers=("NCDHW", "OIDHW", "NCDHW"),
            precision=lax.Precision.HIGHEST,
            preferred_element_type=f32)
        return out + b[None, :, None, None, None].astype(f32)

    def inorm(t, g, bt):
        m = jnp.mean(t, axis=(2, 3, 4), keepdims=True)
        v = jnp.mean((t - m) ** 2, axis=(2, 3, 4), keepdims=True)
        return ((t - m) * lax.rsqrt(v + IN_EPS)
                * g[None, :, None, None, None] + bt[None, :, None, None, None])

    def lrelu(t):
        return jnp.where(t >= 0, t, NEG_SLOPE * t)

    out1 = lrelu(inorm(conv3d(x.astype(f32), params["w1"], params["b1"]),
                       params["gamma1"], params["beta1"]))
    c1 = out1 + x.astype(f32)
    c2 = lrelu(inorm(conv3d(c1, params["w2"], params["b2"]),
                     params["gamma2"], params["beta2"]))
    n, c, d, h, w = c2.shape
    pooled = c2.reshape(n, c, d // 2, 2, h // 2, 2, w // 2, 2).max(axis=(3, 5, 7))
    return pooled, c2


if __name__ == "__main__":
    N, C1, D, H, W = 2, 4, 8, 12, 16     # in_planes=4 -> conv2 emits 2*in_planes=8 channels
    C2 = 2 * C1
    key = jax.random.PRNGKey(0)
    ks = jax.random.split(key, 9)
    params = {
        "w1": 0.2 * jax.random.normal(ks[1], (C1, C1, 3, 3, 3), jnp.float32),
        "b1": 0.1 * jax.random.normal(ks[2], (C1,), jnp.float32),
        "gamma1": 1.0 + 0.1 * jax.random.normal(ks[3], (C1,), jnp.float32),
        "beta1": 0.1 * jax.random.normal(ks[4], (C1,), jnp.float32),
        "w2": 0.2 * jax.random.normal(ks[5], (C2, C1, 3, 3, 3), jnp.float32),
        "b2": 0.1 * jax.random.normal(ks[6], (C2,), jnp.float32),
        "gamma2": 1.0 + 0.1 * jax.random.normal(ks[7], (C2,), jnp.float32),
        "beta2": 0.1 * jax.random.normal(ks[8], (C2,), jnp.float32),
    }
    x = jax.random.normal(ks[0], (N, C1, D, H, W), jnp.float32)

    fwd = jax.jit(dense_down_block_2)
    pooled, concat2 = jax.block_until_ready(fwd(x, params))

    assert pooled.shape == (N, C2, D // 2, H // 2, W // 2)
    assert concat2.shape == (N, C2, D, H, W)

    # tight check against a reference with identically bf16-rounded matmul operands
    rp, rc = _reference(x, params, bf16_matmul_inputs=True)
    assert jnp.allclose(concat2, rc, atol=2e-3, rtol=2e-3), float(jnp.max(jnp.abs(concat2 - rc)))
    assert jnp.allclose(pooled, rp, atol=2e-3, rtol=2e-3), float(jnp.max(jnp.abs(pooled - rp)))

    # sanity check against the pure-f32 PyTorch-equivalent forward
    rp32, rc32 = _reference(x, params, bf16_matmul_inputs=False)
    assert jnp.allclose(concat2, rc32, atol=5e-2, rtol=5e-2), float(jnp.max(jnp.abs(concat2 - rc32)))
    assert jnp.allclose(pooled, rp32, atol=5e-2, rtol=5e-2), float(jnp.max(jnp.abs(pooled - rp32)))

    print("KERNEL_OK")
</pallas_src>

<mosaic_0001>
module attributes {stable_mosaic.version = 11 : i64} {
  func.func @kernel(%arg0: i32, %arg1: memref<1x4x2772xf32, #tpu.memory_space<vmem>>, %arg2: memref<1x2016xf32, #tpu.memory_space<vmem>>, %arg3: memref<4x108xbf16, #tpu.memory_space<vmem>>, %arg4: memref<8x108xbf16, #tpu.memory_space<vmem>>, %arg5: memref<4x1xf32, #tpu.memory_space<vmem>>, %arg6: memref<4x1xf32, #tpu.memory_space<vmem>>, %arg7: memref<8x1xf32, #tpu.memory_space<vmem>>, %arg8: memref<8x1xf32, #tpu.memory_space<vmem>>, %arg9: memref<1x8x2016xf32, #tpu.memory_space<vmem>>, %arg10: memref<1x8x2016xf32, #tpu.memory_space<vmem>>, %arg11: memref<4x2829xf32, #tpu.memory_space<vmem>>) attributes {dimension_semantics = [#tpu.dimension_semantics<parallel>], iteration_bounds = array<i64: 2>, scalar_prefetch = 0 : i64, scratch_operands = 1 : i64, tpu.core_type = #tpu.core_type<tc>, window_params = [{transform_indices = @transform_0, window_bounds = array<i64: 1, 4, 2772>}, {pipeline_mode = #tpu.pipeline_mode<synchronous>, transform_indices = @transform_1, window_bounds = array<i64: 1, 2016>}, {pipeline_mode = #tpu.pipeline_mode<synchronous>, transform_indices = @transform_2, window_bounds = array<i64: 4, 108>}, {pipeline_mode = #tpu.pipeline_mode<synchronous>, transform_indices = @transform_3, window_bounds = array<i64: 8, 108>}, {pipeline_mode = #tpu.pipeline_mode<synchronous>, transform_indices = @transform_4, window_bounds = array<i64: 4, 1>}, {pipeline_mode = #tpu.pipeline_mode<synchronous>, transform_indices = @transform_5, window_bounds = array<i64: 4, 1>}, {pipeline_mode = #tpu.pipeline_mode<synchronous>, transform_indices = @transform_6, window_bounds = array<i64: 8, 1>}, {pipeline_mode = #tpu.pipeline_mode<synchronous>, transform_indices = @transform_7, window_bounds = array<i64: 8, 1>}, {transform_indices = @transform_8, window_bounds = array<i64: 1, 8, 2016>}, {transform_indices = @transform_9, window_bounds = array<i64: 1, 8, 2016>}]} {
    %c0 = arith.constant 0 : index
    %c0_0 = arith.constant 0 : index
    %0 = vector.load %arg2[%c0, %c0_0] : memref<1x2016xf32, #tpu.memory_space<vmem>>, vector<1x2016xf32>
    %c0_1 = arith.constant 0 : index
    %c0_2 = arith.constant 0 : index
    %c0_3 = arith.constant 0 : index
    %1 = vector.load %arg1[%c0_1, %c0_2, %c0_3] : memref<1x4x2772xf32, #tpu.memory_space<vmem>>, vector<1x4x2016xf32>
    %2 = vector.shape_cast %1 : vector<1x4x2016xf32> to vector<4x2016xf32>
    %c0_4 = arith.constant 0 : index
    %c0_5 = arith.constant 0 : index
    %c1 = arith.constant 1 : index
    %3 = vector.load %arg1[%c0_4, %c0_5, %c1] : memref<1x4x2772xf32, #tpu.memory_space<vmem>>, vector<1x4x2016xf32>
    %4 = vector.shape_cast %3 : vector<1x4x2016xf32> to vector<4x2016xf32>
    %c0_6 = arith.constant 0 : index
    %c0_7 = arith.constant 0 : index
    %c2 = arith.constant 2 : index
    %5 = vector.load %arg1[%c0_6, %c0_7, %c2] : memref<1x4x2772xf32, #tpu.memory_space<vmem>>, vector<1x4x2016xf32>
    %6 = vector.shape_cast %5 : vector<1x4x2016xf32> to vector<4x2016xf32>
    %c0_8 = arith.constant 0 : index
    %c0_9 = arith.constant 0 : index
    %c18 = arith.constant 18 : index
    %7 = vector.load %arg1[%c0_8, %c0_9, %c18] : memref<1x4x2772xf32, #tpu.memory_space<vmem>>, vector<1x4x2016xf32>
    %8 = vector.shape_cast %7 : vector<1x4x2016xf32> to vector<4x2016xf32>
    %c0_10 = arith.constant 0 : index
    %c0_11 = arith.constant 0 : index
    %c19 = arith.constant 19 : index
    %9 = vector.load %arg1[%c0_10, %c0_11, %c19] : memref<1x4x2772xf32, #tpu.memory_space<vmem>>, vector<1x4x2016xf32>
    %10 = vector.shape_cast %9 : vector<1x4x2016xf32> to vector<4x2016xf32>
    %c0_12 = arith.constant 0 : index
    %c0_13 = arith.constant 0 : index
    %c20 = arith.constant 20 : index
    %11 = vector.load %arg1[%c0_12, %c0_13, %c20] : memref<1x4x2772xf32, #tpu.memory_space<vmem>>, vector<1x4x2016xf32>
    %12 = vector.shape_cast %11 : vector<1x4x2016xf32> to vector<4x2016xf32>
    %c0_14 = arith.constant 0 : index
    %c0_15 = arith.constant 0 : index
    %c36 = arith.constant 36 : index
    %13 = vector.load %arg1[%c0_14, %c0_15, %c36] : memref<1x4x2772xf32, #tpu.memory_space<vmem>>, vector<1x4x2016xf32>
    %14 = vector.shape_cast %13 : vector<1x4x2016xf32> to vector<4x2016xf32>
    %c0_16 = arith.constant 0 : index
    %c0_17 = arith.constant 0 : index
    %c37 = arith.constant 37 : index
    %15 = vector.load %arg1[%c0_16, %c0_17, %c37] : memref<1x4x2772xf32, #tpu.memory_space<vmem>>, vector<1x4x2016xf32>
    %16 = vector.shape_cast %15 : vector<1x4x2016xf32> to vector<4x2016xf32>
    %c0_18 = arith.constant 0 : index
    %c0_19 = arith.constant 0 : index
    %c38 = arith.constant 38 : index
    %17 = vector.load %arg1[%c0_18, %c0_19, %c38] : memref<1x4x2772xf32, #tpu.memory_space<vmem>>, vector<1x4x2016xf32>
    %18 = vector.shape_cast %17 : vector<1x4x2016xf32> to vector<4x2016xf32>
    %c0_20 = arith.constant 0 : index
    %c0_21 = arith.constant 0 : index
    %c252 = arith.constant 252 : index
    %19 = vector.load %arg1[%c0_20, %c0_21, %c252] : memref<1x4x2772xf32, #tpu.memory_space<vmem>>, vector<1x4x2016xf32>
    %20 = vector.shape_cast %19 : vector<1x4x2016xf32> to vector<4x2016xf32>
    %c0_22 = arith.constant 0 : index
    %c0_23 = arith.constant 0 : index
    %c253 = arith.constant 253 : index
    %21 = vector.load %arg1[%c0_22, %c0_23, %c253] : memref<1x4x2772xf32, #tpu.memory_space<vmem>>, vector<1x4x2016xf32>
    %22 = vector.shape_cast %21 : vector<1x4x2016xf32> to vector<4x2016xf32>
    %c0_24 = arith.constant 0 : index
    %c0_25 = arith.constant 0 : index
    %c254 = arith.constant 254 : index
    %23 = vector.load %arg1[%c0_24, %c0_25, %c254] : memref<1x4x2772xf32, #tpu.memory_space<vmem>>, vector<1x4x2016xf32>
    %24 = vector.shape_cast %23 : vector<1x4x2016xf32> to vector<4x2016xf32>
    %c0_26 = arith.constant 0 : index
    %c0_27 = arith.constant 0 : index
    %c270 = arith.constant 270 : index
    %25 = vector.load %arg1[%c0_26, %c0_27, %c270] : memref<1x4x2772xf32, #tpu.memory_space<vmem>>, vector<1x4x2016xf32>
    %26 = vector.shape_cast %25 : vector<1x4x2016xf32> to vector<4x2016xf32>
    %c0_28 = arith.constant 0 : index
    %c0_29 = arith.constant 0 : index
    %c271 = arith.constant 271 : index
    %27 = vector.load %arg1[%c0_28, %c0_29, %c271] : memref<1x4x2772xf32, #tpu.memory_space<vmem>>, vector<1x4x2016xf32>
    %28 = vector.shape_cast %27 : vector<1x4x2016xf32> to vector<4x2016xf32>
    %c0_30 = arith.constant 0 : index
    %c0_31 = arith.constant 0 : index
    %c272 = arith.constant 272 : index
    %29 = vector.load %arg1[%c0_30, %c0_31, %c272] : memref<1x4x2772xf32, #tpu.memory_space<vmem>>, vector<1x4x2016xf32>
    %30 = vector.shape_cast %29 : vector<1x4x2016xf32> to vector<4x2016xf32>
    %c0_32 = arith.constant 0 : index
    %c0_33 = arith.constant 0 : index
    %c288 = arith.constant 288 : index
    %31 = vector.load %arg1[%c0_32, %c0_33, %c288] : memref<1x4x2772xf32, #tpu.memory_space<vmem>>, vector<1x4x2016xf32>
    %32 = vector.shape_cast %31 : vector<1x4x2016xf32> to vector<4x2016xf32>
    %c0_34 = arith.constant 0 : index
    %c0_35 = arith.constant 0 : index
    %c289 = arith.constant 289 : index
    %33 = vector.load %arg1[%c0_34, %c0_35, %c289] : memref<1x4x2772xf32, #tpu.memory_space<vmem>>, vector<1x4x2016xf32>
    %34 = vector.shape_cast %33 : vector<1x4x2016xf32> to vector<4x2016xf32>
    %c0_36 = arith.constant 0 : index
    %c0_37 = arith.constant 0 : index
    %c290 = arith.constant 290 : index
    %35 = vector.load %arg1[%c0_36, %c0_37, %c290] : memref<1x4x2772xf32, #tpu.memory_space<vmem>>, vector<1x4x2016xf32>
    %36 = vector.shape_cast %35 : vector<1x4x2016xf32> to vector<4x2016xf32>
    %c0_38 = arith.constant 0 : index
    %c0_39 = arith.constant 0 : index
    %c504 = arith.constant 504 : index
    %37 = vector.load %arg1[%c0_38, %c0_39, %c504] : memref<1x4x2772xf32, #tpu.memory_space<vmem>>, vector<1x4x2016xf32>
    %38 = vector.shape_cast %37 : vector<1x4x2016xf32> to vector<4x2016xf32>
    %c0_40 = arith.constant 0 : index
    %c0_41 = arith.constant 0 : index
    %c505 = arith.constant 505 : index
    %39 = vector.load %arg1[%c0_40, %c0_41, %c505] : memref<1x4x2772xf32, #tpu.memory_space<vmem>>, vector<1x4x2016xf32>
    %40 = vector.shape_cast %39 : vector<1x4x2016xf32> to vector<4x2016xf32>
    %c0_42 = arith.constant 0 : index
    %c0_43 = arith.constant 0 : index
    %c506 = arith.constant 506 : index
    %41 = vector.load %arg1[%c0_42, %c0_43, %c506] : memref<1x4x2772xf32, #tpu.memory_space<vmem>>, vector<1x4x2016xf32>
    %42 = vector.shape_cast %41 : vector<1x4x2016xf32> to vector<4x2016xf32>
    %c0_44 = arith.constant 0 : index
    %c0_45 = arith.constant 0 : index
    %c522 = arith.constant 522 : index
    %43 = vector.load %arg1[%c0_44, %c0_45, %c522] : memref<1x4x2772xf32, #tpu.memory_space<vmem>>, vector<1x4x2016xf32>
    %44 = vector.shape_cast %43 : vector<1x4x2016xf32> to vector<4x2016xf32>
    %c0_46 = arith.constant 0 : index
    %c0_47 = arith.constant 0 : index
    %c523 = arith.constant 523 : index
    %45 = vector.load %arg1[%c0_46, %c0_47, %c523] : memref<1x4x2772xf32, #tpu.memory_space<vmem>>, vector<1x4x2016xf32>
    %46 = vector.shape_cast %45 : vector<1x4x2016xf32> to vector<4x2016xf32>
    %c0_48 = arith.constant 0 : index
    %c0_49 = arith.constant 0 : index
    %c524 = arith.constant 524 : index
    %47 = vector.load %arg1[%c0_48, %c0_49, %c524] : memref<1x4x2772xf32, #tpu.memory_space<vmem>>, vector<1x4x2016xf32>
    %48 = vector.shape_cast %47 : vector<1x4x2016xf32> to vector<4x2016xf32>
    %c0_50 = arith.constant 0 : index
    %c0_51 = arith.constant 0 : index
    %c540 = arith.constant 540 : index
    %49 = vector.load %arg1[%c0_50, %c0_51, %c540] : memref<1x4x2772xf32, #tpu.memory_space<vmem>>, vector<1x4x2016xf32>
    %50 = vector.shape_cast %49 : vector<1x4x2016xf32> to vector<4x2016xf32>
    %c0_52 = arith.constant 0 : index
    %c0_53 = arith.constant 0 : index
    %c541 = arith.constant 541 : index
    %51 = vector.load %arg1[%c0_52, %c0_53, %c541] : memref<1x4x2772xf32, #tpu.memory_space<vmem>>, vector<1x4x2016xf32>
    %52 = vector.shape_cast %51 : vector<1x4x2016xf32> to vector<4x2016xf32>
    %c0_54 = arith.constant 0 : index
    %c0_55 = arith.constant 0 : index
    %c542 = arith.constant 542 : index
    %53 = vector.load %arg1[%c0_54, %c0_55, %c542] : memref<1x4x2772xf32, #tpu.memory_space<vmem>>, vector<1x4x2016xf32>
    %54 = vector.shape_cast %53 : vector<1x4x2016xf32> to vector<4x2016xf32>
    %55 = tpu.concatenate %2, %4, %6, %8, %10, %12, %14, %16, %18, %20, %22, %24, %26, %28, %30, %32 in 0 : vector<4x2016xf32>, vector<4x2016xf32>, vector<4x2016xf32>, vector<4x2016xf32>, vector<4x2016xf32>, vector<4x2016xf32>, vector<4x2016xf32>, vector<4x2016xf32>, vector<4x2016xf32>, vector<4x2016xf32>, vector<4x2016xf32>, vector<4x2016xf32>, vector<4x2016xf32>, vector<4x2016xf32>, vector<4x2016xf32>, vector<4x2016xf32> -> vector<64x2016xf32>
    %56 = tpu.concatenate %34, %36, %38, %40, %42, %44, %46, %48, %50, %52, %54 in 0 : vector<4x2016xf32>, vector<4x2016xf32>, vector<4x2016xf32>, vector<4x2016xf32>, vector<4x2016xf32>, vector<4x2016xf32>, vector<4x2016xf32>, vector<4x2016xf32>, vector<4x2016xf32>, vector<4x2016xf32>, vector<4x2016xf32> -> vector<44x2016xf32>
    %57 = tpu.concatenate %55, %56 in 0 : vector<64x2016xf32>, vector<44x2016xf32> -> vector<108x2016xf32>
    %c0_56 = arith.constant 0 : index
    %c0_57 = arith.constant 0 : index
    %58 = vector.load %arg3[%c0_56, %c0_57] : memref<4x108xbf16, #tpu.memory_space<vmem>>, vector<4x108xbf16>
    %59 = arith.truncf %57 : vector<108x2016xf32> to vector<108x2016xbf16>
    %cst = arith.constant dense<0.000000e+00> : vector<4x2016xf32>
    %60 = tpu.matmul %58, %59, %cst {dimension_numbers = #tpu.dot_dimension_numbers<[1], [0], [0], [1], [0, 0, 1, 1], [], []>} : vector<4x108xbf16>, vector<108x2016xbf16>, vector<4x2016xf32> -> vector<4x2016xf32>
    %c0_58 = arith.constant 0 : index
    %c0_59 = arith.constant 0 : index
    %61 = vector.load %arg5[%c0_58, %c0_59] : memref<4x1xf32, #tpu.memory_space<vmem>>, vector<4x1xf32>
    %c0_60 = arith.constant 0 : index
    %c0_61 = arith.constant 0 : index
    %62 = vector.load %arg6[%c0_60, %c0_61] : memref<4x1xf32, #tpu.memory_space<vmem>>, vector<4x1xf32>
    %63 = vector.broadcast %0 : vector<1x2016xf32> to vector<4x2016xf32>
    %64 = arith.mulf %60, %63 : vector<4x2016xf32>
    %cst_62 = arith.constant dense<0.000000e+00> : vector<4xf32>
    %65 = vector.multi_reduction <add>, %64, %cst_62 [1] : vector<4x2016xf32> to vector<4xf32>
    %66 = vector.shape_cast %65 : vector<4xf32> to vector<4x1xf32>
    %67 = arith.mulf %64, %60 : vector<4x2016xf32>
    %cst_63 = arith.constant dense<0.000000e+00> : vector<4xf32>
    %68 = vector.multi_reduction <add>, %67, %cst_63 [1] : vector<4x2016xf32> to vector<4xf32>
    %69 = vector.shape_cast %68 : vector<4xf32> to vector<4x1xf32>
    %cst_64 = arith.constant 1.536000e+03 : f32
    %70 = vector.broadcast %cst_64 : f32 to vector<4x1xf32>
    %71 = arith.divf %66, %70 : vector<4x1xf32>
    %cst_65 = arith.constant 1.536000e+03 : f32
    %72 = vector.broadcast %cst_65 : f32 to vector<4x1xf32>
    %73 = arith.divf %69, %72 : vector<4x1xf32>
    %74 = arith.mulf %71, %71 : vector<4x1xf32>
    %75 = arith.subf %73, %74 : vector<4x1xf32>
    %cst_66 = arith.constant 9.99999974E-6 : f32
    %76 = vector.broadcast %cst_66 : f32 to vector<4x1xf32>
    %77 = arith.addf %75, %76 : vector<4x1xf32>
    %78 = math.rsqrt %77 : vector<4x1xf32>
    %79 = vector.broadcast %71 : vector<4x1xf32> to vector<4x2016xf32>
    %80 = arith.subf %60, %79 : vector<4x2016xf32>
    %81 = arith.mulf %78, %61 : vector<4x1xf32>
    %82 = vector.broadcast %81 : vector<4x1xf32> to vector<4x2016xf32>
    %83 = arith.mulf %80, %82 : vector<4x2016xf32>
    %84 = vector.broadcast %62 : vector<4x1xf32> to vector<4x2016xf32>
    %85 = arith.addf %83, %84 : vector<4x2016xf32>
    %cst_67 = arith.constant 0.000000e+00 : f32
    %86 = vector.broadcast %cst_67 : f32 to vector<4x2016xf32>
    %87 = arith.cmpf oge, %85, %86 : vector<4x2016xf32>
    %cst_68 = arith.constant 0.00999999977 : f32
    %88 = vector.broadcast %cst_68 : f32 to vector<4x2016xf32>
    %89 = arith.mulf %88, %85 : vector<4x2016xf32>
    %90 = arith.select %87, %85, %89 : vector<4x2016xi1>, vector<4x2016xf32>
    %c0_69 = arith.constant 0 : index
    %c0_70 = arith.constant 0 : index
    %c271_71 = arith.constant 271 : index
    %91 = vector.load %arg1[%c0_69, %c0_70, %c271_71] : memref<1x4x2772xf32, #tpu.memory_space<vmem>>, vector<1x4x2016xf32>
    %92 = vector.shape_cast %91 : vector<1x4x2016xf32> to vector<4x2016xf32>
    %93 = arith.addf %90, %92 : vector<4x2016xf32>
    %94 = vector.broadcast %0 : vector<1x2016xf32> to vector<4x2016xf32>
    %95 = arith.mulf %93, %94 : vector<4x2016xf32>
    %cst_72 = arith.constant 0.000000e+00 : f32
    %96 = vector.broadcast %cst_72 : f32 to vector<4x271xf32>
    %c0_73 = arith.constant 0 : index
    %c0_74 = arith.constant 0 : index
    %97 = vector.load %arg11[%c0_73, %c0_74] : memref<4x2829xf32, #tpu.memory_space<vmem>>, vector<4x271xf32>
    tpu.vector_store %arg11[%c0_73, %c0_74], %96 {strides = array<i32>} : memref<4x2829xf32, #tpu.memory_space<vmem>>, vector<4x271xf32>,
    %cst_75 = arith.constant 0.000000e+00 : f32
    %98 = vector.broadcast %cst_75 : f32 to vector<4x542xf32>
    %c0_76 = arith.constant 0 : index
    %c2287 = arith.constant 2287 : index
    %99 = vector.load %arg11[%c0_76, %c2287] : memref<4x2829xf32, #tpu.memory_space<vmem>>, vector<4x542xf32>
    tpu.vector_store %arg11[%c0_76, %c2287], %98 {strides = array<i32>} : memref<4x2829xf32, #tpu.memory_space<vmem>>, vector<4x542xf32>,
    %c0_77 = arith.constant 0 : index
    %c271_78 = arith.constant 271 : index
    %100 = vector.load %arg11[%c0_77, %c271_78] : memref<4x2829xf32, #tpu.memory_space<vmem>>, vector<4x2016xf32>
    tpu.vector_store %arg11[%c0_77, %c271_78], %95 {strides = array<i32>} : memref<4x2829xf32, #tpu.memory_space<vmem>>, vector<4x2016xf32>,
    %c0_79 = arith.constant 0 : index
    %c0_80 = arith.constant 0 : index
    %101 = vector.load %arg11[%c0_79, %c0_80] : memref<4x2829xf32, #tpu.memory_space<vmem>>, vector<4x2287xf32>
    %c0_81 = arith.constant 0 : index
    %c1_82 = arith.constant 1 : index
    %102 = vector.load %arg11[%c0_81, %c1_82] : memref<4x2829xf32, #tpu.memory_space<vmem>>, vector<4x2287xf32>
    %c0_83 = arith.constant 0 : index
    %c2_84 = arith.constant 2 : index
    %103 = vector.load %arg11[%c0_83, %c2_84] : memref<4x2829xf32, #tpu.memory_space<vmem>>, vector<4x2287xf32>
    %c0_85 = arith.constant 0 : index
    %c18_86 = arith.constant 18 : index
    %104 = vector.load %arg11[%c0_85, %c18_86] : memref<4x2829xf32, #tpu.memory_space<vmem>>, vector<4x2287xf32>
    %c0_87 = arith.constant 0 : index
    %c19_88 = arith.constant 19 : index
    %105 = vector.load %arg11[%c0_87, %c19_88] : memref<4x2829xf32, #tpu.memory_space<vmem>>, vector<4x2287xf32>
    %c0_89 = arith.constant 0 : index
    %c20_90 = arith.constant 20 : index
    %106 = vector.load %arg11[%c0_89, %c20_90] : memref<4x2829xf32, #tpu.memory_space<vmem>>, vector<4x2287xf32>
    %c0_91 = arith.constant 0 : index
    %c36_92 = arith.constant 36 : index
    %107 = vector.load %arg11[%c0_91, %c36_92] : memref<4x2829xf32, #tpu.memory_space<vmem>>, vector<4x2287xf32>
    %c0_93 = arith.constant 0 : index
    %c37_94 = arith.constant 37 : index
    %108 = vector.load %arg11[%c0_93, %c37_94] : memref<4x2829xf32, #tpu.memory_space<vmem>>, vector<4x2287xf32>
    %c0_95 = arith.constant 0 : index
    %c38_96 = arith.constant 38 : index
    %109 = vector.load %arg11[%c0_95, %c38_96] : memref<4x2829xf32, #tpu.memory_space<vmem>>, vector<4x2287xf32>
    %c0_97 = arith.constant 0 : index
    %c252_98 = arith.constant 252 : index
    %110 = vector.load %arg11[%c0_97, %c252_98] : memref<4x2829xf32, #tpu.memory_space<vmem>>, vector<4x2287xf32>
    %c0_99 = arith.constant 0 : index
    %c253_100 = arith.constant 253 : index
    %111 = vector.load %arg11[%c0_99, %c253_100] : memref<4x2829xf32, #tpu.memory_space<vmem>>, vector<4x2287xf32>
    %c0_101 = arith.constant 0 : index
    %c254_102 = arith.constant 254 : index
    %112 = vector.load %arg11[%c0_101, %c254_102] : memref<4x2829xf32, #tpu.memory_space<vmem>>, vector<4x2287xf32>
    %c0_103 = arith.constant 0 : index
    %c270_104 = arith.constant 270 : index
    %113 = vector.load %arg11[%c0_103, %c270_104] : memref<4x2829xf32, #tpu.memory_space<vmem>>, vector<4x2287xf32>
    %c0_105 = arith.constant 0 : index
    %c271_106 = arith.constant 271 : index
    %114 = vector.load %arg11[%c0_105, %c271_106] : memref<4x2829xf32, #tpu.memory_space<vmem>>, vector<4x2287xf32>
    %c0_107 = arith.constant 0 : index
    %c272_108 = arith.constant 272 : index
    %115 = vector.load %arg11[%c0_107, %c272_108] : memref<4x2829xf32, #tpu.memory_space<vmem>>, vector<4x2287xf32>
    %c0_109 = arith.constant 0 : index
    %c288_110 = arith.constant 288 : index
    %116 = vector.load %arg11[%c0_109, %c288_110] : memref<4x2829xf32, #tpu.memory_space<vmem>>, vector<4x2287xf32>
    %c0_111 = arith.constant 0 : index
    %c289_112 = arith.constant 289 : index
    %117 = vector.load %arg11[%c0_111, %c289_112] : memref<4x2829xf32, #tpu.memory_space<vmem>>, vector<4x2287xf32>
    %c0_113 = arith.constant 0 : index
    %c290_114 = arith.constant 290 : index
    %118 = vector.load %arg11[%c0_113, %c290_114] : memref<4x2829xf32, #tpu.memory_space<vmem>>, vector<4x2287xf32>
    %c0_115 = arith.constant 0 : index
    %c504_116 = arith.constant 504 : index
    %119 = vector.load %arg11[%c0_115, %c504_116] : memref<4x2829xf32, #tpu.memory_space<vmem>>, vector<4x2287xf32>
    %c0_117 = arith.constant 0 : index
    %c505_118 = arith.constant 505 : index
    %120 = vector.load %arg11[%c0_117, %c505_118] : memref<4x2829xf32, #tpu.memory_space<vmem>>, vector<4x2287xf32>
    %c0_119 = arith.constant 0 : index
    %c506_120 = arith.constant 506 : index
    %121 = vector.load %arg11[%c0_119, %c506_120] : memref<4x2829xf32, #tpu.memory_space<vmem>>, vector<4x2287xf32>
    %c0_121 = arith.constant 0 : index
    %c522_122 = arith.constant 522 : index
    %122 = vector.load %arg11[%c0_121, %c522_122] : memref<4x2829xf32, #tpu.memory_space<vmem>>, vector<4x2287xf32>
    %c0_123 = arith.constant 0 : index
    %c523_124 = arith.constant 523 : index
    %123 = vector.load %arg11[%c0_123, %c523_124] : memref<4x2829xf32, #tpu.memory_space<vmem>>, vector<4x2287xf32>
    %c0_125 = arith.constant 0 : index
    %c524_126 = arith.constant 524 : index
    %124 = vector.load %arg11[%c0_125, %c524_126] : memref<4x2829xf32, #tpu.memory_space<vmem>>, vector<4x2287xf32>
    %c0_127 = arith.constant 0 : index
    %c540_128 = arith.constant 540 : index
    %125 = vector.load %arg11[%c0_127, %c540_128] : memref<4x2829xf32, #tpu.memory_space<vmem>>, vector<4x2287xf32>
    %c0_129 = arith.constant 0 : index
    %c541_130 = arith.constant 541 : index
    %126 = vector.load %arg11[%c0_129, %c541_130] : memref<4x2829xf32, #tpu.memory_space<vmem>>, vector<4x2287xf32>
    %c0_131 = arith.constant 0 : index
    %c542_132 = arith.constant 542 : index
    %127 = vector.load %arg11[%c0_131, %c542_132] : memref<4x2829xf32, #tpu.memory_space<vmem>>, vector<4x2287xf32>
    %128 = tpu.concatenate %101, %102, %103, %104, %105, %106, %107, %108, %109, %110, %111, %112, %113, %114, %115, %116 in 0 : vector<4x2287xf32>, vector<4x2287xf32>, vector<4x2287xf32>, vector<4x2287xf32>, vector<4x2287xf32>, vector<4x2287xf32>, vector<4x2287xf32>, vector<4x2287xf32>, vector<4x2287xf32>, vector<4x2287xf32>, vector<4x2287xf32>, vector<4x2287xf32>, vector<4x2287xf32>, vector<4x2287xf32>, vector<4x2287xf32>, vector<4x2287xf32> -> vector<64x2287xf32>
    %129 = tpu.concatenate %117, %118, %119, %120, %121, %122, %123, %124, %125, %126, %127 in 0 : vector<4x2287xf32>, vector<4x2287xf32>, vector<4x2287xf32>, vector<4x2287xf32>, vector<4x2287xf32>, vector<4x2287xf32>, vector<4x2287xf32>, vector<4x2287xf32>, vector<4x2287xf32>, vector<4x2287xf32>, vector<4x2287xf32> -> vector<44x2287xf32>
    %130 = tpu.concatenate %128, %129 in 0 : vector<64x2287xf32>, vector<44x2287xf32> -> vector<108x2287xf32>
    %c0_133 = arith.constant 0 : index
    %c0_134 = arith.constant 0 : index
    %131 = vector.load %arg4[%c0_133, %c0_134] : memref<8x108xbf16, #tpu.memory_space<vmem>>, vector<8x108xbf16>
    %132 = arith.truncf %130 : vector<108x2287xf32> to vector<108x2287xbf16>
    %cst_135 = arith.constant dense<0.000000e+00> : vector<8x2287xf32>
    %133 = tpu.matmul %131, %132, %cst_135 {dimension_numbers = #tpu.dot_dimension_numbers<[1], [0], [0], [1], [0, 0, 1, 1], [], []>} : vector<8x108xbf16>, vector<108x2287xbf16>, vector<8x2287xf32> -> vector<8x2287xf32>
    %c0_136 = arith.constant 0 : index
    %c0_137 = arith.constant 0 : index
    %134 = vector.load %arg7[%c0_136, %c0_137] : memref<8x1xf32, #tpu.memory_space<vmem>>, vector<8x1xf32>
    %c0_138 = arith.constant 0 : index
    %c0_139 = arith.constant 0 : index
    %135 = vector.load %arg8[%c0_138, %c0_139] : memref<8x1xf32, #tpu.memory_space<vmem>>, vector<8x1xf32>
    %136 = vector.extract_strided_slice %133 {offsets = [0, 0], sizes = [8, 2016], strides = [1, 1]} : vector<8x2287xf32> to vector<8x2016xf32>
    %137 = vector.broadcast %0 : vector<1x2016xf32> to vector<8x2016xf32>
    %138 = arith.mulf %136, %137 : vector<8x2016xf32>
    %cst_140 = arith.constant dense<0.000000e+00> : vector<8xf32>
    %139 = vector.multi_reduction <add>, %138, %cst_140 [1] : vector<8x2016xf32> to vector<8xf32>
    %140 = vector.shape_cast %139 : vector<8xf32> to vector<8x1xf32>
    %141 = vector.extract_strided_slice %133 {offsets = [0, 0], sizes = [8, 2016], strides = [1, 1]} : vector<8x2287xf32> to vector<8x2016xf32>
    %142 = arith.mulf %138, %141 : vector<8x2016xf32>
    %cst_141 = arith.constant dense<0.000000e+00> : vector<8xf32>
    %143 = vector.multi_reduction <add>, %142, %cst_141 [1] : vector<8x2016xf32> to vector<8xf32>
    %144 = vector.shape_cast %143 : vector<8xf32> to vector<8x1xf32>
    %cst_142 = arith.constant 1.536000e+03 : f32
    %145 = vector.broadcast %cst_142 : f32 to vector<8x1xf32>
    %146 = arith.divf %140, %145 : vector<8x1xf32>
    %cst_143 = arith.constant 1.536000e+03 : f32
    %147 = vector.broadcast %cst_143 : f32 to vector<8x1xf32>
    %148 = arith.divf %144, %147 : vector<8x1xf32>
    %149 = arith.mulf %146, %146 : vector<8x1xf32>
    %150 = arith.subf %148, %149 : vector<8x1xf32>
    %cst_144 = arith.constant 9.99999974E-6 : f32
    %151 = vector.broadcast %cst_144 : f32 to vector<8x1xf32>
    %152 = arith.addf %150, %151 : vector<8x1xf32>
    %153 = math.rsqrt %152 : vector<8x1xf32>
    %154 = vector.broadcast %146 : vector<8x1xf32> to vector<8x2287xf32>
    %155 = arith.subf %133, %154 : vector<8x2287xf32>
    %156 = arith.mulf %153, %134 : vector<8x1xf32>
    %157 = vector.broadcast %156 : vector<8x1xf32> to vector<8x2287xf32>
    %158 = arith.mulf %155, %157 : vector<8x2287xf32>
    %159 = vector.broadcast %135 : vector<8x1xf32> to vector<8x2287xf32>
    %160 = arith.addf %158, %159 : vector<8x2287xf32>
    %cst_145 = arith.constant 0.000000e+00 : f32
    %161 = vector.broadcast %cst_145 : f32 to vector<8x2287xf32>
    %162 = arith.cmpf oge, %160, %161 : vector<8x2287xf32>
    %cst_146 = arith.constant 0.00999999977 : f32
    %163 = vector.broadcast %cst_146 : f32 to vector<8x2287xf32>
    %164 = arith.mulf %163, %160 : vector<8x2287xf32>
    %165 = arith.select %162, %160, %164 : vector<8x2287xi1>, vector<8x2287xf32>
    %166 = vector.extract_strided_slice %165 {offsets = [0, 0], sizes = [8, 2016], strides = [1, 1]} : vector<8x2287xf32> to vector<8x2016xf32>
    %c0_147 = arith.constant 0 : index
    %c0_148 = arith.constant 0 : index
    %c0_149 = arith.constant 0 : index
    %167 = vector.load %arg9[%c0_147, %c0_148, %c0_149] : memref<1x8x2016xf32, #tpu.memory_space<vmem>>, vector<1x8x2016xf32>
    %168 = vector.shape_cast %167 : vector<1x8x2016xf32> to vector<8x2016xf32>
    %169 = vector.shape_cast %166 : vector<8x2016xf32> to vector<1x8x2016xf32>
    tpu.vector_store %arg9[%c0_147, %c0_148, %c0_149], %169 {strides = array<i32>} : memref<1x8x2016xf32, #tpu.memory_space<vmem>>, vector<1x8x2016xf32>,
    %170 = vector.extract_strided_slice %165 {offsets = [0, 0], sizes = [8, 2286], strides = [1, 1]} : vector<8x2287xf32> to vector<8x2286xf32>
    %171 = vector.extract_strided_slice %165 {offsets = [0, 1], sizes = [8, 2286], strides = [1, 1]} : vector<8x2287xf32> to vector<8x2286xf32>
    %172 = arith.maximumf %170, %171 : vector<8x2286xf32>
    %173 = vector.extract_strided_slice %172 {offsets = [0, 0], sizes = [8, 2268], strides = [1, 1]} : vector<8x2286xf32> to vector<8x2268xf32>
    %174 = vector.extract_strided_slice %172 {offsets = [0, 18], sizes = [8, 2268], strides = [1, 1]} : vector<8x2286xf32> to vector<8x2268xf32>
    %175 = arith.maximumf %173, %174 : vector<8x2268xf32>
    %176 = vector.extract_strided_slice %175 {offsets = [0, 0], sizes = [8, 2016], strides = [1, 1]} : vector<8x2268xf32> to vector<8x2016xf32>
    %177 = vector.extract_strided_slice %175 {offsets = [0, 252], sizes = [8, 2016], strides = [1, 1]} : vector<8x2268xf32> to vector<8x2016xf32>
    %178 = arith.maximumf %176, %177 : vector<8x2016xf32>
    %c0_150 = arith.constant 0 : index
    %c0_151 = arith.constant 0 : index
    %c0_152 = arith.constant 0 : index
    %179 = vector.load %arg10[%c0_150, %c0_151, %c0_152] : memref<1x8x2016xf32, #tpu.memory_space<vmem>>, vector<1x8x2016xf32>
    %180 = vector.shape_cast %179 : vector<1x8x2016xf32> to vector<8x2016xf32>
    %181 = vector.shape_cast %178 : vector<8x2016xf32> to vector<1x8x2016xf32>
    tpu.vector_store %arg10[%c0_150, %c0_151, %c0_152], %181 {strides = array<i32>} : memref<1x8x2016xf32, #tpu.memory_space<vmem>>, vector<1x8x2016xf32>,
    return
  }
  func.func @transform_0(%arg0: i32) -> (i32, i32, i32) {
    %c0_i32 = arith.constant 0 : i32
    %c0_i32_0 = arith.constant 0 : i32
    %c0_i32_1 = arith.constant 0 : i32
    return %arg0, %c0_i32, %c0_i32_0 : i32, i32, i32
  }
  func.func @transform_1(%arg0: i32) -> (i32, i32) {
    %c0_i32 = arith.constant 0 : i32
    %c0_i32_0 = arith.constant 0 : i32
    %c0_i32_1 = arith.constant 0 : i32
    return %c0_i32, %c0_i32_0 : i32, i32
  }
  func.func @transform_2(%arg0: i32) -> (i32, i32) {
    %c0_i32 = arith.constant 0 : i32
    %c0_i32_0 = arith.constant 0 : i32
    %c0_i32_1 = arith.constant 0 : i32
    return %c0_i32, %c0_i32_0 : i32, i32
  }
  func.func @transform_3(%arg0: i32) -> (i32, i32) {
    %c0_i32 = arith.constant 0 : i32
    %c0_i32_0 = arith.constant 0 : i32
    %c0_i32_1 = arith.constant 0 : i32
    return %c0_i32, %c0_i32_0 : i32, i32
  }
  func.func @transform_4(%arg0: i32) -> (i32, i32) {
    %c0_i32 = arith.constant 0 : i32
    %c0_i32_0 = arith.constant 0 : i32
    %c0_i32_1 = arith.constant 0 : i32
    return %c0_i32, %c0_i32_0 : i32, i32
  }
  func.func @transform_5(%arg0: i32) -> (i32, i32) {
    %c0_i32 = arith.constant 0 : i32
    %c0_i32_0 = arith.constant 0 : i32
    %c0_i32_1 = arith.constant 0 : i32
    return %c0_i32, %c0_i32_0 : i32, i32
  }
  func.func @transform_6(%arg0: i32) -> (i32, i32) {
    %c0_i32 = arith.constant 0 : i32
    %c0_i32_0 = arith.constant 0 : i32
    %c0_i32_1 = arith.constant 0 : i32
    return %c0_i32, %c0_i32_0 : i32, i32
  }
  func.func @transform_7(%arg0: i32) -> (i32, i32) {
    %c0_i32 = arith.constant 0 : i32
    %c0_i32_0 = arith.constant 0 : i32
    %c0_i32_1 = arith.constant 0 : i32
    return %c0_i32, %c0_i32_0 : i32, i32
  }
  func.func @transform_8(%arg0: i32) -> (i32, i32, i32) {
    %c0_i32 = arith.constant 0 : i32
    %c0_i32_0 = arith.constant 0 : i32
    %c0_i32_1 = arith.constant 0 : i32
    return %arg0, %c0_i32, %c0_i32_0 : i32, i32, i32
  }
  func.func @transform_9(%arg0: i32) -> (i32, i32, i32) {
    %c0_i32 = arith.constant 0 : i32
    %c0_i32_0 = arith.constant 0 : i32
    %c0_i32_1 = arith.constant 0 : i32
    return %arg0, %c0_i32, %c0_i32_0 : i32, i32, i32
  }
}

</mosaic_0001>

<bundles_post_ra>
// kernel: dense_down_block_2.1
= control target key start
LH: loop header
LB: loop body
LE: loop exit
PB: predicated region body
PF: predicated region fallthrough
CT: control target
= control target key end

     0   :  { %s10311_s30 = smov 0   ;;  %s18945_s0 = inlined_call_operand.vmem [shape: f32[2,4,2772], index: 0, kind: input, shape index: {}]   ;;  %s18946_s1 = inlined_call_operand.vmem [shape: f32[1,2016], index: 1, kind: input, shape index: {}]   ;;  %s18947_s2 = inlined_call_operand.vmem [shape: bf16[4,108], index: 2, kind: input, shape index: {}]   ;;  %s18948_s3 = inlined_call_operand.vmem [shape: bf16[8,108], index: 3, kind: input, shape index: {}]   ;;  %s18949_s4 = inlined_call_operand.vmem [shape: f32[4,1], index: 4, kind: input, shape index: {}]   ;;  %s18950_s5 = inlined_call_operand.vmem [shape: f32[4,1], index: 5, kind: input, shape index: {}]   ;;  %s18951_s6 = inlined_call_operand.vmem [shape: f32[8,1], index: 6, kind: input, shape index: {}]   ;;  %s18952_s7 = inlined_call_operand.vmem [shape: f32[8,1], index: 7, kind: input, shape index: {}]   ;;  %s18953_s8 = inlined_call_operand.vmem [shape: f32[2,8,2016], index: 8, kind: output, shape index: {0}]   ;;  %s18954_s9 = inlined_call_operand.vmem [shape: f32[2,8,2016], index: 9, kind: output, shape index: {1}]  }
   0x1 LB: > { %s7467_s10 = sadd.s32 4294967295, %s10233_s30   ;;  %p7471_p0 = scmp.ge.s32.totalorder %s10233_s30, 1  ;;  %s10233_s30 = sphi %s10311_s30, %s20_s30  }
   0x2   : > { %p290_p1 = scmp.lt.s32.totalorder %s10233_s30, 3 }
   0x4   : > { %p291_p2 = pnand %p7471_p0, %p290_p1 }
   0x6   : > { %294 = sbr.rel (%p291_p2) target bundleno = 3084 (0xc0c), region = 52 }
   0xb   : > { %p331_p3 = scmp.lt.s32.totalorder %s7467_s10, 1  ;;  %v10235_v0 = vmov 0.0   ;;  %s10236_s15 = smov 127   ;;  %vm19201_vm0 = vcmask 1039360   ;;  %vm1413_vm1 = vcmask 1043456   ;;  %vm19131_vm2 = vcmask 334848  }
   0xc   : > { %3564 = vst [vmem:[#allocation2] sm:$0xff] %v10235_v0  ;;  %3571 = vst [vmem:[#allocation2 + $0x4c] sm:$0xff] %v10235_v0  ;;  %s10237_s16 = smov 126   ;;  %s10238_s17 = smov 110   ;;  %v10577_v43 = vcombine.low %v10235_v0, %v10235_v0  ;;  %vm19152_vm3 = vcmask 326656   ;;  %vm19179_vm4 = vcmask 318464  }
   0xd   : > { %s21833_s10 = smov (!%p331_p3, %s7467_s10), 1  ;;  %s10239_s18 = smov 109   ;;  %vm19176_vm5 = vcmask 187392   ;;  %vm19182_vm6 = vcmask 179200   ;;  %vm19185_vm7 = vcmask 171008   ;;  %vm19202_vm8 = vcmask 1031168  }
   0xe   : > { %s7515_s11 = smul.u32 88, %s21833_s10  ;;  %s10240_s19 = smov 108   ;;  %19648 = vst [vmem:[#allocation11_spill] sm:$0xff] %v10577_v43  ;;  %vm19282_vm9 = vcmask 31744   ;;  %vm19186_vm10 = vcmask 39936   ;;  %vm19272_vm11 = vcmask 23552  }
   0xf   : > { %s10241_s20 = smov 92   ;;  %s10242_s21 = smov 91   ;;  %vm564_vm12 = vcmask 900096   ;;  %vm628_vm13 = vcmask 891904   ;;  %vm692_vm14 = vcmask 883712   ;;  %vm759_vm15 = vcmask 752640  }
  0x10   : > { %s10327_s14 = scalar_lea.vmem %s18945_s0, %s7515_s11  ;;  %s10243_s22 = smov 90  }
  0x11   : > { %v10330_v1 = vld [vmem:[%s10327_s14 + $0x10] sm:$0xff]  ;;  %v349_v2 = vld [vmem:[%s10327_s14] sm:$0xff]  ;;  %v10334_v3 = vld [vmem:[%s10327_s14 + $0x18] sm:$0xff]  ;;  %s10244_s23 = smov 4   ;;  %s10245_s24 = smov 3  }
  0x12   : > { %v10338_v4 = vcombine.low %v10330_v1, %v10330_v1  ;;  %v396_v5 = vcombine.low %v349_v2, %v349_v2  ;;  %v10342_v6 = vcombine.low %v10334_v3, %v10334_v3  ;;  %v10345_v7 = vld [vmem:[%s10327_s14 + $0x8] sm:$0xff]  ;;  %v10355_v10 = vld [vmem:[%s10327_s14 + $0x20] sm:$0xff]  ;;  %v10384_v17 = vld [vmem:[%s10327_s14 + $0x38] sm:$0xff]  ;;  %v10425_v26 = vcombine.high %v349_v2, %v349_v2  ;;  %s10246_s25 = smov 2   ;;  %s10247_s26 = smov 114  }
  0x13   : > { %v10348_v8 = vld [vmem:[%s10327_s14 + $0x28] sm:$0xff]  ;;  %v10352_v9 = vcombine.low %v10345_v7, %v10345_v7  ;;  %v10381_v16 = vcombine.low %v10355_v10, %v10355_v10  ;;  %v10387_v18 = vld [vmem:[%s10327_s14 + $0x30] sm:$0xff]  ;;  %v10391_v19 = vcombine.low %v10384_v17, %v10384_v17  ;;  %v10411_v23 = vcombine.high %v10345_v7, %v10345_v7  ;;  %v357_v41 = vld [vmem:[%s10327_s14 + $0x40] sm:$0xf]  ;;  %s10248_s27 = smov 113   ;;  %s10249_s28 = smov 112  }
  0x14   : > { %v10359_v11 = vpack.i.bf16 %v10330_v1, %v10338_v4  ;;  %v10361_v12 = vpack.i.bf16 %v349_v2, %v396_v5  ;;  %v10365_v13 = vcombine.low %v10348_v8, %v10348_v8  ;;  %v10373_v14 = vpack.i.bf16 %v10334_v3, %v10342_v6  ;;  %19641 = vst [vmem:[#allocation4_spill] sm:$0xff] %v10425_v26  ;;  %v358_v50 = vld [vmem:[%s10327_s14 + $0x4] sm:$0xff]  ;;  %v10617_v54 = vld [vmem:[%s10327_s14 + $0x14] sm:$0xff]  ;;  %v359_v55 = vld [vmem:[%s10327_s14 + $0xc] sm:$0xff]  ;;  %s10250_s29 = smov 96   ;;  %s19034_s11 = smov 41  }
  0x15   : > { %v10377_v15 = vpack.i.bf16 %v10345_v7, %v10352_v9  ;;  %v10403_v21 = vpack.i.bf16 %v10355_v10, %v10381_v16  ;;  %v10407_v22 = vcombine.low %v10387_v18, %v10387_v18  ;;  %19640 = vst [vmem:[#allocation3_spill] sm:$0xff] %v10411_v23  ;;  %v10419_v24 = vpack.i.bf16 %v10384_v17, %v10391_v19  ;;  %v362_v61 = vld [vmem:[%s10327_s14 + $0x24] sm:$0xff]  ;;  %v361_v62 = vld [vmem:[%s10327_s14 + $0x1c] sm:$0xff]  ;;  %s19032_s12 = smov 40   ;;  %s10253_s13 = smov 39  }
  0x16   : > { %7561 = vrot.lane.b32.xlu1 %v10359_v11, %s10236_s15  ;;  %7551 = vrot.lane.b32.xlu0 %v10361_v12, %s10236_s15  ;;  %v10399_v20 = vpack.i.bf16 %v10348_v8, %v10365_v13  ;;  %v10429_v27 = vpack.i.bf16 %v10411_v23, %v10345_v7  ;;  %v10436_v28 = vpack.i.bf16 %v10425_v26, %v349_v2 }
  0x17   : > { %v10423_v25 = vpack.i.bf16 %v10387_v18, %v10407_v22  ;;  %v10440_v29 = vcombine.high %v10334_v3, %v10334_v3  ;;  %v10444_v30 = vcombine.high %v10330_v1, %v10330_v1  ;;  %v10448_v31 = vcombine.high %v10348_v8, %v10348_v8 }
  0x18   : > { %v10464_v34 = vcombine.high %v10355_v10, %v10355_v10  ;;  %v10468_v35 = vcombine.high %v10384_v17, %v10384_v17  ;;  %v10484_v38 = vcombine.high %v10387_v18, %v10387_v18  ;;  %v7790_v42 = vpack.i.bf16 %v10235_v0, %v357_v41 }
  0x19   : > { %19642 = vst [vmem:[#allocation5_spill] sm:$0xff] %v10440_v29  ;;  %19643 = vst [vmem:[#allocation6_spill] sm:$0xff] %v10444_v30  ;;  %v10456_v32 = vpack.i.bf16 %v10440_v29, %v10334_v3  ;;  %v10460_v33 = vpack.i.bf16 %v10444_v30, %v10330_v1  ;;  %v10476_v36 = vpack.i.bf16 %v10448_v31, %v10348_v8 }
  0x1a   : > { %7566 = vrot.lane.b32.xlu1 %v10373_v14, %s10236_s15  ;;  %7556 = vrot.lane.b32.xlu0 %v10377_v15, %s10236_s15  ;;  %19644 = vst [vmem:[#allocation7_spill] sm:$0xff] %v10448_v31  ;;  %19645 = vst [vmem:[#allocation8_spill] sm:$0xff] %v10464_v34  ;;  %v10480_v37 = vpack.i.bf16 %v10464_v34, %v10355_v10  ;;  %v10492_v39 = vpack.i.bf16 %v10468_v35, %v10384_v17 }
  0x1b   : > { %19646 = vst [vmem:[#allocation9_spill] sm:$0xff] %v10468_v35  ;;  %19647 = vst [vmem:[#allocation10_spill] sm:$0xff] %v10484_v38  ;;  %v10496_v40 = vpack.i.bf16 %v10484_v38, %v10387_v18  ;;  %v792_v44 = vcombine.low %v357_v41, %v357_v41  ;;  %v936_v53 = vcombine.low %v358_v50, %v358_v50  ;;  %v364_v41 = vld [vmem:[%s10327_s14 + $0x34] sm:$0xff] }
  0x1c   : > { %v938_v59 = vcombine.low %v10617_v54, %v10617_v54  ;;  %v937_v60 = vcombine.low %v359_v55, %v359_v55  ;;  %v940_v2 = vcombine.low %v362_v61, %v362_v61  ;;  %v942_v26 = vcombine.low %v364_v41, %v364_v41 }
  0x1d   : > { %v7835_v45 = vpack.i.bf16 %v10577_v43, %v792_v44  ;;  %v10628_v58 = vpack.i.bf16 %v358_v50, %v936_v53  ;;  %v363_v44 = vld [vmem:[%s10327_s14 + $0x2c] sm:$0xff] }
  0x1e   : > { %7576 = vrot.lane.b32.xlu1 %v10399_v20, %s10236_s15  ;;  %7571 = vrot.lane.b32.xlu0 %v10403_v21, %s10236_s15  ;;  %v10642_v5 = vpack.i.bf16 %v10617_v54, %v938_v59  ;;  %v1017_v38 = vcombine.high %v363_v44, %v363_v44 }
  0x22   : > { %7586 = vrot.lane.b32.xlu1 %v10419_v24, %s10236_s15  ;;  %7581 = vrot.lane.b32.xlu0 %v10423_v25, %s10236_s15 }
  0x26   : > { %7596 = vrot.lane.b32.xlu1 %v10429_v27, %s10237_s16  ;;  %7591 = vrot.lane.b32.xlu0 %v10436_v28, %s10237_s16 }
  0x2a   : > { %7606 = vrot.lane.b32.xlu1 %v10456_v32, %s10237_s16  ;;  %7601 = vrot.lane.b32.xlu0 %v10460_v33, %s10237_s16 }
  0x2e   : > { %7616 = vrot.lane.b32.xlu1 %v10476_v36, %s10237_s16  ;;  %7611 = vrot.lane.b32.xlu0 %v10480_v37, %s10237_s16 }
  0x32   : > { %7626 = vrot.lane.b32.xlu1 %v10492_v39, %s10237_s16  ;;  %7621 = vrot.lane.b32.xlu0 %v10496_v40, %s10237_s16 }
  0x36   : > { %7636 = vrot.lane.b32.xlu1 %v10377_v15, %s10238_s17  ;;  %7631 = vrot.lane.b32.xlu0 %v10361_v12, %s10238_s17 }
  0x3a   : > { %7646 = vrot.lane.b32.xlu1 %v10373_v14, %s10238_s17  ;;  %7641 = vrot.lane.b32.xlu0 %v10359_v11, %s10238_s17 }
  0x3e   : > { %7656 = vrot.lane.b32.xlu1 %v10399_v20, %s10238_s17  ;;  %7651 = vrot.lane.b32.xlu0 %v10403_v21, %s10238_s17 }
  0x42   : > { %7666 = vrot.lane.b32.xlu1 %v10419_v24, %s10238_s17  ;;  %7661 = vrot.lane.b32.xlu0 %v10423_v25, %s10238_s17 }
  0x46   : > { %7676 = vrot.lane.b32.xlu1 %v10429_v27, %s10239_s18  ;;  %7671 = vrot.lane.b32.xlu0 %v10436_v28, %s10239_s18 }
  0x4a   : > { %7686 = vrot.lane.b32.xlu1 %v10456_v32, %s10239_s18  ;;  %7681 = vrot.lane.b32.xlu0 %v10460_v33, %s10239_s18 }
  0x4e   : > { %7696 = vrot.lane.b32.xlu1 %v10476_v36, %s10239_s18  ;;  %7691 = vrot.lane.b32.xlu0 %v10480_v37, %s10239_s18 }
  0x52   : > { %7706 = vrot.lane.b32.xlu1 %v10492_v39, %s10239_s18  ;;  %7701 = vrot.lane.b32.xlu0 %v10496_v40, %s10239_s18 }
  0x56   : > { %7716 = vrot.lane.b32.xlu1 %v10377_v15, %s10240_s19  ;;  %7711 = vrot.lane.b32.xlu0 %v10361_v12, %s10240_s19 }
  0x5a   : > { %7726 = vrot.lane.b32.xlu1 %v10373_v14, %s10240_s19  ;;  %7721 = vrot.lane.b32.xlu0 %v10359_v11, %s10240_s19 }
  0x5e   : > { %7736 = vrot.lane.b32.xlu1 %v10399_v20, %s10240_s19  ;;  %7731 = vrot.lane.b32.xlu0 %v10403_v21, %s10240_s19 }
  0x62   : > { %7746 = vrot.lane.b32.xlu1 %v10419_v24, %s10240_s19  ;;  %7741 = vrot.lane.b32.xlu0 %v10423_v25, %s10240_s19 }
  0x66   : > { %7756 = vrot.lane.b32.xlu1 %v10429_v27, %s10241_s20  ;;  %7751 = vrot.lane.b32.xlu0 %v10436_v28, %s10241_s20 }
  0x6a   : > { %7766 = vrot.lane.b32.xlu1 %v10456_v32, %s10241_s20  ;;  %7761 = vrot.lane.b32.xlu0 %v10460_v33, %s10241_s20 }
  0x6e   : > { %7776 = vrot.lane.b32.xlu1 %v10476_v36, %s10241_s20  ;;  %7771 = vrot.lane.b32.xlu0 %v10480_v37, %s10241_s20 }
  0x72   : > { %7786 = vrot.lane.b32.xlu1 %v10492_v39, %s10241_s20  ;;  %7781 = vrot.lane.b32.xlu0 %v10496_v40, %s10241_s20 }
  0x76   : > { %7796 = vrot.lane.b32.xlu1 %v10361_v12, %s10242_s21  ;;  %7791 = vrot.lane.b32.xlu0 %v7790_v42, %s10241_s20  ;;  %v10644_v12 = vpack.i.bf16 %v359_v55, %v937_v60  ;;  %v941_v60 = vcombine.low %v363_v44, %v363_v44 }
  0x7a   : > { %7806 = vrot.lane.b32.xlu1 %v10359_v11, %s10242_s21  ;;  %7801 = vrot.lane.b32.xlu0 %v10377_v15, %s10242_s21 }
  0x7e   : > { %7816 = vrot.lane.b32.xlu1 %v10403_v21, %s10242_s21  ;;  %7811 = vrot.lane.b32.xlu0 %v10373_v14, %s10242_s21 }
  0x82   : > { %7826 = vrot.lane.b32.xlu1 %v10423_v25, %s10242_s21  ;;  %7821 = vrot.lane.b32.xlu0 %v10399_v20, %s10242_s21 }
  0x86   : > { %7836 = vrot.lane.b32.xlu1 %v7835_v45, %s10242_s21  ;;  %7831 = vrot.lane.b32.xlu0 %v10419_v24, %s10242_s21 }
  0x88   : > { %v10591_v46 = vpop.permute.xlu1 %7561  ;;  %v10593_v47 = vpop.permute.xlu0 %7551 }
  0x89   : > { %19649 = vst [vmem:[#allocation12_spill] sm:$0xff] %v10591_v46  ;;  %19650 = vst [vmem:[#allocation13_spill] sm:$0xff] %v10593_v47  ;;  %v1014_v46 = vcombine.high %v10617_v54, %v10617_v54 }
  0x8a   : > { %7846 = vrot.lane.b32.xlu1 %v10429_v27, %s10243_s22  ;;  %7841 = vrot.lane.b32.xlu0 %v10436_v28, %s10243_s22  ;;  %v939_v28 = vcombine.low %v361_v62, %v361_v62 }
  0x8c   : > { %v10599_v48 = vpop.permute.xlu1 %7566  ;;  %v10601_v49 = vpop.permute.xlu0 %7556  ;;  %v10658_v59 = vpack.i.bf16 %v361_v62, %v939_v28 }
  0x8d   : > { %19651 = vst [vmem:[#allocation14_spill] sm:$0xff] %v10599_v48  ;;  %19652 = vst [vmem:[#allocation15_spill] sm:$0xff] %v10601_v49  ;;  %v1015_v48 = vcombine.high %v361_v62, %v361_v62 }
  0x8e   : > { %7856 = vrot.lane.b32.xlu1 %v10456_v32, %s10243_s22  ;;  %7851 = vrot.lane.b32.xlu0 %v10460_v33, %s10243_s22 }
  0x90   : > { %v10608_v51 = vpop.permute.xlu1 %7576  ;;  %v10610_v52 = vpop.permute.xlu0 %7571 }
  0x91   : > { %19653 = vst [vmem:[#allocation16_spill] sm:$0xff] %v10608_v51  ;;  %19654 = vst [vmem:[#allocation17_spill] sm:$0xff] %v10610_v52 }
  0x92   : > { %7866 = vrot.lane.b32.xlu1 %v10476_v36, %s10243_s22  ;;  %7861 = vrot.lane.b32.xlu0 %v10480_v37, %s10243_s22 }
  0x94   : > { %v10620_v56 = vpop.permute.xlu1 %7586  ;;  %v10622_v57 = vpop.permute.xlu0 %7581 }
  0x95   : > { %19655 = vst [vmem:[#allocation18_spill] sm:$0xff] %v10620_v56  ;;  %19656 = vst [vmem:[#allocation19_spill] sm:$0xff] %v10622_v57 }
  0x96   : > { %7876 = vrot.lane.b32.xlu1 %v10492_v39, %s10243_s22  ;;  %7871 = vrot.lane.b32.xlu0 %v10496_v40, %s10243_s22 }
  0x98   : > { %v10634_v63 = vpop.permute.xlu1 %7596  ;;  %v10636_v0 = vpop.permute.xlu0 %7591 }
  0x99   : > { %19657 = vst [vmem:[#allocation20_spill] sm:$0xff] %v10634_v63  ;;  %19658 = vst [vmem:[#allocation21_spill] sm:$0xff] %v10636_v0  ;;  %v366_v0 = vld [vmem:[%s10327_s14 + $0x44] sm:$0xf]  ;;  %v365_v63 = vld [vmem:[%s10327_s14 + $0x3c] sm:$0xff] }
  0x9a   : > { %7886 = vrot.lane.b32.xlu1 %v10628_v58, %s10244_s23  ;;  %7881 = vrot.lane.b32.xlu0 %v7790_v42, %s10243_s22  ;;  %v10656_v42 = vpack.i.bf16 %v362_v61, %v940_v2  ;;  %v10674_v2 = vpack.i.bf16 %v363_v44, %v941_v60  ;;  %v943_v28 = vcombine.low %v365_v63, %v365_v63 }
  0x9c   : > { %v10648_v45 = vpop.permute.xlu1 %7606  ;;  %v10650_v53 = vpop.permute.xlu0 %7601  ;;  %v10686_v23 = vpack.i.bf16 %v365_v63, %v943_v28 }
  0x9d   : > { %19659 = vst [vmem:[#allocation22_spill] sm:$0xff] %v10648_v45  ;;  %19660 = vst [vmem:[#allocation23_spill] sm:$0xff] %v10650_v53  ;;  %v10666_v45 = vcombine.low %v366_v0, %v366_v0  ;;  %v10672_v53 = vpack.i.bf16 %v364_v41, %v942_v26  ;;  %v1012_v26 = vcombine.high %v358_v50, %v358_v50 }
  0x9e   : > { %7896 = vrot.lane.b32.xlu1 %v10642_v5, %s10244_s23  ;;  %7891 = vrot.lane.b32.xlu0 %v10644_v12, %s10244_s23 }
  0xa0   : > { %v10662_v47 = vpop.permute.xlu1 %7616  ;;  %v10664_v56 = vpop.permute.xlu0 %7611 }
  0xa1   : > { %19661 = vst [vmem:[#allocation24_spill] sm:$0xff] %v10662_v47  ;;  %19662 = vst [vmem:[#allocation25_spill] sm:$0xff] %v10664_v56  ;;  %v1013_v47 = vcombine.high %v359_v55, %v359_v55  ;;  %v7925_v56 = vpack.i.bf16 %v10338_v4, %v10666_v45 }
  0xa2   : > { %7906 = vrot.lane.b32.xlu1 %v10656_v42, %s10244_s23  ;;  %7901 = vrot.lane.b32.xlu0 %v10658_v59, %s10244_s23 }
  0xa4   : > { %v10676_v57 = vpop.permute.xlu1 %7626  ;;  %v10678_v51 = vpop.permute.xlu0 %7621 }
  0xa5   : > { %19663 = vst [vmem:[#allocation26_spill] sm:$0xff] %v10676_v57  ;;  %19664 = vst [vmem:[#allocation27_spill] sm:$0xff] %v10678_v51  ;;  %v10692_v57 = vpack.i.bf16 %v1013_v47, %v359_v55  ;;  %v7930_v51 = vpack.i.bf16 %v1012_v26, %v358_v50  ;;  %v10706_v47 = vpack.i.bf16 %v1015_v48, %v361_v62 }
  0xa6   : > { %7916 = vrot.lane.b32.xlu1 %v10672_v53, %s10244_s23  ;;  %7911 = vrot.lane.b32.xlu0 %v10674_v2, %s10244_s23  ;;  %v10709_v55 = vpack.i.bf16 %v1014_v46, %v10617_v54  ;;  %v1016_v50 = vcombine.high %v362_v61, %v362_v61  ;;  %v1019_v48 = vcombine.high %v365_v63, %v365_v63 }
  0xa8   : > { %v10688_v60 = vpop.permute.xlu1 %7636  ;;  %v10690_v52 = vpop.permute.xlu0 %7631 }
  0xaa   : > { %7926 = vrot.lane.b32.xlu1 %v7925_v56, %s10244_s23  ;;  %7921 = vrot.lane.b32.xlu0 %v10686_v23, %s10244_s23 }
  0xac   : > { %v10699_v49 = vpop.permute.xlu1 %7646  ;;  %v10701_v28 = vpop.permute.xlu0 %7641 }
  0xad   : > { %19665 = vst [vmem:[#allocation28_spill] sm:$0xff] %v10699_v49  ;;  %19666 = vst [vmem:[#allocation29_spill] sm:$0xff] %v10701_v28  ;;  %v10715_v49 = vpack.i.bf16 %v1017_v38, %v363_v44  ;;  %v10721_v28 = vpack.i.bf16 %v1016_v50, %v362_v61  ;;  %v10731_v38 = vpack.i.bf16 %v1019_v48, %v365_v63 }
  0xae   : > { %7936 = vrot.lane.b32.xlu1 %v10692_v57, %s10245_s24  ;;  %7931 = vrot.lane.b32.xlu0 %v7930_v51, %s10245_s24  ;;  %v1018_v51 = vcombine.high %v364_v41, %v364_v41  ;;  %v7970_v50 = vpack.i.bf16 %v10330_v1, %v366_v0 }
  0xb0   : > { %v10711_v56 = vpop.permute.xlu1 %7656  ;;  %v10713_v26 = vpop.permute.xlu0 %7651  ;;  %v10733_v54 = vpack.i.bf16 %v1018_v51, %v364_v41 }
  0xb2   : > { %7946 = vrot.lane.b32.xlu1 %v10706_v47, %s10245_s24  ;;  %7941 = vrot.lane.b32.xlu0 %v10709_v55, %s10245_s24 }
  0xb4   : > { %v10723_v62 = vpop.permute.xlu1 %7666  ;;  %v10725_v46 = vpop.permute.xlu0 %7661 }
  0xb5   : > { %19667 = vst [vmem:[#allocation30_spill] sm:$0xff] %v10723_v62  ;;  %19668 = vst [vmem:[#allocation31_spill] sm:$0xff] %v10725_v46 }
  0xb6   : > { %7956 = vrot.lane.b32.xlu1 %v10715_v49, %s10245_s24  ;;  %7951 = vrot.lane.b32.xlu0 %v10721_v28, %s10245_s24 }
  0xb8   : > { %v10735_v44 = vpop.permute.xlu1 %7676  ;;  %v10737_v61 = vpop.permute.xlu0 %7671 }
  0xb9   : > { %19669 = vst [vmem:[#allocation32_spill] sm:$0xff] %v10737_v61 }
  0xba   : > { %7966 = vrot.lane.b32.xlu1 %v10731_v38, %s10245_s24  ;;  %7961 = vrot.lane.b32.xlu0 %v10733_v54, %s10245_s24 }
  0xbc   : > { %v10744_v62 = vpop.permute.xlu1 %7686  ;;  %v10746_v46 = vpop.permute.xlu0 %7681 }
  0xbd   : > { %19670 = vst [vmem:[#allocation33_spill] sm:$0xff] %v10744_v62  ;;  %19671 = vst [vmem:[#allocation34_spill] sm:$0xff] %v10746_v46 }
  0xbe   : > { %7976 = vrot.lane.b32.xlu1 %v10628_v58, %s10246_s25  ;;  %7971 = vrot.lane.b32.xlu0 %v7970_v50, %s10245_s24 }
  0xc0   : > { %v10751_v63 = vpop.permute.xlu1 %7696  ;;  %v10753_v41 = vpop.permute.xlu0 %7691 }
  0xc1   : > { %19672 = vst [vmem:[#allocation35_spill] sm:$0xff] %v10751_v63  ;;  %19673 = vst [vmem:[#allocation36_spill] sm:$0xff] %v10753_v41 }
  0xc2   : > { %7986 = vrot.lane.b32.xlu1 %v10642_v5, %s10246_s25  ;;  %7981 = vrot.lane.b32.xlu0 %v10644_v12, %s10246_s25 }
  0xc4   : > { %v10759_v0 = vpop.permute.xlu1 %7706  ;;  %v10761_v48 = vpop.permute.xlu0 %7701 }
  0xc5   : > { %19674 = vst [vmem:[#allocation37_spill] sm:$0xff] %v10759_v0  ;;  %19675 = vst [vmem:[#allocation38_spill] sm:$0xff] %v10761_v48 }
  0xc6   : > { %7996 = vrot.lane.b32.xlu1 %v10656_v42, %s10246_s25  ;;  %7991 = vrot.lane.b32.xlu0 %v10658_v59, %s10246_s25 }
  0xc8   : > { %v10767_v58 = vpop.permute.xlu1 %7716  ;;  %v10769_v51 = vpop.permute.xlu0 %7711 }
  0xc9   : > { %19676 = vst [vmem:[#allocation39_spill] sm:$0xff] %v10767_v58  ;;  %19677 = vst [vmem:[#allocation40_spill] sm:$0xff] %v10769_v51 }
  0xca   : > { %8006 = vrot.lane.b32.xlu1 %v10672_v53, %s10246_s25  ;;  %8001 = vrot.lane.b32.xlu0 %v10674_v2, %s10246_s25 }
  0xcc   : > { %v10775_v50 = vpop.permute.xlu1 %7726  ;;  %v10777_v0 = vpop.permute.xlu0 %7721 }
  0xcd   : > { %19678 = vst [vmem:[#allocation41_spill] sm:$0xff] %v10775_v50  ;;  %19679 = vst [vmem:[#allocation42_spill] sm:$0xff] %v10777_v0  ;;  %v10792_v50 = vld [vmem:[%s10327_s14 + $0x40] sm:$0xff] }
  0xce   : > { %1119 = vrot.lane.b32.xlu1 %v10666_v45, %s10246_s25  ;;  %8011 = vrot.lane.b32.xlu0 %v10686_v23, %s10246_s25  ;;  %v10804_v45 = vcombine.high %v10792_v50, %v10792_v50 }
  0xd0   : > { %v10783_v48 = vpop.permute.xlu1 %7736  ;;  %v10785_v58 = vpop.permute.xlu0 %7731  ;;  %19684 = vst [vmem:[#allocation47_spill] sm:$0xff] %v10804_v45 }
  0xd1   : > { %19680 = vst [vmem:[#allocation43_spill] sm:$0xff] %v10783_v48  ;;  %19681 = vst [vmem:[#allocation44_spill] sm:$0xff] %v10785_v58 }
  0xd2   : > { %8021 = vrot.lane.b32.xlu1 %v10460_v33, %s10247_s26  ;;  %8016 = vrot.lane.b32.xlu0 %v10429_v27, %s10247_s26 }
  0xd4   : > { %v10794_v0 = vpop.permute.xlu1 %7746  ;;  %v10796_v51 = vpop.permute.xlu0 %7741 }
  0xd5   : > { %19682 = vst [vmem:[#allocation45_spill] sm:$0xff] %v10794_v0  ;;  %19683 = vst [vmem:[#allocation46_spill] sm:$0xff] %v10796_v51  ;;  %v10816_v51 = vpack.i.bf16 %v10804_v45, %v10792_v50 }
  0xd6   : > { %8031 = vrot.lane.b32.xlu1 %v10480_v37, %s10247_s26  ;;  %8026 = vrot.lane.b32.xlu0 %v10456_v32, %s10247_s26 }
  0xd8   : > { %v10806_v58 = vpop.permute.xlu1 %7756  ;;  %v10808_v48 = vpop.permute.xlu0 %7751 }
  0xd9   : > { %19685 = vst [vmem:[#allocation48_spill] sm:$0xff] %v10806_v58  ;;  %19686 = vst [vmem:[#allocation49_spill] sm:$0xff] %v10808_v48  ;;  %v8055_v48 = vpack.i.bf16 %v10338_v4, %v10352_v9 }
  0xda   : > { %8041 = vrot.lane.b32.xlu1 %v10496_v40, %s10247_s26  ;;  %8036 = vrot.lane.b32.xlu0 %v10476_v36, %s10247_s26 }
  0xdc   : > { %v10818_v0 = vpop.permute.xlu1 %7766  ;;  %v10820_v41 = vpop.permute.xlu0 %7761 }
  0xdd   : > { %19687 = vst [vmem:[#allocation50_spill] sm:$0xff] %v10818_v0  ;;  %19688 = vst [vmem:[#allocation51_spill] sm:$0xff] %v10820_v41  ;;  %v8060_v41 = vpack.i.bf16 %v10381_v16, %v10342_v6 }
  0xde   : > { %8051 = vrot.lane.b32.xlu1 %v10816_v51, %s10247_s26  ;;  %8046 = vrot.lane.b32.xlu0 %v10492_v39, %s10247_s26 }
  0xe0   : > { %v10828_v58 = vpop.permute.xlu1 %7776  ;;  %v10830_v63 = vpop.permute.xlu0 %7771 }
  0xe1   : > { %19689 = vst [vmem:[#allocation52_spill] sm:$0xff] %v10828_v58  ;;  %19690 = vst [vmem:[#allocation53_spill] sm:$0xff] %v10830_v63 }
  0xe2   : > { %1223 = vrot.lane.b32.xlu1 %v10345_v7, %s10248_s27  ;;  %8056 = vrot.lane.b32.xlu0 %v8055_v48, %s10248_s27  ;;  %v8065_v7 = vpack.i.bf16 %v10407_v22, %v10365_v13  ;;  %v10856_v48 = vcombine.low %v10792_v50, %v10792_v50 }
  0xe4   : > { %v10837_v0 = vpop.permute.xlu1 %7786  ;;  %v10839_v46 = vpop.permute.xlu0 %7781 }
  0xe5   : > { %19691 = vst [vmem:[#allocation54_spill] sm:$0xff] %v10837_v0  ;;  %19692 = vst [vmem:[#allocation55_spill] sm:$0xff] %v10839_v46 }
  0xe6   : > { %8061 = vrot.lane.b32.xlu1 %v8060_v41, %s10248_s27  ;;  %1227 = vrot.lane.b32.xlu0 %v10330_v1, %s10248_s27 }
  0xe8   : > { %v10844_v9 = vpop.permute.xlu1 %7796  ;;  %v10846_v63 = vpop.permute.xlu0 %7791 }
  0xe9   : > { %19693 = vst [vmem:[#allocation56_spill] sm:$0xff] %v10844_v9  ;;  %19694 = vst [vmem:[#allocation57_spill] sm:$0xff] %v10846_v63 }
  0xea   : > { %1235 = vrot.lane.b32.xlu1 %v10355_v10, %s10248_s27  ;;  %1231 = vrot.lane.b32.xlu0 %v10334_v3, %s10248_s27  ;;  %v8070_v10 = vpack.i.bf16 %v10856_v48, %v10391_v19 }
  0xec   : > { %v10858_v41 = vpop.permute.xlu1 %7806  ;;  %v10860_v1 = vpop.permute.xlu0 %7801 }
  0xed   : > { %19695 = vst [vmem:[#allocation58_spill] sm:$0xff] %v10858_v41  ;;  %19696 = vst [vmem:[#allocation59_spill] sm:$0xff] %v10860_v1 }
  0xee   : > { %1239 = vrot.lane.b32.xlu1 %v10348_v8, %s10248_s27  ;;  %8066 = vrot.lane.b32.xlu0 %v8065_v7, %s10248_s27 }
  0xf0   : > { %v10867_v3 = vpop.permute.xlu1 %7816  ;;  %v10869_v63 = vpop.permute.xlu0 %7811 }
  0xf1   : > { %19697 = vst [vmem:[#allocation60_spill] sm:$0xff] %v10867_v3  ;;  %19698 = vst [vmem:[#allocation61_spill] sm:$0xff] %v10869_v63 }
  0xf2   : > { %8071 = vrot.lane.b32.xlu1 %v8070_v10, %s10248_s27  ;;  %1243 = vrot.lane.b32.xlu0 %v10387_v18, %s10248_s27 }
  0xf4   : > { %v10874_v0 = vpop.permute.xlu1 %7826  ;;  %v10876_v1 = vpop.permute.xlu0 %7821 }
  0xf5   : > { %19699 = vst [vmem:[#allocation62_spill] sm:$0xff] %v10874_v0  ;;  %19700 = vst [vmem:[#allocation63_spill] sm:$0xff] %v10876_v1 }
  0xf6   : > { %1251 = vrot.lane.b32.xlu1 %v10792_v50, %s10248_s27  ;;  %1247 = vrot.lane.b32.xlu0 %v10384_v17, %s10248_s27 }
  0xf8   : > { %v10882_v8 = vpop.permute.xlu1 %7836  ;;  %v10884_v7 = vpop.permute.xlu0 %7831 }
  0xf9   : > { %19701 = vst [vmem:[#allocation64_spill] sm:$0xff] %v10882_v8  ;;  %19702 = vst [vmem:[#allocation65_spill] sm:$0xff] %v10884_v7  ;;  %v370_v7 = vld [vmem:[%s10327_s14 + $0x4c] sm:$0xf] }
  0xfa   : > { %8081 = vrot.lane.b32.xlu1 %v10460_v33, %s10249_s28  ;;  %8076 = vrot.lane.b32.xlu0 %v10429_v27, %s10249_s28  ;;  %v1630_v1 = vcombine.low %v370_v7, %v370_v7 }
  0xfc   : > { %v10890_v18 = vpop.permute.xlu1 %7846  ;;  %v10892_v10 = vpop.permute.xlu0 %7841 }
  0xfd   : > { %19703 = vst [vmem:[#allocation66_spill] sm:$0xff] %v10890_v18  ;;  %19704 = vst [vmem:[#allocation67_spill] sm:$0xff] %v10892_v10 }
  0xfe   : > { %8091 = vrot.lane.b32.xlu1 %v10480_v37, %s10249_s28  ;;  %8086 = vrot.lane.b32.xlu0 %v10456_v32, %s10249_s28 }
 0x100   : > { %v10898_v17 = vpop.permute.xlu1 %7856  ;;  %v10900_v8 = vpop.permute.xlu0 %7851 }
 0x101   : > { %19705 = vst [vmem:[#allocation68_spill] sm:$0xff] %v10898_v17  ;;  %19706 = vst [vmem:[#allocation69_spill] sm:$0xff] %v10900_v8 }
 0x102   : > { %8101 = vrot.lane.b32.xlu1 %v10496_v40, %s10249_s28  ;;  %8096 = vrot.lane.b32.xlu0 %v10476_v36, %s10249_s28 }
 0x104   : > { %v10906_v27 = vpop.permute.xlu1 %7866  ;;  %v10908_v10 = vpop.permute.xlu0 %7861 }
 0x105   : > { %19707 = vst [vmem:[#allocation70_spill] sm:$0xff] %v10906_v27  ;;  %19708 = vst [vmem:[#allocation71_spill] sm:$0xff] %v10908_v10 }
 0x106   : > { %8111 = vrot.lane.b32.xlu1 %v10816_v51, %s10249_s28  ;;  %8106 = vrot.lane.b32.xlu0 %v10492_v39, %s10249_s28  ;;  %v10931_v39 = vld [vmem:[%s10327_s14 + $0x48] sm:$0xf] }
 0x108   : > { %v10914_v32 = vpop.permute.xlu1 %7876  ;;  %v10916_v8 = vpop.permute.xlu0 %7871 }
 0x109   : > { %19709 = vst [vmem:[#allocation72_spill] sm:$0xff] %v10914_v32  ;;  %19710 = vst [vmem:[#allocation73_spill] sm:$0xff] %v10916_v8 }
 0x10a   : > { %8121 = vrot.lane.b32.xlu1 %v10359_v11, %s10250_s29  ;;  %8116 = vrot.lane.b32.xlu0 %v10377_v15, %s10250_s29  ;;  %v10943_v15 = vpack.i.bf16 %v10792_v50, %v10856_v48 }
 0x10c   : > { %v10922_v36 = vpop.permute.xlu1 %7886  ;;  %v10924_v10 = vpop.permute.xlu0 %7881 }
 0x10d   : > { %19711 = vst [vmem:[#allocation74_spill] sm:$0xff] %v10922_v36  ;;  %19712 = vst [vmem:[#allocation75_spill] sm:$0xff] %v10924_v10  ;;  %v1544_v10 = vcombine.low %v10931_v39, %v10931_v39 }
 0x10e   : > { %8131 = vrot.lane.b32.xlu1 %v10403_v21, %s10250_s29  ;;  %8126 = vrot.lane.b32.xlu0 %v10373_v14, %s10250_s29 }
 0x110   : > { %v10933_v32 = vpop.permute.xlu1 %7896  ;;  %v10935_v8 = vpop.permute.xlu0 %7891 }
 0x111   : > { %19713 = vst [vmem:[#allocation76_spill] sm:$0xff] %v10933_v32  ;;  %19714 = vst [vmem:[#allocation77_spill] sm:$0xff] %v10935_v8  ;;  %v8160_v8 = vpack.i.bf16 %v10577_v43, %v1544_v10  ;;  %v369_v10 = vld [vmem:[%s10327_s14 + $0x44] sm:$0xff] }
 0x112   : > { %8141 = vrot.lane.b32.xlu1 %v10423_v25, %s10250_s29  ;;  %8136 = vrot.lane.b32.xlu0 %v10399_v20, %s10250_s29 }
 0x114   : > { %v10947_v36 = vpop.permute.xlu1 %7906  ;;  %v10949_v27 = vpop.permute.xlu0 %7901 }
 0x115   : > { %19715 = vst [vmem:[#allocation78_spill] sm:$0xff] %v10947_v36  ;;  %19716 = vst [vmem:[#allocation79_spill] sm:$0xff] %v10949_v27 }
 0x116   : > { %8151 = vrot.lane.b32.xlu1 %v10943_v15, %s10250_s29  ;;  %8146 = vrot.lane.b32.xlu0 %v10419_v24, %s10250_s29 }
 0x118   : > { %v10956_v32 = vpop.permute.xlu1 %7916  ;;  %v10958_v17 = vpop.permute.xlu0 %7911 }
 0x119   : > { %19717 = vst [vmem:[#allocation80_spill] sm:$0xff] %v10956_v32  ;;  %19718 = vst [vmem:[#allocation81_spill] sm:$0xff] %v10958_v17 }
 0x11a   : > { %8161 = vrot.lane.b32.xlu1 %v8160_v8, %s10236_s15  ;;  %8156 = vrot.lane.b32.xlu0 %v10943_v15, %s10236_s15  ;;  %v1560_v8 = vcombine.high %v369_v10, %v369_v10 }
 0x11c   : > { %v10963_v36 = vpop.permute.xlu1 %7926  ;;  %v10965_v27 = vpop.permute.xlu0 %7921 }
 0x11d   : > { %19719 = vst [vmem:[#allocation82_spill] sm:$0xff] %v10965_v27 }
 0x11e   : > { %8171 = vrot.lane.b32.xlu1 %v10709_v55, %s19034_s11  ;;  %8166 = vrot.lane.b32.xlu0 %v10692_v57, %s19034_s11 }
 0x120   : > { %v10972_v43 = vpop.permute.xlu1 %7936  ;;  %v10974_v17 = vpop.permute.xlu0 %7931 }
 0x121   : > { %19720 = vst [vmem:[#allocation83_spill] sm:$0xff] %v10972_v43  ;;  %19721 = vst [vmem:[#allocation84_spill] sm:$0xff] %v10974_v17  ;;  %v8200_v43 = vpack.i.bf16 %v1560_v8, %v369_v10 }
 0x122   : > { %8181 = vrot.lane.b32.xlu1 %v10721_v28, %s19034_s11  ;;  %8176 = vrot.lane.b32.xlu0 %v10706_v47, %s19034_s11 }
 0x124   : > { %v10980_v27 = vpop.permute.xlu1 %7946  ;;  %v10982_v32 = vpop.permute.xlu0 %7941 }
 0x125   : > { %19722 = vst [vmem:[#allocation85_spill] sm:$0xff] %v10980_v27  ;;  %19723 = vst [vmem:[#allocation86_spill] sm:$0xff] %v10982_v32 }
 0x126   : > { %8191 = vrot.lane.b32.xlu1 %v10733_v54, %s19034_s11  ;;  %8186 = vrot.lane.b32.xlu0 %v10715_v49, %s19034_s11 }
 0x128   : > { %v10988_v18 = vpop.permute.xlu1 %7956  ;;  %v10990_v17 = vpop.permute.xlu0 %7951 }
 0x129   : > { %19724 = vst [vmem:[#allocation87_spill] sm:$0xff] %v10988_v18  ;;  %19725 = vst [vmem:[#allocation88_spill] sm:$0xff] %v10990_v17 }
 0x12a   : > { %8201 = vrot.lane.b32.xlu1 %v8200_v43, %s19034_s11  ;;  %8196 = vrot.lane.b32.xlu0 %v10731_v38, %s19034_s11 }
 0x12c   : > { %v10996_v27 = vpop.permute.xlu1 %7966  ;;  %v10998_v32 = vpop.permute.xlu0 %7961 }
 0x12d   : > { %19726 = vst [vmem:[#allocation89_spill] sm:$0xff] %v10996_v27  ;;  %19727 = vst [vmem:[#allocation90_spill] sm:$0xff] %v10998_v32 }
 0x12e   : > { %8206 = vrot.lane.b32.xlu1 %v10644_v12, %s19032_s12  ;;  %1593 = vrot.lane.b32.xlu0 %v370_v7, %s19034_s11  ;;  %v1629_v12 = vcombine.low %v369_v10, %v369_v10  ;;  %s19061_s11 = smov 22  }
 0x130   : > { %v11003_v8 = vpop.permute.xlu1 %7976  ;;  %v11005_v18 = vpop.permute.xlu0 %7971 }
 0x131   : > { %19728 = vst [vmem:[#allocation91_spill] sm:$0xff] %v11003_v8  ;;  %19729 = vst [vmem:[#allocation92_spill] sm:$0xff] %v11005_v18 }
 0x132   : > { %8216 = vrot.lane.b32.xlu1 %v10658_v59, %s19032_s12  ;;  %8211 = vrot.lane.b32.xlu0 %v10642_v5, %s19032_s12  ;;  %v8240_v5 = vpack.i.bf16 %v369_v10, %v1629_v12 }
 0x134   : > { %v11011_v17 = vpop.permute.xlu1 %7986  ;;  %v11013_v27 = vpop.permute.xlu0 %7981 }
 0x135   : > { %19730 = vst [vmem:[#allocation93_spill] sm:$0xff] %v11011_v17  ;;  %19731 = vst [vmem:[#allocation94_spill] sm:$0xff] %v11013_v27  ;;  %v19785_v27 = vld [vmem:[#allocation19_spill] sm:$0xff] }
 0x136   : > { %8226 = vrot.lane.b32.xlu1 %v10674_v2, %s19032_s12  ;;  %8221 = vrot.lane.b32.xlu0 %v10656_v42, %s19032_s12  ;;  %v7583_v0 = vunpack.i.l.bf16 %v19785_v27 }
 0x138   : > { %v11019_v32 = vpop.permute.xlu1 %7996  ;;  %v11021_v8 = vpop.permute.xlu0 %7991 }
 0x139   : > { %19732 = vst [vmem:[#allocation95_spill] sm:$0xff] %v11019_v32  ;;  %19733 = vst [vmem:[#allocation96_spill] sm:$0xff] %v11021_v8  ;;  %v19784_v8 = vld [vmem:[#allocation16_spill] sm:$0xff] }
 0x13a   : > { %8236 = vrot.lane.b32.xlu1 %v10686_v23, %s19032_s12  ;;  %8231 = vrot.lane.b32.xlu0 %v10672_v53, %s19032_s12  ;;  %v7579_v46 = vunpack.i.h.bf16 %v19784_v8 }
 0x13c   : > { %v11027_v59 = vpop.permute.xlu1 %8006  ;;  %v11029_v17 = vpop.permute.xlu0 %8001 }
 0x13d   : > { %19734 = vst [vmem:[#allocation97_spill] sm:$0xff] %v11027_v59  ;;  %19735 = vst [vmem:[#allocation98_spill] sm:$0xff] %v11029_v17 }
 0x13e   : > { %1663 = vrot.lane.b32.xlu1 %v1630_v1, %s19032_s12  ;;  %8241 = vrot.lane.b32.xlu0 %v8240_v5, %s19032_s12  ;;  %s19048_s12 = smov 23   ;;  %v11112_v5 = vld [vmem:[%s10327_s14 + $0x18] sm:$0xff] }
 0x140   : > { %v11033_v42 = vpop.permute.xlu1 %1119  ;;  %v11035_v2 = vpop.permute.xlu0 %8011 }
 0x141   : > { %19736 = vst [vmem:[#allocation99_spill] sm:$0xff] %v11033_v42  ;;  %19737 = vst [vmem:[#allocation100_spill] sm:$0xff] %v11035_v2  ;;  %v8330_v42 = vpack.i.bf16 %v10440_v29, %v11112_v5  ;;  %v11124_v2 = vld [vmem:[%s10327_s14 + $0x28] sm:$0xff] }
 0x142   : > { %8251 = vrot.lane.b32.xlu1 %v10709_v55, %s10253_s13  ;;  %8246 = vrot.lane.b32.xlu0 %v10692_v57, %s10253_s13 }
 0x144   : > { %v11041_v23 = vpop.permute.xlu1 %8021  ;;  %v11043_v53 = vpop.permute.xlu0 %8016 }
 0x145   : > { %19738 = vst [vmem:[#allocation101_spill] sm:$0xff] %v11041_v23  ;;  %19739 = vst [vmem:[#allocation102_spill] sm:$0xff] %v11043_v53  ;;  %v10208_v23 = vld [vmem:[%s10327_s14 + $0x8] sm:$0xff] }
 0x146   : > { %8261 = vrot.lane.b32.xlu1 %v10721_v28, %s10253_s13  ;;  %8256 = vrot.lane.b32.xlu0 %v10706_v47, %s10253_s13 }
 0x148   : > { %v11049_v1 = vpop.permute.xlu1 %8031  ;;  %v11051_v10 = vpop.permute.xlu0 %8026 }
 0x149   : > { %19740 = vst [vmem:[#allocation103_spill] sm:$0xff] %v11049_v1  ;;  %19741 = vst [vmem:[#allocation104_spill] sm:$0xff] %v11051_v10 }
 0x14a   : > { %8271 = vrot.lane.b32.xlu1 %v10733_v54, %s10253_s13  ;;  %8266 = vrot.lane.b32.xlu0 %v10715_v49, %s10253_s13 }
 0x14c   : > { %v11057_v57 = vpop.permute.xlu1 %8041  ;;  %v11059_v55 = vpop.permute.xlu0 %8036 }
 0x14d   : > { %19742 = vst [vmem:[#allocation105_spill] sm:$0xff] %v11057_v57  ;;  %19743 = vst [vmem:[#allocation106_spill] sm:$0xff] %v11059_v55 }
 0x14e   : > { %8281 = vrot.lane.b32.xlu1 %v8200_v43, %s10253_s13  ;;  %8276 = vrot.lane.b32.xlu0 %v10731_v38, %s10253_s13  ;;  %v11080_v43 = vld [vmem:[%s10327_s14 + $0x48] sm:$0xff] }
 0x150   : > { %v11064_v28 = vpop.permute.xlu1 %8051  ;;  %v11066_v47 = vpop.permute.xlu0 %8046 }
 0x151   : > { %19744 = vst [vmem:[#allocation107_spill] sm:$0xff] %v11064_v28  ;;  %19745 = vst [vmem:[#allocation108_spill] sm:$0xff] %v11066_v47 }
 0x152   : > { %8286 = vrot.lane.b32.xlu1 %v10359_v11, %s19048_s12  ;;  %1731 = vrot.lane.b32.xlu0 %v370_v7, %s10253_s13  ;;  %v11092_v11 = vcombine.low %v11080_v43, %v11080_v43 }
 0x154   : > { %v11071_v49 = vpop.permute.xlu1 %1223  ;;  %v11073_v54 = vpop.permute.xlu0 %8056 }
 0x155   : > { %19746 = vst [vmem:[#allocation109_spill] sm:$0xff] %v11071_v49  ;;  %19747 = vst [vmem:[#allocation110_spill] sm:$0xff] %v11073_v54 }
 0x156   : > { %8296 = vrot.lane.b32.xlu1 %v10403_v21, %s19048_s12  ;;  %8291 = vrot.lane.b32.xlu0 %v10373_v14, %s19048_s12 }
 0x158   : > { %v11082_v38 = vpop.permute.xlu1 %8061  ;;  %v11084_v12 = vpop.permute.xlu0 %1227 }
 0x159   : > { %19748 = vst [vmem:[#allocation111_spill] sm:$0xff] %v11082_v38  ;;  %19749 = vst [vmem:[#allocation112_spill] sm:$0xff] %v11084_v12  ;;  %v8380_v12 = vpack.i.bf16 %v11124_v2, %v10365_v13 }
 0x15a   : > { %8306 = vrot.lane.b32.xlu1 %v10423_v25, %s19048_s12  ;;  %8301 = vrot.lane.b32.xlu0 %v10399_v20, %s19048_s12  ;;  %v8320_v25 = vpack.i.bf16 %v11080_v43, %v11092_v11 }
 0x15c   : > { %v11094_v21 = vpop.permute.xlu1 %1235  ;;  %v11096_v14 = vpop.permute.xlu0 %1231 }
 0x15d   : > { %19750 = vst [vmem:[#allocation113_spill] sm:$0xff] %v11094_v21  ;;  %19751 = vst [vmem:[#allocation114_spill] sm:$0xff] %v11096_v14 }
 0x15e   : > { %8316 = vrot.lane.b32.xlu1 %v10943_v15, %s19048_s12  ;;  %8311 = vrot.lane.b32.xlu0 %v10419_v24, %s19048_s12 }
 0x160   : > { %v11104_v7 = vpop.permute.xlu1 %1239  ;;  %v11106_v20 = vpop.permute.xlu0 %8066 }
 0x161   : > { %19752 = vst [vmem:[#allocation115_spill] sm:$0xff] %v11104_v7  ;;  %19753 = vst [vmem:[#allocation116_spill] sm:$0xff] %v11106_v20  ;;  %v11165_v20 = vld [vmem:[%s10327_s14 + $0x20] sm:$0xff] }
 0x162   : > { %8326 = vrot.lane.b32.xlu1 %v10460_v33, %s19061_s11  ;;  %8321 = vrot.lane.b32.xlu0 %v8320_v25, %s19048_s12  ;;  %v8340_v33 = vpack.i.bf16 %v10448_v31, %v11124_v2  ;;  %s19093_s12 = smov 21   ;;  %v8375_v17 = vpack.i.bf16 %v11165_v20, %v10381_v16  ;;  %v8485_v32 = vpack.i.bf16 %v11165_v20, %v10440_v29 }
 0x164   : > { %v11116_v24 = vpop.permute.xlu1 %8071  ;;  %v11118_v28 = vpop.permute.xlu0 %1243 }
 0x165   : > { %19754 = vst [vmem:[#allocation117_spill] sm:$0xff] %v11116_v24  ;;  %19755 = vst [vmem:[#allocation118_spill] sm:$0xff] %v11118_v28  ;;  %v11136_v28 = vld [vmem:[%s10327_s14 + $0x38] sm:$0xff]  ;;  %v11142_v24 = vcombine.high %v11080_v43, %v11080_v43 }
 0x166   : > { %8336 = vrot.lane.b32.xlu1 %v10480_v37, %s19061_s11  ;;  %8331 = vrot.lane.b32.xlu0 %v8330_v42, %s19061_s11  ;;  %v8350_v37 = vpack.i.bf16 %v10468_v35, %v11136_v28 }
 0x167   : > { %v8360_v21 = vpack.i.bf16 %v11142_v24, %v11080_v43 }
 0x168   : > { %v11128_v47 = vpop.permute.xlu1 %1251  ;;  %v11130_v7 = vpop.permute.xlu0 %1247 }
 0x169   : > { %19756 = vst [vmem:[#allocation119_spill] sm:$0xff] %v11128_v47  ;;  %19757 = vst [vmem:[#allocation120_spill] sm:$0xff] %v11130_v7 }
 0x16a   : > { %8346 = vrot.lane.b32.xlu1 %v10496_v40, %s19061_s11  ;;  %8341 = vrot.lane.b32.xlu0 %v8340_v33, %s19061_s11  ;;  %v11152_v40 = vld [vmem:[%s10327_s14 + $0x10] sm:$0xff] }
 0x16b   : > { %v8365_v7 = vpack.i.bf16 %v11152_v40, %v10338_v4  ;;  %v8370_v4 = vpack.i.bf16 %v11112_v5, %v10342_v6 }
 0x16c   : > { %v11144_v57 = vpop.permute.xlu1 %8081  ;;  %v11146_v47 = vpop.permute.xlu0 %8076 }
 0x16d   : > { %19758 = vst [vmem:[#allocation121_spill] sm:$0xff] %v11144_v57  ;;  %19759 = vst [vmem:[#allocation122_spill] sm:$0xff] %v11146_v47  ;;  %v19778_v47 = vld [vmem:[#allocation14_spill] sm:$0xff] }
 0x16e   : > { %8356 = vrot.lane.b32.xlu1 %v10816_v51, %s19061_s11  ;;  %8351 = vrot.lane.b32.xlu0 %v8350_v37, %s19061_s11 }
 0x170   : > { %v11158_v55 = vpop.permute.xlu1 %8091  ;;  %v11160_v14 = vpop.permute.xlu0 %8086 }
 0x171   : > { %19760 = vst [vmem:[#allocation123_spill] sm:$0xff] %v11158_v55  ;;  %19761 = vst [vmem:[#allocation124_spill] sm:$0xff] %v11160_v14  ;;  %v11178_v55 = vld [vmem:[%s10327_s14 + $0x30] sm:$0xff] }
 0x172   : > { %8366 = vrot.lane.b32.xlu1 %v8365_v7, %s19093_s12  ;;  %8361 = vrot.lane.b32.xlu0 %v8360_v21, %s19061_s11  ;;  %v8385_v7 = vpack.i.bf16 %v11178_v55, %v10407_v22  ;;  %s10257_s11 = smov 5  }
 0x174   : > { %v11171_v59 = vpop.permute.xlu1 %8101  ;;  %v11173_v1 = vpop.permute.xlu0 %8096 }
 0x175   : > { %19762 = vst [vmem:[#allocation125_spill] sm:$0xff] %v11171_v59  ;;  %19763 = vst [vmem:[#allocation126_spill] sm:$0xff] %v11173_v1 }
 0x176   : > { %8376 = vrot.lane.b32.xlu1 %v8375_v17, %s19093_s12  ;;  %8371 = vrot.lane.b32.xlu0 %v8370_v4, %s19093_s12  ;;  %v8390_v17 = vpack.i.bf16 %v11136_v28, %v10391_v19 }
 0x178   : > { %v11184_v14 = vpop.permute.xlu1 %8111  ;;  %v11186_v10 = vpop.permute.xlu0 %8106 }
 0x179   : > { %19764 = vst [vmem:[#allocation127_spill] sm:$0xff] %v11184_v14  ;;  %19765 = vst [vmem:[#allocation128_spill] sm:$0xff] %v11186_v10  ;;  %v8405_v14 = vpack.i.bf16 %v10444_v30, %v11152_v40 }
 0x17a   : > { %8386 = vrot.lane.b32.xlu1 %v8385_v7, %s19093_s12  ;;  %8381 = vrot.lane.b32.xlu0 %v8380_v12, %s19093_s12  ;;  %v8415_v12 = vpack.i.bf16 %v10464_v34, %v11165_v20 }
 0x17c   : > { %v11192_v4 = vpop.permute.xlu1 %8121  ;;  %v11194_v59 = vpop.permute.xlu0 %8116 }
 0x17d   : > { %19766 = vst [vmem:[#allocation129_spill] sm:$0xff] %v11192_v4  ;;  %19767 = vst [vmem:[#allocation130_spill] sm:$0xff] %v11194_v59 }
 0x17e   : > { %8396 = vrot.lane.b32.xlu1 %v10943_v15, %s19093_s12  ;;  %8391 = vrot.lane.b32.xlu0 %v8390_v17, %s19093_s12  ;;  %v19772_v17 = vld [vmem:[#allocation10_spill] sm:$0xff] }
 0x180   : > { %v11201_v10 = vpop.permute.xlu1 %8131  ;;  %v11203_v7 = vpop.permute.xlu0 %8126 }
 0x181   : > { %19768 = vst [vmem:[#allocation131_spill] sm:$0xff] %v11201_v10  ;;  %19769 = vst [vmem:[#allocation132_spill] sm:$0xff] %v11203_v7  ;;  %v8425_v10 = vpack.i.bf16 %v19772_v17, %v11178_v55 }
 0x182   : > { %8406 = vrot.lane.b32.xlu1 %v8405_v14, %s10257_s11  ;;  %8401 = vrot.lane.b32.xlu0 %v8320_v25, %s19093_s12  ;;  %s19228_s12 = smov 95  }
 0x184   : > { %v11209_v1 = vpop.permute.xlu1 %8141  ;;  %v11211_v15 = vpop.permute.xlu0 %8136 }
 0x185   : > { %19770 = vst [vmem:[#allocation133_spill] sm:$0xff] %v11209_v1  ;;  %19771 = vst [vmem:[#allocation134_spill] sm:$0xff] %v11211_v15  ;;  %v19777_v15 = vld [vmem:[#allocation12_spill] sm:$0xff] }
 0x186   : > { %8416 = vrot.lane.b32.xlu1 %v8415_v12, %s10257_s11  ;;  %8411 = vrot.lane.b32.xlu0 %v8330_v42, %s10257_s11  ;;  %v8445_v42 = vpack.i.bf16 %v10342_v6, %v11152_v40  ;;  %v8465_v6 = vpack.i.bf16 %v10391_v19, %v11178_v55  ;;  %v8470_v19 = vpack.i.bf16 %v10856_v48, %v11136_v28  ;;  %v7564_v4 = vunpack.i.h.bf16 %v19777_v15 }
 0x187   : > { %v7563_v1 = vunpack.i.l.bf16 %v19777_v15  ;;  %v8480_v48 = vpack.i.bf16 %v11112_v5, %v10444_v30 }
 0x188   : > { %v11217_v7 = vpop.permute.xlu1 %8151  ;;  %v11219_v59 = vpop.permute.xlu0 %8146 }
 0x189   : > { %19773 = vst [vmem:[#allocation135_spill] sm:$0xff] %v11217_v7  ;;  %19774 = vst [vmem:[#allocation136_spill] sm:$0xff] %v11219_v59  ;;  %v19776_v59 = vld [vmem:[#allocation15_spill] sm:$0xff] }
 0x18a   : > { %8426 = vrot.lane.b32.xlu1 %v8425_v10, %s10257_s11  ;;  %8421 = vrot.lane.b32.xlu0 %v8340_v33, %s10257_s11  ;;  %v8455_v10 = vpack.i.bf16 %v10365_v13, %v11165_v20  ;;  %v8450_v33 = vpack.i.bf16 %v10381_v16, %v11112_v5  ;;  %v7559_v16 = vunpack.i.h.bf16 %v19776_v59  ;;  %v19779_v57 = vunpack.i.l.bf16 %v19776_v59 }
 0x18c   : > { %v11223_v14 = vpop.permute.xlu1 %8161  ;;  %v11225_v25 = vpop.permute.xlu0 %8156  ;;  %v440_v38 = vsel %vm19201_vm0, %v7559_v16, %v7563_v1 }
 0x18d   : > { %19775 = vst [vmem:[#allocation137_spill] sm:$0xff] %v11223_v14 }
 0x18e   : > { %8436 = vrot.lane.b32.xlu1 %v10816_v51, %s10257_s11  ;;  %8431 = vrot.lane.b32.xlu0 %v8350_v37, %s10257_s11 }
 0x190   : > { %v11232_v12 = vpop.permute.xlu1 %8171  ;;  %v11234_v7 = vpop.permute.xlu0 %8166 }
 0x192   : > { %8446 = vrot.lane.b32.xlu1 %v8445_v42, %s10244_s23  ;;  %8441 = vrot.lane.b32.xlu0 %v8360_v21, %s10257_s11  ;;  %v8460_v21 = vpack.i.bf16 %v10407_v22, %v11124_v2 }
 0x194   : > { %v11242_v51 = vpop.permute.xlu1 %8181  ;;  %v11244_v37 = vpop.permute.xlu0 %8176 }
 0x196   : > { %8456 = vrot.lane.b32.xlu1 %v8455_v10, %s10244_s23  ;;  %8451 = vrot.lane.b32.xlu0 %v8450_v33, %s10244_s23  ;;  %v8475_v10 = vpack.i.bf16 %v11092_v11, %v10792_v50  ;;  %v439_v11 = vsel %vm19201_vm0, %v19779_v57, %v7559_v16  ;;  %v8490_v16 = vpack.i.bf16 %v11124_v2, %v10464_v34 }
 0x197   : > { %v11288_v57 = vsel %vm1413_vm1, %v10208_v23, %v439_v11  ;;  %v7578_v23 = vunpack.i.l.bf16 %v19784_v8  ;;  %v8495_v8 = vpack.i.bf16 %v11178_v55, %v10448_v31 }
 0x198   : > { %v11252_v42 = vpop.permute.xlu1 %8191  ;;  %v11254_v13 = vpop.permute.xlu0 %8186  ;;  %19780 = vst [vmem:[#allocation15_spill] sm:$0xff] %v11288_v57 }
 0x199   : > { %v447_v62 = vsel %vm19201_vm0, %v7578_v23, %v7579_v46 }
 0x19a   : > { %8466 = vrot.lane.b32.xlu1 %v8465_v6, %s10244_s23  ;;  %8461 = vrot.lane.b32.xlu0 %v8460_v21, %s10244_s23  ;;  %v7569_v6 = vunpack.i.h.bf16 %v19778_v47  ;;  %v7568_v21 = vunpack.i.l.bf16 %v19778_v47  ;;  %v441_v47 = vsel %vm19201_vm0, %v7563_v1, %v7564_v4  ;;  %v19782_v1 = vld [vmem:[#allocation3_spill] sm:$0xff] }
 0x19b   : > { %v11300_v54 = vsel %vm1413_vm1, %v19782_v1, %v440_v38  ;;  %v11312_v41 = vsel %vm1413_vm1, %v11152_v40, %v441_v47  ;;  %v7584_v38 = vunpack.i.h.bf16 %v19785_v27  ;;  %v8500_v40 = vpack.i.bf16 %v11136_v28, %v19772_v17 }
 0x19c   : > { %v11264_v22 = vpop.permute.xlu1 %8201  ;;  %v11266_v33 = vpop.permute.xlu0 %8196  ;;  %v443_v53 = vsel %vm19201_vm0, %v7568_v21, %v7569_v6  ;;  %19783 = vst [vmem:[#allocation12_spill] sm:$0xff] %v11300_v54  ;;  %19786 = vst [vmem:[#allocation14_spill] sm:$0xff] %v11312_v41  ;;  %v8158_v1 = vunpack.i.l.bf16 %v11225_v25 }
 0x19d   : > { %v449_v61 = vsel %vm19201_vm0, %v7583_v0, %v7584_v38 }
 0x19e   : > { %8476 = vrot.lane.b32.xlu1 %v8475_v10, %s10244_s23  ;;  %8471 = vrot.lane.b32.xlu0 %v8470_v19, %s10244_s23  ;;  %v19781_v10 = vld [vmem:[#allocation17_spill] sm:$0xff] }
 0x19f   : > { %v7573_v19 = vunpack.i.l.bf16 %v19781_v10  ;;  %v7574_v11 = vunpack.i.h.bf16 %v19781_v10  ;;  %v11320_v10 = vsel %vm1413_vm1, %v11112_v5, %v443_v53  ;;  %v448_v5 = vsel %vm19201_vm0, %v7579_v46, %v7583_v0 }
 0x1a0   : > { %v11280_v49 = vpop.permute.xlu1 %8206  ;;  %v11282_v15 = vpop.permute.xlu0 %1593  ;;  %19787 = vst [vmem:[#allocation17_spill] sm:$0xff] %v11320_v10  ;;  %v8505_v46 = vpack.i.bf16 %v10792_v50, %v10468_v35  ;;  %v11361_v0 = vsel %vm1413_vm1, %v10448_v31, %v448_v5 }
 0x1a1   : > { %v446_v27 = vsel %vm19201_vm0, %v7574_v11, %v7578_v23  ;;  %19792 = vst [vmem:[#allocation138_spill] sm:$0xff] %v11361_v0 }
 0x1a2   : > { %8481 = vrot.lane.b32.xlu1 %v8480_v48, %s10245_s24  ;;  %2060 = vrot.lane.b32.xlu0 %v11080_v43, %s10244_s23  ;;  %v442_v48 = vsel %vm19201_vm0, %v7564_v4, %v7568_v21  ;;  %v444_v4 = vsel %vm19201_vm0, %v7569_v6, %v7573_v19  ;;  %v19788_v21 = vld [vmem:[#allocation18_spill] sm:$0xff]  ;;  %v445_v6 = vsel %vm19201_vm0, %v7573_v19, %v7574_v11 }
 0x1a3   : > { %v11331_v47 = vunpack.i.h.bf16 %v19788_v21  ;;  %v7588_v53 = vunpack.i.l.bf16 %v19788_v21  ;;  %v11347_v21 = vsel %vm1413_vm1, %v10440_v29, %v444_v4  ;;  %v11351_v19 = vsel %vm1413_vm1, %v10444_v30, %v442_v48 }
 0x1a4   : > { %v11306_v3 = vpop.permute.xlu1 %8216  ;;  %v11308_v63 = vpop.permute.xlu0 %8211  ;;  %19790 = vst [vmem:[#allocation19_spill] sm:$0xff] %v11347_v21  ;;  %19791 = vst [vmem:[#allocation18_spill] sm:$0xff] %v11351_v19  ;;  %v11368_v48 = vsel %vm1413_vm1, %v11165_v20, %v445_v6  ;;  %v11372_v4 = vsel %vm1413_vm1, %v10464_v34, %v446_v27  ;;  %v8525_v20 = vpack.i.bf16 %v11347_v21, %v11320_v10  ;;  %v8188_v34 = vunpack.i.l.bf16 %v11254_v13 }
 0x1a5   : > { %19789 = vst [vmem:[#allocation16_spill] sm:$0xff] %v11331_v47  ;;  %v451_v23 = vsel %vm19201_vm0, %v7588_v53, %v11331_v47  ;;  %v450_v11 = vsel %vm19201_vm0, %v7584_v38, %v7588_v53  ;;  %19793 = vst [vmem:[#allocation139_spill] sm:$0xff] %v11368_v48  ;;  %v11384_v38 = vsel %vm1413_vm1, %v11124_v2, %v447_v62  ;;  %v8219_v30 = vunpack.i.h.bf16 %v11306_v3 }
 0x1a6   : > { %8491 = vrot.lane.b32.xlu1 %v8490_v16, %s10245_s24  ;;  %8486 = vrot.lane.b32.xlu0 %v8485_v32, %s10245_s24  ;;  %v8163_v16 = vunpack.i.l.bf16 %v11223_v14  ;;  %v8159_v32 = vunpack.i.h.bf16 %v11225_v25  ;;  %v8510_v25 = vpack.i.bf16 %v11080_v43, %v10804_v45  ;;  %19794 = vst [vmem:[#allocation140_spill] sm:$0xff] %v11372_v4  ;;  %19795 = vst [vmem:[#allocation141_spill] sm:$0xff] %v11384_v38 }
 0x1a7   : > { %v8520_v27 = vpack.i.bf16 %v11351_v19, %v11312_v41  ;;  %v8530_v62 = vpack.i.bf16 %v11372_v4, %v11368_v48  ;;  %v11402_v2 = vsel %vm1413_vm1, %v19772_v17, %v450_v11  ;;  %v11406_v6 = vsel %vm1413_vm1, %v11136_v28, %v451_v23  ;;  %v19892_v41 = vld [vmem:[#allocation61_spill] sm:$0xff] }
 0x1a8   : > { %v11339_v9 = vpop.permute.xlu1 %8226  ;;  %v11341_v58 = vpop.permute.xlu0 %8221  ;;  %v1553_v43 = vsel %vm19201_vm0, %v8159_v32, %v8163_v16  ;;  %19797 = vst [vmem:[#allocation143_spill] sm:$0xff] %v11402_v2  ;;  %19798 = vst [vmem:[#allocation144_spill] sm:$0xff] %v11406_v6  ;;  %v8169_v11 = vunpack.i.h.bf16 %v11234_v7  ;;  %v8168_v28 = vunpack.i.l.bf16 %v11234_v7  ;;  %v8184_v23 = vunpack.i.h.bf16 %v11242_v51 }
 0x1a9   : > { %v8183_v17 = vunpack.i.l.bf16 %v11242_v51  ;;  %v8178_v7 = vunpack.i.l.bf16 %v11244_v37  ;;  %v8223_v21 = vunpack.i.l.bf16 %v11341_v58 }
 0x1aa   : > { %8501 = vrot.lane.b32.xlu1 %v8500_v40, %s10245_s24  ;;  %8496 = vrot.lane.b32.xlu0 %v8495_v8, %s10245_s24  ;;  %v1551_v40 = vsel %vm19201_vm0, %v11331_v47, %v8158_v1  ;;  %v1552_v8 = vsel %vm19201_vm0, %v8158_v1, %v8159_v32  ;;  %v11394_v1 = vsel %vm1413_vm1, %v11178_v55, %v449_v61  ;;  %v8174_v32 = vunpack.i.h.bf16 %v11232_v12 }
 0x1ab   : > { %19796 = vst [vmem:[#allocation142_spill] sm:$0xff] %v11394_v1  ;;  %v11411_v61 = vsel %vm1413_vm1, %v10468_v35, %v1551_v40  ;;  %v11415_v55 = vsel %vm1413_vm1, %v10792_v50, %v1552_v8  ;;  %v8179_v50 = vunpack.i.h.bf16 %v11244_v37  ;;  %v8209_v8 = vunpack.i.h.bf16 %v11280_v49 }
 0x1ac   : > { %v11378_v5 = vpop.permute.xlu1 %8236  ;;  %v11380_v14 = vpop.permute.xlu0 %8231  ;;  %v8540_v51 = vpack.i.bf16 %v11402_v2, %v11394_v1  ;;  %v8545_v37 = vpack.i.bf16 %v11411_v61, %v11406_v6  ;;  %v1602_v35 = vsel %vm19131_vm2, %v8183_v17, %v8184_v23  ;;  %v1599_v47 = vsel %vm19131_vm2, %v8174_v32, %v8178_v7 }
 0x1ad   : > { %v1601_v61 = vsel %vm19131_vm2, %v8179_v50, %v8183_v17  ;;  %v8199_v1 = vunpack.i.h.bf16 %v11266_v33 }
 0x1ae   : > { %8511 = vrot.lane.b32.xlu1 %v8510_v25, %s10245_s24  ;;  %8506 = vrot.lane.b32.xlu0 %v8505_v46, %s10245_s24  ;;  %v11419_v25 = vsel %vm1413_vm1, %v10804_v45, %v1553_v43  ;;  %v8173_v46 = vunpack.i.l.bf16 %v11232_v12  ;;  %v8208_v43 = vunpack.i.l.bf16 %v11280_v49  ;;  %v11435_v12 = vsel %vm1413_vm1, %v10931_v39, %v8163_v16 }
 0x1af   : > { %v19799_v45 = vpack.i.bf16 %v11300_v54, %v11288_v57  ;;  %v8194_v49 = vunpack.i.h.bf16 %v11252_v42  ;;  %v8193_v39 = vunpack.i.l.bf16 %v11252_v42  ;;  %v8189_v16 = vunpack.i.h.bf16 %v11254_v13 }
 0x1b0   : > { %v11425_v53 = vpop.permute.xlu1 %1663  ;;  %v11427_v40 = vpop.permute.xlu0 %8241  ;;  %v11452_v31 = vsel %vm19131_vm2, %v8173_v46, %v8174_v32  ;;  %v1596_v42 = vsel %vm19131_vm2, %v8168_v28, %v8169_v11  ;;  %v1666_v6 = vsel %vm19152_vm3, %v8208_v43, %v8209_v8  ;;  %v8203_v13 = vunpack.i.l.bf16 %v11264_v22 }
 0x1b1   : > { %v11474_v28 = vsel %vm19131_vm2, %v8193_v39, %v8194_v49  ;;  %v1605_v17 = vsel %vm19131_vm2, %v8189_v16, %v8193_v39  ;;  %v8198_v43 = vunpack.i.l.bf16 %v11266_v33  ;;  %v1603_v32 = vsel %vm19131_vm2, %v8184_v23, %v8188_v34 }
 0x1b2   : > { %8516 = vrot.lane.b32.xlu1 %v19799_v45, %s19228_s12  ;;  %2124 = vrot.lane.b32.xlu0 %v11142_v24, %s10245_s24  ;;  %v1597_v45 = vsel %vm19131_vm2, %v8169_v11, %v8173_v46  ;;  %v8204_v46 = vunpack.i.h.bf16 %v11264_v22  ;;  %v1600_v11 = vsel %vm19131_vm2, %v8178_v7, %v8179_v50  ;;  %v8213_v22 = vunpack.i.l.bf16 %v11308_v63 }
 0x1b3   : > { %v8218_v50 = vunpack.i.l.bf16 %v11306_v3  ;;  %v8214_v7 = vunpack.i.h.bf16 %v11308_v63  ;;  %v8228_v39 = vunpack.i.l.bf16 %v11339_v9  ;;  %v8224_v33 = vunpack.i.h.bf16 %v11341_v58 }
 0x1b4   : > { %v11456_v24 = vpop.permute.xlu1 %8251  ;;  %v11458_v29 = vpop.permute.xlu0 %8246  ;;  %v1604_v23 = vsel %vm19131_vm2, %v8188_v34, %v8189_v16  ;;  %v11492_v48 = vsel %vm19131_vm2, %v8203_v13, %v8204_v46  ;;  %v11495_v4 = vsel %vm19131_vm2, %v8199_v1, %v8203_v13  ;;  %v19800_v3 = vpack.i.bf16 %v11361_v0, %v11384_v38 }
 0x1b5   : > { %v1607_v63 = vsel %vm19131_vm2, %v8194_v49, %v8198_v43  ;;  %v1611_v34 = vsel %vm19131_vm2, %v8204_v46, %v11282_v15  ;;  %v8229_v16 = vunpack.i.h.bf16 %v11339_v9  ;;  %v8234_v58 = vunpack.i.h.bf16 %v11380_v14 }
 0x1b6   : > { %8526 = vrot.lane.b32.xlu1 %v8525_v20, %s19228_s12  ;;  %8521 = vrot.lane.b32.xlu0 %v8520_v27, %s19228_s12  ;;  %v2145_v27 = vsel %vm1413_vm1, %v1596_v42, %v1666_v6  ;;  %v1608_v6 = vsel %vm19131_vm2, %v8198_v43, %v8199_v1  ;;  %v1667_v42 = vsel %vm19152_vm3, %v8209_v8, %v8213_v22  ;;  %v8233_v13 = vunpack.i.l.bf16 %v11380_v14 }
 0x1b7   : > { %v1670_v49 = vsel %vm19152_vm3, %v8218_v50, %v8219_v30  ;;  %v1669_v1 = vsel %vm19152_vm3, %v8214_v7, %v8218_v50  ;;  %v1668_v46 = vsel %vm19152_vm3, %v8213_v22, %v8214_v7  ;;  %v1673_v9 = vsel %vm19152_vm3, %v8224_v33, %v8228_v39 }
 0x1b8   : > { %v11481_v2 = vpop.permute.xlu1 %8261  ;;  %v11483_v20 = vpop.permute.xlu0 %8256  ;;  %v1671_v8 = vsel %vm19152_vm3, %v8219_v30, %v8223_v21  ;;  %v1672_v43 = vsel %vm19152_vm3, %v8223_v21, %v8224_v33  ;;  %v8239_v14 = vunpack.i.h.bf16 %v11378_v5  ;;  %v8238_v38 = vunpack.i.l.bf16 %v11378_v5 }
 0x1b9   : > { %v8243_v22 = vunpack.i.l.bf16 %v11427_v40  ;;  %v2146_v50 = vsel %vm1413_vm1, %v1597_v45, %v1667_v42  ;;  %v1675_v30 = vsel %vm19152_vm3, %v8229_v16, %v8233_v13  ;;  %v1676_v21 = vsel %vm19152_vm3, %v8233_v13, %v8234_v58 }
 0x1ba   : > { %8536 = vrot.lane.b32.xlu1 %v19800_v3, %s19228_s12  ;;  %8531 = vrot.lane.b32.xlu0 %v8530_v62, %s19228_s12  ;;  %v8555_v62 = vpack.i.bf16 %v2145_v27, %v11435_v12  ;;  %v1674_v12 = vsel %vm19152_vm3, %v8228_v39, %v8229_v16  ;;  %v8244_v27 = vunpack.i.h.bf16 %v11427_v40  ;;  %v2147_v5 = vsel %vm1413_vm1, %v11452_v31, %v1668_v46 }
 0x1bb   : > { %v2150_v39 = vsel %vm1413_vm1, %v1601_v61, %v1671_v8  ;;  %v2151_v40 = vsel %vm1413_vm1, %v1602_v35, %v1672_v43  ;;  %v2152_v45 = vsel %vm1413_vm1, %v1603_v32, %v1673_v9  ;;  %v1678_v16 = vsel %vm19152_vm3, %v8238_v38, %v8239_v14 }
 0x1bc   : > { %v11511_v10 = vpop.permute.xlu1 %8271  ;;  %v11513_v3 = vpop.permute.xlu0 %8266  ;;  %v1677_v42 = vsel %vm19152_vm3, %v8234_v58, %v8238_v38  ;;  %v19801_v13 = vpack.i.bf16 %v11419_v25, %v11415_v55  ;;  %v2153_v31 = vsel %vm1413_vm1, %v1604_v23, %v1674_v12  ;;  %v1680_v35 = vsel %vm19152_vm3, %v8243_v22, %v8244_v27 }
 0x1bd   : > { %v2154_v61 = vsel %vm1413_vm1, %v1605_v17, %v1675_v30  ;;  %v1681_v38 = vsel %vm19152_vm3, %v8244_v27, %v11425_v53  ;;  %v8560_v55 = vpack.i.bf16 %v2147_v5, %v2146_v50  ;;  %v11563_v23 = vsel %vm1413_vm1, %v11282_v15, %v11425_v53 }
 0x1be   : > { %8541 = vrot.lane.b32.xlu0 %v8540_v51, %s19228_s12  ;;  %8546 = vrot.lane.b32.xlu1 %v8545_v37, %s19228_s12  ;;  %v2148_v51 = vsel %vm1413_vm1, %v1599_v47, %v1669_v1  ;;  %v2149_v37 = vsel %vm1413_vm1, %v1600_v11, %v1670_v49  ;;  %v1679_v47 = vsel %vm19152_vm3, %v8239_v14, %v8243_v22  ;;  %v8254_v15 = vunpack.i.h.bf16 %v11456_v24 }
 0x1bf   : > { %v2155_v11 = vsel %vm1413_vm1, %v11474_v28, %v1676_v21  ;;  %v8565_v25 = vpack.i.bf16 %v2149_v37, %v2148_v51  ;;  %v8575_v49 = vpack.i.bf16 %v2153_v31, %v2152_v45  ;;  %v2156_v17 = vsel %vm1413_vm1, %v1607_v63, %v1677_v42 }
 0x1c0   : > { %v11532_v7 = vpop.permute.xlu1 %8281  ;;  %v11534_v33 = vpop.permute.xlu0 %8276  ;;  %v2157_v1 = vsel %vm1413_vm1, %v1608_v6, %v1678_v16  ;;  %v8580_v28 = vpack.i.bf16 %v2155_v11, %v2154_v61  ;;  %v2158_v46 = vsel %vm1413_vm1, %v11495_v4, %v1679_v47  ;;  %v2159_v9 = vsel %vm1413_vm1, %v11492_v48, %v1680_v35 }
 0x1c1   : > { %v8253_v53 = vunpack.i.l.bf16 %v11456_v24  ;;  %v8249_v63 = vunpack.i.h.bf16 %v11458_v29  ;;  %v2160_v6 = vsel %vm1413_vm1, %v1611_v34, %v1681_v38  ;;  %v8248_v8 = vunpack.i.l.bf16 %v11458_v29 }
 0x1c2   : > { %8551 = vrot.lane.b32.xlu0 %v19801_v13, %s19228_s12  ;;  %8556 = vrot.lane.b32.xlu1 %v8555_v62, %s19228_s12  ;;  %v8570_v62 = vpack.i.bf16 %v2151_v40, %v2150_v39  ;;  %v8264_v43 = vunpack.i.h.bf16 %v11481_v2  ;;  %v8263_v14 = vunpack.i.l.bf16 %v11481_v2  ;;  %v8259_v12 = vunpack.i.h.bf16 %v11483_v20 }
 0x1c3   : > { %v8258_v48 = vunpack.i.l.bf16 %v11483_v20  ;;  %v8585_v30 = vpack.i.bf16 %v2157_v1, %v2156_v17  ;;  %v8590_v29 = vpack.i.bf16 %v2159_v9, %v2158_v46  ;;  %v8595_v34 = vpack.i.bf16 %v11563_v23, %v2160_v6 }
 0x1c4   : > { %v8287_v32 = vpop.permute.xlu1 %8286  ;;  %v11558_v58 = vpop.permute.xlu0 %1731  ;;  %v1736_v2 = vsel %vm19179_vm4, %v8253_v53, %v8254_v15  ;;  %v1735_v5 = vsel %vm19179_vm4, %v8249_v63, %v8253_v53  ;;  %v8274_v51 = vunpack.i.h.bf16 %v11511_v10  ;;  %v8273_v20 = vunpack.i.l.bf16 %v11511_v10 }
 0x1c5   : > { %v8289_v22 = vunpack.i.h.bf16 %v8287_v32  ;;  %v8288_v50 = vunpack.i.l.bf16 %v8287_v32  ;;  %v1734_v37 = vsel %vm19179_vm4, %v8248_v8, %v8249_v63  ;;  %v1740_v39 = vsel %vm19179_vm4, %v8263_v14, %v8264_v43 }
 0x1c6   : > { %8561 = vrot.lane.b32.xlu0 %v8560_v55, %s19228_s12  ;;  %8566 = vrot.lane.b32.xlu1 %v8565_v25, %s19228_s12  ;;  %v1739_v40 = vsel %vm19179_vm4, %v8259_v12, %v8263_v14  ;;  %v1737_v13 = vsel %vm19179_vm4, %v8254_v15, %v8258_v48  ;;  %v8269_v31 = vunpack.i.h.bf16 %v11513_v3  ;;  %v1738_v55 = vsel %vm19179_vm4, %v8258_v48, %v8259_v12 }
 0x1c7   : > { %v1802_v47 = vsel %vm19176_vm5, %v8288_v50, %v8289_v22  ;;  %v1744_v25 = vsel %vm19179_vm4, %v8273_v20, %v8274_v51  ;;  %v2162_v23 = vsel %vm1413_vm1, %v1734_v37, %v8288_v50  ;;  %vm827_vm2 = vcmask 744448  }
 0x1c8   : > { %v8297_v4 = vpop.permute.xlu1 %8296  ;;  %v8292_v27 = vpop.permute.xlu0 %8291  ;;  %v1743_v15 = vsel %vm19179_vm4, %v8269_v31, %v8273_v20  ;;  %vm19283_vm3 = vcmask 736256  }
 0x1c9   : > { %v8294_v24 = vunpack.i.h.bf16 %v8292_v27  ;;  %v8293_v21 = vunpack.i.l.bf16 %v8292_v27  ;;  %v8298_v45 = vunpack.i.l.bf16 %v8297_v4  ;;  %v8299_v35 = vunpack.i.h.bf16 %v8297_v4 }
 0x1ca   : > { %8571 = vrot.lane.b32.xlu0 %v8570_v62, %s19228_s12  ;;  %8576 = vrot.lane.b32.xlu1 %v8575_v49, %s19228_s12  ;;  %v8268_v62 = vunpack.i.l.bf16 %v11513_v3  ;;  %v8278_v27 = vunpack.i.l.bf16 %v11534_v33 }
 0x1cb   : > { %v1803_v61 = vsel %vm19176_vm5, %v8289_v22, %v8293_v21  ;;  %v1804_v11 = vsel %vm19176_vm5, %v8293_v21, %v8294_v24  ;;  %v1805_v49 = vsel %vm19176_vm5, %v8294_v24, %v8298_v45  ;;  %v1806_v53 = vsel %vm19176_vm5, %v8298_v45, %v8299_v35 }
 0x1cc   : > { %v8307_v16 = vpop.permute.xlu1 %8306  ;;  %v8302_v42 = vpop.permute.xlu0 %8301  ;;  %v2164_v63 = vsel %vm1413_vm1, %v1736_v2, %v1803_v61  ;;  %v2165_v6 = vsel %vm1413_vm1, %v1737_v13, %v1804_v11  ;;  %v1741_v4 = vsel %vm19179_vm4, %v8264_v43, %v8268_v62  ;;  %v2166_v22 = vsel %vm1413_vm1, %v1738_v55, %v1805_v49 }
 0x1cd   : > { %v8304_v38 = vunpack.i.h.bf16 %v8302_v42  ;;  %v8303_v32 = vunpack.i.l.bf16 %v8302_v42  ;;  %v8309_v17 = vunpack.i.h.bf16 %v8307_v16  ;;  %v8308_v1 = vunpack.i.l.bf16 %v8307_v16 }
 0x1ce   : > { %8581 = vrot.lane.b32.xlu0 %v8580_v28, %s19228_s12  ;;  %8586 = vrot.lane.b32.xlu1 %v8585_v30, %s19228_s12  ;;  %v2163_v28 = vsel %vm1413_vm1, %v1735_v5, %v1802_v47  ;;  %v8605_v2 = vpack.i.bf16 %v2165_v6, %v2164_v63  ;;  %v8284_v13 = vunpack.i.h.bf16 %v11532_v7  ;;  %v8279_v47 = vunpack.i.h.bf16 %v11534_v33 }
 0x1cf   : > { %v1807_v3 = vsel %vm19176_vm5, %v8299_v35, %v8303_v32  ;;  %v1808_v8 = vsel %vm19176_vm5, %v8303_v32, %v8304_v38  ;;  %v8600_v48 = vpack.i.bf16 %v2163_v28, %v2162_v23  ;;  %v1810_v50 = vsel %vm19176_vm5, %v8308_v1, %v8309_v17 }
 0x1d0   : > { %v8317_v46 = vpop.permute.xlu1 %8316  ;;  %v8312_v9 = vpop.permute.xlu0 %8311  ;;  %v1809_v30 = vsel %vm19176_vm5, %v8304_v38, %v8308_v1  ;;  %v2168_v43 = vsel %vm1413_vm1, %v1740_v39, %v1807_v3  ;;  %v2169_v20 = vsel %vm1413_vm1, %v1741_v4, %v1808_v8  ;;  %v8283_v39 = vunpack.i.l.bf16 %v11532_v7 }
 0x1d1   : > { %v8314_v14 = vunpack.i.h.bf16 %v8312_v9  ;;  %v8313_v12 = vunpack.i.l.bf16 %v8312_v9  ;;  %v8319_v5 = vunpack.i.h.bf16 %v8317_v46  ;;  %v1745_v35 = vsel %vm19179_vm4, %v8274_v51, %v8278_v27 }
 0x1d2   : > { %8591 = vrot.lane.b32.xlu0 %v8590_v29, %s19228_s12  ;;  %8596 = vrot.lane.b32.xlu1 %v8595_v34, %s19228_s12  ;;  %v2167_v29 = vsel %vm1413_vm1, %v1739_v40, %v1806_v53  ;;  %v8318_v34 = vunpack.i.l.bf16 %v8317_v46  ;;  %v1742_v40 = vsel %vm19179_vm4, %v8268_v62, %v8269_v31  ;;  %v8615_v32 = vpack.i.bf16 %v2169_v20, %v2168_v43 }
 0x1d3   : > { %v1811_v37 = vsel %vm19176_vm5, %v8309_v17, %v8313_v12  ;;  %v1812_v45 = vsel %vm19176_vm5, %v8313_v12, %v8314_v14  ;;  %v8610_v38 = vpack.i.bf16 %v2167_v29, %v2166_v22  ;;  %v2170_v55 = vsel %vm1413_vm1, %v1742_v40, %v1809_v30 }
 0x1d4   : > { %v11620_v24 = vpop.permute.xlu1 %8326  ;;  %v11622_v21 = vpop.permute.xlu0 %8321  ;;  %v1814_v23 = vsel %vm19176_vm5, %v8318_v34, %v8319_v5  ;;  %v2171_v31 = vsel %vm1413_vm1, %v1743_v15, %v1810_v50  ;;  %v2172_v62 = vsel %vm1413_vm1, %v1744_v25, %v1811_v37  ;;  %v2173_v7 = vsel %vm1413_vm1, %v1745_v35, %v1812_v45 }
 0x1d5   : > { %v8324_v16 = vunpack.i.h.bf16 %v11622_v21  ;;  %v8323_v42 = vunpack.i.l.bf16 %v11622_v21  ;;  %v1813_v33 = vsel %vm19176_vm5, %v8314_v14, %v8318_v34  ;;  %v1748_v49 = vsel %vm19179_vm4, %v8283_v39, %v8284_v13 }
 0x1d6   : > { %8601 = vrot.lane.b32.xlu0 %v8600_v48, %s19228_s12  ;;  %8606 = vrot.lane.b32.xlu1 %v8605_v2, %s19228_s12  ;;  %v1747_v17 = vsel %vm19179_vm4, %v8279_v47, %v8283_v39  ;;  %v1746_v1 = vsel %vm19179_vm4, %v8278_v27, %v8279_v47  ;;  %v1749_v25 = vsel %vm19179_vm4, %v8284_v13, %v11558_v58  ;;  %v8329_v27 = vunpack.i.h.bf16 %v11620_v24 }
 0x1d7   : > { %v1815_v10 = vsel %vm19176_vm5, %v8319_v5, %v8323_v42  ;;  %v1816_v51 = vsel %vm19176_vm5, %v8323_v42, %v8324_v16  ;;  %v8620_v28 = vpack.i.bf16 %v2171_v31, %v2170_v55  ;;  %v8625_v15 = vpack.i.bf16 %v2173_v7, %v2172_v62 }
 0x1d8   : > { %v11640_v61 = vpop.permute.xlu1 %8336  ;;  %v8332_v11 = vpop.permute.xlu0 %8331  ;;  %v2174_v53 = vsel %vm1413_vm1, %v1746_v1, %v1813_v33  ;;  %v2175_v63 = vsel %vm1413_vm1, %v1747_v17, %v1814_v23  ;;  %v2176_v6 = vsel %vm1413_vm1, %v1748_v49, %v1815_v10  ;;  %v2177_v3 = vsel %vm1413_vm1, %v1749_v25, %v1816_v51 }
 0x1d9   : > { %v8630_v12 = vpack.i.bf16 %v2175_v63, %v2174_v53  ;;  %v8635_v4 = vpack.i.bf16 %v2177_v3, %v2176_v6  ;;  %v8328_v48 = vunpack.i.l.bf16 %v11620_v24  ;;  %v8339_v22 = vunpack.i.h.bf16 %v11640_v61 }
 0x1da   : > { %8611 = vrot.lane.b32.xlu0 %v8610_v38, %s19228_s12  ;;  %8616 = vrot.lane.b32.xlu1 %v8615_v32, %s19228_s12  ;;  %v8338_v50 = vunpack.i.l.bf16 %v11640_v61  ;;  %v8334_v30 = vunpack.i.h.bf16 %v8332_v11  ;;  %v8333_v21 = vunpack.i.l.bf16 %v8332_v11  ;;  %v2178_v24 = vsel %vm1413_vm1, %v11558_v58, %v8324_v16 }
 0x1db   : > { %v1868_v20 = vsel %vm19182_vm6, %v8328_v48, %v8329_v27  ;;  %vm19271_vm5 = vcmask 15360   ;;  %vm1253_vm4 = vcmask 924672  }
 0x1dc   : > { %v8347_v46 = vpop.permute.xlu1 %8346  ;;  %v8342_v9 = vpop.permute.xlu0 %8341  ;;  %v1872_v42 = vsel %vm19182_vm6, %v8338_v50, %v8339_v22  ;;  %v1871_v40 = vsel %vm19182_vm6, %v8334_v30, %v8338_v50  ;;  %v1869_v13 = vsel %vm19182_vm6, %v8329_v27, %v8333_v21  ;;  %v1870_v47 = vsel %vm19182_vm6, %v8333_v21, %v8334_v30 }
 0x1dd   : > { %v8349_v2 = vunpack.i.h.bf16 %v8347_v46  ;;  %v8348_v29 = vunpack.i.l.bf16 %v8347_v46  ;;  %v8344_v5 = vunpack.i.h.bf16 %v8342_v9  ;;  %v8343_v37 = vunpack.i.l.bf16 %v8342_v9 }
 0x1de   : > { %8621 = vrot.lane.b32.xlu0 %v8620_v28, %s19228_s12  ;;  %8626 = vrot.lane.b32.xlu1 %v8625_v15, %s19228_s12 }
 0x1df   : > { %v11686_v38 = vsel %vm19182_vm6, %v8348_v29, %v8349_v2  ;;  %v1875_v58 = vsel %vm19182_vm6, %v8344_v5, %v8348_v29  ;;  %v1873_v31 = vsel %vm19182_vm6, %v8339_v22, %v8343_v37  ;;  %v1874_v10 = vsel %vm19182_vm6, %v8343_v37, %v8344_v5 }
 0x1e0   : > { %v11663_v8 = vpop.permute.xlu1 %8356  ;;  %v11665_v14 = vpop.permute.xlu0 %8351 }
 0x1e1   : > { %v8358_v35 = vunpack.i.l.bf16 %v11663_v8  ;;  %v8354_v61 = vunpack.i.h.bf16 %v11665_v14  ;;  %v8353_v16 = vunpack.i.l.bf16 %v11665_v14  ;;  %v8359_v51 = vunpack.i.h.bf16 %v11663_v8 }
 0x1e2   : > { %8631 = vrot.lane.b32.xlu0 %v8630_v12, %s19228_s12  ;;  %8636 = vrot.lane.b32.xlu1 %v8635_v4, %s19228_s12 }
 0x1e3   : > { %v1879_v1 = vsel %vm19182_vm6, %v8354_v61, %v8358_v35  ;;  %v1877_v28 = vsel %vm19182_vm6, %v8349_v2, %v8353_v16  ;;  %v1878_v21 = vsel %vm19182_vm6, %v8353_v16, %v8354_v61 }
 0x1e4   : > { %v8367_v34 = vpop.permute.xlu1 %8366  ;;  %v11673_v43 = vpop.permute.xlu0 %8361 }
 0x1e5   : > { %v8368_v45 = vunpack.i.l.bf16 %v8367_v34  ;;  %v8369_v39 = vunpack.i.h.bf16 %v8367_v34  ;;  %v8364_v34 = vunpack.i.h.bf16 %v11673_v43 }
 0x1e7   : > { %v2179_v11 = vsel %vm1413_vm1, %v8328_v48, %v8368_v45  ;;  %v1933_v49 = vsel %vm19185_vm7, %v8368_v45, %v8369_v39 }
 0x1e8   : > { %v8377_v32 = vpop.permute.xlu1 %8376  ;;  %v8372_v55 = vpop.permute.xlu0 %8371  ;;  %v8640_v23 = vpack.i.bf16 %v2179_v11, %v2178_v24  ;;  %v2180_v27 = vsel %vm1413_vm1, %v1868_v20, %v1933_v49 }
 0x1e9   : > { %v8378_v62 = vunpack.i.l.bf16 %v8377_v32  ;;  %v8374_v7 = vunpack.i.h.bf16 %v8372_v55  ;;  %v8373_v33 = vunpack.i.l.bf16 %v8372_v55  ;;  %v8379_v17 = vunpack.i.h.bf16 %v8377_v32 }
 0x1ea   : > { %8641 = vrot.lane.b32.xlu0 %v8640_v23, %s19228_s12  ;;  %v8363_v23 = vunpack.i.l.bf16 %v11673_v43 }
 0x1eb   : > { %v1936_v25 = vsel %vm19185_vm7, %v8374_v7, %v8378_v62  ;;  %v1934_v46 = vsel %vm19185_vm7, %v8369_v39, %v8373_v33  ;;  %v1935_v9 = vsel %vm19185_vm7, %v8373_v33, %v8374_v7  ;;  %v1937_v48 = vsel %vm19185_vm7, %v8378_v62, %v8379_v17 }
 0x1ec   : > { %v8387_v15 = vpop.permute.xlu1 %8386  ;;  %v8382_v53 = vpop.permute.xlu0 %8381  ;;  %v2182_v63 = vsel %vm1413_vm1, %v1870_v47, %v1935_v9  ;;  %v2183_v6 = vsel %vm1413_vm1, %v1871_v40, %v1936_v25  ;;  %v2181_v3 = vsel %vm1413_vm1, %v1869_v13, %v1934_v46  ;;  %v2184_v61 = vsel %vm1413_vm1, %v1872_v42, %v1937_v48 }
 0x1ed   : > { %v8388_v14 = vunpack.i.l.bf16 %v8387_v15  ;;  %v8384_v12 = vunpack.i.h.bf16 %v8382_v53  ;;  %v8383_v4 = vunpack.i.l.bf16 %v8382_v53  ;;  %v8389_v22 = vunpack.i.h.bf16 %v8387_v15 }
 0x1ee   : > { %v8650_v50 = vpack.i.bf16 %v2183_v6, %v2182_v63  ;;  %v8645_v30 = vpack.i.bf16 %v2181_v3, %v2180_v27  ;;  %v1880_v46 = vsel %vm19182_vm6, %v8358_v35, %v8359_v51  ;;  %v1881_v63 = vsel %vm19182_vm6, %v8359_v51, %v8363_v23 }
 0x1ef   : > { %v1940_v2 = vsel %vm19185_vm7, %v8384_v12, %v8388_v14  ;;  %v1938_v29 = vsel %vm19185_vm7, %v8379_v17, %v8383_v4  ;;  %v1939_v5 = vsel %vm19185_vm7, %v8383_v4, %v8384_v12  ;;  %v1941_v11 = vsel %vm19185_vm7, %v8388_v14, %v8389_v22  ;;  %v19802_v12 = vld [vmem:[#allocation13_spill] sm:$0xff] }
 0x1f0   : > { %8651 = vrot.lane.b32.xlu0 %v8650_v50, %s19228_s12  ;;  %8646 = vrot.lane.b32.xlu1 %v8645_v30, %s19228_s12  ;;  %v8397_v20 = vpop.permute.xlu1 %8396  ;;  %v8392_v24 = vpop.permute.xlu0 %8391  ;;  %v2186_v37 = vsel %vm1413_vm1, %v1874_v10, %v1939_v5  ;;  %v2187_v45 = vsel %vm1413_vm1, %v1875_v58, %v1940_v2  ;;  %v2185_v40 = vsel %vm1413_vm1, %v1873_v31, %v1938_v29  ;;  %v7554_v4 = vunpack.i.h.bf16 %v19802_v12  ;;  %v10209_v5 = vld [vmem:[%s10327_s14] sm:$0xff]  ;;  %s7513_s14 = sshll.u32 %s21833_s10, 7 }
 0x1f1   : > { %v8398_v13 = vunpack.i.l.bf16 %v8397_v20  ;;  %v8394_v39 = vunpack.i.h.bf16 %v8392_v24  ;;  %v8393_v47 = vunpack.i.l.bf16 %v8392_v24  ;;  %v8399_v16 = vunpack.i.h.bf16 %v8397_v20  ;;  %v19804_v20 = vld [vmem:[#allocation20_spill] sm:$0xff] }
 0x1f2   : > { %v8660_v32 = vpack.i.bf16 %v2187_v45, %v2186_v37  ;;  %v8655_v55 = vpack.i.bf16 %v2185_v40, %v2184_v61  ;;  %v2188_v25 = vsel %vm1413_vm1, %v11686_v38, %v1941_v11  ;;  %v1882_v6 = vsel %vm19182_vm6, %v8363_v23, %v8364_v34  ;;  %v19805_v37 = vld [vmem:[#allocation21_spill] sm:$0xff] }
 0x1f3   : > { %v1944_v62 = vsel %vm19185_vm7, %v8394_v39, %v8398_v13  ;;  %v1942_v7 = vsel %vm19185_vm7, %v8389_v22, %v8393_v47  ;;  %v1943_v58 = vsel %vm19185_vm7, %v8393_v47, %v8394_v39  ;;  %v1945_v9 = vsel %vm19185_vm7, %v8398_v13, %v8399_v16 }
 0x1f4   : > { %8661 = vrot.lane.b32.xlu0 %v8660_v32, %s19228_s12  ;;  %8656 = vrot.lane.b32.xlu1 %v8655_v55, %s19228_s12  ;;  %v11725_v31 = vpop.permute.xlu1 %8406  ;;  %v8402_v42 = vpop.permute.xlu0 %8401  ;;  %v2190_v33 = vsel %vm1413_vm1, %v1878_v21, %v1943_v58  ;;  %v2191_v10 = vsel %vm1413_vm1, %v1879_v1, %v1944_v62  ;;  %v2189_v49 = vsel %vm1413_vm1, %v1877_v28, %v1942_v7  ;;  %v7553_v27 = vunpack.i.l.bf16 %v19802_v12 }
 0x1f5   : > { %v8404_v43 = vunpack.i.h.bf16 %v8402_v42  ;;  %v8403_v17 = vunpack.i.l.bf16 %v8402_v42  ;;  %v8670_v15 = vpack.i.bf16 %v2191_v10, %v2190_v33  ;;  %v8665_v53 = vpack.i.bf16 %v2189_v49, %v2188_v25 }
 0x1f6   : > { %v2192_v51 = vsel %vm1413_vm1, %v1880_v46, %v1945_v9  ;;  %v437_v21 = vsel %vm19201_vm0, %v7553_v27, %v7554_v4  ;;  %v7598_v24 = vunpack.i.l.bf16 %v19804_v20  ;;  %v7594_v45 = vunpack.i.h.bf16 %v19805_v37 }
 0x1f7   : > { %v1946_v1 = vsel %vm19185_vm7, %v8399_v16, %v8403_v17  ;;  %v1947_v28 = vsel %vm19185_vm7, %v8403_v17, %v8404_v43  ;;  %v2195_v3 = vsel %vm1413_vm1, %v8364_v34, %v8404_v43  ;;  %v11761_v34 = vsel %vm1413_vm1, %v10209_v5, %v437_v21 }
 0x1f8   : > { %8671 = vrot.lane.b32.xlu0 %v8670_v15, %s19228_s12  ;;  %8666 = vrot.lane.b32.xlu1 %v8665_v53, %s19228_s12  ;;  %v8417_v8 = vpop.permute.xlu1 %8416  ;;  %v8412_v35 = vpop.permute.xlu0 %8411  ;;  %v2194_v38 = vsel %vm1413_vm1, %v1882_v6, %v1947_v28  ;;  %v2193_v14 = vsel %vm1413_vm1, %v1881_v63, %v1946_v1  ;;  %19803 = vst [vmem:[#allocation13_spill] sm:$0xff] %v11761_v34  ;;  %v8409_v40 = vunpack.i.h.bf16 %v11725_v31  ;;  %v8408_v13 = vunpack.i.l.bf16 %v11725_v31 }
 0x1f9   : > { %v8680_v48 = vpack.i.bf16 %v2195_v3, %v2194_v38  ;;  %v8675_v22 = vpack.i.bf16 %v2193_v14, %v2192_v51  ;;  %v8419_v39 = vunpack.i.h.bf16 %v8417_v8  ;;  %v8418_v47 = vunpack.i.l.bf16 %v8417_v8 }
 0x1fa   : > { %v8414_v61 = vunpack.i.h.bf16 %v8412_v35  ;;  %v7599_v11 = vunpack.i.h.bf16 %v19804_v20  ;;  %v8413_v16 = vunpack.i.l.bf16 %v8412_v35  ;;  %v7929_v7 = vunpack.i.h.bf16 %v10963_v36 }
 0x1fb   : > { %v19806_v31 = vunpack.i.l.bf16 %v19776_v59  ;;  %v1998_v10 = vsel %vm19186_vm10, %v8408_v13, %v8409_v40  ;;  %v11786_v17 = vsel %vm19202_vm8, %v7594_v45, %v7598_v24  ;;  %v2002_v59 = vsel %vm19186_vm10, %v8418_v47, %v8419_v39 }
 0x1fc   : > { %8681 = vrot.lane.b32.xlu0 %v8680_v48, %s19228_s12  ;;  %8676 = vrot.lane.b32.xlu1 %v8675_v22, %s19228_s12  ;;  %v11750_v50 = vpop.permute.xlu1 %8426  ;;  %v11752_v30 = vpop.permute.xlu0 %8421  ;;  %v2196_v25 = vsel %vm1413_vm1, %v8408_v13, %v7929_v7  ;;  %v2001_v46 = vsel %vm19186_vm10, %v8414_v61, %v8418_v47  ;;  %v1999_v15 = vsel %vm19186_vm10, %v8409_v40, %v8413_v16  ;;  %vm19268_vm6 = vcmask 932864  }
 0x1fd   : > { %v8429_v32 = vunpack.i.h.bf16 %v11750_v50  ;;  %v8428_v55 = vunpack.i.l.bf16 %v11750_v50  ;;  %v11776_v33 = vsel %vm19201_vm0, %v7554_v4, %v19806_v31  ;;  %v8424_v49 = vunpack.i.h.bf16 %v11752_v30 }
 0x1fe   : > { %v8423_v43 = vunpack.i.l.bf16 %v11752_v30  ;;  %v2000_v53 = vsel %vm19186_vm10, %v8413_v16, %v8414_v61  ;;  %vm19254_vm7 = vcmask 916480   ;;  %vm19253_vm0 = vcmask 777216  }
 0x1ff   : > { %v2006_v63 = vsel %vm19186_vm10, %v8428_v55, %v8429_v32  ;;  %v2005_v14 = vsel %vm19186_vm10, %v8424_v49, %v8428_v55 }
 0x200   : > { %v11755_v2 = vpop.permute.xlu1 %8436  ;;  %v11757_v29 = vpop.permute.xlu0 %8431  ;;  %v2003_v51 = vsel %vm19186_vm10, %v8419_v39, %v8423_v43 }
 0x201   : > { %v8433_v27 = vunpack.i.l.bf16 %v11757_v29 }
 0x204   : > { %v8447_v23 = vpop.permute.xlu1 %8446  ;;  %v11770_v62 = vpop.permute.xlu0 %8441 }
 0x205   : > { %v8449_v58 = vunpack.i.h.bf16 %v8447_v23  ;;  %v8448_v42 = vunpack.i.l.bf16 %v8447_v23 }
 0x207   : > { %v2062_v9 = vsel %vm19282_vm9, %v7929_v7, %v8448_v42  ;;  %v2063_v3 = vsel %vm19282_vm9, %v8448_v42, %v8449_v58  ;;  %v2004_v7 = vsel %vm19186_vm10, %v8423_v43, %v8424_v49 }
 0x208   : > { %v8457_v6 = vpop.permute.xlu1 %8456  ;;  %v8452_v1 = vpop.permute.xlu0 %8451  ;;  %v2197_v28 = vsel %vm1413_vm1, %v1998_v10, %v2062_v9  ;;  %v2198_v40 = vsel %vm1413_vm1, %v1999_v15, %v2063_v3 }
 0x209   : > { %v8458_v8 = vunpack.i.l.bf16 %v8457_v6  ;;  %v8454_v35 = vunpack.i.h.bf16 %v8452_v1  ;;  %v8453_v38 = vunpack.i.l.bf16 %v8452_v1  ;;  %v8459_v12 = vunpack.i.h.bf16 %v8457_v6  ;;  %v19807_v1 = vld [vmem:[#allocation22_spill] sm:$0xff] }
 0x20a   : > { %v8685_v4 = vpack.i.bf16 %v2197_v28, %v2196_v25  ;;  %v7609_v28 = vunpack.i.h.bf16 %v19807_v1  ;;  %v7608_v3 = vunpack.i.l.bf16 %v19807_v1 }
 0x20b   : > { %v2066_v48 = vsel %vm19282_vm9, %v8454_v35, %v8458_v8  ;;  %v2064_v22 = vsel %vm19282_vm9, %v8449_v58, %v8453_v38  ;;  %v2065_v30 = vsel %vm19282_vm9, %v8453_v38, %v8454_v35  ;;  %v2067_v58 = vsel %vm19282_vm9, %v8458_v8, %v8459_v12 }
 0x20c   : > { %8686 = vrot.lane.b32.xlu1 %v8685_v4, %s19228_s12  ;;  %v8467_v21 = vpop.permute.xlu1 %8466  ;;  %v8462_v5 = vpop.permute.xlu0 %8461  ;;  %v2199_v13 = vsel %vm1413_vm1, %v2000_v53, %v2064_v22  ;;  %v2200_v39 = vsel %vm1413_vm1, %v2001_v46, %v2065_v30  ;;  %v2201_v47 = vsel %vm1413_vm1, %v2002_v59, %v2066_v48  ;;  %v7593_v59 = vunpack.i.l.bf16 %v19805_v37  ;;  %v19808_v22 = vld [vmem:[#allocation23_spill] sm:$0xff] }
 0x20d   : > { %v8469_v61 = vunpack.i.h.bf16 %v8467_v21  ;;  %v8468_v16 = vunpack.i.l.bf16 %v8467_v21  ;;  %v8464_v55 = vunpack.i.h.bf16 %v8462_v5  ;;  %v8463_v23 = vunpack.i.l.bf16 %v8462_v5 }
 0x20e   : > { %v8690_v42 = vpack.i.bf16 %v2199_v13, %v2198_v40  ;;  %v8695_v31 = vpack.i.bf16 %v2201_v47, %v2200_v39  ;;  %v2007_v8 = vsel %vm19186_vm10, %v8429_v32, %v8433_v27  ;;  %v2202_v35 = vsel %vm1413_vm1, %v2003_v51, %v2067_v58 }
 0x20f   : > { %v2071_v10 = vsel %vm19282_vm9, %v8468_v16, %v8469_v61  ;;  %v2070_v25 = vsel %vm19282_vm9, %v8464_v55, %v8468_v16  ;;  %v2068_v9 = vsel %vm19282_vm9, %v8459_v12, %v8463_v23  ;;  %v2069_v46 = vsel %vm19282_vm9, %v8463_v23, %v8464_v55 }
 0x210   : > { %8691 = vrot.lane.b32.xlu0 %v8690_v42, %s19228_s12  ;;  %8696 = vrot.lane.b32.xlu1 %v8695_v31, %s19228_s12  ;;  %v8477_v15 = vpop.permute.xlu1 %8476  ;;  %v8472_v49 = vpop.permute.xlu0 %8471  ;;  %v2203_v43 = vsel %vm1413_vm1, %v2004_v7, %v2068_v9  ;;  %v2204_v53 = vsel %vm1413_vm1, %v2005_v14, %v2069_v46  ;;  %v2205_v6 = vsel %vm1413_vm1, %v2006_v63, %v2070_v25  ;;  %v7604_v30 = vunpack.i.h.bf16 %v19808_v22 }
 0x211   : > { %v8474_v38 = vunpack.i.h.bf16 %v8472_v49  ;;  %v8473_v12 = vunpack.i.l.bf16 %v8472_v49  ;;  %v8700_v4 = vpack.i.bf16 %v2203_v43, %v2202_v35  ;;  %v8705_v48 = vpack.i.bf16 %v2205_v6, %v2204_v53 }
 0x212   : > { %v8438_v14 = vunpack.i.l.bf16 %v11755_v2  ;;  %v8434_v63 = vunpack.i.h.bf16 %v11757_v29  ;;  %v2206_v21 = vsel %vm1413_vm1, %v2007_v8, %v2071_v10  ;;  %v7974_v5 = vunpack.i.h.bf16 %v11005_v18  ;;  %v19860_v18 = vld [vmem:[#allocation44_spill] sm:$0xff] }
 0x213   : > { %v8479_v50 = vunpack.i.h.bf16 %v8477_v15  ;;  %v8478_v40 = vunpack.i.l.bf16 %v8477_v15  ;;  %v8439_v13 = vunpack.i.h.bf16 %v11755_v2  ;;  %v8444_v39 = vunpack.i.h.bf16 %v11770_v62 }
 0x214   : > { %8701 = vrot.lane.b32.xlu0 %v8700_v4, %s19228_s12  ;;  %8706 = vrot.lane.b32.xlu1 %v8705_v48, %s19228_s12  ;;  %v8482_v32 = vpop.permute.xlu1 %8481  ;;  %v2061_v51 = vpop.permute.xlu0 %2060  ;;  %v8443_v29 = vunpack.i.l.bf16 %v11770_v62  ;;  %v2072_v55 = vsel %vm19282_vm9, %v8469_v61, %v8473_v12  ;;  %v2073_v23 = vsel %vm19282_vm9, %v8473_v12, %v8474_v38  ;;  %v8710_v7 = vpack.i.bf16 %v7974_v5, %v2206_v21 }
 0x215   : > { %v8484_v47 = vunpack.i.h.bf16 %v8482_v32  ;;  %v8483_v16 = vunpack.i.l.bf16 %v8482_v32  ;;  %v2009_v58 = vsel %vm19186_vm10, %v8434_v63, %v8438_v14  ;;  %v2008_v42 = vsel %vm19186_vm10, %v8433_v27, %v8434_v63 }
 0x216   : > { %v2075_v2 = vsel %vm19282_vm9, %v8478_v40, %v8479_v50  ;;  %v2074_v25 = vsel %vm19282_vm9, %v8474_v38, %v8478_v40  ;;  %v2076_v9 = vsel %vm19282_vm9, %v8479_v50, %v2061_v51  ;;  %v2207_v43 = vsel %vm1413_vm1, %v2008_v42, %v2072_v55 }
 0x217   : > { %v2126_v31 = vsel %vm19272_vm11, %v7974_v5, %v8483_v16  ;;  %v2127_v10 = vsel %vm19272_vm11, %v8483_v16, %v8484_v47  ;;  %v2208_v27 = vsel %vm1413_vm1, %v2009_v58, %v2073_v23  ;;  %v7603_v53 = vunpack.i.l.bf16 %v19808_v22 }
 0x218   : > { %8711 = vrot.lane.b32.xlu0 %v8710_v7, %s19228_s12  ;;  %v8492_v62 = vpop.permute.xlu1 %8491  ;;  %v8487_v61 = vpop.permute.xlu0 %8486  ;;  %v8715_v46 = vpack.i.bf16 %v2127_v10, %v2126_v31  ;;  %v2010_v6 = vsel %vm19186_vm10, %v8438_v14, %v8439_v13  ;;  %v2011_v8 = vsel %vm19186_vm10, %v8439_v13, %v8443_v29  ;;  %v2012_v35 = vsel %vm19186_vm10, %v8443_v29, %v8444_v39 }
 0x219   : > { %v8489_v15 = vunpack.i.h.bf16 %v8487_v61  ;;  %v8488_v49 = vunpack.i.l.bf16 %v8487_v61  ;;  %v2211_v38 = vsel %vm1413_vm1, %v2012_v35, %v2076_v9  ;;  %v2212_v12 = vsel %vm1413_vm1, %v8444_v39, %v2061_v51  ;;  %v19809_v51 = vld [vmem:[#allocation4_spill] sm:$0xff] }
 0x21a   : > { %8716 = vrot.lane.b32.xlu1 %v8715_v46, %s19228_s12  ;;  %v8725_v5 = vpack.i.bf16 %v2208_v27, %v2207_v43  ;;  %v2209_v14 = vsel %vm1413_vm1, %v2010_v6, %v2074_v25  ;;  %v2210_v40 = vsel %vm1413_vm1, %v2011_v8, %v2075_v2  ;;  %v8494_v32 = vunpack.i.h.bf16 %v8492_v62  ;;  %v19811_v61 = vld [vmem:[#allocation24_spill] sm:$0xff]  ;;  %v19812_v8 = vld [vmem:[#allocation25_spill] sm:$0xff] }
 0x21b   : > { %v2128_v4 = vsel %vm19272_vm11, %v8484_v47, %v8488_v49  ;;  %v2129_v48 = vsel %vm19272_vm11, %v8488_v49, %v8489_v15  ;;  %v8493_v13 = vunpack.i.l.bf16 %v8492_v62  ;;  %v11866_v39 = vsel %vm1413_vm1, %v19809_v51, %v11776_v33 }
 0x21c   : > { %v8502_v63 = vpop.permute.xlu1 %8501  ;;  %v8497_v21 = vpop.permute.xlu0 %8496  ;;  %v8720_v50 = vpack.i.bf16 %v2129_v48, %v2128_v4  ;;  %19810 = vst [vmem:[#allocation20_spill] sm:$0xff] %v11866_v39  ;;  %v11873_v47 = vsel %vm19202_vm8, %v7593_v59, %v7594_v45  ;;  %v11880_v7 = vsel %vm19202_vm8, %v7608_v3, %v7609_v28  ;;  %v11889_v37 = vsel %vm19202_vm8, %v7598_v24, %v7599_v11 }
 0x21d   : > { %v8499_v16 = vunpack.i.h.bf16 %v8497_v21  ;;  %v8498_v29 = vunpack.i.l.bf16 %v8497_v21  ;;  %v8504_v55 = vunpack.i.h.bf16 %v8502_v63  ;;  %v8503_v23 = vunpack.i.l.bf16 %v8502_v63  ;;  %v19813_v63 = vld [vmem:[#allocation27_spill] sm:$0xff] }
 0x21e   : > { %8726 = vrot.lane.b32.xlu1 %v8725_v5, %s19228_s12  ;;  %8721 = vrot.lane.b32.xlu0 %v8720_v50, %s19228_s12  ;;  %v11894_v45 = vsel %vm19202_vm8, %v7603_v53, %v7604_v30  ;;  %v8735_v33 = vpack.i.bf16 %v2212_v12, %v2211_v38  ;;  %v8730_v10 = vpack.i.bf16 %v2210_v40, %v2209_v14  ;;  %v7619_v46 = vunpack.i.h.bf16 %v19811_v61 }
 0x21f   : > { %v2132_v58 = vsel %vm19272_vm11, %v8494_v32, %v8498_v29  ;;  %v2133_v42 = vsel %vm19272_vm11, %v8498_v29, %v8499_v16  ;;  %v11899_v2 = vsel %vm19202_vm8, %v7599_v11, %v7603_v53  ;;  %v2131_v25 = vsel %vm19272_vm11, %v8493_v13, %v8494_v32  ;;  %v19814_v29 = vld [vmem:[#allocation29_spill] sm:$0xff] }
 0x220   : > { %v8512_v59 = vpop.permute.xlu1 %8511  ;;  %v8507_v31 = vpop.permute.xlu0 %8506  ;;  %v2130_v9 = vsel %vm19272_vm11, %v8489_v15, %v8493_v13  ;;  %v2135_v49 = vsel %vm19272_vm11, %v8503_v23, %v8504_v55  ;;  %v2134_v43 = vsel %vm19272_vm11, %v8499_v16, %v8503_v23  ;;  %v8745_v20 = vpack.i.bf16 %v2133_v42, %v2132_v58 }
 0x221   : > { %v8509_v24 = vunpack.i.h.bf16 %v8507_v31  ;;  %v8508_v62 = vunpack.i.l.bf16 %v8507_v31  ;;  %v8514_v27 = vunpack.i.h.bf16 %v8512_v59  ;;  %v8513_v11 = vunpack.i.l.bf16 %v8512_v59 }
 0x222   : > { %8736 = vrot.lane.b32.xlu1 %v8735_v33, %s19228_s12  ;;  %8731 = vrot.lane.b32.xlu0 %v8730_v10, %s19228_s12  ;;  %v7618_v15 = vunpack.i.l.bf16 %v19811_v61  ;;  %v7614_v35 = vunpack.i.h.bf16 %v19812_v8  ;;  %v7613_v38 = vunpack.i.l.bf16 %v19812_v8  ;;  %v8740_v48 = vpack.i.bf16 %v2131_v25, %v2130_v9  ;;  %v19815_v10 = vld [vmem:[#allocation26_spill] sm:$0xff]  ;;  %v19817_v61 = vld [vmem:[#allocation28_spill] sm:$0xff] }
 0x223   : > { %v2136_v53 = vsel %vm19272_vm11, %v8504_v55, %v8508_v62  ;;  %v2137_v6 = vsel %vm19272_vm11, %v8508_v62, %v8509_v24  ;;  %v7624_v21 = vunpack.i.h.bf16 %v19813_v63  ;;  %v7623_v5 = vunpack.i.l.bf16 %v19813_v63 }
 0x224   : > { %v11913_v12 = vpop.permute.xlu1 %8516  ;;  %v2125_v4 = vpop.permute.xlu0 %2124  ;;  %v7638_v50 = vunpack.i.l.bf16 %v10688_v60  ;;  %v7634_v14 = vunpack.i.h.bf16 %v10690_v52  ;;  %v7639_v40 = vunpack.i.h.bf16 %v10688_v60  ;;  %v7633_v32 = vunpack.i.l.bf16 %v10690_v52 }
 0x225   : > { %v8755_v13 = vpack.i.bf16 %v2137_v6, %v2136_v53  ;;  %v8750_v16 = vpack.i.bf16 %v2135_v49, %v2134_v43  ;;  %v7643_v55 = vunpack.i.l.bf16 %v19814_v29  ;;  %v2139_v23 = vsel %vm19272_vm11, %v8513_v11, %v8514_v27 }
 0x226   : > { %8746 = vrot.lane.b32.xlu1 %v8745_v20, %s19228_s12  ;;  %8741 = vrot.lane.b32.xlu0 %v8740_v48, %s19228_s12  ;;  %v2138_v51 = vsel %vm19272_vm11, %v8509_v24, %v8513_v11  ;;  %v2140_v58 = vsel %vm19272_vm11, %v8514_v27, %v2125_v4  ;;  %v11928_v42 = vsel %vm19202_vm8, %v7618_v15, %v7619_v46  ;;  %v19116_v25 = vunpack.i.l.bf16 %v19815_v10 }
 0x227   : > { %v11931_v60 = vsel %vm19202_vm8, %v7613_v38, %v7614_v35  ;;  %v506_v59 = vsel %vm19202_vm8, %v7604_v30, %v7608_v3  ;;  %v508_v31 = vsel %vm19202_vm8, %v7609_v28, %v7613_v38  ;;  %v11947_v9 = vsel %vm19202_vm8, %v7623_v5, %v7624_v21 }
 0x228   : > { %v11933_v52 = vpop.permute.xlu1 %8526  ;;  %v11935_v33 = vpop.permute.xlu0 %8521  ;;  %19816 = vst [vmem:[#allocation21_spill] sm:$0xff] %v11947_v9  ;;  %v566_v24 = vsel %vm564_vm12, %v7634_v14, %v7638_v50  ;;  %v510_v62 = vsel %vm19202_vm8, %v7614_v35, %v7618_v15  ;;  %v7648_v49 = vunpack.i.l.bf16 %v19817_v61  ;;  %v7644_v43 = vunpack.i.h.bf16 %v19814_v29 }
 0x229   : > { %v8765_v22 = vpack.i.bf16 %v2125_v4, %v2140_v58  ;;  %v8760_v1 = vpack.i.bf16 %v2139_v23, %v2138_v51  ;;  %v7649_v28 = vunpack.i.h.bf16 %v19817_v61  ;;  %v565_v3 = vsel %vm564_vm12, %v7633_v32, %v7634_v14  ;;  %v19848_v51 = vld [vmem:[#allocation39_spill] sm:$0xff] }
 0x22a   : > { %8756 = vrot.lane.b32.xlu1 %v8755_v13, %s19228_s12  ;;  %8751 = vrot.lane.b32.xlu0 %v8750_v16, %s19228_s12  ;;  %v568_v30 = vsel %vm564_vm12, %v7639_v40, %v7643_v55  ;;  %v567_v20 = vsel %vm564_vm12, %v7638_v50, %v7639_v40  ;;  %v7658_v27 = vunpack.i.l.bf16 %v10711_v56  ;;  %v7654_v11 = vunpack.i.h.bf16 %v10713_v26  ;;  %v19824_v50 = vld [vmem:[#allocation31_spill] sm:$0xff]  ;;  %v19849_v13 = vld [vmem:[#allocation40_spill] sm:$0xff] }
 0x22b   : > { %v7653_v53 = vunpack.i.l.bf16 %v10713_v26  ;;  %v11968_v8 = vsel %vm1413_vm1, %v11786_v17, %v566_v24  ;;  %v19118_v35 = vmov 0   ;;  %v512_v38 = vsel %vm19202_vm8, %v7619_v46, %v7623_v5 }
 0x22c   : > { %v11962_v6 = vpop.permute.xlu1 %8536  ;;  %v11964_v15 = vpop.permute.xlu0 %8531  ;;  %19820 = vst [vmem:[#allocation4_spill] sm:$0xff] %v11968_v8  ;;  %2892 = vmatprep.mubr.bf16.mxu0 %v19118_v35  ;;  %2933 = vmatprep.mubr.bf16.mxu1 %v19118_v35  ;;  %v11976_v4 = vsel %vm19202_vm8, %v7624_v21, %v19116_v25  ;;  %v569_v26 = vsel %vm564_vm12, %v7643_v55, %v7644_v43  ;;  %v7659_v63 = vunpack.i.h.bf16 %v10711_v56  ;;  %v7663_v14 = vunpack.i.l.bf16 %v19824_v50  ;;  %v20004_v8 = vld [vmem:[#allocation104_spill] sm:$0xff] }
 0x22d   : > { %19818 = vst [vmem:[#allocation22_spill] sm:$0xff] %v11962_v6  ;;  %19819 = vst [vmem:[#allocation23_spill] sm:$0xff] %v11964_v15  ;;  %v11983_v17 = vsel %vm1413_vm1, %v11873_v47, %v565_v3  ;;  %v570_v48 = vsel %vm564_vm12, %v7644_v43, %v7648_v49  ;;  %v571_v46 = vsel %vm564_vm12, %v7648_v49, %v7649_v28  ;;  %8770 = vset.pattern.permute.xlu1 %v19118_v35  ;;  %v19836_v3 = vld [vmem:[#allocation32_spill] sm:$0xff]  ;;  %vm19251_vm10 = vcmask 785408  }
 0x22e   : > { %8766 = vrot.lane.b32.xlu1 %v8765_v22, %s19228_s12  ;;  %8761 = vrot.lane.b32.xlu0 %v8760_v1, %s19228_s12  ;;  %19821 = vst [vmem:[#allocation24_spill] sm:$0xff] %v11983_v17  ;;  %v11990_v21 = vsel %vm1413_vm1, %v11899_v2, %v568_v30  ;;  %v11994_v5 = vsel %vm1413_vm1, %v11889_v37, %v567_v20  ;;  %v7664_v55 = vunpack.i.h.bf16 %v19824_v50  ;;  %v7674_v30 = vunpack.i.h.bf16 %v19836_v3  ;;  %v19847_v1 = vld [vmem:[#allocation36_spill] sm:$0xff]  ;;  %s10260_s12 = smov 15  }
 0x22f   : > { %19822 = vst [vmem:[#allocation25_spill] sm:$0xff] %v11990_v21  ;;  %19823 = vst [vmem:[#allocation27_spill] sm:$0xff] %v11994_v5  ;;  %v572_v56 = vsel %vm564_vm12, %v7649_v28, %v7653_v53  ;;  %v574_v2 = vsel %vm564_vm12, %v7654_v11, %v7658_v27  ;;  %8801 = vset.pattern.permute.xlu0 %v19118_v35  ;;  %v573_v37 = vsel %vm564_vm12, %v7653_v53, %v7654_v11  ;;  %v19845_v11 = vld [vmem:[#allocation34_spill] sm:$0xff]  ;;  %vm19252_vm8 = vcmask 1045504  }
 0x230   : > { %v11998_v47 = vpop.permute.xlu0 %8541  ;;  %v12000_v40 = vpop.permute.xlu1 %8546  ;;  %v12011_v16 = vsel %vm1413_vm1, %v506_v59, %v570_v48  ;;  %v12015_v29 = vsel %vm1413_vm1, %v11894_v45, %v569_v26  ;;  %v12024_v58 = vsel %vm1413_vm1, %v11880_v7, %v571_v46  ;;  %v575_v24 = vsel %vm564_vm12, %v7658_v27, %v7659_v63  ;;  %v19830_v59 = vld [vmem:[#allocation30_spill] sm:$0xff]  ;;  %v19859_v46 = vld [vmem:[#allocation43_spill] sm:$0xff] }
 0x231   : > { %19825 = vst [vmem:[#allocation29_spill] sm:$0xff] %v11998_v47  ;;  %19826 = vst [vmem:[#allocation28_spill] sm:$0xff] %v12000_v40  ;;  %v19117_v61 = vunpack.i.l.bf16 %v19830_v59  ;;  %v12029_v49 = vsel %vm1413_vm1, %v508_v31, %v572_v56  ;;  %v12032_v45 = vsel %vm1413_vm1, %v510_v62, %v574_v2  ;;  %v12044_v28 = vsel %vm1413_vm1, %v11931_v60, %v573_v37 }
 0x232   : > { %19827 = vst [vmem:[#allocation31_spill] sm:$0xff] %v12011_v16  ;;  %19828 = vst [vmem:[#allocation145_spill] sm:$0xff] %v12015_v29  ;;  %v576_v31 = vsel %vm564_vm12, %v7659_v63, %v7663_v14  ;;  %v7678_v62 = vunpack.i.l.bf16 %v10735_v44  ;;  %v7673_v20 = vunpack.i.l.bf16 %v19836_v3  ;;  %v12053_v53 = vsel %vm564_vm12, %v7663_v14, %v7664_v55  ;;  %v19844_v14 = vld [vmem:[#allocation33_spill] sm:$0xff] }
 0x233   : > { %19829 = vst [vmem:[#allocation146_spill] sm:$0xff] %v12024_v58  ;;  %19831 = vst [vmem:[#allocation147_spill] sm:$0xff] %v12029_v49  ;;  %v7679_v26 = vunpack.i.h.bf16 %v10735_v44  ;;  %v12063_v2 = vsel %vm1413_vm1, %v512_v38, %v576_v31  ;;  %v12067_v37 = vsel %vm1413_vm1, %v11928_v42, %v575_v24  ;;  %v578_v44 = vsel %vm564_vm12, %v7664_v55, %v19117_v61  ;;  %v19846_v38 = vld [vmem:[#allocation35_spill] sm:$0xff] }
 0x234   : > { %19832 = vst [vmem:[#allocation148_spill] sm:$0xff] %v12032_v45  ;;  %v12034_v43 = vpop.permute.xlu0 %8551  ;;  %v12036_v22 = vpop.permute.xlu1 %8556  ;;  %19835 = vst [vmem:[#allocation151_spill] sm:$0xff] %v12044_v28  ;;  %v7689_v3 = vunpack.i.h.bf16 %v19844_v14  ;;  %v7688_v25 = vunpack.i.l.bf16 %v19844_v14  ;;  %v7684_v63 = vunpack.i.h.bf16 %v19845_v11  ;;  %v7683_v60 = vunpack.i.l.bf16 %v19845_v11 }
 0x235   : > { %19833 = vst [vmem:[#allocation149_spill] sm:$0xff] %v12034_v43  ;;  %19834 = vst [vmem:[#allocation150_spill] sm:$0xff] %v12036_v22  ;;  %v7699_v31 = vunpack.i.h.bf16 %v19846_v38  ;;  %v7698_v7 = vunpack.i.l.bf16 %v19846_v38  ;;  %v630_v42 = vsel %vm628_vm13, %v7674_v30, %v7678_v62  ;;  %v629_v24 = vsel %vm628_vm13, %v7673_v20, %v7674_v30 }
 0x236   : > { %19838 = vst [vmem:[#allocation32_spill] sm:$0xff] %v12053_v53  ;;  %19842 = vst [vmem:[#allocation152_spill] sm:$0xff] %v12063_v2  ;;  %v7694_v55 = vunpack.i.h.bf16 %v19847_v1  ;;  %v7693_v61 = vunpack.i.l.bf16 %v19847_v1  ;;  %v631_v14 = vsel %vm628_vm13, %v7678_v62, %v7679_v26  ;;  %v7718_v23 = vunpack.i.l.bf16 %v19848_v51  ;;  %v19852_v53 = vld [vmem:[#allocation38_spill] sm:$0xff] }
 0x237   : > { %19843 = vst [vmem:[#allocation153_spill] sm:$0xff] %v12067_v37  ;;  %v7714_v32 = vunpack.i.h.bf16 %v19849_v13  ;;  %v12095_v30 = vsel %vm1413_vm1, %v11976_v4, %v578_v44  ;;  %v635_v1 = vsel %vm628_vm13, %v7688_v25, %v7689_v3  ;;  %v633_v20 = vsel %vm628_vm13, %v7683_v60, %v7684_v63  ;;  %v19853_v44 = vld [vmem:[#allocation37_spill] sm:$0xff]  ;;  %v19854_v37 = vld [vmem:[#allocation42_spill] sm:$0xff] }
 0x238   : > { %v12076_v56 = vpop.permute.xlu0 %8561  ;;  %v12084_v35 = vpop.permute.xlu1 %8566  ;;  %19851 = vst [vmem:[#allocation33_spill] sm:$0xff] %v12095_v30  ;;  %v7704_v62 = vunpack.i.h.bf16 %v19852_v53  ;;  %v7703_v10 = vunpack.i.l.bf16 %v19852_v53  ;;  %v12102_v11 = vsel %vm628_vm13, %v7698_v7, %v7699_v31  ;;  %v7713_v59 = vunpack.i.l.bf16 %v19849_v13  ;;  %v19856_v53 = vld [vmem:[#allocation41_spill] sm:$0xff] }
 0x239   : > { %v632_v0 = vsel %vm628_vm13, %v7679_v26, %v7683_v60  ;;  %v634_v9 = vsel %vm628_vm13, %v7684_v63, %v7688_v25  ;;  %v637_v4 = vsel %vm628_vm13, %v7693_v61, %v7694_v55  ;;  %v7719_v38 = vunpack.i.h.bf16 %v19848_v51 }
 0x23a   : > { %v7723_v2 = vunpack.i.l.bf16 %v19854_v37  ;;  %v7729_v50 = vunpack.i.h.bf16 %v19856_v53  ;;  %v7728_v28 = vunpack.i.l.bf16 %v19856_v53  ;;  %v7724_v13 = vunpack.i.h.bf16 %v19854_v37 }
 0x23b   : > { %v694_v26 = vsel %vm692_vm14, %v7714_v32, %v7718_v23  ;;  %v12118_v25 = vsel %vm628_vm13, %v7703_v10, %v7704_v62  ;;  %v636_v51 = vsel %vm628_vm13, %v7689_v3, %v7693_v61  ;;  %v638_v63 = vsel %vm628_vm13, %v7694_v55, %v7698_v7 }
 0x23c   : > { %v12111_v43 = vpop.permute.xlu0 %8571  ;;  %19857 = vst [vmem:[#allocation35_spill] sm:$0xff] %v12118_v25  ;;  %v12120_v60 = vpop.permute.xlu1 %8576  ;;  %v640_v30 = vsel %vm628_vm13, %v7699_v31, %v7703_v10  ;;  %v7738_v45 = vunpack.i.l.bf16 %v19859_v46  ;;  %v7734_v53 = vunpack.i.h.bf16 %v19860_v18  ;;  %v7733_v37 = vunpack.i.l.bf16 %v19860_v18 }
 0x23d   : > { %19855 = vst [vmem:[#allocation34_spill] sm:$0xff] %v12111_v43  ;;  %19858 = vst [vmem:[#allocation36_spill] sm:$0xff] %v12120_v60  ;;  %v693_v40 = vsel %vm692_vm14, %v7713_v59, %v7714_v32  ;;  %v12130_v27 = vsel %vm1413_vm1, %v630_v42, %v694_v26  ;;  %v696_v25 = vsel %vm692_vm14, %v7719_v38, %v7723_v2  ;;  %v19862_v61 = vunpack.i.l.bf16 %v19853_v44  ;;  %v19863_v32 = vld [vmem:[#allocation45_spill] sm:$0xff]  ;;  %v19864_v42 = vld [vmem:[#allocation46_spill] sm:$0xff] }
 0x23e   : > { %19861 = vst [vmem:[#allocation39_spill] sm:$0xff] %v12130_v27  ;;  %v695_v58 = vsel %vm692_vm14, %v7718_v23, %v7719_v38  ;;  %v699_v10 = vsel %vm692_vm14, %v7728_v28, %v7729_v50  ;;  %v697_v3 = vsel %vm692_vm14, %v7723_v2, %v7724_v13  ;;  %v7739_v31 = vunpack.i.h.bf16 %v19859_v46 }
 0x23f   : > { %v642_v7 = vsel %vm628_vm13, %v7704_v62, %v19862_v61  ;;  %v698_v18 = vsel %vm692_vm14, %v7724_v13, %v7728_v28  ;;  %v19132_v59 = vunpack.i.l.bf16 %v19863_v32  ;;  %v7744_v55 = vunpack.i.h.bf16 %v19864_v42 }
 0x240   : > { %v7743_v26 = vunpack.i.l.bf16 %v19864_v42  ;;  %v12144_v48 = vpop.permute.xlu0 %8581  ;;  %v12147_v23 = vsel %vm1413_vm1, %v629_v24, %v693_v40  ;;  %v12150_v38 = vsel %vm1413_vm1, %v632_v0, %v696_v25  ;;  %v12153_v2 = vsel %vm1413_vm1, %v631_v14, %v695_v58  ;;  %v12158_v13 = vpop.permute.xlu1 %8586  ;;  %v19873_v24 = vld [vmem:[#allocation48_spill] sm:$0xff] }
 0x241   : > { %19865 = vst [vmem:[#allocation40_spill] sm:$0xff] %v12144_v48  ;;  %19866 = vst [vmem:[#allocation38_spill] sm:$0xff] %v12147_v23  ;;  %v700_v28 = vsel %vm692_vm14, %v7729_v50, %v7733_v37  ;;  %v702_v46 = vsel %vm692_vm14, %v7734_v53, %v7738_v45  ;;  %v701_v62 = vsel %vm692_vm14, %v7733_v37, %v7734_v53  ;;  %v7758_v14 = vunpack.i.l.bf16 %v19873_v24  ;;  %v19874_v50 = vld [vmem:[#allocation49_spill] sm:$0xff]  ;;  %v19877_v37 = vld [vmem:[#allocation50_spill] sm:$0xff] }
 0x242   : > { %19867 = vst [vmem:[#allocation42_spill] sm:$0xff] %v12150_v38  ;;  %19868 = vst [vmem:[#allocation41_spill] sm:$0xff] %v12153_v2  ;;  %v12161_v61 = vsel %vm1413_vm1, %v634_v9, %v698_v18  ;;  %v12164_v40 = vsel %vm1413_vm1, %v633_v20, %v697_v3  ;;  %v12167_v0 = vsel %vm1413_vm1, %v635_v1, %v699_v10  ;;  %v7754_v25 = vunpack.i.h.bf16 %v19874_v50  ;;  %v20002_v38 = vld [vmem:[#allocation130_spill] sm:$0xff] }
 0x243   : > { %19869 = vst [vmem:[#allocation43_spill] sm:$0xff] %v12158_v13  ;;  %19870 = vst [vmem:[#allocation44_spill] sm:$0xff] %v12161_v61  ;;  %v703_v58 = vsel %vm692_vm14, %v7738_v45, %v7739_v31  ;;  %v7753_v42 = vunpack.i.l.bf16 %v19874_v50  ;;  %v12174_v53 = vsel %vm1413_vm1, %v636_v51, %v700_v28  ;;  %v12177_v9 = vsel %vm1413_vm1, %v638_v63, %v702_v46  ;;  %v19880_v63 = vld [vmem:[#allocation51_spill] sm:$0xff] }
 0x244   : > { %19871 = vst [vmem:[#allocation46_spill] sm:$0xff] %v12164_v40  ;;  %19872 = vst [vmem:[#allocation154_spill] sm:$0xff] %v12167_v0  ;;  %v704_v20 = vsel %vm692_vm14, %v7739_v31, %v7743_v26  ;;  %v706_v1 = vsel %vm692_vm14, %v7744_v55, %v19132_v59  ;;  %v7759_v45 = vunpack.i.h.bf16 %v19873_v24  ;;  %v7769_v10 = vunpack.i.h.bf16 %v19877_v37  ;;  %v12194_v46 = vpop.permute.xlu0 %8591  ;;  %v19886_v59 = vld [vmem:[#allocation56_spill] sm:$0xff] }
 0x245   : > { %19875 = vst [vmem:[#allocation48_spill] sm:$0xff] %v12174_v53  ;;  %19876 = vst [vmem:[#allocation49_spill] sm:$0xff] %v12177_v9  ;;  %v7768_v3 = vunpack.i.l.bf16 %v19877_v37  ;;  %v12187_v18 = vsel %vm1413_vm1, %v637_v4, %v701_v62  ;;  %v12190_v51 = vsel %vm692_vm14, %v7743_v26, %v7744_v55  ;;  %v7764_v28 = vunpack.i.h.bf16 %v19880_v63  ;;  %v19885_v26 = vld [vmem:[#allocation52_spill] sm:$0xff] }
 0x246   : > { %19878 = vst [vmem:[#allocation50_spill] sm:$0xff] %v12187_v18  ;;  %19879 = vst [vmem:[#allocation155_spill] sm:$0xff] %v12190_v51  ;;  %v7763_v31 = vunpack.i.l.bf16 %v19880_v63  ;;  %v12198_v50 = vsel %vm1413_vm1, %v12102_v11, %v703_v58  ;;  %v761_v24 = vsel %vm759_vm15, %v7754_v25, %v7758_v14  ;;  %v760_v37 = vsel %vm759_vm15, %v7753_v42, %v7754_v25  ;;  %v12212_v11 = vpop.permute.xlu1 %8596  ;;  %v19888_v25 = vld [vmem:[#allocation53_spill] sm:$0xff]  ;;  %v19934_v9 = vld [vmem:[#allocation76_spill] sm:$0xff] }
 0x247   : > { %19881 = vst [vmem:[#allocation51_spill] sm:$0xff] %v12194_v46  ;;  %19882 = vst [vmem:[#allocation156_spill] sm:$0xff] %v12198_v50  ;;  %v12203_v4 = vsel %vm1413_vm1, %v640_v30, %v704_v20  ;;  %v12206_v55 = vsel %vm1413_vm1, %v642_v7, %v706_v1  ;;  %v7779_v62 = vunpack.i.h.bf16 %v19885_v26  ;;  %v7778_v63 = vunpack.i.l.bf16 %v19885_v26  ;;  %v19889_v1 = vld [vmem:[#allocation55_spill] sm:$0xff]  ;;  %v19942_v40 = vld [vmem:[#allocation80_spill] sm:$0xff] }
 0x248   : > { %19883 = vst [vmem:[#allocation157_spill] sm:$0xff] %v12203_v4  ;;  %19884 = vst [vmem:[#allocation158_spill] sm:$0xff] %v12206_v55  ;;  %v7799_v51 = vunpack.i.h.bf16 %v19886_v59  ;;  %v7798_v44 = vunpack.i.l.bf16 %v19886_v59  ;;  %v12215_v58 = vsel %vm759_vm15, %v7768_v3, %v7769_v10  ;;  %v7774_v42 = vunpack.i.h.bf16 %v19888_v25  ;;  %v19890_v59 = vld [vmem:[#allocation58_spill] sm:$0xff]  ;;  %v12233_v19 = vpop.permute.xlu0 %8601 }
 0x249   : > { %19887 = vst [vmem:[#allocation52_spill] sm:$0xff] %v12212_v11  ;;  %v7773_v30 = vunpack.i.l.bf16 %v19888_v25  ;;  %v762_v7 = vsel %vm759_vm15, %v7758_v14, %v7759_v45  ;;  %v764_v20 = vsel %vm759_vm15, %v7763_v31, %v7764_v28  ;;  %v7784_v55 = vunpack.i.h.bf16 %v19889_v1  ;;  %v19891_v11 = vld [vmem:[#allocation59_spill] sm:$0xff] }
 0x24a   : > { %v7783_v26 = vunpack.i.l.bf16 %v19889_v1  ;;  %v763_v32 = vsel %vm759_vm15, %v7759_v45, %v7763_v31  ;;  %v7808_v46 = vunpack.i.l.bf16 %v19890_v59  ;;  %v7804_v49 = vunpack.i.h.bf16 %v19891_v11  ;;  %v19893_v31 = vld [vmem:[#allocation60_spill] sm:$0xff]  ;;  %v12245_v57 = vpop.permute.xlu1 %8606 }
 0x24b   : > { %v7803_v13 = vunpack.i.l.bf16 %v19891_v11  ;;  %v765_v47 = vsel %vm759_vm15, %v7764_v28, %v7768_v3  ;;  %v12229_v25 = vsel %vm759_vm15, %v7778_v63, %v7779_v62  ;;  %v7809_v14 = vunpack.i.h.bf16 %v19890_v59  ;;  %v19894_v3 = vld [vmem:[#allocation54_spill] sm:$0xff] }
 0x24c   : > { %v7813_v29 = vunpack.i.l.bf16 %v19892_v41  ;;  %v828_v1 = vsel %vm827_vm2, %v7798_v44, %v7799_v51  ;;  %v768_v45 = vsel %vm759_vm15, %v7773_v30, %v7774_v42  ;;  %v7818_v16 = vunpack.i.l.bf16 %v19893_v31  ;;  %v19896_v44 = vld [vmem:[#allocation57_spill] sm:$0xff] }
 0x24d   : > { %v7814_v48 = vunpack.i.h.bf16 %v19892_v41  ;;  %v767_v11 = vsel %vm759_vm15, %v7769_v10, %v7773_v30  ;;  %v12243_v59 = vsel %vm759_vm15, %v7783_v26, %v7784_v55  ;;  %v769_v5 = vsel %vm759_vm15, %v7774_v42, %v7778_v63  ;;  %v19899_v63 = vld [vmem:[#allocation63_spill] sm:$0xff] }
 0x24e   : > { %19895 = vst [vmem:[#allocation56_spill] sm:$0xff] %v12243_v59  ;;  %v7793_v54 = vunpack.i.l.bf16 %v19896_v44  ;;  %v829_v21 = vsel %vm827_vm2, %v7799_v51, %v7803_v13  ;;  %v12251_v60 = vsel %vm1413_vm1, %v760_v37, %v828_v1  ;;  %v831_v41 = vsel %vm827_vm2, %v7804_v49, %v7808_v46  ;;  %v19898_v59 = vld [vmem:[#allocation62_spill] sm:$0xff]  ;;  %v12262_v37 = vpop.permute.xlu0 %8611 }
 0x24f   : > { %19897 = vst [vmem:[#allocation53_spill] sm:$0xff] %v12251_v60  ;;  %v832_v10 = vsel %vm827_vm2, %v7808_v46, %v7809_v14  ;;  %v7819_v30 = vunpack.i.h.bf16 %v19893_v31  ;;  %v830_v28 = vsel %vm827_vm2, %v7803_v13, %v7804_v49  ;;  %v833_v6 = vsel %vm827_vm2, %v7809_v14, %v7813_v29 }
 0x250   : > { %v7828_v15 = vunpack.i.l.bf16 %v19898_v59  ;;  %v7824_v42 = vunpack.i.h.bf16 %v19899_v63  ;;  %v7823_v44 = vunpack.i.l.bf16 %v19899_v63  ;;  %v835_v51 = vsel %vm827_vm2, %v7814_v48, %v7818_v16 }
 0x251   : > { %v12265_v1 = vsel %vm1413_vm1, %v761_v24, %v829_v21  ;;  %v12268_v46 = vsel %vm1413_vm1, %v763_v32, %v831_v41  ;;  %v771_v49 = vsel %vm759_vm15, %v7779_v62, %v7783_v26  ;;  %v19902_v13 = vunpack.i.l.bf16 %v19894_v3  ;;  %v12285_v24 = vpop.permute.xlu1 %8616  ;;  %v19925_v62 = vld [vmem:[#allocation70_spill] sm:$0xff] }
 0x252   : > { %19900 = vst [vmem:[#allocation55_spill] sm:$0xff] %v12265_v1  ;;  %19901 = vst [vmem:[#allocation58_spill] sm:$0xff] %v12268_v46  ;;  %v7829_v31 = vunpack.i.h.bf16 %v19898_v59  ;;  %v12276_v63 = vsel %vm1413_vm1, %v762_v7, %v830_v28  ;;  %v12279_v34 = vsel %vm1413_vm1, %v765_v47, %v833_v6  ;;  %v12282_v21 = vsel %vm1413_vm1, %v764_v20, %v832_v10  ;;  %v19918_v28 = vld [vmem:[#allocation67_spill] sm:$0xff] }
 0x253   : > { %v773_v14 = vsel %vm759_vm15, %v7784_v55, %v19902_v13  ;;  %19903 = vst [vmem:[#allocation59_spill] sm:$0xff] %v12276_v63  ;;  %19904 = vst [vmem:[#allocation61_spill] sm:$0xff] %v12279_v34  ;;  %v834_v32 = vsel %vm827_vm2, %v7813_v29, %v7814_v48  ;;  %v12290_v55 = vsel %vm1413_vm1, %v767_v11, %v835_v51  ;;  %v19908_v26 = vunpack.i.h.bf16 %v19894_v3  ;;  %v12321_v13 = vpop.permute.xlu0 %8621  ;;  %v19919_v11 = vld [vmem:[#allocation64_spill] sm:$0xff]  ;;  %v19945_v34 = vld [vmem:[#allocation82_spill] sm:$0xff] }
 0x254   : > { %19905 = vst [vmem:[#allocation60_spill] sm:$0xff] %v12282_v21  ;;  %19906 = vst [vmem:[#allocation62_spill] sm:$0xff] %v12285_v24  ;;  %v836_v6 = vsel %vm827_vm2, %v7818_v16, %v7819_v30  ;;  %v837_v29 = vsel %vm827_vm2, %v7819_v30, %v7823_v44  ;;  %v839_v48 = vsel %vm827_vm2, %v7824_v42, %v7828_v15  ;;  %v19912_v30 = vld [vmem:[#allocation65_spill] sm:$0xff]  ;;  %v7838_v20 = vunpack.i.l.bf16 %v19919_v11 }
 0x255   : > { %19907 = vst [vmem:[#allocation63_spill] sm:$0xff] %v12290_v55  ;;  %v12295_v7 = vsel %vm759_vm15, %v19908_v26, %v7793_v54  ;;  %v12311_v16 = vsel %vm827_vm2, %v7828_v15, %v7829_v31  ;;  %v838_v59 = vsel %vm827_vm2, %v7823_v44, %v7824_v42  ;;  %v12318_v10 = vsel %vm1413_vm1, %v12215_v58, %v834_v32  ;;  %v19917_v44 = vld [vmem:[#allocation66_spill] sm:$0xff]  ;;  %v19943_v21 = vld [vmem:[#allocation81_spill] sm:$0xff] }
 0x256   : > { %19909 = vst [vmem:[#allocation159_spill] sm:$0xff] %v12295_v7  ;;  %19910 = vst [vmem:[#allocation160_spill] sm:$0xff] %v12311_v16  ;;  %v12324_v26 = vsel %vm1413_vm1, %v769_v5, %v837_v29  ;;  %v12327_v54 = vsel %vm1413_vm1, %v768_v45, %v836_v6  ;;  %v12330_v15 = vsel %vm1413_vm1, %v771_v49, %v839_v48  ;;  %v7849_v42 = vunpack.i.h.bf16 %v19917_v44  ;;  %v12338_v5 = vpop.permute.xlu1 %8626  ;;  %v19922_v6 = vld [vmem:[#allocation68_spill] sm:$0xff]  ;;  %v19926_v16 = vld [vmem:[#allocation71_spill] sm:$0xff] }
 0x257   : > { %19911 = vst [vmem:[#allocation161_spill] sm:$0xff] %v12318_v10  ;;  %19913 = vst [vmem:[#allocation162_spill] sm:$0xff] %v12321_v13  ;;  %v7848_v41 = vunpack.i.l.bf16 %v19917_v44  ;;  %v7844_v58 = vunpack.i.h.bf16 %v19918_v28  ;;  %v7843_v32 = vunpack.i.l.bf16 %v19918_v28  ;;  %v12344_v49 = vsel %vm1413_vm1, %v12229_v25, %v838_v59  ;;  %v19923_v44 = vld [vmem:[#allocation69_spill] sm:$0xff]  ;;  %v12368_v4 = vpop.permute.xlu0 %8631 }
 0x258   : > { %19914 = vst [vmem:[#allocation163_spill] sm:$0xff] %v12324_v26  ;;  %19915 = vst [vmem:[#allocation164_spill] sm:$0xff] %v12327_v54  ;;  %v7859_v29 = vunpack.i.h.bf16 %v19922_v6  ;;  %v7858_v48 = vunpack.i.l.bf16 %v19922_v6  ;;  %v7854_v47 = vunpack.i.h.bf16 %v19923_v44  ;;  %v7853_v28 = vunpack.i.l.bf16 %v19923_v44 }
 0x259   : > { %19916 = vst [vmem:[#allocation165_spill] sm:$0xff] %v12330_v15  ;;  %19920 = vst [vmem:[#allocation66_spill] sm:$0xff] %v12338_v5  ;;  %v19924_v25 = vunpack.i.l.bf16 %v19912_v30  ;;  %v896_v11 = vsel %vm19283_vm3, %v7844_v58, %v7848_v41  ;;  %v895_v6 = vsel %vm19283_vm3, %v7843_v32, %v7844_v58  ;;  %v897_v3 = vsel %vm19283_vm3, %v7848_v41, %v7849_v42 }
 0x25a   : > { %19921 = vst [vmem:[#allocation67_spill] sm:$0xff] %v12344_v49  ;;  %v7869_v7 = vunpack.i.h.bf16 %v19925_v62  ;;  %v7868_v51 = vunpack.i.l.bf16 %v19925_v62  ;;  %v7864_v18 = vunpack.i.h.bf16 %v19926_v16  ;;  %v7863_v45 = vunpack.i.l.bf16 %v19926_v16  ;;  %19927 = vst [vmem:[#allocation68_spill] sm:$0xff] %v12368_v4  ;;  %v19931_v62 = vld [vmem:[#allocation73_spill] sm:$0xff]  ;;  %v19932_v16 = vld [vmem:[#allocation74_spill] sm:$0xff]  ;;  %v12386_v54 = vpop.permute.xlu1 %8636 }
 0x25b   : > { %v841_v59 = vsel %vm827_vm2, %v7829_v31, %v19924_v25  ;;  %v12371_v31 = vsel %vm19283_vm3, %v7858_v48, %v7859_v29  ;;  %v899_v58 = vsel %vm19283_vm3, %v7853_v28, %v7854_v47  ;;  %v19929_v32 = vunpack.i.h.bf16 %v19912_v30  ;;  %19933 = vst [vmem:[#allocation71_spill] sm:$0xff] %v12386_v54  ;;  %v19937_v4 = vld [vmem:[#allocation72_spill] sm:$0xff] }
 0x25c   : > { %v12375_v41 = vsel %vm1413_vm1, %v773_v14, %v841_v59  ;;  %v7874_v44 = vunpack.i.h.bf16 %v19931_v62  ;;  %v7873_v50 = vunpack.i.l.bf16 %v19931_v62  ;;  %v7889_v49 = vunpack.i.h.bf16 %v19932_v16  ;;  %v19935_v59 = vld [vmem:[#allocation77_spill] sm:$0xff] }
 0x25d   : > { %19928 = vst [vmem:[#allocation69_spill] sm:$0xff] %v12375_v41  ;;  %v12380_v25 = vsel %vm827_vm2, %v19929_v32, %v7838_v20  ;;  %v7888_v15 = vunpack.i.l.bf16 %v19932_v16  ;;  %v7899_v26 = vunpack.i.h.bf16 %v19934_v9  ;;  %v7898_v14 = vunpack.i.l.bf16 %v19934_v9 }
 0x25e   : > { %19930 = vst [vmem:[#allocation70_spill] sm:$0xff] %v12380_v25  ;;  %v7893_v41 = vunpack.i.l.bf16 %v19935_v59  ;;  %v898_v30 = vsel %vm19283_vm3, %v7849_v42, %v7853_v28  ;;  %v905_v20 = vsel %vm19283_vm3, %v7868_v51, %v7869_v7  ;;  %v903_v32 = vsel %vm19283_vm3, %v7863_v45, %v7864_v18  ;;  %v12395_v25 = vpop.permute.xlu0 %8641  ;;  %v19939_v28 = vld [vmem:[#allocation75_spill] sm:$0xff] }
 0x25f   : > { %v7894_v62 = vunpack.i.h.bf16 %v19935_v59  ;;  %19936 = vst [vmem:[#allocation73_spill] sm:$0xff] %v12395_v25  ;;  %v900_v16 = vsel %vm19283_vm3, %v7854_v47, %v7858_v48  ;;  %v902_v9 = vsel %vm19283_vm3, %v7859_v29, %v7863_v45  ;;  %v904_v10 = vsel %vm19283_vm3, %v7864_v18, %v7868_v51  ;;  %v19940_v48 = vld [vmem:[#allocation78_spill] sm:$0xff]  ;;  %v19941_v18 = vld [vmem:[#allocation79_spill] sm:$0xff] }
 0x260   : > { %v12403_v42 = vsel %vm19283_vm3, %v7873_v50, %v7874_v44  ;;  %v7883_v53 = vunpack.i.l.bf16 %v19939_v28  ;;  %v980_v59 = vsel %vm19282_vm9, %v7888_v15, %v7889_v49  ;;  %v906_v5 = vsel %vm19283_vm3, %v7869_v7, %v7873_v50 }
 0x261   : > { %19938 = vst [vmem:[#allocation74_spill] sm:$0xff] %v12403_v42  ;;  %v984_v47 = vsel %vm19282_vm9, %v7898_v14, %v7899_v26  ;;  %v7909_v54 = vunpack.i.h.bf16 %v19940_v48  ;;  %v7908_v0 = vunpack.i.l.bf16 %v19940_v48  ;;  %v981_v45 = vsel %vm19282_vm9, %v7889_v49, %v7893_v41 }
 0x262   : > { %v12406_v55 = vpop.permute.xlu1 %8646  ;;  %v7904_v51 = vunpack.i.h.bf16 %v19941_v18  ;;  %v7903_v29 = vunpack.i.l.bf16 %v19941_v18  ;;  %v983_v28 = vsel %vm19282_vm9, %v7894_v62, %v7898_v14  ;;  %v982_v42 = vsel %vm19282_vm9, %v7893_v41, %v7894_v62  ;;  %v12425_v13 = vpop.permute.xlu0 %8651 }
 0x263   : > { %v7918_v15 = vunpack.i.l.bf16 %v19942_v40  ;;  %v7914_v50 = vunpack.i.h.bf16 %v19943_v21  ;;  %v7913_v7 = vunpack.i.l.bf16 %v19943_v21  ;;  %v19944_v61 = vunpack.i.l.bf16 %v19937_v4 }
 0x264   : > { %v12428_v18 = vsel %vm1413_vm1, %v896_v11, %v981_v45  ;;  %v12431_v14 = vsel %vm1413_vm1, %v895_v6, %v980_v59  ;;  %v19947_v41 = vunpack.i.h.bf16 %v19937_v4  ;;  %v988_v21 = vsel %vm19282_vm9, %v7908_v0, %v7909_v54  ;;  %v19954_v4 = vld [vmem:[#allocation84_spill] sm:$0xff] }
 0x265   : > { %v908_v48 = vsel %vm19283_vm3, %v7874_v44, %v19944_v61  ;;  %19946 = vst [vmem:[#allocation76_spill] sm:$0xff] %v12431_v14  ;;  %v12440_v61 = vsel %vm1413_vm1, %v898_v30, %v983_v28  ;;  %v12443_v44 = vsel %vm1413_vm1, %v897_v3, %v982_v42  ;;  %v12446_v11 = vsel %vm1413_vm1, %v899_v58, %v984_v47  ;;  %v19953_v28 = vld [vmem:[#allocation83_spill] sm:$0xff] }
 0x266   : > { %v12436_v62 = vsel %vm19283_vm3, %v19947_v41, %v7883_v53  ;;  %19949 = vst [vmem:[#allocation78_spill] sm:$0xff] %v12440_v61  ;;  %19950 = vst [vmem:[#allocation79_spill] sm:$0xff] %v12443_v44  ;;  %v986_v6 = vsel %vm19282_vm9, %v7903_v29, %v7904_v51  ;;  %v7919_v59 = vunpack.i.h.bf16 %v19942_v40  ;;  %v12450_v45 = vpop.permute.xlu1 %8656  ;;  %v985_v53 = vsel %vm19282_vm9, %v7899_v26, %v7903_v29 }
 0x267   : > { %19948 = vst [vmem:[#allocation77_spill] sm:$0xff] %v12436_v62  ;;  %19951 = vst [vmem:[#allocation80_spill] sm:$0xff] %v12446_v11  ;;  %v987_v41 = vsel %vm19282_vm9, %v7904_v51, %v7908_v0  ;;  %v7928_v49 = vunpack.i.l.bf16 %v10963_v36  ;;  %v19178_v30 = vunpack.i.h.bf16 %v19945_v34  ;;  %v989_v3 = vsel %vm19282_vm9, %v7909_v54, %v7913_v7 }
 0x268   : > { %19952 = vst [vmem:[#allocation81_spill] sm:$0xff] %v12450_v45  ;;  %v991_v42 = vsel %vm19282_vm9, %v7914_v50, %v7918_v15  ;;  %v990_v58 = vsel %vm19282_vm9, %v7913_v7, %v7914_v50  ;;  %v7938_v47 = vunpack.i.l.bf16 %v19953_v28  ;;  %v7934_v40 = vunpack.i.h.bf16 %v19954_v4  ;;  %v12481_v7 = vpop.permute.xlu0 %8661 }
 0x269   : > { %v19955_v62 = vunpack.i.l.bf16 %v19945_v34  ;;  %v12465_v0 = vsel %vm1413_vm1, %v900_v16, %v985_v53  ;;  %v12468_v36 = vsel %vm1413_vm1, %v902_v9, %v987_v41  ;;  %v12472_v54 = vsel %vm1413_vm1, %v12371_v31, %v986_v6  ;;  %19960 = vst [vmem:[#allocation168_spill] sm:$0xff] %v12481_v7  ;;  %v19969_v41 = vld [vmem:[#allocation86_spill] sm:$0xff]  ;;  %v19973_v34 = vld [vmem:[#allocation88_spill] sm:$0xff] }
 0x26a   : > { %19956 = vst [vmem:[#allocation83_spill] sm:$0xff] %v12468_v36  ;;  %19957 = vst [vmem:[#allocation84_spill] sm:$0xff] %v12472_v54  ;;  %v12475_v51 = vsel %vm1413_vm1, %v903_v32, %v988_v21  ;;  %v12478_v29 = vsel %vm19282_vm9, %v7918_v15, %v7919_v59  ;;  %v7933_v50 = vunpack.i.l.bf16 %v19954_v4  ;;  %v12484_v16 = vsel %vm1413_vm1, %v904_v10, %v989_v3  ;;  %v19966_v15 = vld [vmem:[#allocation85_spill] sm:$0xff]  ;;  %v19967_v10 = vld [vmem:[#allocation91_spill] sm:$0xff] }
 0x26b   : > { %v993_v26 = vsel %vm19282_vm9, %v7919_v59, %v19955_v62  ;;  %19958 = vst [vmem:[#allocation166_spill] sm:$0xff] %v12475_v51  ;;  %19959 = vst [vmem:[#allocation167_spill] sm:$0xff] %v12478_v29  ;;  %v12487_v9 = vsel %vm1413_vm1, %v906_v5, %v991_v42  ;;  %v7939_v62 = vunpack.i.h.bf16 %v19953_v28  ;;  %v12491_v31 = vsel %vm1413_vm1, %v905_v20, %v990_v58  ;;  %v12504_v59 = vpop.permute.xlu1 %8666  ;;  %v19970_v42 = vld [vmem:[#allocation94_spill] sm:$0xff] }
 0x26c   : > { %19961 = vst [vmem:[#allocation169_spill] sm:$0xff] %v12484_v16  ;;  %19962 = vst [vmem:[#allocation170_spill] sm:$0xff] %v12487_v9  ;;  %v12494_v32 = vsel %vm1413_vm1, %v908_v48, %v993_v26  ;;  %v12499_v4 = vsel %vm19282_vm9, %v19178_v30, %v7928_v49  ;;  %v7949_v21 = vunpack.i.h.bf16 %v19966_v15  ;;  %v7979_v6 = vunpack.i.h.bf16 %v19967_v10  ;;  %v19971_v49 = vld [vmem:[#allocation87_spill] sm:$0xff]  ;;  %v19972_v26 = vld [vmem:[#allocation93_spill] sm:$0xff]  ;;  %v12521_v16 = vpop.permute.xlu0 %8671 }
 0x26d   : > { %19963 = vst [vmem:[#allocation171_spill] sm:$0xff] %v12491_v31  ;;  %19964 = vst [vmem:[#allocation172_spill] sm:$0xff] %v12494_v32  ;;  %v7978_v5 = vunpack.i.l.bf16 %v19967_v10  ;;  %v1056_v53 = vsel %vm19272_vm11, %v7934_v40, %v7938_v47  ;;  %v7948_v20 = vunpack.i.l.bf16 %v19966_v15  ;;  %v7944_v48 = vunpack.i.h.bf16 %v19969_v41 }
 0x26e   : > { %19965 = vst [vmem:[#allocation173_spill] sm:$0xff] %v12499_v4  ;;  %19968 = vst [vmem:[#allocation85_spill] sm:$0xff] %v12504_v59  ;;  %v7943_v3 = vunpack.i.l.bf16 %v19969_v41  ;;  %v7983_v58 = vunpack.i.l.bf16 %v19970_v42  ;;  %v7959_v28 = vunpack.i.h.bf16 %v19971_v49  ;;  %v7988_v30 = vunpack.i.l.bf16 %v19972_v26  ;;  %v19974_v41 = vld [vmem:[#allocation90_spill] sm:$0xff] }
 0x26f   : > { %v7984_v4 = vunpack.i.h.bf16 %v19970_v42  ;;  %v1055_v10 = vsel %vm19272_vm11, %v7933_v50, %v7934_v40  ;;  %v7958_v29 = vunpack.i.l.bf16 %v19971_v49  ;;  %v7954_v32 = vunpack.i.h.bf16 %v19973_v34  ;;  %19975 = vst [vmem:[#allocation91_spill] sm:$0xff] %v12521_v16  ;;  %v12532_v54 = vpop.permute.xlu1 %8676 }
 0x270   : > { %v7953_v15 = vunpack.i.l.bf16 %v19973_v34  ;;  %v7989_v31 = vunpack.i.h.bf16 %v19972_v26  ;;  %v7964_v9 = vunpack.i.h.bf16 %v19974_v41  ;;  %v7963_v51 = vunpack.i.l.bf16 %v19974_v41  ;;  %v19976_v26 = vld [vmem:[#allocation89_spill] sm:$0xff]  ;;  %19977 = vst [vmem:[#allocation86_spill] sm:$0xff] %v12532_v54 }
 0x271   : > { %v1122_v59 = vsel %vm19271_vm5, %v7978_v5, %v7979_v6  ;;  %v1057_v42 = vsel %vm19272_vm11, %v7938_v47, %v7939_v62  ;;  %v12526_v40 = vsel %vm19272_vm11, %v7948_v20, %v7949_v21  ;;  %v1059_v50 = vsel %vm19272_vm11, %v7943_v3, %v7944_v48  ;;  %v19993_v54 = vld [vmem:[#allocation101_spill] sm:$0xff] }
 0x272   : > { %v1123_v34 = vsel %vm19271_vm5, %v7979_v6, %v7983_v58  ;;  %v1058_v49 = vsel %vm19272_vm11, %v7939_v62, %v7943_v3  ;;  %v1125_v41 = vsel %vm19271_vm5, %v7984_v4, %v7988_v30  ;;  %v1124_v5 = vsel %vm19271_vm5, %v7983_v58, %v7984_v4  ;;  %v19983_v58 = vld [vmem:[#allocation96_spill] sm:$0xff] }
 0x273   : > { %v1060_v47 = vsel %vm19272_vm11, %v7944_v48, %v7948_v20  ;;  %v12538_v16 = vsel %vm19272_vm11, %v7958_v29, %v7959_v28  ;;  %v12541_v2 = vsel %vm19272_vm11, %v7953_v15, %v7954_v32  ;;  %v1126_v6 = vsel %vm19271_vm5, %v7988_v30, %v7989_v31  ;;  %v19984_v30 = vld [vmem:[#allocation110_spill] sm:$0xff] }
 0x274   : > { %19978 = vst [vmem:[#allocation94_spill] sm:$0xff] %v12538_v16  ;;  %v12545_v62 = vsel %vm1413_vm1, %v1055_v10, %v1122_v59  ;;  %v12548_v3 = vsel %vm19272_vm11, %v7963_v51, %v7964_v9  ;;  %v12551_v4 = vsel %vm1413_vm1, %v1056_v53, %v1123_v34  ;;  %v12554_v20 = vsel %vm19272_vm11, %v7949_v21, %v7953_v15 }
 0x275   : > { %19979 = vst [vmem:[#allocation87_spill] sm:$0xff] %v12545_v62  ;;  %19980 = vst [vmem:[#allocation93_spill] sm:$0xff] %v12548_v3  ;;  %v12557_v48 = vsel %vm19272_vm11, %v7954_v32, %v7958_v29  ;;  %v7993_v36 = vunpack.i.l.bf16 %v19983_v58  ;;  %v12562_v59 = vsel %vm1413_vm1, %v1058_v49, %v1125_v41  ;;  %v12565_v10 = vsel %vm1413_vm1, %v1057_v42, %v1124_v5  ;;  %v12567_v3 = vpop.permute.xlu0 %8681  ;;  %v19992_v42 = vld [vmem:[#allocation95_spill] sm:$0xff] }
 0x276   : > { %19981 = vst [vmem:[#allocation88_spill] sm:$0xff] %v12554_v20  ;;  %19982 = vst [vmem:[#allocation90_spill] sm:$0xff] %v12557_v48  ;;  %v12574_v29 = vsel %vm1413_vm1, %v1059_v50, %v1126_v6  ;;  %v12577_v32 = vsel %vm19272_vm11, %v7959_v28, %v7963_v51  ;;  %v19990_v15 = vunpack.i.l.bf16 %v19976_v26  ;;  %v7998_v41 = vunpack.i.l.bf16 %v19992_v42  ;;  %v19994_v6 = vld [vmem:[#allocation102_spill] sm:$0xff]  ;;  %v19997_v50 = vld [vmem:[#allocation111_spill] sm:$0xff] }
 0x277   : > { %19985 = vst [vmem:[#allocation96_spill] sm:$0xff] %v12562_v59  ;;  %19986 = vst [vmem:[#allocation110_spill] sm:$0xff] %v12565_v10  ;;  %v7994_v5 = vunpack.i.h.bf16 %v19983_v58  ;;  %v8018_v28 = vunpack.i.l.bf16 %v19994_v6  ;;  %v19995_v49 = vunpack.i.h.bf16 %v19984_v30  ;;  %v19996_v58 = vld [vmem:[#allocation109_spill] sm:$0xff]  ;;  %v1127_v21 = vsel %vm19271_vm5, %v7989_v31, %v7993_v36  ;;  %v19999_v48 = vld [vmem:[#allocation122_spill] sm:$0xff] }
 0x278   : > { %19987 = vst [vmem:[#allocation174_spill] sm:$0xff] %v12567_v3  ;;  %19988 = vst [vmem:[#allocation175_spill] sm:$0xff] %v12574_v29  ;;  %v12582_v34 = vsel %vm19272_vm11, %v7964_v9, %v19990_v15  ;;  %v8019_v3 = vunpack.i.h.bf16 %v19994_v6  ;;  %v8058_v15 = vunpack.i.l.bf16 %v19984_v30  ;;  %v8079_v51 = vunpack.i.h.bf16 %v19999_v48  ;;  %v20001_v31 = vld [vmem:[#allocation129_spill] sm:$0xff] }
 0x279   : > { %19989 = vst [vmem:[#allocation176_spill] sm:$0xff] %v12577_v32  ;;  %19991 = vst [vmem:[#allocation177_spill] sm:$0xff] %v12582_v34  ;;  %v1255_v34 = vsel %vm1253_vm4, %v19996_v58, %v19995_v49  ;;  %v19998_v32 = vld [vmem:[#allocation121_spill] sm:$0xff]  ;;  %v8078_v63 = vunpack.i.l.bf16 %v19999_v48  ;;  %v20000_v17 = vunpack.i.h.bf16 %v19992_v42  ;;  %v12616_v49 = vsel %vm19271_vm5, %v7993_v36, %v7994_v5  ;;  %v20010_v36 = vld [vmem:[#allocation132_spill] sm:$0xff] }
 0x27a   : > { %v20003_v46 = vunpack.i.l.bf16 %v19993_v54  ;;  %v12624_v39 = vsel %vm1413_vm1, %v1060_v47, %v1127_v21  ;;  %v12636_v26 = vsel %vm19268_vm6, %v8018_v28, %v8019_v3  ;;  %v20005_v47 = vld [vmem:[#allocation124_spill] sm:$0xff]  ;;  %v20007_v42 = vunpack.i.l.bf16 %v19998_v32 }
 0x27b   : > { %v12613_v7 = vsel %vm19271_vm5, %v7998_v41, %v20000_v17  ;;  %v12629_v17 = vsel %vm19271_vm5, %v7994_v5, %v7998_v41  ;;  %v12651_v5 = vsel %vm19254_vm7, %v8078_v63, %v8079_v51  ;;  %v8649_v43 = vunpack.i.h.bf16 %v12406_v55 }
 0x27c   : > { %v1190_v48 = vsel %vm19268_vm6, %v8019_v3, %v20003_v46  ;;  %v12640_v46 = vsel %vm1253_vm4, %v8058_v15, %v19996_v58  ;;  %v12648_v41 = vsel %vm19254_vm7, %v8079_v51, %v20007_v42  ;;  %v20009_v3 = vld [vmem:[#allocation112_spill] sm:$0xff]  ;;  %v20011_v58 = vunpack.i.l.bf16 %v20001_v31 }
 0x27d   : > { %v12633_v24 = vsel %vm1413_vm1, %v1190_v48, %v1255_v34  ;;  %v20008_v34 = vunpack.i.l.bf16 %v19997_v50  ;;  %v20012_v42 = vunpack.i.h.bf16 %v20002_v38  ;;  %v8563_v51 = vunpack.i.l.bf16 %v12076_v56 }
 0x27e   : > { %v12569_v53 = vpop.permute.xlu1 %8686  ;;  %v8604_v29 = vunpack.i.h.bf16 %v12233_v19  ;;  %v8603_v10 = vunpack.i.l.bf16 %v12233_v19  ;;  %v20015_v60 = vunpack.i.h.bf16 %v12076_v56  ;;  %v8653_v48 = vunpack.i.l.bf16 %v12425_v13 }
 0x27f   : > { %v12657_v28 = vsel %vm1253_vm4, %v20009_v3, %v20008_v34  ;;  %v12667_v11 = vsel %vm19251_vm10, %v20012_v42, %v20011_v58  ;;  %v8648_v58 = vunpack.i.l.bf16 %v12406_v55  ;;  %v8689_v42 = vunpack.i.h.bf16 %v12569_v53 }
 0x280   : > { %v8688_v63 = vunpack.i.l.bf16 %v12569_v53  ;;  %v8608_v55 = vunpack.i.l.bf16 %v12245_v57  ;;  %v2520_v53 = vsel %vm19253_vm0, %v8563_v51, %v20015_v60 }
 0x281   : > { %v2552_v19 = vsel %vm19253_vm0, %v8648_v58, %v8649_v43 }
 0x282   : > { %v12606_v9 = vpop.permute.xlu0 %8691  ;;  %v12608_v6 = vpop.permute.xlu1 %8696  ;;  %v2567_v59 = vsel %vm19253_vm0, %v8688_v63, %v8689_v42 }
 0x283   : > { %v8693_v21 = vunpack.i.l.bf16 %v12606_v9  ;;  %v8694_v61 = vunpack.i.h.bf16 %v12606_v9 }
 0x285   : > { %v2568_v1 = vsel %vm19253_vm0, %v8689_v42, %v8693_v21  ;;  %v2536_v42 = vsel %vm19253_vm0, %v8604_v29, %v8608_v55 }
 0x286   : > { %v12643_v16 = vpop.permute.xlu0 %8701  ;;  %v12671_v34 = vpop.permute.xlu1 %8706 }
 0x287   : > { %20006 = vst [vmem:[#allocation101_spill] sm:$0xff] %v12643_v16  ;;  %20013 = vst [vmem:[#allocation102_spill] sm:$0xff] %v12671_v34  ;;  %v8559_v34 = vunpack.i.h.bf16 %v12036_v22 }
 0x28a   : > { %v12681_v44 = vpop.permute.xlu0 %8711 }
 0x28b   : > { %20014 = vst [vmem:[#allocation111_spill] sm:$0xff] %v12681_v44  ;;  %v8714_v22 = vunpack.i.h.bf16 %v12681_v44  ;;  %v8609_v44 = vunpack.i.h.bf16 %v12245_v57 }
 0x28c   : > { %v8717_v23 = vpop.permute.xlu1 %8716 }
 0x28d   : > { %v8719_v15 = vunpack.i.h.bf16 %v8717_v23  ;;  %v8718_v16 = vunpack.i.l.bf16 %v8717_v23  ;;  %v8644_v23 = vunpack.i.h.bf16 %v12395_v25  ;;  %v20016_v25 = vunpack.i.h.bf16 %v12425_v13 }
 0x28f   : > { %v2584_v60 = vsel %vm19253_vm0, %v8718_v16, %v8719_v15  ;;  %v2583_v45 = vsel %vm19253_vm0, %v8714_v22, %v8718_v16  ;;  %v2777_v16 = vpack.c.bf16 %v2552_v19, %v2536_v42  ;;  %v2551_v57 = vsel %vm19253_vm0, %v8644_v23, %v8648_v58 }
 0x290   : > { %v12705_v14 = vpop.permute.xlu0 %8721  ;;  %v2793_v62 = vpack.c.bf16 %v2584_v60, %v2568_v1  ;;  %v2792_v9 = vpack.c.bf16 %v2583_v45, %v2567_v59  ;;  %v2554_v1 = vsel %vm19253_vm0, %v8653_v48, %v20016_v25  ;;  %v20017_v45 = vunpack.i.l.bf16 %v12608_v6 }
 0x291   : > { %v19221_v20 = vunpack.i.h.bf16 %v12705_v14  ;;  %v8723_v27 = vunpack.i.l.bf16 %v12705_v14  ;;  %v8524_v19 = vunpack.i.h.bf16 %v11935_v33  ;;  %v2535_v23 = vsel %vm19253_vm0, %v8603_v10, %v8604_v29 }
 0x292   : > { %7477 = vmatprep.subr.msk.bf16.mxu0 %vm19252_vm8, %v2793_v62  ;;  %v2813_v22 = vsel %vm19252_vm8, %v2792_v9, 0  ;;  %v2570_v59 = vsel %vm19253_vm0, %v8694_v61, %v20017_v45  ;;  %v2569_v62 = vsel %vm19253_vm0, %v8693_v21, %v8694_v61  ;;  %v2776_v42 = vpack.c.bf16 %v2551_v57, %v2535_v23 }
 0x293   : > { %2863 = vmatpush1.bf16.msra.mxu0 %v2813_v22  ;;  %v2586_v60 = vsel %vm19253_vm0, %v8723_v27, %v19221_v20  ;;  %v2585_v9 = vsel %vm19253_vm0, %v8719_v15, %v8723_v27  ;;  %v20018_v22 = vunpack.i.l.bf16 %v11935_v33  ;;  %v20019_v45 = vunpack.i.h.bf16 %v11913_v12 }
 0x294   : > { %2864 = vmatprep.subr.bf16.mxu0 %v2777_v16  ;;  %v2795_v58 = vpack.c.bf16 %v2586_v60, %v2570_v59  ;;  %v2794_v25 = vpack.c.bf16 %v2585_v9, %v2569_v62  ;;  %v20020_v20 = vunpack.i.l.bf16 %v12262_v37  ;;  %v2519_v27 = vsel %vm19253_vm0, %v8559_v34, %v8563_v51 }
 0x295   : > { %v2504_v63 = vsel %vm19253_vm0, %v20019_v45, %v20018_v22  ;;  %v2553_v29 = vsel %vm19253_vm0, %v8649_v43, %v8653_v48  ;;  %v8084_v16 = vunpack.i.h.bf16 %v19998_v32  ;;  %v1527_v57 = vsel %vm1413_vm1, %v12648_v41, %v12667_v11 }
 0x296   : > { %v2538_v61 = vsel %vm19253_vm0, %v8609_v44, %v20020_v20  ;;  %7479 = vmatprep.subr.msk.bf16.mxu1 %vm19252_vm8, %v2795_v58  ;;  %v2819_v21 = vsel %vm19252_vm8, %v2794_v25, 0  ;;  %v2761_v15 = vpack.c.bf16 %v2520_v53, %v2504_v63  ;;  %v20021_v20 = vunpack.i.h.bf16 %v12084_v35  ;;  %v12754_v63 = vpop.permute.xlu1 %8726 }
 0x297   : > { %v2779_v10 = vpack.c.bf16 %v2554_v1, %v2538_v61  ;;  %2865 = vmatpush1.bf16.msra.mxu0 %v2776_v42  ;;  %2904 = vmatpush1.bf16.msra.mxu1 %v2819_v21  ;;  %v20022_v51 = vunpack.i.l.bf16 %v12084_v35  ;;  %v20023_v59 = vunpack.i.h.bf16 %v20002_v38  ;;  %v20024_v53 = vunpack.i.l.bf16 %v20002_v38 }
 0x298   : > { %v8024_v48 = vunpack.i.h.bf16 %v19993_v54  ;;  %2866 = vmatprep.subr.bf16.mxu0 %v2761_v15  ;;  %v20025_v11 = vmov %v20019_v45  ;;  %v20026_v41 = vunpack.i.l.bf16 %v11913_v12  ;;  %v2537_v60 = vsel %vm19253_vm0, %v8608_v55, %v8609_v44  ;;  %v12773_v45 = vpop.permute.xlu0 %8731 }
 0x299   : > { %v2522_v34 = vsel %vm19253_vm0, %v20022_v51, %v20021_v20  ;;  %v1382_v43 = vsel %vm19251_vm10, %v20024_v53, %v20023_v59  ;;  %2905 = vmatprep.subr.bf16.mxu1 %v2779_v10  ;;  %v20027_v62 = vunpack.i.l.bf16 %v20010_v36  ;;  %v20028_v38 = vunpack.i.h.bf16 %v20001_v31 }
 0x29a   : > { %v2503_v1 = vsel %vm19253_vm0, %v20026_v41, %v20025_v11  ;;  %v2778_v23 = vpack.c.bf16 %v2553_v29, %v2537_v60  ;;  %v20029_v25 = vunpack.i.l.bf16 %v11933_v52  ;;  %v20030_v22 = vunpack.i.l.bf16 %v20005_v47  ;;  %v20039_v60 = vld [vmem:[#allocation103_spill] sm:$0xff] }
 0x29b   : > { %v1385_v9 = vsel %vm19251_vm10, %v20028_v38, %v20027_v62  ;;  %v2760_v58 = vpack.c.bf16 %v2519_v27, %v2503_v1  ;;  %v2745_v44 = vpack.c.bf16 %v1527_v57, %v12633_v24  ;;  %v1526_v61 = vsel %vm1413_vm1, %v12651_v5, %v1382_v43 }
 0x29c   : > { %v2506_v42 = vsel %vm19253_vm0, %v8524_v19, %v20029_v25  ;;  %v1321_v12 = vsel %vm19254_vm7, %v8084_v16, %v20030_v22  ;;  %v20031_v21 = vmov %v20022_v51  ;;  %v20032_v27 = vunpack.i.h.bf16 %v12076_v56  ;;  %2906 = vmatpush1.bf16.msra.mxu1 %v2778_v23  ;;  %v20042_v23 = vld [vmem:[#allocation98_spill] sm:$0xff] }
 0x29d   : > { %v2763_v55 = vpack.c.bf16 %v2522_v34, %v2506_v42  ;;  %2867 = vmatpush1.bf16.msra.mxu0 %v2760_v58  ;;  %v20033_v10 = vunpack.i.l.bf16 %v20004_v8  ;;  %v1529_v20 = vsel %vm1413_vm1, %v1321_v12, %v1385_v9  ;;  %v20034_v24 = vmov %v20028_v38  ;;  %v20041_v9 = vld [vmem:[#allocation97_spill] sm:$0xff]  ;;  %v20043_v42 = vld [vmem:[#allocation116_spill] sm:$0xff]  ;;  %v8742_v12 = vpop.permute.xlu0 %8741  ;;  %v20073_v58 = vld [vmem:[#allocation34_spill] sm:$0xff] }
 0x29e   : > { %v2521_v15 = vsel %vm19253_vm0, %v20032_v27, %v20031_v21  ;;  %v20035_v57 = vunpack.i.l.bf16 %v20001_v31  ;;  %2868 = vmatprep.subr.bf16.mxu0 %v2745_v44  ;;  %v1510_v56 = vsel %vm1413_vm1, %v12636_v26, %v12640_v46  ;;  %v20036_v51 = vunpack.i.l.bf16 %v11935_v33  ;;  %v12809_v46 = vpop.permute.xlu1 %8736  ;;  %v20048_v27 = vld [vmem:[#allocation88_spill] sm:$0xff]  ;;  %v20074_v25 = vld [vmem:[#allocation62_spill] sm:$0xff] }
 0x29f   : > { %v1192_v29 = vsel %vm19268_vm6, %v8024_v48, %v20033_v10  ;;  %2907 = vmatprep.subr.bf16.mxu1 %v2763_v55  ;;  %v20037_v59 = vunpack.i.h.bf16 %v19984_v30  ;;  %v2744_v43 = vpack.c.bf16 %v1526_v61, %v1510_v56  ;;  %v20038_v41 = vunpack.i.l.bf16 %v19998_v32  ;;  %v20052_v56 = vld [vmem:[#allocation76_spill] sm:$0xff] }
 0x2a0   : > { %v1384_v5 = vsel %vm19251_vm10, %v20035_v57, %v20034_v24  ;;  %v2505_v34 = vsel %vm19253_vm0, %v20036_v51, %v8524_v19  ;;  %v1513_v31 = vsel %vm1413_vm1, %v1192_v29, %v12657_v28  ;;  %v19223_v26 = vunpack.i.l.bf16 %v20039_v60 }
 0x2a1   : > { %v1256_v53 = vsel %vm1253_vm4, %v20037_v59, %v20009_v3  ;;  %v2762_v11 = vpack.c.bf16 %v2521_v15, %v2505_v34  ;;  %v1320_v1 = vsel %vm19254_vm7, %v20038_v41, %v8084_v16  ;;  %v8029_v33 = vunpack.i.h.bf16 %v20004_v8  ;;  %2869 = vmatpush1.bf16.msra.mxu0 %v2744_v43  ;;  %v20054_v34 = vld [vmem:[#allocation131_spill] sm:$0xff]  ;;  %v20058_v41 = vld [vmem:[#allocation96_spill] sm:$0xff] }
 0x2a2   : > { %v2747_v19 = vpack.c.bf16 %v1529_v20, %v1513_v31  ;;  %v1528_v30 = vsel %vm1413_vm1, %v1320_v1, %v1384_v5  ;;  %v19225_v62 = vunpack.i.h.bf16 %v19997_v50  ;;  %v20040_v38 = vunpack.i.l.bf16 %v19993_v54  ;;  %v20051_v5 = vld [vmem:[#allocation87_spill] sm:$0xff]  ;;  %v20059_v1 = vld [vmem:[#allocation78_spill] sm:$0xff] }
 0x2a3   : > { %2908 = vmatpush1.bf16.msra.mxu1 %v2762_v11  ;;  %v12819_v32 = vsel %vm1413_vm1, %v12526_v40, %v12616_v49  ;;  %v12824_v16 = vsel %vm1413_vm1, %v12541_v2, %v12613_v7  ;;  %v19222_v22 = vunpack.i.l.bf16 %v20043_v42  ;;  %v20044_v54 = vpack.c.bf16 %v12551_v4, %v12428_v18  ;;  %v20045_v49 = vld [vmem:[#allocation123_spill] sm:$0xff]  ;;  %v20046_v7 = vld [vmem:[#allocation114_spill] sm:$0xff] }
 0x2a4   : > { %v1191_v28 = vsel %vm19268_vm6, %v20040_v38, %v8024_v48  ;;  %2909 = vmatprep.subr.bf16.mxu1 %v2747_v19  ;;  %v19224_v48 = vunpack.i.l.bf16 %v20045_v49  ;;  %v8089_v44 = vunpack.i.h.bf16 %v20005_v47  ;;  %v1259_v55 = vsel %vm1253_vm4, %v20046_v7, %v19225_v62  ;;  %v20055_v43 = vld [vmem:[#allocation55_spill] sm:$0xff]  ;;  %v20076_v62 = vld [vmem:[#allocation20_spill] sm:$0xff] }
 0x2a5   : > { %2870 = vmatprep.subr.bf16.mxu0 %v20044_v54  ;;  %v1512_v40 = vsel %vm1413_vm1, %v1191_v28, %v1256_v53  ;;  %v20047_v61 = vmov %v20033_v10  ;;  %v1194_v18 = vsel %vm19268_vm6, %v8029_v33, %v19223_v26  ;;  %v12852_v15 = vsel %vm1413_vm1, %v20048_v27, %v12629_v17  ;;  %v20049_v10 = vld [vmem:[#allocation106_spill] sm:$0xff]  ;;  %v12866_v53 = vpop.permute.xlu1 %8746  ;;  %v20056_v11 = vld [vmem:[#allocation39_spill] sm:$0xff]  ;;  %v20085_v27 = vld [vmem:[#allocation13_spill] sm:$0xff] }
 0x2a6   : > { %v2746_v2 = vpack.c.bf16 %v1528_v30, %v1512_v40  ;;  %v12842_v21 = vsel %vm19268_vm6, %v20047_v61, %v8029_v33  ;;  %v20050_v8 = vunpack.i.l.bf16 %v19997_v50  ;;  %v8744_v24 = vunpack.i.h.bf16 %v8742_v12  ;;  %v20061_v30 = vld [vmem:[#allocation113_spill] sm:$0xff]  ;;  %v20064_v61 = vld [vmem:[#allocation126_spill] sm:$0xff] }
 0x2a7   : > { %v8743_v57 = vunpack.i.l.bf16 %v8742_v12  ;;  %v20053_v51 = vpack.c.bf16 %v20051_v5, %v20052_v56  ;;  %v19226_v59 = vunpack.i.l.bf16 %v20054_v34  ;;  %v19227_v17 = vunpack.i.h.bf16 %v20010_v36  ;;  %v20063_v40 = vld [vmem:[#allocation101_spill] sm:$0xff] }
 0x2a8   : > { %v12859_v20 = vsel %vm1253_vm4, %v20050_v8, %v20046_v7  ;;  %2910 = vmatpush1.bf16.msra.mxu1 %v2746_v2  ;;  %v20057_v31 = vpack.c.bf16 %v20055_v43, %v20056_v11  ;;  %v20060_v33 = vpack.c.bf16 %v20058_v41, %v20059_v1  ;;  %v12875_v19 = vsel %vm1413_vm1, %v1194_v18, %v1259_v55  ;;  %v20065_v8 = vld [vmem:[#allocation81_spill] sm:$0xff]  ;;  %v20070_v1 = vld [vmem:[#allocation79_spill] sm:$0xff] }
 0x2a9   : > { %2871 = vmatpush1.bf16.msra.mxu0 %v20053_v51  ;;  %v12881_v38 = vsel %vm1253_vm4, %v20061_v30, %v19222_v22  ;;  %v20062_v28 = vunpack.i.l.bf16 %v20005_v47  ;;  %v8699_v54 = vunpack.i.h.bf16 %v12608_v6  ;;  %v8703_v2 = vunpack.i.l.bf16 %v20063_v40  ;;  %v20066_v11 = vld [vmem:[#allocation53_spill] sm:$0xff] }
 0x2aa   : > { %2872 = vmatprep.subr.bf16.mxu0 %v20057_v31  ;;  %2911 = vmatprep.subr.bf16.mxu1 %v20060_v33  ;;  %v12893_v55 = vsel %vm19254_vm7, %v8089_v44, %v19224_v48  ;;  %v8659_v5 = vunpack.i.h.bf16 %v20065_v8  ;;  %v8658_v47 = vunpack.i.l.bf16 %v20065_v8  ;;  %v19230_v56 = vunpack.i.h.bf16 %v12866_v53  ;;  %v20067_v31 = vld [vmem:[#allocation38_spill] sm:$0xff]  ;;  %v20075_v48 = vld [vmem:[#allocation4_spill] sm:$0xff]  ;;  %v20087_v8 = vld [vmem:[#allocation59_spill] sm:$0xff] }
 0x2ab   : > { %v12886_v12 = vsel %vm19254_vm7, %v20062_v28, %v8089_v44  ;;  %v8748_v51 = vunpack.i.l.bf16 %v12866_v53  ;;  %v2588_v43 = vsel %vm19253_vm0, %v8743_v57, %v8744_v24  ;;  %v20068_v41 = vpack.c.bf16 %v20066_v11, %v20067_v31  ;;  %v20069_v44 = vld [vmem:[#allocation110_spill] sm:$0xff] }
 0x2ac   : > { %v20071_v33 = vpack.c.bf16 %v20069_v44, %v20070_v1  ;;  %v20072_v28 = vunpack.i.h.bf16 %v12705_v14  ;;  %v8614_v4 = vunpack.i.h.bf16 %v12262_v37  ;;  %v19232_v26 = vunpack.i.l.bf16 %v20074_v25  ;;  %v20078_v11 = vld [vmem:[#allocation58_spill] sm:$0xff] }
 0x2ad   : > { %2873 = vmatpush1.bf16.msra.mxu0 %v20068_v41  ;;  %v20077_v29 = vpack.c.bf16 %v20075_v48, %v20076_v62  ;;  %v20079_v31 = vld [vmem:[#allocation42_spill] sm:$0xff]  ;;  %v1387_v14 = vsel %vm19251_vm10, %v19227_v17, %v19226_v59  ;;  %v2572_v44 = vsel %vm19253_vm0, %v8699_v54, %v8703_v2  ;;  %v8573_v48 = vunpack.i.l.bf16 %v20073_v58  ;;  %v20084_v59 = vld [vmem:[#allocation24_spill] sm:$0xff] }
 0x2ae   : > { %2912 = vmatpush1.bf16.msra.mxu1 %v20071_v33  ;;  %v2587_v22 = vsel %vm19253_vm0, %v20072_v28, %v8743_v57  ;;  %v20080_v41 = vpack.c.bf16 %v20078_v11, %v20079_v31  ;;  %v8704_v57 = vunpack.i.h.bf16 %v20063_v40  ;;  %v20081_v1 = vld [vmem:[#allocation102_spill] sm:$0xff]  ;;  %v20082_v28 = vunpack.i.l.bf16 %v12608_v6  ;;  %v20088_v6 = vld [vmem:[#allocation41_spill] sm:$0xff] }
 0x2af   : > { %2874 = vmatprep.subr.bf16.mxu0 %v20077_v29  ;;  %v20083_v29 = vld [vmem:[#allocation168_spill] sm:$0xff]  ;;  %v2797_v31 = vpack.c.bf16 %v2588_v43, %v2572_v44  ;;  %v2590_v40 = vsel %vm19253_vm0, %v8748_v51, %v19230_v56  ;;  %v20086_v17 = vpack.c.bf16 %v20084_v59, %v20085_v27  ;;  %v20089_v33 = vpack.c.bf16 %v20087_v8, %v20088_v6  ;;  %v20098_v6 = vld [vmem:[#allocation27_spill] sm:$0xff] }
 0x2b0   : > { %2913 = vmatprep.subr.bf16.mxu1 %v20080_v41  ;;  %v2571_v62 = vsel %vm19253_vm0, %v20082_v28, %v8699_v54  ;;  %v8663_v18 = vunpack.i.l.bf16 %v20083_v29  ;;  %v12946_v54 = vld [vmem:[%s18947_s2] sm:$0x3]  ;;  %v2589_v43 = vsel %vm19253_vm0, %v8744_v24, %v8748_v51  ;;  %v8529_v44 = vunpack.i.h.bf16 %v11933_v52  ;;  %v20091_v56 = vld [vmem:[#allocation36_spill] sm:$0xff] }
 0x2b1   : > { %v2796_v41 = vpack.c.bf16 %v2587_v22, %v2571_v62  ;;  %2875 = vmatpush1.bf16.msra.mxu0 %v20086_v17  ;;  %v2556_v22 = vsel %vm19253_vm0, %v8658_v47, %v8659_v5  ;;  %v20090_v28 = vld [vmem:[#allocation23_spill] sm:$0xff]  ;;  %v20092_v17 = vld [vmem:[#allocation25_spill] sm:$0xff]  ;;  %v20093_v27 = vld [vmem:[#allocation12_spill] sm:$0xff]  ;;  %v2540_v8 = vsel %vm19253_vm0, %v8614_v4, %v19232_v26  ;;  %v20096_v24 = vunpack.i.h.bf16 %v12425_v13 }
 0x2b2   : > { %2914 = vmatpush1.bf16.msra.mxu1 %v20089_v33  ;;  %v20094_v11 = vpack.c.bf16 %v20092_v17, %v20093_v27  ;;  %7481 = vmatprep.subr.msk.bf16.mxu0 %vm19252_vm8, %v2797_v31  ;;  %v20095_v33 = vld [vmem:[#allocation162_spill] sm:$0xff]  ;;  %v20097_v62 = vunpack.i.l.bf16 %v20081_v1  ;;  %v2573_v7 = vsel %vm19253_vm0, %v8703_v2, %v8704_v57  ;;  %v2781_v31 = vpack.c.bf16 %v2556_v22, %v2540_v8 }
 0x2b3   : > { %v2555_v51 = vsel %vm19253_vm0, %v20096_v24, %v8658_v47  ;;  %v2798_v27 = vpack.c.bf16 %v2589_v43, %v2573_v7  ;;  %v8578_v26 = vunpack.i.l.bf16 %v20091_v56  ;;  %v8619_v13 = vunpack.i.h.bf16 %v20074_v25  ;;  %v20099_v47 = vld [vmem:[#allocation15_spill] sm:$0xff]  ;;  %v20103_v22 = vld [vmem:[#allocation134_spill] sm:$0xff] }
 0x2b4   : > { %2915 = vmatprep.subr.bf16.mxu1 %v20094_v11  ;;  %v2574_v59 = vsel %vm19253_vm0, %v8704_v57, %v20097_v62  ;;  %7478 = vmatmul.mubr.msk.bf16.vlgmr.msra.gmra.mxu0 %vm692_vm14, %v12946_v54  ;;  %v2825_v11 = vsel %vm19252_vm8, %v2796_v41, 0  ;;  %v20100_v24 = vpack.c.bf16 %v20098_v6, %v20099_v47  ;;  %v20101_v62 = vunpack.i.h.bf16 %v20073_v58  ;;  %v20104_v7 = vld [vmem:[#allocation22_spill] sm:$0xff] }
 0x2b5   : > { %v2799_v17 = vpack.c.bf16 %v2590_v40, %v2574_v59  ;;  %2945 = vmatpush1.bf16.msra.mxu0 %v2825_v11  ;;  %v20102_v57 = vunpack.i.h.bf16 %v20083_v29  ;;  %v8534_v59 = vunpack.i.h.bf16 %v20090_v28  ;;  %v20105_v8 = vunpack.i.l.bf16 %v12262_v37 }
 0x2b6   : > { %2916 = vmatpush1.bf16.msra.mxu1 %v20100_v24  ;;  %v2524_v2 = vsel %vm19253_vm0, %v8573_v48, %v20101_v62  ;;  %2946 = vmatprep.subr.bf16.mxu0 %v2781_v31  ;;  %v20106_v11 = vunpack.i.h.bf16 %v12084_v35  ;;  %v20107_v62 = vunpack.i.l.bf16 %v20090_v28  ;;  %v20108_v43 = vunpack.i.l.bf16 %v20095_v33 }
 0x2b7   : > { %v2558_v41 = vsel %vm19253_vm0, %v8663_v18, %v20102_v57  ;;  %v2539_v6 = vsel %vm19253_vm0, %v20105_v8, %v8614_v4  ;;  %7483 = vmatprep.subr.msk.bf16.mxu1 %vm19252_vm8, %v2799_v17  ;;  %v20109_v3 = vmov 0   ;;  %v2557_v37 = vsel %vm19253_vm0, %v8659_v5, %v8663_v18 }
 0x2b8   : > { %v2523_v47 = vsel %vm19253_vm0, %v20106_v11, %v8573_v48  ;;  %v2780_v24 = vpack.c.bf16 %v2555_v51, %v2539_v6  ;;  %v2508_v57 = vsel %vm19253_vm0, %v8529_v44, %v20107_v62  ;;  %v2542_v40 = vsel %vm19253_vm0, %v8619_v13, %v20108_v43  ;;  %2974 = vmatprep.mubr.bf16.mxu0 %v20109_v3 }
 0x2b9   : > { %7480 = vmatmul.mubr.msk.bf16.vlgmr.msra.gmra.mxu1 %vm692_vm14, %v12946_v54  ;;  %v2831_v35 = vsel %vm19252_vm8, %v2798_v27, 0  ;;  %v2765_v4 = vpack.c.bf16 %v2524_v2, %v2508_v57  ;;  %v2783_v48 = vpack.c.bf16 %v2558_v41, %v2542_v40  ;;  %v8094_v51 = vunpack.i.h.bf16 %v20045_v49 }
 0x2ba   : > { %v20110_v31 = vunpack.i.h.bf16 %v20010_v36  ;;  %v20111_v17 = vunpack.i.l.bf16 %v20010_v36  ;;  %2947 = vmatpush1.bf16.msra.mxu0 %v2780_v24  ;;  %2986 = vmatpush1.bf16.msra.mxu1 %v2831_v35  ;;  %v1531_v18 = vsel %vm1413_vm1, %v12893_v55, %v1387_v14  ;;  %v20112_v5 = vunpack.i.h.bf16 %v20091_v56 }
 0x2bb   : > { %v8034_v27 = vunpack.i.h.bf16 %v20039_v60  ;;  %v20113_v2 = vunpack.i.l.bf16 %v11933_v52  ;;  %v20114_v40 = vunpack.i.l.bf16 %v20074_v25  ;;  %2948 = vmatprep.subr.bf16.mxu0 %v2765_v4  ;;  %2987 = vmatprep.subr.bf16.mxu1 %v2783_v48  ;;  %v20115_v6 = vunpack.i.l.bf16 %v20103_v22 }
 0x2bc   : > { %v1386_v8 = vsel %vm19251_vm10, %v20111_v17, %v20110_v31  ;;  %v2526_v43 = vsel %vm19253_vm0, %v8578_v26, %v20112_v5  ;;  %v20116_v55 = vunpack.i.h.bf16 %v20054_v34  ;;  %v20117_v62 = vunpack.i.l.bf16 %v20104_v7  ;;  %3015 = vmatprep.mubr.bf16.mxu1 %v20109_v3 }
 0x2bd   : > { %v2507_v41 = vsel %vm19253_vm0, %v20113_v2, %v8529_v44  ;;  %v2541_v36 = vsel %vm19253_vm0, %v20114_v40, %v8619_v13  ;;  %v20118_v44 = vunpack.i.l.bf16 %v20064_v61  ;;  %v20119_v13 = vunpack.i.h.bf16 %v20073_v58 }
 0x2be   : > { %v1389_v14 = vsel %vm19251_vm10, %v20116_v55, %v20115_v6  ;;  %v2764_v11 = vpack.c.bf16 %v2523_v47, %v2507_v41  ;;  %v2782_v24 = vpack.c.bf16 %v2557_v37, %v2541_v36  ;;  %v2510_v52 = vsel %vm19253_vm0, %v8534_v59, %v20117_v62  ;;  %v20126_v6 = vld [vmem:[#allocation105_spill] sm:$0xff] }
 0x2bf   : > { %v1325_v25 = vsel %vm19254_vm7, %v8094_v51, %v20118_v44  ;;  %v2525_v57 = vsel %vm19253_vm0, %v20119_v13, %v8578_v26  ;;  %v2749_v35 = vpack.c.bf16 %v1531_v18, %v12875_v19  ;;  %v2767_v4 = vpack.c.bf16 %v2526_v43, %v2510_v52  ;;  %v20132_v44 = vld [vmem:[#allocation117_spill] sm:$0xff]  ;;  %v8752_v13 = vpop.permute.xlu0 %8751 }
 0x2c0   : > { %v1530_v47 = vsel %vm1413_vm1, %v12886_v12, %v1386_v8  ;;  %v8003_v37 = vunpack.i.l.bf16 %v20042_v23  ;;  %v20120_v48 = vmov %v20116_v55  ;;  %v20121_v31 = vunpack.i.l.bf16 %v20054_v34  ;;  %2949 = vmatpush1.bf16.msra.mxu0 %v2764_v11  ;;  %2988 = vmatpush1.bf16.msra.mxu1 %v2782_v24 }
 0x2c1   : > { %v20122_v58 = vunpack.i.l.bf16 %v20049_v10  ;;  %v1533_v19 = vsel %vm1413_vm1, %v1325_v25, %v1389_v14  ;;  %v20123_v18 = vunpack.i.h.bf16 %v19997_v50  ;;  %v19237_v8 = vunpack.i.h.bf16 %v20043_v42  ;;  %2950 = vmatprep.subr.bf16.mxu0 %v2749_v35  ;;  %2989 = vmatprep.subr.bf16.mxu1 %v2767_v4  ;;  %v20135_v35 = vld [vmem:[#allocation125_spill] sm:$0xff] }
 0x2c2   : > { %v1388_v17 = vsel %vm19251_vm10, %v20121_v31, %v20120_v48  ;;  %v20124_v5 = vunpack.i.l.bf16 %v20090_v28  ;;  %v1514_v43 = vsel %vm1413_vm1, %v12842_v21, %v12859_v20  ;;  %v20125_v2 = vunpack.i.l.bf16 %v20045_v49  ;;  %v20128_v49 = vld [vmem:[#allocation84_spill] sm:$0xff] }
 0x2c3   : > { %v1196_v26 = vsel %vm19268_vm6, %v8034_v27, %v20122_v58  ;;  %v1260_v12 = vsel %vm1253_vm4, %v20123_v18, %v20061_v30  ;;  %v2748_v40 = vpack.c.bf16 %v1530_v47, %v1514_v43  ;;  %v19235_v55 = vunpack.i.l.bf16 %v20126_v6 }
 0x2c4   : > { %v2509_v34 = vsel %vm19253_vm0, %v20124_v5, %v8534_v59  ;;  %v1324_v41 = vsel %vm19254_vm7, %v20125_v2, %v8094_v51  ;;  %v1517_v36 = vsel %vm1413_vm1, %v1196_v26, %v12881_v38  ;;  %v8039_v28 = vunpack.i.h.bf16 %v20049_v10  ;;  %v20129_v51 = vld [vmem:[#allocation95_spill] sm:$0xff] }
 0x2c5   : > { %v2766_v50 = vpack.c.bf16 %v2525_v57, %v2509_v34  ;;  %v2751_v59 = vpack.c.bf16 %v1533_v19, %v1517_v36  ;;  %v1532_v14 = vsel %vm1413_vm1, %v1324_v41, %v1388_v17  ;;  %v20127_v11 = vunpack.i.l.bf16 %v20039_v60  ;;  %2951 = vmatpush1.bf16.msra.mxu0 %v2748_v40  ;;  %v20143_v41 = vld [vmem:[#allocation175_spill] sm:$0xff]  ;;  %v20144_v40 = vld [vmem:[#allocation80_spill] sm:$0xff]  ;;  %v20146_v36 = vld [vmem:[#allocation133_spill] sm:$0xff] }
 0x2c6   : > { %v2734_v20 = vpack.c.bf16 %v12819_v32, %v20128_v49  ;;  %v20130_v24 = vunpack.i.h.bf16 %v20129_v51  ;;  %v20131_v62 = vunpack.i.h.bf16 %v20042_v23  ;;  %v19234_v25 = vunpack.i.l.bf16 %v20132_v44  ;;  %v20134_v32 = vld [vmem:[#allocation83_spill] sm:$0xff]  ;;  %v20150_v51 = vld [vmem:[#allocation118_spill] sm:$0xff] }
 0x2c7   : > { %v1195_v21 = vsel %vm19268_vm6, %v20127_v11, %v8034_v27  ;;  %2990 = vmatpush1.bf16.msra.mxu1 %v2766_v50  ;;  %v20133_v60 = vpack.c.bf16 %v12624_v39, %v12465_v0  ;;  %v2735_v57 = vpack.c.bf16 %v12852_v15, %v20134_v32  ;;  %v19236_v4 = vunpack.i.l.bf16 %v20135_v35  ;;  %v20138_v15 = vld [vmem:[#allocation90_spill] sm:$0xff]  ;;  %v20148_v11 = vld [vmem:[#allocation44_spill] sm:$0xff] }
 0x2c8   : > { %v1131_v38 = vsel %vm19271_vm5, %v20130_v24, %v8003_v37  ;;  %v13079_v52 = vsel %vm19271_vm5, %v8003_v37, %v20131_v62  ;;  %2991 = vmatprep.subr.bf16.mxu1 %v2751_v59  ;;  %v1516_v27 = vsel %vm1413_vm1, %v1195_v21, %v1260_v12  ;;  %v8099_v47 = vunpack.i.h.bf16 %v20064_v61  ;;  %v20136_v37 = vld [vmem:[#allocation115_spill] sm:$0xff]  ;;  %v20141_v12 = vld [vmem:[#allocation108_spill] sm:$0xff]  ;;  %v13125_v59 = vpop.permute.xlu1 %8756 }
 0x2c9   : > { %2952 = vmatprep.subr.bf16.mxu0 %v20133_v60  ;;  %v2750_v48 = vpack.c.bf16 %v1532_v14, %v1516_v27  ;;  %v1263_v31 = vsel %vm1253_vm4, %v20136_v37, %v19237_v8  ;;  %v20137_v17 = vmov %v20122_v58  ;;  %v1198_v0 = vsel %vm19268_vm6, %v8039_v28, %v19235_v55  ;;  %v20147_v14 = vld [vmem:[#allocation61_spill] sm:$0xff]  ;;  %v20152_v60 = vld [vmem:[#allocation111_spill] sm:$0xff]  ;;  %v20165_v8 = vld [vmem:[#allocation48_spill] sm:$0xff] }
 0x2ca   : > { %v13097_v39 = vsel %vm19268_vm6, %v20137_v17, %v8039_v28  ;;  %v13104_v58 = vsel %vm1413_vm1, %v20138_v15, %v1131_v38  ;;  %v20139_v26 = vunpack.i.l.bf16 %v20041_v9  ;;  %v20140_v19 = vmov %v20131_v62  ;;  %v20154_v17 = vld [vmem:[#allocation85_spill] sm:$0xff] }
 0x2cb   : > { %v20142_v5 = vunpack.i.l.bf16 %v20043_v42  ;;  %v8754_v43 = vunpack.i.h.bf16 %v8752_v13  ;;  %v8753_v2 = vunpack.i.l.bf16 %v8752_v13  ;;  %v20145_v50 = vpack.c.bf16 %v20143_v41, %v20144_v40  ;;  %2992 = vmatpush1.bf16.msra.mxu1 %v2750_v48  ;;  %v20156_v41 = vld [vmem:[#allocation46_spill] sm:$0xff] }
 0x2cc   : > { %v13111_v18 = vsel %vm19271_vm5, %v20140_v19, %v20139_v26  ;;  %v19238_v23 = vunpack.i.l.bf16 %v20146_v36  ;;  %v19239_v28 = vunpack.i.h.bf16 %v20103_v22  ;;  %v20149_v21 = vpack.c.bf16 %v20147_v14, %v20148_v11  ;;  %2993 = vmatprep.subr.bf16.mxu1 %v2735_v57  ;;  %v20153_v57 = vld [vmem:[#allocation128_spill] sm:$0xff]  ;;  %v20170_v48 = vld [vmem:[#allocation14_spill] sm:$0xff] }
 0x2cd   : > { %v13118_v34 = vsel %vm1253_vm4, %v20142_v5, %v20136_v37  ;;  %2953 = vmatpush1.bf16.msra.mxu0 %v20145_v50  ;;  %v13131_v49 = vsel %vm1413_vm1, %v1198_v0, %v1263_v31  ;;  %v13137_v24 = vsel %vm1253_vm4, %v20150_v51, %v19234_v25  ;;  %v20151_v38 = vunpack.i.l.bf16 %v20064_v61  ;;  %v20155_v5 = vld [vmem:[#allocation60_spill] sm:$0xff]  ;;  %v20162_v25 = vld [vmem:[#allocation18_spill] sm:$0xff] }
 0x2ce   : > { %2954 = vmatprep.subr.bf16.mxu0 %v20149_v21  ;;  %v8709_v13 = vunpack.i.h.bf16 %v20081_v1  ;;  %v8713_v27 = vunpack.i.l.bf16 %v20152_v60  ;;  %v13149_v32 = vsel %vm19254_vm7, %v8099_v47, %v19236_v4  ;;  %v8669_v0 = vunpack.i.h.bf16 %v20154_v17  ;;  %v20159_v14 = vld [vmem:[#allocation40_spill] sm:$0xff]  ;;  %v20164_v4 = vld [vmem:[#allocation63_spill] sm:$0xff] }
 0x2cf   : > { %v13142_v62 = vsel %vm19254_vm7, %v20151_v38, %v8099_v47  ;;  %v8668_v61 = vunpack.i.l.bf16 %v20154_v17  ;;  %v19240_v15 = vunpack.i.h.bf16 %v13125_v59  ;;  %v8758_v26 = vunpack.i.l.bf16 %v13125_v59  ;;  %2994 = vmatpush1.bf16.msra.mxu1 %v2734_v20  ;;  %v20160_v38 = vld [vmem:[#allocation66_spill] sm:$0xff]  ;;  %v20161_v17 = vld [vmem:[#allocation31_spill] sm:$0xff] }
 0x2d0   : > { %v2592_v19 = vsel %vm19253_vm0, %v8753_v2, %v8754_v43  ;;  %v20157_v40 = vpack.c.bf16 %v20155_v5, %v20156_v41  ;;  %v20158_v47 = vunpack.i.h.bf16 %v12866_v53  ;;  %v8624_v21 = vunpack.i.h.bf16 %v20095_v33 }
 0x2d1   : > { %v20163_v55 = vpack.c.bf16 %v20161_v17, %v20162_v25  ;;  %v20166_v10 = vpack.c.bf16 %v20164_v4, %v20165_v8  ;;  %v1391_v53 = vsel %vm19251_vm10, %v19239_v28, %v19238_v23  ;;  %v2576_v20 = vsel %vm19253_vm0, %v8709_v13, %v8713_v27  ;;  %v20168_v8 = vld [vmem:[#allocation91_spill] sm:$0xff]  ;;  %v20169_v23 = vld [vmem:[#allocation145_spill] sm:$0xff] }
 0x2d2   : > { %2955 = vmatpush1.bf16.msra.mxu0 %v20157_v40  ;;  %v2591_v50 = vsel %vm19253_vm0, %v20158_v47, %v8753_v2  ;;  %v8728_v5 = vunpack.i.l.bf16 %v12754_v63  ;;  %v20167_v41 = vunpack.i.l.bf16 %v20081_v1  ;;  %v8583_v25 = vunpack.i.l.bf16 %v20159_v14  ;;  %v20172_v28 = vld [vmem:[#allocation161_spill] sm:$0xff]  ;;  %v20173_v1 = vld [vmem:[#allocation154_spill] sm:$0xff]  ;;  %v20177_v2 = vld [vmem:[#allocation147_spill] sm:$0xff] }
 0x2d3   : > { %2956 = vmatprep.subr.bf16.mxu0 %v20163_v55  ;;  %2995 = vmatprep.subr.bf16.mxu1 %v20166_v10  ;;  %v2801_v10 = vpack.c.bf16 %v2592_v19, %v2576_v20  ;;  %v8673_v47 = vunpack.i.l.bf16 %v20168_v8  ;;  %v2594_v17 = vsel %vm19253_vm0, %v8758_v26, %v19240_v15  ;;  %v20171_v31 = vpack.c.bf16 %v20169_v23, %v20170_v48  ;;  %v20178_v15 = vld [vmem:[#allocation19_spill] sm:$0xff]  ;;  %v20181_v48 = vld [vmem:[#allocation68_spill] sm:$0xff] }
 0x2d4   : > { %v2575_v55 = vsel %vm19253_vm0, %v20167_v41, %v8709_v13  ;;  %v20174_v11 = vpack.c.bf16 %v20172_v28, %v20173_v1  ;;  %v2560_v13 = vsel %vm19253_vm0, %v8668_v61, %v8669_v0  ;;  %v2593_v41 = vsel %vm19253_vm0, %v8754_v43, %v8758_v26 }
 0x2d5   : > { %v2800_v40 = vpack.c.bf16 %v2591_v50, %v2575_v55  ;;  %v8539_v19 = vunpack.i.h.bf16 %v20104_v7  ;;  %v20175_v50 = vld [vmem:[#allocation29_spill] sm:$0xff]  ;;  %v20176_v55 = vld [vmem:[#allocation43_spill] sm:$0xff]  ;;  %v20179_v60 = vpack.c.bf16 %v20177_v2, %v20178_v15  ;;  %v20180_v23 = vunpack.i.l.bf16 %v20160_v38 }
 0x2d6   : > { %2957 = vmatpush1.bf16.msra.mxu0 %v20171_v31  ;;  %2996 = vmatpush1.bf16.msra.mxu1 %v20174_v11  ;;  %v8543_v20 = vunpack.i.l.bf16 %v20175_v50  ;;  %v20182_v43 = vunpack.i.h.bf16 %v20083_v29  ;;  %v20183_v11 = vunpack.i.h.bf16 %v12754_v63  ;;  %v2577_v4 = vsel %vm19253_vm0, %v8713_v27, %v8728_v5  ;;  %v20184_v31 = vld [vmem:[#allocation146_spill] sm:$0xff] }
 0x2d7   : > { %2997 = vmatprep.subr.bf16.mxu1 %v20179_v60  ;;  %7485 = vmatprep.subr.msk.bf16.mxu0 %vm19252_vm8, %v2801_v10  ;;  %v2544_v28 = vsel %vm19253_vm0, %v8624_v21, %v20180_v23  ;;  %v2837_v15 = vsel %vm19252_vm8, %v2800_v40, 0  ;;  %v2802_v10 = vpack.c.bf16 %v2593_v41, %v2577_v4  ;;  %v8588_v23 = vunpack.i.l.bf16 %v20176_v55  ;;  %v20190_v41 = vld [vmem:[#allocation28_spill] sm:$0xff] }
 0x2d8   : > { %v2559_v26 = vsel %vm19253_vm0, %v20182_v43, %v8668_v61  ;;  %v2578_v1 = vsel %vm19253_vm0, %v8728_v5, %v20183_v11  ;;  %v2785_v60 = vpack.c.bf16 %v2560_v13, %v2544_v28  ;;  %v8629_v29 = vunpack.i.h.bf16 %v20160_v38  ;;  %v20185_v61 = vld [vmem:[#allocation17_spill] sm:$0xff]  ;;  %v20189_v13 = vld [vmem:[#allocation136_spill] sm:$0xff] }
 0x2d9   : > { %7482 = vmatmul.mubr.msk.bf16.vlgmr.msra.gmra.mxu0 %vm692_vm14, %v12946_v54  ;;  %v2803_v2 = vpack.c.bf16 %v2594_v17, %v2578_v1  ;;  %v20186_v43 = vpack.c.bf16 %v20184_v31, %v20185_v61  ;;  %v20187_v11 = vunpack.i.h.bf16 %v20159_v14  ;;  %v20188_v5 = vunpack.i.h.bf16 %v20168_v8 }
 0x2da   : > { %3027 = vmatpush1.bf16.msra.mxu0 %v2837_v15  ;;  %v19250_v17 = vunpack.i.l.bf16 %v20189_v13  ;;  %v8544_v4 = vunpack.i.h.bf16 %v20175_v50  ;;  %v20191_v1 = vunpack.i.l.bf16 %v20095_v33  ;;  %v20192_v15 = vunpack.i.h.bf16 %v20091_v56  ;;  %3056 = vmatprep.mubr.bf16.mxu0 %v20109_v3  ;;  %v20210_v50 = vld [vmem:[#allocation169_spill] sm:$0xff] }
 0x2db   : > { %2998 = vmatpush1.bf16.msra.mxu1 %v20186_v43  ;;  %v2528_v27 = vsel %vm19253_vm0, %v8583_v25, %v20187_v11  ;;  %v2562_v40 = vsel %vm19253_vm0, %v8673_v47, %v20188_v5  ;;  %3028 = vmatprep.subr.bf16.mxu0 %v2785_v60  ;;  %v2512_v11 = vsel %vm19253_vm0, %v8539_v19, %v8543_v20  ;;  %v20193_v5 = vunpack.i.l.bf16 %v20181_v48 }
 0x2dc   : > { %v2543_v31 = vsel %vm19253_vm0, %v20191_v1, %v8624_v21  ;;  %7487 = vmatprep.subr.msk.bf16.mxu1 %vm19252_vm8, %v2803_v2  ;;  %v2527_v61 = vsel %vm19253_vm0, %v20192_v15, %v8583_v25  ;;  %v2561_v33 = vsel %vm19253_vm0, %v8669_v0, %v8673_v47  ;;  %v2843_v56 = vsel %vm19252_vm8, %v2802_v10, 0 }
 0x2dd   : > { %v2784_v43 = vpack.c.bf16 %v2559_v26, %v2543_v31  ;;  %v2546_v28 = vsel %vm19253_vm0, %v8629_v29, %v20193_v5  ;;  %v2769_v21 = vpack.c.bf16 %v2528_v27, %v2512_v11  ;;  %v8104_v26 = vunpack.i.h.bf16 %v20135_v35 }
 0x2de   : > { %7484 = vmatmul.mubr.msk.bf16.vlgmr.msra.gmra.mxu1 %vm692_vm14, %v12946_v54  ;;  %v2787_v25 = vpack.c.bf16 %v2562_v40, %v2546_v28  ;;  %v20194_v60 = vunpack.i.h.bf16 %v20103_v22  ;;  %v20195_v2 = vunpack.i.l.bf16 %v20103_v22  ;;  %v1535_v0 = vsel %vm1413_vm1, %v13149_v32, %v1391_v53 }
 0x2df   : > { %3029 = vmatpush1.bf16.msra.mxu0 %v2784_v43  ;;  %3068 = vmatpush1.bf16.msra.mxu1 %v2843_v56  ;;  %v20196_v47 = vunpack.i.h.bf16 %v20176_v55  ;;  %v8044_v10 = vunpack.i.h.bf16 %v20126_v6  ;;  %v20197_v27 = vunpack.i.l.bf16 %v20104_v7  ;;  %v20198_v28 = vunpack.i.l.bf16 %v20160_v38 }
 0x2e0   : > { %v1390_v1 = vsel %vm19251_vm10, %v20195_v2, %v20194_v60  ;;  %3030 = vmatprep.subr.bf16.mxu0 %v2769_v21  ;;  %3069 = vmatprep.subr.bf16.mxu1 %v2787_v25  ;;  %v20199_v32 = vunpack.i.h.bf16 %v20146_v36  ;;  %v20200_v11 = vunpack.i.l.bf16 %v20190_v41  ;;  %v2753_v56 = vpack.c.bf16 %v1535_v0, %v13131_v49  ;;  %v20207_v0 = vld [vmem:[#allocation100_spill] sm:$0xff] }
 0x2e1   : > { %v2530_v31 = vsel %vm19253_vm0, %v8588_v23, %v20196_v47  ;;  %v2511_v40 = vsel %vm19253_vm0, %v20197_v27, %v8539_v19  ;;  %v2545_v22 = vsel %vm19253_vm0, %v20198_v28, %v8629_v29  ;;  %v20201_v19 = vunpack.i.l.bf16 %v20153_v57  ;;  %3097 = vmatprep.mubr.bf16.mxu1 %v20109_v3 }
 0x2e2   : > { %v1393_v53 = vsel %vm19251_vm10, %v20199_v32, %v19250_v17  ;;  %v2768_v15 = vpack.c.bf16 %v2527_v61, %v2511_v40  ;;  %v2786_v43 = vpack.c.bf16 %v2561_v33, %v2545_v22  ;;  %v2514_v7 = vsel %vm19253_vm0, %v8544_v4, %v20200_v11  ;;  %v20203_v33 = vld [vmem:[#allocation92_spill] sm:$0xff] }
 0x2e3   : > { %v1329_v38 = vsel %vm19254_vm7, %v8104_v26, %v20201_v19  ;;  %v20202_v29 = vunpack.i.h.bf16 %v20159_v14  ;;  %v2771_v21 = vpack.c.bf16 %v2530_v31, %v2514_v7  ;;  %v1534_v61 = vsel %vm1413_vm1, %v13142_v62, %v1390_v1  ;;  %v20215_v19 = vld [vmem:[#allocation107_spill] sm:$0xff] }
 0x2e4   : > { %v7973_v25 = vunpack.i.l.bf16 %v20203_v33  ;;  %v20204_v60 = vmov %v20199_v32  ;;  %v20205_v2 = vunpack.i.l.bf16 %v20146_v36  ;;  %3031 = vmatpush1.bf16.msra.mxu0 %v2768_v15  ;;  %3070 = vmatpush1.bf16.msra.mxu1 %v2786_v43  ;;  %v20206_v14 = vunpack.i.l.bf16 %v20141_v12  ;;  %v20211_v43 = vld [vmem:[#allocation89_spill] sm:$0xff] }
 0x2e5   : > { %v2529_v5 = vsel %vm19253_vm0, %v20202_v29, %v8588_v23  ;;  %v1537_v49 = vsel %vm1413_vm1, %v1329_v38, %v1393_v53  ;;  %v19243_v31 = vunpack.i.l.bf16 %v20207_v0  ;;  %v20208_v62 = vunpack.i.h.bf16 %v20043_v42  ;;  %3032 = vmatprep.subr.bf16.mxu0 %v2753_v56  ;;  %3071 = vmatprep.subr.bf16.mxu1 %v2771_v21 }
 0x2e6   : > { %v1392_v47 = vsel %vm19251_vm10, %v20205_v2, %v20204_v60  ;;  %v1200_v23 = vsel %vm19268_vm6, %v8044_v10, %v20206_v14  ;;  %v2513_v36 = vsel %vm19253_vm0, %v8543_v20, %v8544_v4  ;;  %v1518_v27 = vsel %vm1413_vm1, %v13097_v39, %v13118_v34  ;;  %v20213_v34 = vld [vmem:[#allocation176_spill] sm:$0xff]  ;;  %v20218_v60 = vld [vmem:[#allocation127_spill] sm:$0xff] }
 0x2e7   : > { %v1264_v1 = vsel %vm1253_vm4, %v20208_v62, %v20150_v51  ;;  %v20209_v40 = vunpack.i.l.bf16 %v20135_v35  ;;  %v2752_v22 = vpack.c.bf16 %v1534_v61, %v1518_v27  ;;  %v2770_v32 = vpack.c.bf16 %v2529_v5, %v2513_v36  ;;  %v8762_v5 = vpop.permute.xlu0 %8761  ;;  %v8767_v36 = vpop.permute.xlu1 %8766  ;;  %v20221_v27 = vld [vmem:[#allocation163_spill] sm:$0xff] }
 0x2e8   : > { %v1521_v42 = vsel %vm1413_vm1, %v1200_v23, %v13137_v24  ;;  %v8009_v53 = vunpack.i.h.bf16 %v20041_v9  ;;  %v2737_v20 = vpack.c.bf16 %v13104_v58, %v20210_v50  ;;  %v19241_v11 = vunpack.i.h.bf16 %v20211_v43  ;;  %v20226_v50 = vld [vmem:[#allocation120_spill] sm:$0xff] }
 0x2e9   : > { %v1328_v28 = vsel %vm19254_vm7, %v20209_v40, %v8104_v26  ;;  %v2755_v4 = vpack.c.bf16 %v1537_v49, %v1521_v42  ;;  %v20212_v39 = vunpack.i.l.bf16 %v20126_v6  ;;  %3033 = vmatpush1.bf16.msra.mxu0 %v2752_v22  ;;  %3072 = vmatpush1.bf16.msra.mxu1 %v2770_v32  ;;  %v1505_v24 = vsel %vm1413_vm1, %v20213_v34, %v13111_v18  ;;  %v20214_v26 = vld [vmem:[#allocation94_spill] sm:$0xff]  ;;  %v20224_v22 = vld [vmem:[#allocation177_spill] sm:$0xff]  ;;  %v20225_v42 = vld [vmem:[#allocation99_spill] sm:$0xff] }
 0x2ea   : > { %v1536_v15 = vsel %vm1413_vm1, %v1328_v28, %v1392_v47  ;;  %v1504_v7 = vsel %vm1413_vm1, %v20214_v26, %v13079_v52  ;;  %v19244_v58 = vunpack.i.h.bf16 %v20207_v0  ;;  %v19242_v38 = vunpack.i.l.bf16 %v20215_v19  ;;  %3034 = vmatprep.subr.bf16.mxu0 %v2737_v20  ;;  %v20228_v34 = vld [vmem:[#allocation135_spill] sm:$0xff]  ;;  %v20229_v26 = vld [vmem:[#allocation86_spill] sm:$0xff] }
 0x2eb   : > { %v1199_v35 = vsel %vm19268_vm6, %v20212_v39, %v8044_v10  ;;  %v19247_v29 = vunpack.i.h.bf16 %v20141_v12  ;;  %3073 = vmatprep.subr.bf16.mxu1 %v2755_v4  ;;  %v20216_v10 = vld [vmem:[#allocation166_spill] sm:$0xff]  ;;  %v1135_v18 = vsel %vm19271_vm5, %v8009_v53, %v19243_v31  ;;  %v13339_v52 = vsel %vm19272_vm11, %v19241_v11, %v7973_v25  ;;  %v20239_v11 = vld [vmem:[#allocation165_spill] sm:$0xff] }
 0x2ec   : > { %v1520_v6 = vsel %vm1413_vm1, %v1199_v35, %v1264_v1  ;;  %v2736_v56 = vpack.c.bf16 %v12824_v16, %v20216_v10  ;;  %v20217_v61 = vunpack.i.l.bf16 %v20041_v9  ;;  %v19245_v2 = vunpack.i.l.bf16 %v20218_v60  ;;  %v20219_v16 = vld [vmem:[#allocation170_spill] sm:$0xff]  ;;  %v20220_v1 = vld [vmem:[#allocation171_spill] sm:$0xff]  ;;  %v20222_v9 = vld [vmem:[#allocation49_spill] sm:$0xff] }
 0x2ed   : > { %v2754_v21 = vpack.c.bf16 %v1536_v15, %v1520_v6  ;;  %v19248_v47 = vunpack.i.h.bf16 %v20153_v57  ;;  %v2739_v14 = vpack.c.bf16 %v1505_v24, %v20219_v16  ;;  %v19246_v23 = vunpack.i.h.bf16 %v20132_v44  ;;  %v20243_v31 = vld [vmem:[#allocation174_spill] sm:$0xff] }
 0x2ee   : > { %v13344_v33 = vsel %vm19271_vm5, %v20217_v61, %v8009_v53  ;;  %v8764_v49 = vunpack.i.h.bf16 %v8762_v5  ;;  %v8763_v62 = vunpack.i.l.bf16 %v8762_v5  ;;  %3035 = vmatpush1.bf16.msra.mxu0 %v2736_v56  ;;  %v2738_v25 = vpack.c.bf16 %v1504_v7, %v20220_v1 }
 0x2ef   : > { %3074 = vmatpush1.bf16.msra.mxu1 %v2754_v21  ;;  %v20223_v40 = vpack.c.bf16 %v20221_v27, %v20222_v9  ;;  %v13359_v28 = vsel %vm19268_vm6, %v19247_v29, %v19242_v38  ;;  %v13363_v32 = vsel %vm1413_vm1, %v20224_v22, %v1135_v18  ;;  %v13369_v53 = vsel %vm19271_vm5, %v19244_v58, %v20225_v42  ;;  %v20230_v21 = vld [vmem:[#allocation164_spill] sm:$0xff]  ;;  %v20231_v18 = vld [vmem:[#allocation50_spill] sm:$0xff]  ;;  %v20234_v27 = vld [vmem:[#allocation51_spill] sm:$0xff] }
 0x2f0   : > { %3075 = vmatprep.subr.bf16.mxu1 %v2739_v14  ;;  %v20227_v20 = vunpack.i.l.bf16 %v20132_v44  ;;  %v8734_v15 = vunpack.i.h.bf16 %v12773_v45  ;;  %v8733_v39 = vunpack.i.l.bf16 %v12773_v45  ;;  %v13383_v35 = vsel %vm1253_vm4, %v20226_v50, %v19246_v23  ;;  %v20235_v22 = vld [vmem:[#allocation71_spill] sm:$0xff]  ;;  %v20248_v23 = vld [vmem:[#allocation156_spill] sm:$0xff] }
 0x2f1   : > { %3036 = vmatprep.subr.bf16.mxu0 %v20223_v40  ;;  %v8153_v24 = vunpack.i.l.bf16 %v20228_v34  ;;  %v8679_v7 = vunpack.i.h.bf16 %v20229_v26  ;;  %v8678_v5 = vunpack.i.l.bf16 %v20229_v26  ;;  %v13393_v6 = vsel %vm19254_vm7, %v19248_v47, %v19245_v2 }
 0x2f2   : > { %v13375_v4 = vsel %vm1253_vm4, %v20227_v20, %v20226_v50  ;;  %v8769_v45 = vunpack.i.h.bf16 %v8767_v36  ;;  %v8768_v10 = vunpack.i.l.bf16 %v8767_v36  ;;  %v2596_v56 = vsel %vm19253_vm0, %v8763_v62, %v8764_v49  ;;  %v20236_v36 = vld [vmem:[#allocation148_spill] sm:$0xff] }
 0x2f3   : > { %v20232_v61 = vpack.c.bf16 %v20230_v21, %v20231_v18  ;;  %3076 = vmatpush1.bf16.msra.mxu1 %v2738_v25  ;;  %v20233_v16 = vunpack.i.h.bf16 %v13125_v59  ;;  %v8149_v1 = vunpack.i.h.bf16 %v20189_v13  ;;  %v8594_v9 = vunpack.i.h.bf16 %v20234_v27  ;;  %v20237_v20 = vld [vmem:[#allocation140_spill] sm:$0xff]  ;;  %v20240_v21 = vld [vmem:[#allocation157_spill] sm:$0xff] }
 0x2f4   : > { %v8634_v40 = vunpack.i.h.bf16 %v20181_v48  ;;  %v19249_v42 = vunpack.i.l.bf16 %v20235_v22  ;;  %v20238_v26 = vpack.c.bf16 %v20236_v36, %v20237_v20  ;;  %v20241_v18 = vpack.c.bf16 %v20239_v11, %v20240_v21  ;;  %v20244_v21 = vld [vmem:[#allocation151_spill] sm:$0xff] }
 0x2f5   : > { %3037 = vmatpush1.bf16.msra.mxu0 %v20232_v61  ;;  %v2595_v14 = vsel %vm19253_vm0, %v20233_v16, %v8763_v62  ;;  %v8739_v59 = vunpack.i.h.bf16 %v12809_v46  ;;  %v8738_v62 = vunpack.i.l.bf16 %v12809_v46  ;;  %v2580_v25 = vsel %vm19253_vm0, %v8733_v39, %v8734_v15  ;;  %v20247_v46 = vld [vmem:[#allocation67_spill] sm:$0xff] }
 0x2f6   : > { %3038 = vmatprep.subr.bf16.mxu0 %v20238_v26  ;;  %3077 = vmatprep.subr.bf16.mxu1 %v20241_v18  ;;  %v20242_v61 = vunpack.i.h.bf16 %v12754_v63  ;;  %v8593_v38 = vunpack.i.l.bf16 %v20234_v27  ;;  %v8684_v58 = vunpack.i.h.bf16 %v20243_v31  ;;  %v2805_v36 = vpack.c.bf16 %v2596_v56, %v2580_v25  ;;  %v20245_v18 = vld [vmem:[#allocation139_spill] sm:$0xff]  ;;  %v20250_v56 = vld [vmem:[#allocation149_spill] sm:$0xff]  ;;  %v20251_v25 = vld [vmem:[#allocation52_spill] sm:$0xff] }
 0x2f7   : > { %v8683_v26 = vunpack.i.l.bf16 %v20243_v31  ;;  %v2598_v11 = vsel %vm19253_vm0, %v8768_v10, %v8769_v45  ;;  %v20246_v2 = vpack.c.bf16 %v20244_v21, %v20245_v18  ;;  %v20249_v29 = vpack.c.bf16 %v20247_v46, %v20248_v23  ;;  %v20253_v45 = vld [vmem:[#allocation138_spill] sm:$0xff] }
 0x2f8   : > { %v2579_v16 = vsel %vm19253_vm0, %v20242_v61, %v8733_v39  ;;  %v2564_v63 = vsel %vm19253_vm0, %v8678_v5, %v8679_v7  ;;  %v2597_v39 = vsel %vm19253_vm0, %v8764_v49, %v8768_v10  ;;  %v8549_v61 = vunpack.i.h.bf16 %v20190_v41 }
 0x2f9   : > { %v2804_v20 = vpack.c.bf16 %v2595_v14, %v2579_v16  ;;  %3039 = vmatpush1.bf16.msra.mxu0 %v20246_v2  ;;  %3078 = vmatpush1.bf16.msra.mxu1 %v20249_v29  ;;  %v8553_v14 = vunpack.i.l.bf16 %v20250_v56  ;;  %v8599_v31 = vunpack.i.h.bf16 %v20251_v25  ;;  %v20252_v16 = vld [vmem:[#allocation152_spill] sm:$0xff]  ;;  %v2548_v29 = vsel %vm19253_vm0, %v8634_v40, %v19249_v42  ;;  %v20255_v2 = vld [vmem:[#allocation73_spill] sm:$0xff] }
 0x2fa   : > { %v20254_v47 = vpack.c.bf16 %v20252_v16, %v20253_v45  ;;  %7489 = vmatprep.subr.msk.bf16.mxu0 %vm19252_vm8, %v2805_v36  ;;  %v8643_v23 = vunpack.i.l.bf16 %v20255_v2  ;;  %v20256_v49 = vunpack.i.h.bf16 %v20168_v8  ;;  %v2582_v21 = vsel %vm19253_vm0, %v8738_v62, %v8739_v59  ;;  %v20257_v42 = vld [vmem:[#allocation153_spill] sm:$0xff] }
 0x2fb   : > { %v2581_v18 = vsel %vm19253_vm0, %v8734_v15, %v8738_v62  ;;  %v2789_v36 = vpack.c.bf16 %v2564_v63, %v2548_v29  ;;  %v2807_v46 = vpack.c.bf16 %v2598_v11, %v2582_v21  ;;  %v8598_v45 = vunpack.i.l.bf16 %v20251_v25  ;;  %v20258_v8 = vld [vmem:[#allocation141_spill] sm:$0xff]  ;;  %v20260_v62 = vld [vmem:[#allocation150_spill] sm:$0xff] }
 0x2fc   : > { %3079 = vmatprep.subr.bf16.mxu1 %v20254_v47  ;;  %v2563_v10 = vsel %vm19253_vm0, %v20256_v49, %v8678_v5  ;;  %7486 = vmatmul.mubr.msk.bf16.vlgmr.msra.gmra.mxu0 %vm692_vm14, %v12946_v54  ;;  %v2849_v47 = vsel %vm19252_vm8, %v2804_v20, 0  ;;  %v2806_v16 = vpack.c.bf16 %v2597_v39, %v2581_v18  ;;  %v8639_v2 = vunpack.i.h.bf16 %v20235_v22 }
 0x2fd   : > { %v20259_v17 = vpack.c.bf16 %v20257_v42, %v20258_v8  ;;  %3109 = vmatpush1.bf16.msra.mxu0 %v2849_v47  ;;  %v2532_v15 = vsel %vm19253_vm0, %v8593_v38, %v8594_v9  ;;  %v2566_v5 = vsel %vm19253_vm0, %v8683_v26, %v8684_v58  ;;  %v8554_v59 = vunpack.i.h.bf16 %v20250_v56  ;;  %3138 = vmatprep.mubr.bf16.mxu0 %v20109_v3 }
 0x2fe   : > { %v8558_v20 = vunpack.i.l.bf16 %v20260_v62  ;;  %v20261_v11 = vunpack.i.l.bf16 %v20181_v48  ;;  %3110 = vmatprep.subr.bf16.mxu0 %v2789_v36  ;;  %v20262_v42 = vunpack.i.h.bf16 %v20176_v55  ;;  %v2516_v25 = vsel %vm19253_vm0, %v8549_v61, %v8553_v14 }
 0x2ff   : > { %3080 = vmatpush1.bf16.msra.mxu1 %v20259_v17  ;;  %v1395_v17 = vsel %vm19251_vm10, %v8149_v1, %v8153_v24  ;;  %v2550_v48 = vsel %vm19253_vm0, %v8639_v2, %v8643_v23  ;;  %v2855_v29 = vsel %vm19252_vm8, %v2806_v16, 0  ;;  %v2773_v49 = vpack.c.bf16 %v2532_v15, %v2516_v25 }
 0x300   : > { %v2547_v63 = vsel %vm19253_vm0, %v20261_v11, %v8634_v40  ;;  %7491 = vmatprep.subr.msk.bf16.mxu1 %vm19252_vm8, %v2807_v46  ;;  %v2531_v39 = vsel %vm19253_vm0, %v20262_v42, %v8593_v38  ;;  %v2565_v40 = vsel %vm19253_vm0, %v8679_v7, %v8683_v26  ;;  %v2791_v55 = vpack.c.bf16 %v2566_v5, %v2550_v48  ;;  %v20273_v42 = vld [vmem:[#allocation172_spill] sm:$0xff] }
 0x301   : > { %v2788_v58 = vpack.c.bf16 %v2563_v10, %v2547_v63  ;;  %v8154_v38 = vunpack.i.h.bf16 %v20228_v34  ;;  %v20263_v10 = vunpack.i.l.bf16 %v20189_v13  ;;  %v1539_v23 = vsel %vm1413_vm1, %v13393_v6, %v1395_v17 }
 0x302   : > { %7488 = vmatmul.mubr.msk.bf16.vlgmr.msra.gmra.mxu1 %vm692_vm14, %v12946_v54  ;;  %v2534_v7 = vsel %vm19253_vm0, %v8598_v45, %v8599_v31  ;;  %v8114_v26 = vunpack.i.h.bf16 %v20218_v60  ;;  %v20264_v18 = vunpack.i.l.bf16 %v20190_v41  ;;  %v20265_v36 = vunpack.i.l.bf16 %v20235_v22 }
 0x303   : > { %v1394_v21 = vsel %vm19251_vm10, %v20263_v10, %v8149_v1  ;;  %3111 = vmatpush1.bf16.msra.mxu0 %v2788_v58  ;;  %3150 = vmatpush1.bf16.msra.mxu1 %v2855_v29  ;;  %v1523_v13 = vsel %vm1413_vm1, %v13359_v28, %v13383_v35  ;;  %v20266_v6 = vunpack.i.h.bf16 %v20153_v57  ;;  %v20267_v1 = vunpack.i.l.bf16 %v20153_v57 }
 0x304   : > { %v2515_v47 = vsel %vm19253_vm0, %v20264_v18, %v8549_v61  ;;  %v2549_v46 = vsel %vm19253_vm0, %v20265_v36, %v8639_v2  ;;  %3112 = vmatprep.subr.bf16.mxu0 %v2773_v49  ;;  %3151 = vmatprep.subr.bf16.mxu1 %v2791_v55  ;;  %v2518_v61 = vsel %vm19253_vm0, %v8554_v59, %v8558_v20  ;;  %v8054_v35 = vunpack.i.h.bf16 %v20215_v19 }
 0x305   : > { %v1330_v31 = vsel %vm19254_vm7, %v20267_v1, %v20266_v6  ;;  %v2772_v16 = vpack.c.bf16 %v2531_v39, %v2515_v47  ;;  %v2790_v41 = vpack.c.bf16 %v2565_v40, %v2549_v46  ;;  %3179 = vmatprep.mubr.bf16.mxu1 %v20109_v3  ;;  %v2533_v22 = vsel %vm19253_vm0, %v8594_v9, %v8598_v45  ;;  %v20270_v9 = vld [vmem:[#allocation119_spill] sm:$0xff]  ;;  %v20287_v46 = vld [vmem:[#allocation173_spill] sm:$0xff]  ;;  %v20289_v1 = vld [vmem:[#allocation158_spill] sm:$0xff] }
 0x306   : > { %v2757_v2 = vpack.c.bf16 %v1539_v23, %v1523_v13  ;;  %v2775_v8 = vpack.c.bf16 %v2534_v7, %v2518_v61  ;;  %v1538_v28 = vsel %vm1413_vm1, %v1330_v31, %v1394_v21  ;;  %v20268_v57 = vunpack.i.h.bf16 %v20141_v12  ;;  %v20283_v23 = vld [vmem:[#allocation167_spill] sm:$0xff]  ;;  %v20288_v13 = vld [vmem:[#allocation77_spill] sm:$0xff]  ;;  %v20291_v61 = vld [vmem:[#allocation160_spill] sm:$0xff] }
 0x307   : > { %v20269_v15 = vunpack.i.l.bf16 %v20141_v12  ;;  %v1396_v62 = vsel %vm19251_vm10, %v8153_v24, %v8154_v38  ;;  %3113 = vmatpush1.bf16.msra.mxu0 %v2772_v16  ;;  %3152 = vmatpush1.bf16.msra.mxu1 %v2790_v41  ;;  %v1541_v27 = vsel %vm1413_vm1, %v8114_v26, %v8154_v38  ;;  %v20271_v45 = vunpack.i.h.bf16 %v20132_v44  ;;  %v20280_v38 = vld [vmem:[#allocation82_spill] sm:$0xff]  ;;  %v20290_v31 = vld [vmem:[#allocation69_spill] sm:$0xff] }
 0x308   : > { %v2517_v11 = vsel %vm19253_vm0, %v8553_v14, %v8554_v59  ;;  %3114 = vmatprep.subr.bf16.mxu0 %v2757_v2  ;;  %3153 = vmatprep.subr.bf16.mxu1 %v2775_v8  ;;  %v20272_v34 = vunpack.i.l.bf16 %v20218_v60  ;;  %v1525_v44 = vsel %vm1413_vm1, %v8054_v35, %v20270_v9  ;;  %v2741_v39 = vpack.c.bf16 %v13363_v32, %v20273_v42  ;;  %v20274_v14 = vld [vmem:[#allocation93_spill] sm:$0xff]  ;;  %v20304_v42 = vld [vmem:[#allocation155_spill] sm:$0xff] }
 0x309   : > { %v1201_v5 = vsel %vm19268_vm6, %v20269_v15, %v20268_v57  ;;  %v1268_v20 = vsel %vm1253_vm4, %v20271_v45, %v20270_v9  ;;  %v2774_v17 = vpack.c.bf16 %v2533_v22, %v2517_v11  ;;  %v2759_v56 = vpack.c.bf16 %v1541_v27, %v1525_v44  ;;  %v20279_v32 = vld [vmem:[#allocation45_spill] sm:$0xff]  ;;  %v20292_v22 = vld [vmem:[#allocation56_spill] sm:$0xff]  ;;  %v20300_v11 = vld [vmem:[#allocation70_spill] sm:$0xff] }
 0x30a   : > { %v1522_v12 = vsel %vm1413_vm1, %v1201_v5, %v13375_v4  ;;  %v1332_v24 = vsel %vm19254_vm7, %v20272_v34, %v8114_v26  ;;  %v1506_v59 = vsel %vm1413_vm1, %v20274_v14, %v13344_v33  ;;  %v20275_v4 = vld [vmem:[#allocation30_spill] sm:$0xff]  ;;  %v20276_v60 = vunpack.i.h.bf16 %v20207_v0 }
 0x30b   : > { %v2756_v63 = vpack.c.bf16 %v1538_v28, %v1522_v12  ;;  %v1540_v58 = vsel %vm1413_vm1, %v1332_v24, %v1396_v62  ;;  %v7669_v25 = vunpack.i.h.bf16 %v20275_v4  ;;  %v20277_v48 = vunpack.i.l.bf16 %v20207_v0  ;;  %3154 = vmatpush1.bf16.msra.mxu1 %v2774_v17  ;;  %v20293_v28 = vld [vmem:[#allocation37_spill] sm:$0xff]  ;;  %v20297_v62 = vld [vmem:[#allocation72_spill] sm:$0xff]  ;;  %v20301_v12 = vld [vmem:[#allocation159_spill] sm:$0xff] }
 0x30c   : > { %v20278_v29 = vunpack.i.l.bf16 %v20215_v19  ;;  %v1509_v33 = vsel %vm1413_vm1, %v13339_v52, %v13369_v53  ;;  %v7749_v55 = vunpack.i.h.bf16 %v20279_v32  ;;  %v20281_v10 = vunpack.i.h.bf16 %v20280_v38  ;;  %3155 = vmatprep.subr.bf16.mxu1 %v2759_v56  ;;  %v20284_v19 = vld [vmem:[#allocation74_spill] sm:$0xff] }
 0x30d   : > { %v1136_v40 = vsel %vm19271_vm5, %v20277_v48, %v20276_v60  ;;  %3115 = vmatpush1.bf16.msra.mxu0 %v2756_v63  ;;  %v20282_v21 = vunpack.i.l.bf16 %v20280_v38  ;;  %v1490_v7 = vsel %vm1413_vm1, %v20284_v19, %v20283_v23  ;;  %v20285_v18 = vunpack.i.h.bf16 %v20211_v43  ;;  %v20302_v24 = vld [vmem:[#allocation26_spill] sm:$0xff]  ;;  %v20312_v23 = vld [vmem:[#allocation21_spill] sm:$0xff] }
 0x30e   : > { %v1203_v49 = vsel %vm19268_vm6, %v20278_v29, %v8054_v35  ;;  %3116 = vmatprep.subr.bf16.mxu0 %v2741_v39  ;;  %v20286_v52 = vunpack.i.l.bf16 %v20211_v43  ;;  %v2740_v47 = vpack.c.bf16 %v1506_v59, %v1490_v7  ;;  %v1493_v6 = vsel %vm1413_vm1, %v20288_v13, %v20287_v46  ;;  %v20294_v35 = vld [vmem:[#allocation65_spill] sm:$0xff]  ;;  %v20305_v39 = vld [vmem:[#allocation35_spill] sm:$0xff]  ;;  %v20306_v59 = vld [vmem:[#allocation54_spill] sm:$0xff] }
 0x30f   : > { %v994_v0 = vsel %vm19282_vm9, %v20282_v21, %v20281_v10  ;;  %v1524_v26 = vsel %vm1413_vm1, %v1203_v49, %v1268_v20  ;;  %v2725_v16 = vpack.c.bf16 %v20290_v31, %v20289_v1  ;;  %v2743_v41 = vpack.c.bf16 %v1509_v33, %v1493_v6  ;;  %v20309_v33 = vld [vmem:[#allocation143_spill] sm:$0xff]  ;;  %v20311_v21 = vld [vmem:[#allocation32_spill] sm:$0xff]  ;;  %v20317_v46 = vld [vmem:[#allocation142_spill] sm:$0xff] }
 0x310   : > { %v1069_v53 = vsel %vm19272_vm11, %v20286_v52, %v20285_v18  ;;  %v2758_v36 = vpack.c.bf16 %v1540_v58, %v1524_v26  ;;  %v1474_v2 = vsel %vm1413_vm1, %v20292_v22, %v20291_v61  ;;  %v7709_v43 = vunpack.i.h.bf16 %v20293_v28  ;;  %v20318_v6 = vld [vmem:[#allocation16_spill] sm:$0xff]  ;;  %v20319_v1 = vld [vmem:[#allocation9_spill] sm:$0xff] }
 0x311   : > { %v1508_v8 = vsel %vm1413_vm1, %v1069_v53, %v1136_v40  ;;  %v20295_v57 = vunpack.i.h.bf16 %v20294_v35  ;;  %v20296_v15 = vunpack.i.l.bf16 %v20294_v35  ;;  %v20298_v27 = vunpack.i.h.bf16 %v20297_v62  ;;  %3117 = vmatpush1.bf16.msra.mxu0 %v2740_v47 }
 0x312   : > { %v20299_v45 = vunpack.i.l.bf16 %v20297_v62  ;;  %3156 = vmatpush1.bf16.msra.mxu1 %v2758_v36  ;;  %v1477_v34 = vsel %vm1413_vm1, %v20301_v12, %v20300_v11  ;;  %v7629_v63 = vunpack.i.h.bf16 %v20302_v24  ;;  %v20303_v17 = vunpack.i.l.bf16 %v20279_v32  ;;  %3118 = vmatprep.subr.bf16.mxu0 %v2725_v16  ;;  %v20310_v32 = vld [vmem:[#allocation33_spill] sm:$0xff] }
 0x313   : > { %v842_v5 = vsel %vm827_vm2, %v20296_v15, %v20295_v57  ;;  %3157 = vmatprep.subr.bf16.mxu1 %v2743_v41  ;;  %v1458_v56 = vsel %vm1413_vm1, %v20305_v39, %v20304_v42  ;;  %v20307_v58 = vunpack.i.h.bf16 %v20306_v59  ;;  %v20308_v60 = vunpack.i.l.bf16 %v20306_v59 }
 0x314   : > { %v909_v20 = vsel %vm19283_vm3, %v20299_v45, %v20298_v27  ;;  %v707_v44 = vsel %vm692_vm14, %v20303_v17, %v7749_v55  ;;  %v2724_v40 = vpack.c.bf16 %v1474_v2, %v1458_v56  ;;  %v1461_v49 = vsel %vm1413_vm1, %v7709_v43, %v7749_v55 }
 0x315   : > { %v1492_v14 = vsel %vm1413_vm1, %v909_v20, %v994_v0  ;;  %v774_v48 = vsel %vm759_vm15, %v20308_v60, %v20307_v58  ;;  %v2709_v38 = vpack.c.bf16 %v20310_v32, %v20309_v33  ;;  %v2727_v10 = vpack.c.bf16 %v1477_v34, %v1461_v49 }
 0x316   : > { %v2742_v29 = vpack.c.bf16 %v1508_v8, %v1492_v14  ;;  %v1442_v19 = vsel %vm1413_vm1, %v20312_v23, %v20311_v21  ;;  %v1476_v0 = vsel %vm1413_vm1, %v774_v48, %v842_v5  ;;  %v20313_v7 = vunpack.i.l.bf16 %v20275_v4  ;;  %3119 = vmatpush1.bf16.msra.mxu0 %v2724_v40 }
 0x317   : > { %v20314_v18 = vunpack.i.l.bf16 %v20293_v28  ;;  %v1445_v55 = vsel %vm1413_vm1, %v7629_v63, %v7669_v25  ;;  %3120 = vmatprep.subr.bf16.mxu0 %v2709_v38  ;;  %v20315_v47 = vunpack.i.l.bf16 %v20302_v24  ;;  %vm20316_vm10 = vcmask 1031168  }
 0x318   : > { %v579_v26 = vsel %vm564_vm12, %v20313_v7, %v7669_v25  ;;  %3158 = vmatpush1.bf16.msra.mxu1 %v2742_v29  ;;  %v2708_v4 = vpack.c.bf16 %v1442_v19, %v20317_v46  ;;  %v1429_v31 = vsel %vm1413_vm1, %v20319_v1, %v20318_v6  ;;  %v20320_v25 = vld [vmem:[#allocation144_spill] sm:$0xff]  ;;  %v3192_v5 = vlaneseq }
 0x319   : > { %v643_v52 = vsel %vm628_vm13, %v20314_v18, %v7709_v43  ;;  %3159 = vmatprep.subr.bf16.mxu1 %v2727_v10  ;;  %v515_v36 = vsel %vm20316_vm10, %v20315_v47, %v7629_v63  ;;  %v2711_v16 = vpack.c.bf16 %v1445_v55, %v1429_v31  ;;  %v347_v63 = vld [vmem:[%s18946_s1] sm:$0xff]  ;;  %vm3317_vm10 = vcmask 781312  }
 0x31a   : > { %v1460_v53 = vsel %vm1413_vm1, %v643_v52, %v707_v44  ;;  %v1444_v41 = vsel %vm1413_vm1, %v515_v36, %v579_v26  ;;  %3121 = vmatpush1.bf16.msra.mxu0 %v2708_v4  ;;  %vm3567_vm8 = vcmask 1044344   ;;  %vm3568_vm0 = vcmask 1047556  }
 0x31b   : > { %v2726_v13 = vpack.c.bf16 %v1476_v0, %v1460_v53  ;;  %v2710_v61 = vpack.c.bf16 %v1444_v41, %v20320_v25  ;;  %vm3569_vm7 = vmor %vm3568_vm0, %vm3567_vm8 }
 0x31d   : > { %3160 = vmatpush1.bf16.msra.mxu1 %v2726_v13  ;;  %7490 = vmatmul.mubr.msk.bf16.vlgmr.msra.gmra.mxu0 %vm692_vm14, %v12946_v54 }
 0x31e   : > { %3161 = vmatprep.subr.bf16.mxu1 %v2711_v16  ;;  %6502 = vmatprep.mubr.bf16.mxu0 %v20109_v3 }
 0x321   : > { %3162 = vmatpush1.bf16.msra.mxu1 %v2710_v61 }
 0x324   : > { %7492 = vmatmul.mubr.msk.bf16.vlgmr.msra.gmra.mxu1 %vm692_vm14, %v12946_v54  ;;  %v13642_v54 = vshrl.u32 %v3192_v5, 7 }
 0x325   : > { %6543 = vmatprep.mubr.bf16.mxu1 %v20109_v3 }
 0x326   : > { %v3198_v11 = vsub.s32 1, %v13642_v54  ;;  %v3194_v24 = vsub.s32 0, %v13642_v54  ;;  %v3202_v42 = vsub.s32 2, %v13642_v54  ;;  %v3206_v58 = vsub.s32 3, %v13642_v54 }
 0x327   : > { %v3210_v60 = vsub.s32 4, %v13642_v54  ;;  %v3214_v21 = vsub.s32 5, %v13642_v54  ;;  %v3218_v26 = vsub.s32 6, %v13642_v54  ;;  %v3222_v41 = vsub.s32 7, %v13642_v54 }
 0x328   : > { %v13655_v44 = vrot.slane %v347_v63, %v3198_v11  ;;  %v13658_v56 = vrot.slane %v347_v63, %v3194_v24  ;;  %v13664_v59 = vrot.slane %v347_v63, %v3202_v42  ;;  %v13675_v49 = vrot.slane %v347_v63, %v3206_v58 }
 0x329   : > { %v13679_v33 = vrot.slane %v347_v63, %v3210_v60  ;;  %v13696_v53 = vrot.slane %v347_v63, %v3214_v21  ;;  %v13702_v13 = vrot.slane %v347_v63, %v3218_v26 }
 0x32a   : > { %20321 = vst [vmem:[#allocation121_spill] sm:$0xff] %v13655_v44  ;;  %20322 = vst [vmem:[#allocation122_spill] sm:$0xff] %v13658_v56 }
 0x32b   : > { %20323 = vst [vmem:[#allocation129_spill] sm:$0xff] %v13664_v59  ;;  %20324 = vst [vmem:[#allocation130_spill] sm:$0xff] %v13675_v49 }
 0x32c   : > { %20325 = vst [vmem:[#allocation104_spill] sm:$0xff] %v13679_v33  ;;  %20326 = vst [vmem:[#allocation124_spill] sm:$0xff] %v13696_v53 }
 0x32d   : > { %20327 = vst [vmem:[#allocation132_spill] sm:$0xff] %v13702_v13 }
 0x374   : > { %v13630_v22 = vpop.f32.mrf.mxu0 }
 0x375   : > { %v3272_v48 = vmul.f32 %v13658_v56, %v13630_v22 }
 0x376   : > { %v13632_v2 = vpop.f32.mrf.mxu0 }
 0x377   : > { %v3273_v14 = vmul.f32 %v13655_v44, %v13632_v2  ;;  %v3288_v32 = vsel %vm1413_vm1, %v3272_v48, 0.0  ;;  %v3322_v38 = vmul.f32 %v3272_v48, %v13630_v22 }
 0x378   : > { %v2898_v8 = vpop.f32.mrf.mxu0 }
 0x379   : > { %v13634_v28 = vpop.f32.mrf.mxu1  ;;  %v3323_v40 = vmul.f32 %v3273_v14, %v13632_v2  ;;  %v3289_v10 = vsel %vm1413_vm1, %v3273_v14, 0.0  ;;  %v3338_v18 = vsel %vm1413_vm1, %v3322_v38, 0.0 }
 0x37a   : > { %v2899_v43 = vpop.f32.mrf.mxu0  ;;  %v3274_v29 = vmul.f32 %v13664_v59, %v13634_v28  ;;  %v3290_v7 = vadd.f32 %v3289_v10, %v3288_v32 }
 0x37b   : > { %v13636_v35 = vpop.f32.mrf.mxu1  ;;  %v3339_v23 = vsel %vm1413_vm1, %v3323_v40, 0.0 }
 0x37c   : > { %v3324_v19 = vmul.f32 %v3274_v29, %v13634_v28  ;;  %v3275_v0 = vmul.f32 %v13675_v49, %v13636_v35  ;;  %v3291_v52 = vsel %vm1413_vm1, %v3274_v29, 0.0  ;;  %v3340_v47 = vadd.f32 %v3339_v23, %v3338_v18 }
 0x37d   : > { %v2939_v57 = vpop.f32.mrf.mxu1  ;;  %v3292_v4 = vadd.f32 %v3291_v52, %v3290_v7 }
 0x37e   : > { %v3341_v36 = vsel %vm1413_vm1, %v3324_v19, 0.0  ;;  %v3325_v46 = vmul.f32 %v3275_v0, %v13636_v35  ;;  %v3293_v6 = vsel %vm1413_vm1, %v3275_v0, 0.0 }
 0x37f   : > { %v2940_v15 = vpop.f32.mrf.mxu1  ;;  %v3342_v25 = vadd.f32 %v3341_v36, %v3340_v47  ;;  %v3294_v57 = vadd.f32 %v3293_v6, %v3292_v4 }
 0x380   : > { %v3343_v8 = vsel %vm1413_vm1, %v3325_v46, 0.0  ;;  %v13716_v15 = vld [vmem:[%s18946_s1 + $0x8] sm:$0xff] }
 0x381   : > { %v3344_v14 = vadd.f32 %v3343_v8, %v3342_v25  ;;  %v13732_v38 = vrot.slane %v13716_v15, %v3194_v24  ;;  %v13746_v24 = vrot.slane %v13716_v15, %v3198_v11 }
 0x383   : > { %20329 = vst [vmem:[#allocation97_spill] sm:$0xff] %v13732_v38  ;;  %20330 = vst [vmem:[#allocation98_spill] sm:$0xff] %v13746_v24 }
 0x399   : > { %v13638_v62 = vpop.f32.mrf.mxu0 }
 0x39a   : > { %v3276_v55 = vmul.f32 %v13679_v33, %v13638_v62 }
 0x39b   : > { %v13640_v27 = vpop.f32.mrf.mxu0 }
 0x39c   : > { %v3326_v31 = vmul.f32 %v3276_v55, %v13638_v62  ;;  %v3277_v16 = vmul.f32 %v13696_v53, %v13640_v27  ;;  %v3295_v43 = vsel %vm1413_vm1, %v3276_v55, 0.0 }
 0x39d   : > { %v2980_v45 = vpop.f32.mrf.mxu0  ;;  %v3296_v48 = vadd.f32 %v3295_v43, %v3294_v57  ;;  %v13757_v43 = vrot.slane %v13716_v15, %v3202_v42 }
 0x39e   : > { %v13644_v20 = vpop.f32.mrf.mxu1  ;;  %v3345_v45 = vsel %vm1413_vm1, %v3326_v31, 0.0  ;;  %v3297_v32 = vsel %vm1413_vm1, %v3277_v16, 0.0 }
 0x39f   : > { %v2981_v12 = vpop.f32.mrf.mxu0  ;;  %v3346_v10 = vadd.f32 %v3345_v45, %v3344_v14  ;;  %v3298_v18 = vadd.f32 %v3297_v32, %v3296_v48  ;;  %20331 = vst [vmem:[#allocation116_spill] sm:$0xff] %v13757_v43 }
 0x3a0   : > { %v13647_v34 = vpop.f32.mrf.mxu1  ;;  %v3327_v12 = vmul.f32 %v3277_v16, %v13640_v27 }
 0x3a2   : > { %v3021_v17 = vpop.f32.mrf.mxu1  ;;  %v3347_v0 = vsel %vm1413_vm1, %v3327_v12, 0.0 }
 0x3a3   : > { %v3278_v17 = vmul.f32 %v13702_v13, %v13644_v20  ;;  %v3348_v36 = vadd.f32 %v3347_v0, %v3346_v10 }
 0x3a4   : > { %v3022_v39 = vpop.f32.mrf.mxu1 }
 0x3a5   : > { %v13726_v39 = vrot.slane %v347_v63, %v3222_v41  ;;  %v3328_v7 = vmul.f32 %v3278_v17, %v13644_v20  ;;  %v3299_v55 = vsel %vm1413_vm1, %v3278_v17, 0.0 }
 0x3a6   : > { %v3300_v31 = vadd.f32 %v3299_v55, %v3298_v18 }
 0x3a7   : > { %20328 = vst [vmem:[#allocation103_spill] sm:$0xff] %v13726_v39  ;;  %v3279_v63 = vmul.f32 %v13726_v39, %v13647_v34  ;;  %v3349_v4 = vsel %vm1413_vm1, %v3328_v7, 0.0 }
 0x3a8   : > { %v3350_v11 = vadd.f32 %v3349_v4, %v3348_v36  ;;  %v13781_v36 = vrot.slane %v13716_v15, %v3210_v60  ;;  %v13797_v60 = vrot.slane %v13716_v15, %v3218_v26 }
 0x3a9   : > { %v3329_v6 = vmul.f32 %v3279_v63, %v13647_v34  ;;  %v3301_v16 = vsel %vm1413_vm1, %v3279_v63, 0.0 }
 0x3aa   : > { %v3302_v12 = vadd.f32 %v3301_v16, %v3300_v31  ;;  %20333 = vst [vmem:[#allocation88_spill] sm:$0xff] %v13781_v36  ;;  %20335 = vst [vmem:[#allocation87_spill] sm:$0xff] %v13797_v60 }
 0x3ab   : > { %v3351_v57 = vsel %vm1413_vm1, %v3329_v6, 0.0  ;;  %v13787_v6 = vrot.slane %v13716_v15, %v3214_v21 }
 0x3ac   : > { %v3352_v42 = vadd.f32 %v3351_v57, %v3350_v11 }
 0x3ad   : > { %20334 = vst [vmem:[#allocation106_spill] sm:$0xff] %v13787_v6 }
 0x3bc   : > { %v13709_v61 = vpop.f32.mrf.mxu0 }
 0x3bd   : > { %v3280_v47 = vmul.f32 %v13732_v38, %v13709_v61 }
 0x3be   : > { %v13718_v5 = vpop.f32.mrf.mxu0 }
 0x3bf   : > { %v3330_v25 = vmul.f32 %v3280_v47, %v13709_v61  ;;  %v3281_v8 = vmul.f32 %v13746_v24, %v13718_v5  ;;  %v3303_v45 = vsel %vm1413_vm1, %v3280_v47, 0.0 }
 0x3c0   : > { %v3062_v40 = vpop.f32.mrf.mxu0  ;;  %v3304_v32 = vadd.f32 %v3303_v45, %v3302_v12 }
 0x3c1   : > { %v3353_v17 = vsel %vm1413_vm1, %v3330_v25, 0.0  ;;  %v3331_v14 = vmul.f32 %v3281_v8, %v13718_v5  ;;  %v13768_v40 = vrot.slane %v13716_v15, %v3206_v58  ;;  %v3305_v10 = vsel %vm1413_vm1, %v3281_v8, 0.0 }
 0x3c2   : > { %v13728_v29 = vpop.f32.mrf.mxu1  ;;  %v3063_v23 = vpop.f32.mrf.mxu0  ;;  %v3306_v18 = vadd.f32 %v3305_v10, %v3304_v32 }
 0x3c3   : > { %v3282_v48 = vmul.f32 %v13757_v43, %v13728_v29  ;;  %20332 = vst [vmem:[#allocation123_spill] sm:$0xff] %v13768_v40  ;;  %v3354_v23 = vadd.f32 %v3353_v17, %v3352_v42  ;;  %v3355_v0 = vsel %vm1413_vm1, %v3331_v14, 0.0  ;;  %v13808_v17 = vrot.slane %v13716_v15, %v3222_v41 }
 0x3c4   : > { %v13734_v19 = vpop.f32.mrf.mxu1 }
 0x3c5   : > { %v3332_v7 = vmul.f32 %v3282_v48, %v13728_v29  ;;  %v3283_v63 = vmul.f32 %v13768_v40, %v13734_v19  ;;  %v3356_v55 = vadd.f32 %v3355_v0, %v3354_v23  ;;  %20336 = vst [vmem:[#allocation76_spill] sm:$0xff] %v13808_v17 }
 0x3c6   : > { %v3103_v52 = vpop.f32.mrf.mxu1 }
 0x3c7   : > { %v3307_v52 = vsel %vm1413_vm1, %v3282_v48, 0.0  ;;  %v3357_v47 = vsel %vm1413_vm1, %v3332_v7, 0.0  ;;  %v3333_v58 = vmul.f32 %v3283_v63, %v13734_v19  ;;  %v3309_v4 = vsel %vm1413_vm1, %v3283_v63, 0.0 }
 0x3c8   : > { %v3104_v46 = vpop.f32.mrf.mxu1  ;;  %v3358_v31 = vadd.f32 %v3357_v47, %v3356_v55 }
 0x3c9   : > { %v3308_v46 = vadd.f32 %v3307_v52, %v3306_v18  ;;  %v3359_v25 = vsel %vm1413_vm1, %v3333_v58, 0.0 }
 0x3ca   : > { %v3360_v14 = vadd.f32 %v3359_v25, %v3358_v31 }
 0x3cb   : > { %v3310_v11 = vadd.f32 %v3309_v4, %v3308_v46 }
 0x3dd   : > { %v13789_v16 = vpop.f32.mrf.mxu0 }
 0x3de   : > { %v3284_v8 = vmul.f32 %v13781_v36, %v13789_v16 }
 0x3df   : > { %v13799_v57 = vpop.f32.mrf.mxu0 }
 0x3e0   : > { %v3311_v45 = vsel %vm1413_vm1, %v3284_v8, 0.0  ;;  %v3334_v21 = vmul.f32 %v3284_v8, %v13789_v16  ;;  %v3285_v12 = vmul.f32 %v13787_v6, %v13799_v57 }
 0x3e1   : > { %v3312_v48 = vadd.f32 %v3311_v45, %v3310_v11  ;;  %v3144_v42 = vpop.f32.mrf.mxu0 }
 0x3e2   : > { %v3361_v32 = vsel %vm1413_vm1, %v3334_v21, 0.0  ;;  %v3313_v10 = vsel %vm1413_vm1, %v3285_v12, 0.0  ;;  %v3335_v23 = vmul.f32 %v3285_v12, %v13799_v57  ;;  %v20337_v42 = vld [vmem:[#allocation11_spill] sm:$0xff] }
 0x3e3   : > { %v3362_v7 = vadd.f32 %v3361_v32, %v3360_v14  ;;  %v3314_v63 = vadd.f32 %v3313_v10, %v3312_v48  ;;  %v3145_v54 = vpop.f32.mrf.mxu0  ;;  %v3189_v14 = vld [vmem:[%s18950_s5] sm:$0xf] }
 0x3e4   : > { %v13810_v26 = vpop.f32.mrf.mxu1  ;;  %v3363_v41 = vsel %vm1413_vm1, %v3335_v23, 0.0  ;;  %v13830_v48 = vld [vmem:[#allocation2] sm:$0xff] }
 0x3e5   : > { %v3286_v0 = vmul.f32 %v13797_v60, %v13810_v26  ;;  %v3364_v47 = vadd.f32 %v3363_v41, %v3362_v7  ;;  %3570 = vst.msk [vmem:[#allocation2 + $0x44] sm:$0xff] %vm3569_vm7, %v13830_v48  ;;  %v8776_v32 = vpack.i.bf16 %v13830_v48, %v20337_v42  ;;  %v13839_v10 = vcombine.high %v13830_v48, %v13830_v48  ;;  %v20339_v23 = vld [vmem:[#allocation3_spill] sm:$0xff]  ;;  %v20340_v7 = vld [vmem:[#allocation6_spill] sm:$0xff] }
 0x3e6   : > { %v13817_v18 = vpop.f32.mrf.mxu1 }
 0x3e7   : > { %v3315_v15 = vsel %vm1413_vm1, %v3286_v0, 0.0  ;;  %v3336_v52 = vmul.f32 %v3286_v0, %v13810_v26  ;;  %v3287_v55 = vmul.f32 %v13808_v17, %v13817_v18  ;;  %20338 = vst [vmem:[#allocation131_spill] sm:$0xff] %v13839_v10  ;;  %v8771_v0 = vpack.i.bf16 %v13839_v10, %v13830_v48 }
 0x3e8   : > { %v3185_v58 = vpop.f32.mrf.mxu1  ;;  %v3316_v46 = vadd.f32 %v3315_v15, %v3314_v63  ;;  %v13851_v63 = vld [vmem:[#allocation2 + $0x4c] sm:$0xf] }
 0x3e9   : > { %v3365_v4 = vsel %vm1413_vm1, %v3336_v52, 0.0  ;;  %v3337_v31 = vmul.f32 %v3287_v55, %v13817_v18  ;;  %v3318_v25 = vsel %vm3317_vm10, %v3287_v55, 0.0  ;;  %20342 = vst [vmem:[#allocation55_spill] sm:$0xff] %v13851_v63  ;;  %v13856_v41 = vcombine.low %v13851_v63, %v13851_v63  ;;  %v20345_v52 = vld [vmem:[#allocation8_spill] sm:$0xff]  ;;  %v20347_v58 = vld [vmem:[#allocation10_spill] sm:$0xff] }
 0x3ea   : > { %v3186_v8 = vpop.f32.mrf.mxu1  ;;  %v3319_v11 = vadd.f32 %v3318_v25, %v3316_v46  ;;  %v3366_v45 = vadd.f32 %v3365_v4, %v3364_v47  ;;  %v20346_v47 = vld [vmem:[#allocation7_spill] sm:$0xff] }
 0x3eb   : > { %v3367_v21 = vsel %vm3317_vm10, %v3337_v31, 0.0  ;;  %20343 = vst [vmem:[#allocation39_spill] sm:$0xff] %v13856_v41  ;;  %v20348_v46 = vld [vmem:[#allocation47_spill] sm:$0xff] }
 0x3ec   : > { %3320 = vadd.xlane.f32.xlu0 %v3319_v11  ;;  %v3368_v12 = vadd.f32 %v3367_v21, %v3366_v45  ;;  %v3679_v54 = vld [vmem:[#allocation2 + $0x48] sm:$0xff] }
 0x3ed   : > { %v13858_v15 = vcombine.low %v3679_v54, %v3679_v54  ;;  %v13872_v4 = vld [vmem:[#allocation2 + $0x48] sm:$0xf]  ;;  %v13883_v25 = vcombine.high %v3679_v54, %v3679_v54 }
 0x3ee   : > { %3369 = vadd.xlane.f32.xlu1 %v3368_v12  ;;  %20349 = vst [vmem:[#allocation78_spill] sm:$0xff] %v13872_v4  ;;  %v13877_v31 = vcombine.low %v13872_v4, %v13872_v4 }
 0x3ef   : > { %20344 = vst [vmem:[#allocation96_spill] sm:$0xff] %v13858_v15  ;;  %v8796_v55 = vpack.i.bf16 %v3679_v54, %v13858_v15  ;;  %20351 = vst [vmem:[#allocation101_spill] sm:$0xff] %v13883_v25  ;;  %v8791_v8 = vpack.i.bf16 %v13883_v25, %v3679_v54 }
 0x3f0   : > { %20350 = vst [vmem:[#allocation113_spill] sm:$0xff] %v13877_v31 }
 0x3ff   : > { %3418 = vperm.xlu1 %8770, %v3189_v14  }
 0x402   : > { %3497 = vrot.lane.b32.xlu0 %v20319_v1, %s10248_s27  ;;  %v20341_v1 = vld [vmem:[#allocation5_spill] sm:$0xff] }
 0x403   : > { %3485 = vrot.lane.b32.xlu1 %v20339_v23, %s10248_s27  ;;  %v3188_v23 = vld [vmem:[%s18949_s4] sm:$0xf] }
 0x406   : > { %8777 = vrot.lane.b32.xlu0 %v8776_v32, %s10238_s17 }
 0x407   : > { %3487 = vrot.lane.b32.xlu1 %v20340_v7, %s10248_s27 }
 0x40a   : > { %8782 = vrot.lane.b32.xlu0 %v8771_v0, %s10239_s18 }
 0x40b   : > { %3489 = vrot.lane.b32.xlu1 %v20341_v1, %s10248_s27 }
 0x40e   : > { %8787 = vrot.lane.b32.xlu0 %v8776_v32, %s10240_s19 }
 0x40f   : > { %3491 = vrot.lane.b32.xlu1 %v20345_v52, %s10248_s27 }
 0x412   : > { %4522 = vrot.lane.b32.xlu0 %v13856_v41, %s10246_s25 }
 0x413   : > { %3493 = vrot.lane.b32.xlu1 %v20346_v47, %s10248_s27 }
 0x416   : > { %8797 = vrot.lane.b32.xlu0 %v8796_v55, %s10248_s27 }
 0x417   : > { %3495 = vrot.lane.b32.xlu1 %v20347_v58, %s10248_s27 }
 0x41b   : > { %3499 = vrot.lane.b32.xlu1 %v20348_v46, %s10248_s27 }
 0x41f   : > { %8772 = vrot.lane.b32.xlu1 %v8771_v0, %s10237_s16 }
 0x423   : > { %3901 = vrot.lane.b32.xlu1 %v13877_v31, %s10238_s17 }
 0x427   : > { %3975 = vrot.lane.b32.xlu1 %v13872_v4, %s10239_s18 }
 0x42b   : > { %4049 = vrot.lane.b32.xlu1 %v13877_v31, %s10240_s19 }
 0x42f   : > { %8792 = vrot.lane.b32.xlu1 %v8791_v8, %s10247_s26 }
 0x475   : > { %v3321_v11 = vpop.xlane.xlu0 %3320 }
 0x476   : > { %v13889_v45 = vmul.f32 0.0006510417, %v3321_v11 }
 0x477   : > { %v3370_v21 = vpop.xlane.xlu1 %3369 }
 0x478   : > { %v3373_v12 = vmul.f32 0.0006510417, %v3370_v21  ;;  %v3374_v14 = vmul.f32 %v13889_v45, %v13889_v45  ;;  %v3385_v3 = vsub.f32 %v13647_v34, %v13889_v45  ;;  %v20357_v34 = vld [vmem:[#allocation109_spill] sm:$0xff] }
 0x479   : > { %v13898_v55 = vpop.permute.xlu0 %3497 }
 0x47a   : > { %v3375_v42 = vsub.f32 %v3373_v12, %v3374_v14 }
 0x47b   : > { %v13896_v1 = vpop.permute.xlu1 %3418 }
 0x47c   : > { %v3376_v32 = vadd.f32 1e-05, %v3375_v42  ;;  %v3380_v42 = vsub.f32 %v13634_v28, %v13889_v45  ;;  %v3383_v28 = vsub.f32 %v13640_v27, %v13889_v45 }
 0x47d   : > { %v13900_v58 = vpop.permute.xlu0 %8777 }
 0x47e   : > { %10198 = vrsqrt.f32 %v3376_v32  ;;  %20352 = vst [vmem:[#allocation126_spill] sm:$0xff] %v13900_v58  ;;  %v3381_v32 = vsub.f32 %v13636_v35, %v13889_v45 }
 0x47f   : > { %v3486_v54 = vpop.permute.xlu1 %3485 }
 0x480   : > { %v3501_v27 = vsel %vm1253_vm4, %v20357_v34, %v3486_v54 }
 0x481   : > { %v13902_v8 = vpop.permute.xlu0 %8782 }
 0x482   : > { %20353 = vst [vmem:[#allocation81_spill] sm:$0xff] %v13902_v8  ;;  %v20359_v8 = vld [vmem:[#allocation114_spill] sm:$0xff] }
 0x483   : > { %v3488_v52 = vpop.permute.xlu1 %3487 }
 0x484   : > { %v3504_v34 = vsel %vm1253_vm4, %v3488_v52, %v20359_v8 }
 0x485   : > { %v13904_v21 = vpop.permute.xlu0 %8787 }
 0x486   : > { %20354 = vst [vmem:[#allocation53_spill] sm:$0xff] %v13904_v21 }
 0x487   : > { %v3490_v47 = vpop.permute.xlu1 %3489 }
 0x488   : > { %v13954_v58 = vsel %vm1253_vm4, %v20359_v8, %v3490_v47  ;;  %v13958_v35 = vsel %vm1253_vm4, %v3490_v47, %v20061_v30 }
 0x489   : > { %v13906_v12 = vpop.permute.xlu0 %4522 }
 0x48a   : > { %20355 = vst [vmem:[#allocation38_spill] sm:$0xff] %v13906_v12  ;;  %v3382_v12 = vsub.f32 %v13638_v62, %v13889_v45 }
 0x48b   : > { %v10199_v0 = vpop.eup %10198  ;;  %v3492_v46 = vpop.permute.xlu1 %3491 }
 0x48c   : > { %v3394_v7 = vmul.f32 %v10199_v0, %v3188_v23  ;;  %v3378_v23 = vsub.f32 %v13630_v22, %v13889_v45  ;;  %v3379_v0 = vsub.f32 %v13632_v2, %v13889_v45  ;;  %v3507_v2 = vsel %vm1253_vm4, %v20061_v30, %v3492_v46 }
 0x48d   : > { %v13926_v25 = vpop.permute.xlu0 %8797 }
 0x48e   : > { %3397 = vperm.xlu0 %8801, %v3394_v7   ;;  %v3384_v7 = vsub.f32 %v13644_v20, %v13889_v45  ;;  %20356 = vst [vmem:[#allocation110_spill] sm:$0xff] %v13926_v25  ;;  %v20358_v25 = vld [vmem:[#allocation112_spill] sm:$0xff] }
 0x48f   : > { %v3494_v11 = vpop.permute.xlu1 %3493  ;;  %v3502_v20 = vsel %vm1253_vm4, %v3486_v54, %v20358_v25  ;;  %v3503_v62 = vsel %vm1253_vm4, %v20358_v25, %v3488_v52  ;;  %v3508_v54 = vsel %vm1253_vm4, %v3492_v46, %v20136_v37 }
 0x490   : > { %v13966_v25 = vsel %vm1253_vm4, %v20136_v37, %v3494_v11  ;;  %v13970_v52 = vsel %vm1253_vm4, %v3494_v11, %v20150_v51 }
 0x493   : > { %v3496_v14 = vpop.permute.xlu1 %3495 }
 0x494   : > { %v13974_v8 = vsel %vm1253_vm4, %v20150_v51, %v3496_v14  ;;  %v13978_v47 = vsel %vm1253_vm4, %v3496_v14, %v20226_v50 }
 0x497   : > { %v13938_v21 = vpop.permute.xlu1 %3499 }
 0x498   : > { %v13983_v30 = vsel %vm1253_vm4, %v20270_v9, %v13938_v21 }
 0x509   : > { %v13985_v46 = vpop.permute.xlu0 %3397 }
 0x50a   : > { %v3402_v37 = vmul.f32 %v13985_v46, %v3380_v42  ;;  %v3403_v11 = vmul.f32 %v13985_v46, %v3381_v32  ;;  %v3400_v22 = vmul.f32 %v13985_v46, %v3378_v23  ;;  %v3401_v51 = vmul.f32 %v13985_v46, %v3379_v0 }
 0x50b   : > { %v3406_v41 = vmul.f32 %v13985_v46, %v3384_v7  ;;  %v3407_v14 = vmul.f32 %v13985_v46, %v3385_v3  ;;  %v3404_v4 = vmul.f32 %v13985_v46, %v3382_v12  ;;  %v3405_v63 = vmul.f32 %v13985_v46, %v3383_v28 }
 0x50c   : > { %v3423_v15 = vadd.f32 %v13896_v1, %v3402_v37  ;;  %v3424_v31 = vadd.f32 %v13896_v1, %v3403_v11  ;;  %v3421_v42 = vadd.f32 %v13896_v1, %v3400_v22  ;;  %v3422_v32 = vadd.f32 %v13896_v1, %v3401_v51 }
 0x50d   : > { %v3427_v23 = vadd.f32 %v13896_v1, %v3406_v41  ;;  %v3428_v0 = vadd.f32 %v13896_v1, %v3407_v14  ;;  %v3425_v7 = vadd.f32 %v13896_v1, %v3404_v4  ;;  %v3426_v3 = vadd.f32 %v13896_v1, %v3405_v63 }
 0x50e   : > { %vm3439_vm7 = vcmp.ge.f32.partialorder %v3423_v15, 0.0  ;;  %vm3440_vm8 = vcmp.ge.f32.partialorder %v3424_v31, 0.0  ;;  %v3455_v12 = vmul.f32 0.01, %v3423_v15  ;;  %v3456_v28 = vmul.f32 0.01, %v3424_v31 }
 0x50f   : > { %vm3437_vm10 = vcmp.ge.f32.partialorder %v3421_v42, 0.0  ;;  %vm3438_vm6 = vcmp.ge.f32.partialorder %v3422_v32, 0.0  ;;  %v3453_v37 = vmul.f32 0.01, %v3421_v42  ;;  %v3454_v11 = vmul.f32 0.01, %v3422_v32 }
 0x510   : > { %v3471_v10 = vsel %vm3439_vm7, %v3423_v15, %v3455_v12  ;;  %v3472_v22 = vsel %vm3440_vm8, %v3424_v31, %v3456_v28  ;;  %vm3443_vm5 = vcmp.ge.f32.partialorder %v3427_v23, 0.0  ;;  %vm3444_vm11 = vcmp.ge.f32.partialorder %v3428_v0, 0.0 }
 0x511   : > { %v3534_v51 = vadd.f32 %v3503_v62, %v3471_v10  ;;  %v3535_v41 = vadd.f32 %v3504_v34, %v3472_v22  ;;  %v3469_v6 = vsel %vm3437_vm10, %v3421_v42, %v3453_v37  ;;  %v3470_v14 = vsel %vm3438_vm6, %v3422_v32, %v3454_v11 }
 0x512   : > { %v3532_v36 = vadd.f32 %v3501_v27, %v3469_v6  ;;  %v3533_v4 = vadd.f32 %v3502_v20, %v3470_v14  ;;  %v3459_v9 = vmul.f32 0.01, %v3427_v23  ;;  %v3460_v63 = vmul.f32 0.01, %v3428_v0 }
 0x513   : > { %v3550_v17 = vmul.f32 %v3534_v51, %v13664_v59  ;;  %v3551_v60 = vmul.f32 %v3535_v41, %v13675_v49  ;;  %vm3441_vm9 = vcmp.ge.f32.partialorder %v3425_v7, 0.0  ;;  %vm3442_vm3 = vcmp.ge.f32.partialorder %v3426_v3, 0.0 }
 0x514   : > { %v3548_v50 = vmul.f32 %v3532_v36, %v13658_v56  ;;  %v3549_v15 = vmul.f32 %v3533_v4, %v13655_v44  ;;  %v3475_v31 = vsel %vm3443_vm5, %v3427_v23, %v3459_v9  ;;  %v3476_v10 = vsel %vm3444_vm11, %v3428_v0, %v3460_v63 }
 0x515   : > { %v3592_v62 = vcombine.low %v3550_v17, %v3551_v60  ;;  %v3538_v34 = vadd.f32 %v3507_v2, %v3475_v31  ;;  %v3539_v6 = vadd.f32 %v3508_v54, %v3476_v10  ;;  %v3457_v20 = vmul.f32 0.01, %v3425_v7 }
 0x516   : > { %v3591_v27 = vcombine.low %v3548_v50, %v3549_v15  ;;  %v3458_v42 = vmul.f32 0.01, %v3426_v3  ;;  %v20360_v32 = vsub.f32 %v13728_v29, %v13889_v45  ;;  %v20361_v36 = vsub.f32 %v13734_v19, %v13889_v45 }
 0x517   : > { %3601 = vrot.lane.b32.xlu1 %v3592_v62, %s10260_s12  ;;  %v3554_v9 = vmul.f32 %v3538_v34, %v13702_v13  ;;  %v3555_v60 = vmul.f32 %v3539_v6, %v13726_v39  ;;  %v3473_v50 = vsel %vm3441_vm9, %v3425_v7, %v3457_v20  ;;  %v20362_v17 = vsub.f32 %v13709_v61, %v13889_v45 }
 0x518   : > { %v3410_v12 = vmul.f32 %v13985_v46, %v20360_v32  ;;  %v3411_v28 = vmul.f32 %v13985_v46, %v20361_v36  ;;  %3599 = vrot.lane.b32.xlu0 %v3591_v27, %s10260_s12  ;;  %v3474_v19 = vsel %vm3442_vm3, %v3426_v3, %v3458_v42  ;;  %v3536_v2 = vadd.f32 %v13954_v58, %v3473_v50 }
 0x519   : > { %v3408_v29 = vmul.f32 %v13985_v46, %v20362_v17  ;;  %v3594_v0 = vcombine.low %v3554_v9, %v3555_v60  ;;  %v3537_v37 = vadd.f32 %v13958_v35, %v3474_v19  ;;  %v20363_v7 = vsub.f32 %v13718_v5, %v13889_v45 }
 0x51a   : > { %v3431_v54 = vadd.f32 %v13896_v1, %v3410_v12  ;;  %v3432_v23 = vadd.f32 %v13896_v1, %v3411_v28  ;;  %v3552_v22 = vmul.f32 %v3536_v2, %v13679_v33  ;;  %v20364_v5 = vsub.f32 %v13810_v26, %v13889_v45 }
 0x51b   : > { %v3409_v61 = vmul.f32 %v13985_v46, %v20363_v7  ;;  %v3429_v11 = vadd.f32 %v13896_v1, %v3408_v29  ;;  %3605 = vrot.lane.b32.xlu1 %v3594_v0, %s10260_s12  ;;  %v3553_v58 = vmul.f32 %v3537_v37, %v13696_v53  ;;  %v20365_v63 = vsub.f32 %v13817_v18, %v13889_v45  ;;  %v20369_v37 = vld [vmem:[#allocation87_spill] sm:$0xff] }
 0x51c   : > { %vm3447_vm5 = vcmp.ge.f32.partialorder %v3431_v54, 0.0  ;;  %vm3448_vm3 = vcmp.ge.f32.partialorder %v3432_v23, 0.0  ;;  %v3463_v3 = vmul.f32 0.01, %v3431_v54  ;;  %v3464_v51 = vmul.f32 0.01, %v3432_v23 }
 0x51d   : > { %v3430_v41 = vadd.f32 %v13896_v1, %v3409_v61  ;;  %vm3445_vm6 = vcmp.ge.f32.partialorder %v3429_v11, 0.0  ;;  %v3461_v14 = vmul.f32 0.01, %v3429_v11  ;;  %v3414_v4 = vmul.f32 %v13985_v46, %v20364_v5  ;;  %v20370_v61 = vld [vmem:[#allocation76_spill] sm:$0xff]  ;;  %v20373_v5 = vld [vmem:[#allocation106_spill] sm:$0xff] }
 0x51e   : > { %v3479_v35 = vsel %vm3447_vm5, %v3431_v54, %v3463_v3  ;;  %v3415_v15 = vmul.f32 %v13985_v46, %v20365_v63  ;;  %v3593_v31 = vcombine.low %v3552_v22, %v3553_v58  ;;  %v3480_v10 = vsel %vm3448_vm3, %v3432_v23, %v3464_v51 }
 0x51f   : > { %v3542_v62 = vadd.f32 %v13974_v8, %v3479_v35  ;;  %vm3446_vm9 = vcmp.ge.f32.partialorder %v3430_v41, 0.0  ;;  %v3543_v34 = vadd.f32 %v13978_v47, %v3480_v10  ;;  %v3462_v6 = vmul.f32 0.01, %v3430_v41  ;;  %v20372_v35 = vld [vmem:[#allocation88_spill] sm:$0xff] }
 0x520   : > { %v3477_v20 = vsel %vm3445_vm6, %v3429_v11, %v3461_v14  ;;  %v3435_v27 = vadd.f32 %v13896_v1, %v3414_v4  ;;  %3603 = vrot.lane.b32.xlu0 %v3593_v31, %s10260_s12  ;;  %v3436_v18 = vadd.f32 %v13896_v1, %v3415_v15  ;;  %v20366_v32 = vsub.f32 %v13789_v16, %v13889_v45  ;;  %v14086_v15 = vpop.permute.xlu1 %8772 }
 0x521   : > { %v3558_v26 = vmul.f32 %v3542_v62, %v13757_v43  ;;  %v3540_v42 = vadd.f32 %v13966_v25, %v3477_v20  ;;  %v3559_v12 = vmul.f32 %v3543_v34, %v13768_v40  ;;  %v3478_v47 = vsel %vm3446_vm9, %v3430_v41, %v3462_v6 }
 0x522   : > { %v3412_v8 = vmul.f32 %v13985_v46, %v20366_v32  ;;  %vm3451_vm11 = vcmp.ge.f32.partialorder %v3435_v27, 0.0  ;;  %v3467_v36 = vmul.f32 0.01, %v3435_v27  ;;  %v3541_v28 = vadd.f32 %v13970_v52, %v3478_v47 }
 0x523   : > { %v3556_v9 = vmul.f32 %v3540_v42, %v13732_v38  ;;  %vm3452_vm7 = vcmp.ge.f32.partialorder %v3436_v18, 0.0  ;;  %v3468_v60 = vmul.f32 0.01, %v3436_v18  ;;  %v3596_v50 = vcombine.low %v3558_v26, %v3559_v12 }
 0x524   : > { %v3483_v25 = vsel %vm3451_vm11, %v3435_v27, %v3467_v36  ;;  %v20367_v17 = vsub.f32 %v13799_v57, %v13889_v45  ;;  %v3433_v29 = vadd.f32 %v13896_v1, %v3412_v8  ;;  %v3557_v19 = vmul.f32 %v3541_v28, %v13746_v24  ;;  %v20368_v57 = vld [vmem:[#allocation120_spill] sm:$0xff]  ;;  %v14088_v31 = vpop.permute.xlu1 %3901 }
 0x525   : > { %v3484_v2 = vsel %vm3452_vm7, %v3436_v18, %v3468_v60  ;;  %v3546_v54 = vadd.f32 %v13983_v30, %v3483_v25  ;;  %vm3565_vm8 = vcmask 117760   ;;  %3609 = vrot.lane.b32.xlu1 %v3596_v50, %s10260_s12  ;;  %v3513_v45 = vsel %vm1253_vm4, %v20368_v57, %v13898_v55  ;;  %20374 = vst [vmem:[#allocation79_spill] sm:$0xff] %v14088_v31 }
 0x526   : > { %v3413_v16 = vmul.f32 %v13985_v46, %v20367_v17  ;;  %v3547_v52 = vadd.f32 %v13938_v21, %v3484_v2  ;;  %vm3449_vm10 = vcmp.ge.f32.partialorder %v3433_v29, 0.0  ;;  %v3465_v0 = vmul.f32 0.01, %v3433_v29  ;;  %3566 = vst.msk [vmem:[#allocation2 + $0x8] sm:$0xf] %vm3565_vm8, %v13830_v48  ;;  %v20378_v17 = vld [vmem:[#allocation131_spill] sm:$0xff] }
 0x527   : > { %v3595_v46 = vcombine.low %v3556_v9, %v3557_v19  ;;  %v3562_v7 = vmul.f32 %v3546_v54, %v20369_v37  ;;  %vm3647_vm3 = vcmask 1043576   ;;  %vm3623_vm6 = vcmask 121856  }
 0x528   : > { %v3434_v23 = vadd.f32 %v13896_v1, %v3413_v16  ;;  %v3563_v30 = vmul.f32 %v3547_v52, %v20370_v61  ;;  %v3481_v22 = vsel %vm3449_vm10, %v3433_v29, %v3465_v0  ;;  %v20371_v1 = vld [vmem:[#allocation119_spill] sm:$0xff]  ;;  %v14090_v10 = vpop.permute.xlu1 %3975  ;;  %vm3648_vm9 = vmor %vm3568_vm0, %vm3647_vm3  ;;  %vm3656_vm0 = vcmask 908292  }
 0x529   : > { %3607 = vrot.lane.b32.xlu0 %v3595_v46, %s10260_s12  ;;  %v3544_v21 = vadd.f32 %v3513_v45, %v3481_v22  ;;  %v3514_v3 = vsel %vm1253_vm4, %v13898_v55, %v20371_v1  ;;  %20375 = vst [vmem:[#allocation34_spill] sm:$0xff] %v14090_v10  ;;  %vm3657_vm11 = vmor %vm3656_vm0, %vm1413_vm1  ;;  %vm20448_vm7 = vcmask 1039360   ;;  %vm20449_vm8 = vcmask 1031168  }
 0x52a   : > { %vm3450_vm5 = vcmp.ge.f32.partialorder %v3434_v23, 0.0  ;;  %v3466_v11 = vmul.f32 0.01, %v3434_v23  ;;  %v3598_v58 = vcombine.low %v3562_v7, %v3563_v30  ;;  %vm3572_vm10 = vcmask 105476  }
 0x52b   : > { %v3560_v14 = vmul.f32 %v3544_v21, %v20372_v35  ;;  %vm20501_vm3 = vcmask 736256  }
 0x52c   : > { %v3482_v51 = vsel %vm3450_vm5, %v3434_v23, %v3466_v11  ;;  %3613 = vrot.lane.b32.xlu1 %v3598_v58, %s10260_s12  ;;  %v14092_v62 = vpop.permute.xlu1 %4049  ;;  %vm3573_vm5 = vmor %vm3572_vm10, %vm1413_vm1  ;;  %vm20542_vm10 = vcmask 23552  }
 0x52d   : > { %v3545_v41 = vadd.f32 %v3514_v3, %v3482_v51  ;;  %20376 = vst [vmem:[#allocation62_spill] sm:$0xff] %v14092_v62  ;;  %vm20530_vm0 = vmmov %vm20501_vm3 }
 0x52f   : > { %v3561_v4 = vmul.f32 %v3545_v41, %v20373_v5 }
 0x530   : > { %v14094_v55 = vpop.permute.xlu1 %8792 }
 0x531   : > { %v3597_v63 = vcombine.low %v3560_v14, %v3561_v4  ;;  %20377 = vst [vmem:[#allocation4_spill] sm:$0xff] %v14094_v55  ;;  %v20405_v55 = vld [vmem:[#allocation78_spill] sm:$0xff] }
 0x533   : > { %3611 = vrot.lane.b32.xlu0 %v3597_v63, %s10260_s12 }
 0x589   : > { %v3602_v34 = vpop.permute.xlu1 %3601 }
 0x58a   : > { %v3616_v6 = vrot.slane %v3602_v34, 4  ;;  %v3600_v20 = vpop.permute.xlu0 %3599 }
 0x58b   : > { %v3615_v27 = vrot.slane %v3600_v20, 4 }
 0x58d   : > { %v3624_v26 = vsel %vm3623_vm6, %v3615_v27, %v3600_v20  ;;  %v3625_v42 = vsel %vm1413_vm1, %v3615_v27, %v3616_v6  ;;  %v3606_v18 = vpop.permute.xlu1 %3605 }
 0x58e   : > { %v14100_v32 = vsel %vm3623_vm6, %v3625_v42, %v3602_v34  ;;  %3649 = vst.msk [vmem:[#allocation2 + $0x8] sm:$0xff] %vm3648_vm9, %v3624_v26  ;;  %v3618_v8 = vrot.slane %v3606_v18, 4  ;;  %vm20515_vm9 = vmmov %vm20449_vm8 }
 0x58f   : > { %3650 = vst [vmem:[#allocation2 + $0x10] sm:$0xff] %v14100_v32 }
 0x592   : > { %v3604_v12 = vpop.permute.xlu0 %3603 }
 0x593   : > { %v3617_v47 = vrot.slane %v3604_v12, 4 }
 0x595   : > { %v3627_v36 = vsel %vm1413_vm1, %v3616_v6, %v3617_v47  ;;  %v3629_v28 = vsel %vm1413_vm1, %v3617_v47, %v3618_v8  ;;  %v14105_v9 = vld [vmem:[#allocation2 + $0x8] sm:$0xff] }
 0x596   : > { %v14108_v60 = vsel %vm3623_vm6, %v3627_v36, %v3604_v12  ;;  %v14111_v50 = vsel %vm3623_vm6, %v3629_v28, %v3606_v18  ;;  %v8802_v16 = vpack.i.bf16 %v14105_v9, %v20378_v17  ;;  %v14139_v58 = vld [vmem:[#allocation2 + $0xc] sm:$0xff]  ;;  %v20380_v12 = vld [vmem:[#allocation96_spill] sm:$0xff]  ;;  %v14177_v36 = vcombine.low %v14105_v9, %v14105_v9 }
 0x597   : > { %3651 = vst [vmem:[#allocation2 + $0x18] sm:$0xff] %v14108_v60  ;;  %3652 = vst [vmem:[#allocation2 + $0x20] sm:$0xff] %v14111_v50  ;;  %v3610_v25 = vpop.permute.xlu1 %3609  ;;  %v14147_v4 = vcombine.high %v14139_v58, %v14139_v58  ;;  %v14151_v63 = vcombine.low %v14139_v58, %v14139_v58  ;;  %v20379_v18 = vld [vmem:[#allocation113_spill] sm:$0xff]  ;;  %v14355_v49 = vcombine.high %v14111_v50, %v14111_v50 }
 0x598   : > { %v3620_v29 = vrot.slane %v3610_v25, 4  ;;  %8803 = vrot.lane.b32.xlu0 %v8802_v16, %s10241_s20  ;;  %v8897_v24 = vpack.i.bf16 %v14100_v32, %v14177_v36 }
 0x599   : > { %20397 = vst [vmem:[#allocation15_spill] sm:$0xff] %v14355_v49 }
 0x59b   : > { %v3608_v19 = vpop.permute.xlu0 %3607 }
 0x59c   : > { %v3619_v2 = vrot.slane %v3608_v19, 4  ;;  %8808 = vrot.lane.b32.xlu0 %v8802_v16, %s10243_s22 }
 0x59e   : > { %v3631_v54 = vsel %vm1413_vm1, %v3618_v8, %v3619_v2  ;;  %v3633_v52 = vsel %vm1413_vm1, %v3619_v2, %v3620_v29  ;;  %v3614_v57 = vpop.permute.xlu1 %3613  ;;  %v14132_v22 = vld [vmem:[#allocation2 + $0x14] sm:$0xff]  ;;  %v3672_v3 = vld [vmem:[#allocation2 + $0x1c] sm:$0xff] }
 0x59f   : > { %v14122_v23 = vsel %vm3623_vm6, %v3631_v54, %v3608_v19  ;;  %v14125_v0 = vsel %vm3623_vm6, %v3633_v52, %v3610_v25  ;;  %v3622_v45 = vrot.slane %v3614_v57, 4  ;;  %v14143_v51 = vcombine.high %v14132_v22, %v14132_v22  ;;  %v20382_v19 = vld [vmem:[#allocation55_spill] sm:$0xff] }
 0x5a0   : > { %3653 = vst [vmem:[#allocation2 + $0x28] sm:$0xff] %v14122_v23  ;;  %3654 = vst [vmem:[#allocation2 + $0x30] sm:$0xff] %v14125_v0  ;;  %v4406_v41 = vcombine.high %v3672_v3, %v3672_v3  ;;  %v4322_v14 = vcombine.low %v3672_v3, %v3672_v3  ;;  %v14155_v34 = vpack.i.bf16 %v14132_v22, %v14147_v4 }
 0x5a1   : > { %v14159_v6 = vpack.i.bf16 %v14139_v58, %v14143_v51  ;;  %v14184_v16 = vcombine.low %v14132_v22, %v14132_v22  ;;  %v8822_v2 = vpack.i.bf16 %v14100_v32, %v20382_v19  ;;  %v14192_v54 = vcombine.high %v14105_v9, %v14105_v9 }
 0x5a2   : > { %v14161_v20 = vpack.i.bf16 %v4406_v41, %v3672_v3  ;;  %v14167_v42 = vpack.i.bf16 %v3672_v3, %v4322_v14  ;;  %v8827_v3 = vpack.i.bf16 %v14177_v36, %v13830_v48  ;;  %v3718_v39 = vcombine.low %v14125_v0, %v14125_v0 }
 0x5a3   : > { %20383 = vst [vmem:[#allocation58_spill] sm:$0xff] %v14192_v54 }
 0x5a4   : > { %v14324_v13 = vpack.i.bf16 %v14125_v0, %v3718_v39  ;;  %v14347_v33 = vpack.i.bf16 %v3718_v39, %v14122_v23  ;;  %v14366_v39 = vpack.i.bf16 %v14355_v49, %v14111_v50 }
 0x5a5   : > { %v3612_v46 = vpop.permute.xlu0 %3611 }
 0x5a6   : > { %v3621_v7 = vrot.slane %v3612_v46, 4  ;;  %20395 = vst [vmem:[#allocation162_spill] sm:$0xff] %v14324_v13  ;;  %20399 = vst [vmem:[#allocation22_spill] sm:$0xff] %v14366_v39 }
 0x5a7   : > { %v3673_v28 = vld [vmem:[#allocation2 + $0x24] sm:$0xff]  ;;  %v3674_v25 = vld [vmem:[#allocation2 + $0x2c] sm:$0xff] }
 0x5a8   : > { %v3635_v30 = vsel %vm1413_vm1, %v3620_v29, %v3621_v7  ;;  %v3637_v11 = vsel %vm1413_vm1, %v3621_v7, %v3622_v45  ;;  %v8837_v29 = vpack.i.bf16 %v14105_v9, %v14177_v36  ;;  %v4408_v45 = vcombine.high %v3674_v25, %v3674_v25 }
 0x5a9   : > { %v14135_v21 = vsel %vm3623_vm6, %v3635_v30, %v3612_v46  ;;  %v3638_v1 = vsel %vm3623_vm6, %v3637_v11, %v3614_v57  ;;  %v4407_v57 = vcombine.high %v3673_v28, %v3673_v28  ;;  %v4324_v46 = vcombine.low %v3674_v25, %v3674_v25 }
 0x5aa   : > { %3655 = vst [vmem:[#allocation2 + $0x38] sm:$0xff] %v14135_v21  ;;  %3658 = vst.msk [vmem:[#allocation2 + $0x40] sm:$0xff] %vm3657_vm11, %v3638_v1  ;;  %v4323_v30 = vcombine.low %v3673_v28, %v3673_v28  ;;  %v8842_v1 = vpack.i.bf16 %v14192_v54, %v14105_v9  ;;  %vm20502_vm6 = vcmask 31744  }
 0x5ab   : > { %v14202_v14 = vpack.i.bf16 %v4407_v57, %v3673_v28  ;;  %v14210_v61 = vpack.i.bf16 %v3674_v25, %v4324_v46  ;;  %vm20533_vm11 = vmmov %vm20448_vm7 }
 0x5ac   : > { %v14208_v11 = vpack.i.bf16 %v3673_v28, %v4323_v30  ;;  %v8852_v28 = vpack.i.bf16 %v14100_v32, %v14192_v54 }
 0x5b1   : > { %v14163_v27 = vld [vmem:[#allocation2 + $0x40] sm:$0xff]  ;;  %v3675_v52 = vld [vmem:[#allocation2 + $0x34] sm:$0xff] }
 0x5b2   : > { %v8817_v8 = vpack.i.bf16 %v20379_v18, %v14163_v27  ;;  %v14173_v47 = vpack.i.bf16 %v20380_v12, %v14163_v27  ;;  %v3676_v7 = vld [vmem:[#allocation2 + $0x3c] sm:$0xff]  ;;  %v4409_v41 = vcombine.high %v3675_v52, %v3675_v52  ;;  %v4325_v26 = vcombine.low %v3675_v52, %v3675_v52 }
 0x5b3   : > { %v4326_v18 = vcombine.low %v3676_v7, %v3676_v7  ;;  %v4410_v19 = vcombine.high %v3676_v7, %v3676_v7  ;;  %v3720_v36 = vcombine.low %v14163_v27, %v14163_v27 }
 0x5b4   : > { %20381 = vst [vmem:[#allocation20_spill] sm:$0xff] %v14173_v47  ;;  %8818 = vrot.lane.b32.xlu1 %v8817_v8, %s10242_s21  ;;  %8813 = vrot.lane.b32.xlu0 %v14173_v47, %s10236_s15  ;;  %v3677_v8 = vld [vmem:[#allocation2 + $0x44] sm:$0xff]  ;;  %v14212_v37 = vpack.i.bf16 %v4409_v41, %v3675_v52  ;;  %v14220_v40 = vpack.i.bf16 %v3675_v52, %v4325_v26 }
 0x5b5   : > { %v4327_v48 = vcombine.low %v3677_v8, %v3677_v8  ;;  %v4411_v5 = vcombine.high %v3677_v8, %v3677_v8  ;;  %v14216_v57 = vpack.i.bf16 %v4410_v19, %v3676_v7  ;;  %v14218_v35 = vpack.i.bf16 %v3676_v7, %v4326_v18  ;;  %v3669_v52 = vld [vmem:[#allocation2 + $0x4] sm:$0xff] }
 0x5b6   : > { %20385 = vst [vmem:[#allocation102_spill] sm:$0xff] %v14220_v40  ;;  %v14240_v26 = vcombine.low %v14122_v23, %v14122_v23  ;;  %v4319_v30 = vcombine.low %v3669_v52, %v3669_v52  ;;  %v4403_v18 = vcombine.high %v3669_v52, %v3669_v52  ;;  %v14336_v53 = vpack.i.bf16 %v14163_v27, %v3720_v36 }
 0x5b7   : > { %20384 = vst [vmem:[#allocation42_spill] sm:$0xff] %v14218_v35  ;;  %v14230_v46 = vpack.i.bf16 %v3677_v8, %v4327_v48  ;;  %v14362_v59 = vpack.i.bf16 %v3720_v36, %v14135_v21  ;;  %v14382_v36 = vcombine.high %v14163_v27, %v14163_v27 }
 0x5b8   : > { %8838 = vrot.lane.b32.xlu1 %v8837_v29, %s10238_s17  ;;  %8823 = vrot.lane.b32.xlu0 %v8822_v2, %s10245_s24  ;;  %v14206_v2 = vpack.i.bf16 %v4408_v45, %v3674_v25  ;;  %v14226_v25 = vcombine.low %v14108_v60, %v14108_v60  ;;  %v14228_v45 = vpack.i.bf16 %v4411_v5, %v3677_v8 }
 0x5b9   : > { %20387 = vst [vmem:[#allocation24_spill] sm:$0xff] %v14230_v46  ;;  %v14247_v5 = vpack.i.bf16 %v14240_v26, %v14111_v50  ;;  %v8867_v41 = vpack.i.bf16 %v3669_v52, %v4319_v30  ;;  %v14262_v8 = vcombine.high %v14108_v60, %v14108_v60  ;;  %v8872_v19 = vpack.i.bf16 %v4403_v18, %v3669_v52 }
 0x5ba   : > { %20386 = vst [vmem:[#allocation168_spill] sm:$0xff] %v14228_v45  ;;  %v14236_v7 = vpack.i.bf16 %v14226_v25, %v14100_v32  ;;  %v14284_v52 = vcombine.high %v14135_v21, %v14135_v21  ;;  %20398 = vst [vmem:[#allocation134_spill] sm:$0xff] %v14362_v59  ;;  %v14390_v56 = vpack.i.bf16 %v14382_v36, %v14163_v27 }
 0x5bb   : > { %20389 = vst [vmem:[#allocation59_spill] sm:$0xff] %v14262_v8  ;;  %v14269_v48 = vpack.i.bf16 %v14262_v8, %v14108_v60  ;;  %20402 = vst [vmem:[#allocation95_spill] sm:$0xff] %v14382_v36  ;;  %v14406_v31 = vpack.i.bf16 %v14108_v60, %v14226_v25  ;;  %v14414_v10 = vpack.i.bf16 %v14122_v23, %v14240_v26 }
 0x5bc   : > { %8843 = vrot.lane.b32.xlu1 %v8842_v1, %s10239_s18  ;;  %8828 = vrot.lane.b32.xlu0 %v8827_v3, %s10236_s15  ;;  %20392 = vst [vmem:[#allocation36_spill] sm:$0xff] %v14284_v52  ;;  %v14291_v18 = vpack.i.bf16 %v14284_v52, %v14135_v21  ;;  %v14434_v26 = vpack.i.bf16 %v14122_v23, %v14355_v49 }
 0x5bd   : > { %20403 = vst [vmem:[#allocation117_spill] sm:$0xff] %v14414_v10  ;;  %v14479_v54 = vpack.i.bf16 %v14111_v50, %v14262_v8  ;;  %v14503_v8 = vpack.i.bf16 %v14163_v27, %v14284_v52 }
 0x5bf   : > { %20410 = vst [vmem:[#allocation175_spill] sm:$0xff] %v14503_v8 }
 0x5c0   : > { %8848 = vrot.lane.b32.xlu1 %v8837_v29, %s10240_s19  ;;  %8833 = vrot.lane.b32.xlu0 %v8842_v1, %s10237_s16 }
 0x5c4   : > { %8853 = vrot.lane.b32.xlu1 %v8852_v28, %s10241_s20  ;;  %8888 = vrot.lane.b32.xlu0 %v8837_v29, %s10248_s27  ;;  %v14251_v29 = vcombine.low %v14135_v21, %v14135_v21 }
 0x5c6   : > { %20388 = vst [vmem:[#allocation13_spill] sm:$0xff] %v14251_v29  ;;  %v14422_v25 = vpack.i.bf16 %v14135_v21, %v14251_v29 }
 0x5c8   : > { %8858 = vrot.lane.b32.xlu1 %v8827_v3, %s10242_s21  ;;  %8908 = vrot.lane.b32.xlu0 %v14236_v7, %s10236_s15  ;;  %v14258_v3 = vpack.i.bf16 %v14251_v29, %v14125_v0 }
 0x5cc   : > { %8863 = vrot.lane.b32.xlu1 %v8852_v28, %s10243_s22  ;;  %8918 = vrot.lane.b32.xlu0 %v14247_v5, %s10236_s15  ;;  %v14273_v28 = vcombine.high %v14122_v23, %v14122_v23 }
 0x5ce   : > { %20390 = vst [vmem:[#allocation41_spill] sm:$0xff] %v14273_v28  ;;  %v14280_v30 = vpack.i.bf16 %v14273_v28, %v14122_v23  ;;  %v9107_v23 = vpack.i.bf16 %v20405_v55, %v14382_v36 }
 0x5d0   : > { %8868 = vrot.lane.b32.xlu1 %v8867_v41, %s10244_s23  ;;  %8928 = vrot.lane.b32.xlu0 %v14258_v3, %s10236_s15  ;;  %20391 = vst [vmem:[#allocation23_spill] sm:$0xff] %v14280_v30 }
 0x5d4   : > { %8873 = vrot.lane.b32.xlu1 %v8872_v19, %s10245_s24  ;;  %8943 = vrot.lane.b32.xlu0 %v14269_v48, %s10237_s16  ;;  %v14295_v19 = vcombine.low %v14100_v32, %v14100_v32 }
 0x5d6   : > { %v14302_v43 = vpack.i.bf16 %v14100_v32, %v14295_v19 }
 0x5d8   : > { %8878 = vrot.lane.b32.xlu1 %v8867_v41, %s10246_s25  ;;  %8953 = vrot.lane.b32.xlu0 %v14280_v30, %s10237_s16  ;;  %v3716_v41 = vcombine.low %v14111_v50, %v14111_v50 }
 0x5da   : > { %v14312_v38 = vpack.i.bf16 %v14111_v50, %v3716_v41 }
 0x5dc   : > { %8883 = vrot.lane.b32.xlu1 %v8842_v1, %s10247_s26  ;;  %8963 = vrot.lane.b32.xlu0 %v14291_v18, %s10237_s16  ;;  %20393 = vst [vmem:[#allocation25_spill] sm:$0xff] %v14312_v38 }
 0x5e0   : > { %8893 = vrot.lane.b32.xlu1 %v8842_v1, %s10249_s28  ;;  %8973 = vrot.lane.b32.xlu0 %v14302_v43, %s10238_s17  ;;  %v14321_v1 = vpack.i.bf16 %v14295_v19, %v14105_v9  ;;  %v14340_v9 = vcombine.high %v14100_v32, %v14100_v32 }
 0x5e2   : > { %20394 = vst [vmem:[#allocation12_spill] sm:$0xff] %v14321_v1  ;;  %20396 = vst [vmem:[#allocation27_spill] sm:$0xff] %v14340_v9  ;;  %v14426_v62 = vpack.i.bf16 %v14108_v60, %v14340_v9 }
 0x5e4   : > { %8898 = vrot.lane.b32.xlu1 %v8897_v24, %s10250_s29  ;;  %8983 = vrot.lane.b32.xlu0 %v14312_v38, %s10238_s17  ;;  %v14333_v24 = vpack.i.bf16 %v3716_v41, %v14108_v60  ;;  %v14351_v41 = vpack.i.bf16 %v14340_v9, %v14100_v32  ;;  %v14370_v32 = vcombine.high %v14125_v0, %v14125_v0 }
 0x5e5   : > { %v14491_v9 = vpack.i.bf16 %v14125_v0, %v14273_v28 }
 0x5e6   : > { %20400 = vst [vmem:[#allocation105_spill] sm:$0xff] %v14370_v32  ;;  %v14378_v44 = vpack.i.bf16 %v14370_v32, %v14125_v0  ;;  %v14442_v60 = vpack.i.bf16 %v14135_v21, %v14370_v32 }
 0x5e8   : > { %8903 = vrot.lane.b32.xlu1 %v14321_v1, %s10236_s15  ;;  %8993 = vrot.lane.b32.xlu0 %v14324_v13, %s10238_s17  ;;  %20401 = vst [vmem:[#allocation84_spill] sm:$0xff] %v14378_v44  ;;  %20404 = vst [vmem:[#allocation83_spill] sm:$0xff] %v14442_v60 }
 0x5ec   : > { %8913 = vrot.lane.b32.xlu1 %v14333_v24, %s10236_s15  ;;  %9003 = vrot.lane.b32.xlu0 %v14336_v53, %s10238_s17 }
 0x5f0   : > { %8923 = vrot.lane.b32.xlu1 %v14347_v33, %s10236_s15  ;;  %9008 = vrot.lane.b32.xlu0 %v14351_v41, %s10239_s18 }
 0x5f4   : > { %8933 = vrot.lane.b32.xlu1 %v14362_v59, %s10236_s15  ;;  %9018 = vrot.lane.b32.xlu0 %v14366_v39, %s10239_s18 }
 0x5f8   : > { %8938 = vrot.lane.b32.xlu1 %v14351_v41, %s10237_s16  ;;  %9028 = vrot.lane.b32.xlu0 %v14378_v44, %s10239_s18 }
 0x5fc   : > { %8948 = vrot.lane.b32.xlu1 %v14366_v39, %s10237_s16  ;;  %9038 = vrot.lane.b32.xlu0 %v14390_v56, %s10239_s18 }
 0x600   : > { %8958 = vrot.lane.b32.xlu1 %v14378_v44, %s10237_s16  ;;  %9043 = vrot.lane.b32.xlu0 %v14302_v43, %s10240_s19 }
 0x604   : > { %8968 = vrot.lane.b32.xlu1 %v14390_v56, %s10237_s16  ;;  %9053 = vrot.lane.b32.xlu0 %v14312_v38, %s10240_s19  ;;  %s20471_s16 = smov 23  }
 0x608   : > { %8978 = vrot.lane.b32.xlu1 %v14406_v31, %s10238_s17  ;;  %9063 = vrot.lane.b32.xlu0 %v14324_v13, %s10240_s19 }
 0x60a   : > { %v14450_v29 = vpop.permute.xlu0 %8803 }
 0x60c   : > { %8988 = vrot.lane.b32.xlu1 %v14414_v10, %s10238_s17  ;;  %9073 = vrot.lane.b32.xlu0 %v14336_v53, %s10240_s19 }
 0x60e   : > { %v14459_v21 = vpop.permute.xlu0 %8808 }
 0x610   : > { %8998 = vrot.lane.b32.xlu1 %v14422_v25, %s10238_s17  ;;  %9078 = vrot.lane.b32.xlu0 %v14426_v62, %s10241_s20 }
 0x614   : > { %9013 = vrot.lane.b32.xlu1 %v14269_v48, %s10239_s18  ;;  %9088 = vrot.lane.b32.xlu0 %v14434_v26, %s10241_s20 }
 0x618   : > { %9023 = vrot.lane.b32.xlu1 %v14280_v30, %s10239_s18  ;;  %9098 = vrot.lane.b32.xlu0 %v14442_v60, %s10241_s20 }
 0x61c   : > { %9033 = vrot.lane.b32.xlu1 %v14291_v18, %s10239_s18  ;;  %9108 = vrot.lane.b32.xlu0 %v9107_v23, %s10241_s20  ;;  %s20474_s18 = smov 22  }
 0x620   : > { %9048 = vrot.lane.b32.xlu1 %v14406_v31, %s10240_s19  ;;  %9113 = vrot.lane.b32.xlu0 %v14321_v1, %s10242_s21 }
 0x624   : > { %9058 = vrot.lane.b32.xlu1 %v14414_v10, %s10240_s19  ;;  %9123 = vrot.lane.b32.xlu0 %v14333_v24, %s10242_s21 }
 0x626   : > { %v14465_v55 = vpop.permute.xlu1 %8818  ;;  %v14467_v12 = vpop.permute.xlu0 %8813 }
 0x627   : > { %20406 = vst [vmem:[#allocation125_spill] sm:$0xff] %v14465_v55  ;;  %20407 = vst [vmem:[#allocation115_spill] sm:$0xff] %v14467_v12 }
 0x628   : > { %9068 = vrot.lane.b32.xlu1 %v14422_v25, %s10240_s19  ;;  %9133 = vrot.lane.b32.xlu0 %v14347_v33, %s10242_s21  ;;  %s20477_s19 = smov 21  }
 0x62a   : > { %v14473_v47 = vpop.permute.xlu1 %8838  ;;  %v14475_v1 = vpop.permute.xlu0 %8823 }
 0x62b   : > { %20408 = vst [vmem:[#allocation90_spill] sm:$0xff] %v14475_v1 }
 0x62c   : > { %9083 = vrot.lane.b32.xlu1 %v14479_v54, %s10241_s20  ;;  %9143 = vrot.lane.b32.xlu0 %v14362_v59, %s10242_s21 }
 0x62e   : > { %v14485_v32 = vpop.permute.xlu1 %8843  ;;  %v14487_v49 = vpop.permute.xlu0 %8828 }
 0x630   : > { %9093 = vrot.lane.b32.xlu1 %v14491_v9, %s10241_s20  ;;  %9148 = vrot.lane.b32.xlu0 %v14426_v62, %s10243_s22 }
 0x632   : > { %v14497_v50 = vpop.permute.xlu1 %8848  ;;  %v14499_v1 = vpop.permute.xlu0 %8833 }
 0x633   : > { %20409 = vst [vmem:[#allocation108_spill] sm:$0xff] %v14497_v50 }
 0x634   : > { %9103 = vrot.lane.b32.xlu1 %v14503_v8, %s10241_s20  ;;  %9158 = vrot.lane.b32.xlu0 %v14434_v26, %s10243_s22  ;;  %s20487_s20 = smov 41  }
 0x636   : > { %v14509_v0 = vpop.permute.xlu1 %8853  ;;  %v14511_v28 = vpop.permute.xlu0 %8888 }
 0x637   : > { %20411 = vst [vmem:[#allocation80_spill] sm:$0xff] %v14509_v0  ;;  %20412 = vst [vmem:[#allocation133_spill] sm:$0xff] %v14511_v28  ;;  %v9182_v28 = vpack.i.bf16 %v14139_v58, %v14151_v63 }
 0x638   : > { %9118 = vrot.lane.b32.xlu1 %v14236_v7, %s10242_s21  ;;  %9168 = vrot.lane.b32.xlu0 %v14442_v60, %s10243_s22 }
 0x63a   : > { %v14517_v59 = vpop.permute.xlu1 %8858  ;;  %v14519_v52 = vpop.permute.xlu0 %8908 }
 0x63b   : > { %20413 = vst [vmem:[#allocation61_spill] sm:$0xff] %v14517_v59  ;;  %20414 = vst [vmem:[#allocation44_spill] sm:$0xff] %v14519_v52  ;;  %v20425_v59 = vld [vmem:[#allocation39_spill] sm:$0xff] }
 0x63c   : > { %9128 = vrot.lane.b32.xlu1 %v14247_v5, %s10242_s21  ;;  %9178 = vrot.lane.b32.xlu0 %v9107_v23, %s10243_s22  ;;  %v9222_v50 = vpack.i.bf16 %v14295_v19, %v20425_v59 }
 0x63e   : > { %v14524_v17 = vpop.permute.xlu1 %8863  ;;  %v14526_v0 = vpop.permute.xlu0 %8918 }
 0x63f   : > { %20415 = vst [vmem:[#allocation118_spill] sm:$0xff] %v14524_v17  ;;  %20416 = vst [vmem:[#allocation111_spill] sm:$0xff] %v14526_v0 }
 0x640   : > { %9138 = vrot.lane.b32.xlu1 %v14258_v3, %s10242_s21  ;;  %9183 = vrot.lane.b32.xlu0 %v9182_v28, %s10244_s23  ;;  %s20490_s21 = smov 40  }
 0x642   : > { %v14533_v60 = vpop.permute.xlu1 %8868  ;;  %v14535_v52 = vpop.permute.xlu0 %8928 }
 0x643   : > { %20417 = vst [vmem:[#allocation128_spill] sm:$0xff] %v14533_v60  ;;  %20418 = vst [vmem:[#allocation85_spill] sm:$0xff] %v14535_v52 }
 0x644   : > { %9153 = vrot.lane.b32.xlu1 %v14479_v54, %s10243_s22  ;;  %9193 = vrot.lane.b32.xlu0 %v14167_v42, %s10244_s23 }
 0x646   : > { %v14541_v23 = vpop.permute.xlu1 %8873  ;;  %v14543_v0 = vpop.permute.xlu0 %8943 }
 0x647   : > { %20419 = vst [vmem:[#allocation60_spill] sm:$0xff] %v14541_v23  ;;  %20420 = vst [vmem:[#allocation46_spill] sm:$0xff] %v14543_v0  ;;  %v9187_v0 = vpack.i.bf16 %v14132_v22, %v14184_v16 }
 0x648   : > { %9163 = vrot.lane.b32.xlu1 %v14491_v9, %s10243_s22  ;;  %9203 = vrot.lane.b32.xlu0 %v14210_v61, %s10244_s23 }
 0x64a   : > { %v14549_v17 = vpop.permute.xlu1 %8878  ;;  %v14551_v60 = vpop.permute.xlu0 %8953 }
 0x64b   : > { %20421 = vst [vmem:[#allocation40_spill] sm:$0xff] %v14549_v17  ;;  %20422 = vst [vmem:[#allocation66_spill] sm:$0xff] %v14551_v60  ;;  %v9227_v17 = vpack.i.bf16 %v14147_v4, %v14139_v58 }
 0x64c   : > { %9173 = vrot.lane.b32.xlu1 %v14503_v8, %s10243_s22  ;;  %9213 = vrot.lane.b32.xlu0 %v14218_v35, %s10244_s23  ;;  %s20862_s22 = smov 95  }
 0x64e   : > { %v14557_v52 = vpop.permute.xlu1 %8883  ;;  %v14559_v23 = vpop.permute.xlu0 %8963 }
 0x64f   : > { %20423 = vst [vmem:[#allocation31_spill] sm:$0xff] %v14557_v52  ;;  %20424 = vst [vmem:[#allocation18_spill] sm:$0xff] %v14559_v23 }
 0x650   : > { %9188 = vrot.lane.b32.xlu1 %v9187_v0, %s10244_s23  ;;  %9223 = vrot.lane.b32.xlu0 %v9222_v50, %s10244_s23  ;;  %v9232_v50 = vpack.i.bf16 %v14143_v51, %v14132_v22 }
 0x652   : > { %v14567_v60 = vpop.permute.xlu1 %8893  ;;  %v14569_v8 = vpop.permute.xlu0 %8973 }
 0x653   : > { %20426 = vst [vmem:[#allocation63_spill] sm:$0xff] %v14567_v60  ;;  %20427 = vst [vmem:[#allocation48_spill] sm:$0xff] %v14569_v8 }
 0x654   : > { %9198 = vrot.lane.b32.xlu1 %v14208_v11, %s10244_s23  ;;  %9228 = vrot.lane.b32.xlu0 %v9227_v17, %s10245_s24 }
 0x656   : > { %v14576_v23 = vpop.permute.xlu1 %8898  ;;  %v14578_v52 = vpop.permute.xlu0 %8983 }
 0x657   : > { %20428 = vst [vmem:[#allocation91_spill] sm:$0xff] %v14576_v23  ;;  %20429 = vst [vmem:[#allocation145_spill] sm:$0xff] %v14578_v52 }
 0x658   : > { %9208 = vrot.lane.b32.xlu1 %v14220_v40, %s10244_s23  ;;  %9238 = vrot.lane.b32.xlu0 %v14161_v20, %s10245_s24 }
 0x65a   : > { %v14584_v59 = vpop.permute.xlu1 %8903  ;;  %v14586_v19 = vpop.permute.xlu0 %8993 }
 0x65b   : > { %20430 = vst [vmem:[#allocation14_spill] sm:$0xff] %v14584_v59  ;;  %20431 = vst [vmem:[#allocation161_spill] sm:$0xff] %v14586_v19 }
 0x65c   : > { %9218 = vrot.lane.b32.xlu1 %v14230_v46, %s10244_s23  ;;  %9248 = vrot.lane.b32.xlu0 %v14206_v2, %s10245_s24 }
 0x65e   : > { %v14592_v17 = vpop.permute.xlu1 %8913  ;;  %v14594_v4 = vpop.permute.xlu0 %9003 }
 0x65f   : > { %20432 = vst [vmem:[#allocation154_spill] sm:$0xff] %v14592_v17  ;;  %20433 = vst [vmem:[#allocation29_spill] sm:$0xff] %v14594_v4 }
 0x660   : > { %9233 = vrot.lane.b32.xlu1 %v9232_v50, %s10245_s24  ;;  %9258 = vrot.lane.b32.xlu0 %v14216_v57, %s10245_s24 }
 0x662   : > { %v14601_v23 = vpop.permute.xlu1 %8923  ;;  %v14603_v19 = vpop.permute.xlu0 %9008 }
 0x663   : > { %20434 = vst [vmem:[#allocation43_spill] sm:$0xff] %v14601_v23  ;;  %20435 = vst [vmem:[#allocation147_spill] sm:$0xff] %v14603_v19 }
 0x664   : > { %9243 = vrot.lane.b32.xlu1 %v14202_v14, %s10245_s24  ;;  %9268 = vrot.lane.b32.xlu0 %v9182_v28, %s10246_s25 }
 0x666   : > { %v14608_v52 = vpop.permute.xlu1 %8933  ;;  %v14610_v17 = vpop.permute.xlu0 %9018 }
 0x667   : > { %20436 = vst [vmem:[#allocation19_spill] sm:$0xff] %v14608_v52  ;;  %20437 = vst [vmem:[#allocation68_spill] sm:$0xff] %v14610_v17  ;;  %v20447_v23 = vunpack.i.h.bf16 %v14608_v52 }
 0x668   : > { %9253 = vrot.lane.b32.xlu1 %v14212_v37, %s10245_s24  ;;  %9278 = vrot.lane.b32.xlu0 %v14167_v42, %s10246_s25 }
 0x66a   : > { %v14616_v51 = vpop.permute.xlu1 %8938  ;;  %v14618_v50 = vpop.permute.xlu0 %9028 }
 0x66b   : > { %20438 = vst [vmem:[#allocation146_spill] sm:$0xff] %v14616_v51  ;;  %20439 = vst [vmem:[#allocation17_spill] sm:$0xff] %v14618_v50 }
 0x66c   : > { %9263 = vrot.lane.b32.xlu1 %v14228_v45, %s10245_s24  ;;  %9288 = vrot.lane.b32.xlu0 %v14210_v61, %s10246_s25  ;;  %v19353_v45 = vunpack.i.h.bf16 %v14594_v4 }
 0x66e   : > { %v14624_v28 = vpop.permute.xlu1 %8948  ;;  %v14626_v19 = vpop.permute.xlu0 %9038 }
 0x66f   : > { %20440 = vst [vmem:[#allocation136_spill] sm:$0xff] %v14624_v28  ;;  %20441 = vst [vmem:[#allocation28_spill] sm:$0xff] %v14626_v19  ;;  %v19354_v28 = vunpack.i.l.bf16 %v14594_v4 }
 0x670   : > { %9273 = vrot.lane.b32.xlu1 %v9187_v0, %s10246_s25  ;;  %9298 = vrot.lane.b32.xlu0 %v14218_v35, %s10246_s25  ;;  %v14643_v0 = vunpack.i.l.bf16 %v14467_v12 }
 0x672   : > { %v14631_v17 = vpop.permute.xlu1 %8958  ;;  %v14633_v51 = vpop.permute.xlu0 %9043  ;;  %20444 = vst [vmem:[#allocation169_spill] sm:$0xff] %v14643_v0  ;;  %v3773_v59 = vsel %vm20448_vm7, %v20447_v23, %v14643_v0 }
 0x673   : > { %20442 = vst [vmem:[#allocation92_spill] sm:$0xff] %v14631_v17  ;;  %20443 = vst [vmem:[#allocation100_spill] sm:$0xff] %v14633_v51  ;;  %v14678_v60 = vsel %vm1413_vm1, %v14163_v27, %v3773_v59 }
 0x674   : > { %9283 = vrot.lane.b32.xlu1 %v14208_v11, %s10246_s25  ;;  %9308 = vrot.lane.b32.xlu0 %v14351_v41, %s10247_s26  ;;  %20451 = vst [vmem:[#allocation107_spill] sm:$0xff] %v14678_v60 }
 0x676   : > { %v14645_v35 = vpop.permute.xlu1 %8968  ;;  %v14647_v17 = vpop.permute.xlu0 %9053 }
 0x677   : > { %20445 = vst [vmem:[#allocation89_spill] sm:$0xff] %v14645_v35  ;;  %20446 = vst [vmem:[#allocation176_spill] sm:$0xff] %v14647_v17  ;;  %v19352_v51 = vunpack.i.h.bf16 %v14645_v35  ;;  %v19355_v50 = vunpack.i.l.bf16 %v14645_v35  ;;  %v3919_v17 = vsel %vm564_vm12, %v19354_v28, %v19353_v45 }
 0x678   : > { %9293 = vrot.lane.b32.xlu1 %v14220_v40, %s10246_s25  ;;  %9318 = vrot.lane.b32.xlu0 %v14366_v39, %s10247_s26 }
 0x679   : > { %v3844_v52 = vsel %vm20449_vm8, %v19355_v50, %v19352_v51  ;;  %v19367_v51 = vunpack.i.h.bf16 %v14626_v19  ;;  %v19368_v50 = vunpack.i.l.bf16 %v14626_v19  ;;  %vm20538_vm8 = vmmov %vm20530_vm0 }
 0x67a   : > { %v14669_v8 = vpop.permute.xlu1 %8978  ;;  %v14671_v23 = vpop.permute.xlu0 %9063  ;;  %v14674_v40 = vsel %vm1413_vm1, %v3844_v52, %v3919_v17 }
 0x67b   : > { %20450 = vst [vmem:[#allocation94_spill] sm:$0xff] %v14674_v40 }
 0x67c   : > { %9303 = vrot.lane.b32.xlu1 %v14230_v46, %s10246_s25  ;;  %9328 = vrot.lane.b32.xlu0 %v14378_v44, %s10247_s26 }
 0x67e   : > { %v14686_v45 = vpop.permute.xlu1 %8988  ;;  %v14688_v28 = vpop.permute.xlu0 %9073 }
 0x67f   : > { %20452 = vst [vmem:[#allocation166_spill] sm:$0xff] %v14688_v28  ;;  %v19365_v59 = vunpack.i.h.bf16 %v14688_v28  ;;  %v19366_v17 = vunpack.i.l.bf16 %v14688_v28 }
 0x680   : > { %9313 = vrot.lane.b32.xlu1 %v14269_v48, %s10247_s26  ;;  %9338 = vrot.lane.b32.xlu0 %v14390_v56, %s10247_s26 }
 0x681   : > { %v4067_v4 = vsel %vm692_vm14, %v19366_v17, %v19365_v59 }
 0x682   : > { %v14694_v27 = vpop.permute.xlu1 %8998  ;;  %v14696_v52 = vpop.permute.xlu0 %9078 }
 0x683   : > { %20453 = vst [vmem:[#allocation127_spill] sm:$0xff] %v14696_v52 }
 0x684   : > { %9323 = vrot.lane.b32.xlu1 %v14280_v30, %s10247_s26  ;;  %9348 = vrot.lane.b32.xlu0 %v14406_v31, %s10248_s27 }
 0x686   : > { %v14706_v40 = vpop.permute.xlu1 %9013  ;;  %v14708_v46 = vpop.permute.xlu0 %9088 }
 0x687   : > { %20454 = vst [vmem:[#allocation170_spill] sm:$0xff] %v14706_v40  ;;  %20455 = vst [vmem:[#allocation171_spill] sm:$0xff] %v14708_v46  ;;  %v3993_v40 = vsel %vm628_vm13, %v19368_v50, %v19367_v51 }
 0x688   : > { %9333 = vrot.lane.b32.xlu1 %v14291_v18, %s10247_s26  ;;  %9358 = vrot.lane.b32.xlu0 %v14414_v10, %s10248_s27  ;;  %v14729_v28 = vsel %vm1413_vm1, %v3993_v40, %v4067_v4 }
 0x689   : > { %20458 = vst [vmem:[#allocation177_spill] sm:$0xff] %v14729_v28  ;;  %v20496_v28 = vpack.i.bf16 %v14184_v16, %v14139_v58 }
 0x68a   : > { %v14724_v52 = vpop.permute.xlu1 %9023  ;;  %v14726_v46 = vpop.permute.xlu0 %9098 }
 0x68b   : > { %20456 = vst [vmem:[#allocation163_spill] sm:$0xff] %v14724_v52  ;;  %20457 = vst [vmem:[#allocation49_spill] sm:$0xff] %v14726_v46  ;;  %v14772_v46 = vld [vmem:[#allocation2] sm:$0xff] }
 0x68c   : > { %9343 = vrot.lane.b32.xlu1 %v14302_v43, %s10248_s27  ;;  %9368 = vrot.lane.b32.xlu0 %v14422_v25, %s10248_s27  ;;  %3574 = vst.msk [vmem:[#allocation2 + $0x54] sm:$0xff] %vm3573_vm5, %v14772_v46  ;;  %vm20545_vm5 = vcmask 15360  }
 0x68e   : > { %v14735_v59 = vpop.permute.xlu1 %9033  ;;  %v14737_v17 = vpop.permute.xlu0 %9108 }
 0x68f   : > { %20459 = vst [vmem:[#allocation99_spill] sm:$0xff] %v14735_v59  ;;  %20460 = vst [vmem:[#allocation135_spill] sm:$0xff] %v14737_v17 }
 0x690   : > { %9353 = vrot.lane.b32.xlu1 %v14312_v38, %s10248_s27  ;;  %9378 = vrot.lane.b32.xlu0 %v14351_v41, %s10249_s28 }
 0x692   : > { %v14743_v51 = vpop.permute.xlu1 %9048  ;;  %v14745_v40 = vpop.permute.xlu0 %9113 }
 0x693   : > { %20461 = vst [vmem:[#allocation86_spill] sm:$0xff] %v14743_v51  ;;  %20462 = vst [vmem:[#allocation164_spill] sm:$0xff] %v14745_v40  ;;  %v19384_v51 = vunpack.i.l.bf16 %v14737_v17 }
 0x694   : > { %9363 = vrot.lane.b32.xlu1 %v14324_v13, %s10248_s27  ;;  %9388 = vrot.lane.b32.xlu0 %v14351_v41, %s10257_s11 }
 0x696   : > { %v14751_v4 = vpop.permute.xlu1 %9058  ;;  %v14753_v50 = vpop.permute.xlu0 %9123 }
 0x697   : > { %20463 = vst [vmem:[#allocation50_spill] sm:$0xff] %v14751_v4  ;;  %20464 = vst [vmem:[#allocation51_spill] sm:$0xff] %v14753_v50 }
 0x698   : > { %9373 = vrot.lane.b32.xlu1 %v14336_v53, %s10248_s27  ;;  %9398 = vrot.lane.b32.xlu0 %v14236_v7, %s10244_s23 }
 0x69a   : > { %v14759_v19 = vpop.permute.xlu1 %9068  ;;  %v14761_v59 = vpop.permute.xlu0 %9133 }
 0x69b   : > { %20465 = vst [vmem:[#allocation71_spill] sm:$0xff] %v14759_v19  ;;  %20466 = vst [vmem:[#allocation148_spill] sm:$0xff] %v14761_v59 }
 0x69c   : > { %9383 = vrot.lane.b32.xlu1 %v14269_v48, %s10249_s28  ;;  %9408 = vrot.lane.b32.xlu0 %v14366_v39, %s10257_s11 }
 0x69e   : > { %v14767_v4 = vpop.permute.xlu1 %9083  ;;  %v14769_v50 = vpop.permute.xlu0 %9143 }
 0x69f   : > { %20467 = vst [vmem:[#allocation140_spill] sm:$0xff] %v14767_v4  ;;  %20468 = vst [vmem:[#allocation165_spill] sm:$0xff] %v14769_v50  ;;  %v19387_v52 = vunpack.i.h.bf16 %v14769_v50  ;;  %v20720_v50 = vld [vmem:[#allocation92_spill] sm:$0xff] }
 0x6a0   : > { %9393 = vrot.lane.b32.xlu1 %v14269_v48, %s10257_s11  ;;  %9418 = vrot.lane.b32.xlu0 %v14155_v34, %s10253_s13 }
 0x6a2   : > { %v14779_v7 = vpop.permute.xlu1 %9093  ;;  %v14781_v59 = vpop.permute.xlu0 %9148 }
 0x6a3   : > { %20469 = vst [vmem:[#allocation157_spill] sm:$0xff] %v14779_v7  ;;  %20470 = vst [vmem:[#allocation174_spill] sm:$0xff] %v14781_v59 }
 0x6a4   : > { %9403 = vrot.lane.b32.xlu1 %v14426_v62, %s10245_s24  ;;  %9428 = vrot.lane.b32.xlu0 %v14302_v43, %s20471_s16  ;;  %v19386_v62 = vunpack.i.l.bf16 %v14465_v55 }
 0x6a6   : > { %v14787_v4 = vpop.permute.xlu1 %9103  ;;  %v14789_v19 = vpop.permute.xlu0 %9158 }
 0x6a7   : > { %20472 = vst [vmem:[#allocation151_spill] sm:$0xff] %v14787_v4  ;;  %20473 = vst [vmem:[#allocation139_spill] sm:$0xff] %v14789_v19  ;;  %v19385_v40 = vunpack.i.h.bf16 %v14787_v4 }
 0x6a8   : > { %9413 = vrot.lane.b32.xlu1 %v14333_v24, %s10244_s23  ;;  %9438 = vrot.lane.b32.xlu0 %v14351_v41, %s20474_s18  ;;  %v4215_v24 = vsel %vm827_vm2, %v19387_v52, %v19386_v62 }
 0x6a9   : > { %v4141_v19 = vsel %vm759_vm15, %v19385_v40, %v19384_v51 }
 0x6aa   : > { %v14804_v59 = vpop.permute.xlu1 %9118  ;;  %v14806_v7 = vpop.permute.xlu0 %9168  ;;  %v14818_v41 = vsel %vm1413_vm1, %v4141_v19, %v4215_v24 }
 0x6ab   : > { %20475 = vst [vmem:[#allocation67_spill] sm:$0xff] %v14804_v59  ;;  %20476 = vst [vmem:[#allocation156_spill] sm:$0xff] %v14806_v7  ;;  %v20684_v7 = vld [vmem:[#allocation146_spill] sm:$0xff] }
 0x6ac   : > { %9423 = vrot.lane.b32.xlu1 %v14159_v6, %s10253_s13  ;;  %9448 = vrot.lane.b32.xlu0 %v14302_v43, %s20477_s19  ;;  %20478 = vst [vmem:[#allocation149_spill] sm:$0xff] %v14818_v41 }
 0x6ae   : > { %v14820_v51 = vpop.permute.xlu1 %9128  ;;  %v14822_v40 = vpop.permute.xlu0 %9178 }
 0x6af   : > { %20479 = vst [vmem:[#allocation52_spill] sm:$0xff] %v14820_v51  ;;  %20480 = vst [vmem:[#allocation152_spill] sm:$0xff] %v14822_v40  ;;  %v19399_v58 = vunpack.i.l.bf16 %v14822_v40  ;;  %v20511_v40 = vld [vmem:[#allocation81_spill] sm:$0xff]  ;;  %v10215_v51 = vld [vmem:[#allocation2 + $0x18] sm:$0xff] }
 0x6b0   : > { %9433 = vrot.lane.b32.xlu1 %v14406_v31, %s20471_s16  ;;  %9458 = vrot.lane.b32.xlu0 %v14479_v54, %s10245_s24 }
 0x6b2   : > { %v14828_v62 = vpop.permute.xlu1 %9138  ;;  %v14830_v52 = vpop.permute.xlu0 %9183 }
 0x6b3   : > { %20481 = vst [vmem:[#allocation138_spill] sm:$0xff] %v14828_v62  ;;  %20482 = vst [vmem:[#allocation73_spill] sm:$0xff] %v14830_v52 }
 0x6b4   : > { %9443 = vrot.lane.b32.xlu1 %v14269_v48, %s20474_s18  ;;  %9468 = vrot.lane.b32.xlu0 %v14312_v38, %s20471_s16 }
 0x6b6   : > { %v14836_v43 = vpop.permute.xlu1 %9153  ;;  %v14838_v19 = vpop.permute.xlu0 %9193 }
 0x6b7   : > { %20483 = vst [vmem:[#allocation153_spill] sm:$0xff] %v14836_v43  ;;  %20484 = vst [vmem:[#allocation141_spill] sm:$0xff] %v14838_v19  ;;  %v20546_v43 = vunpack.i.h.bf16 %v14473_v47 }
 0x6b8   : > { %9453 = vrot.lane.b32.xlu1 %v14406_v31, %s20477_s19  ;;  %9478 = vrot.lane.b32.xlu0 %v14312_v38, %s20477_s19 }
 0x6ba   : > { %v14844_v54 = vpop.permute.xlu1 %9163  ;;  %v14846_v24 = vpop.permute.xlu0 %9203 }
 0x6bb   : > { %20485 = vst [vmem:[#allocation150_spill] sm:$0xff] %v14844_v54  ;;  %20486 = vst [vmem:[#allocation172_spill] sm:$0xff] %v14846_v24  ;;  %v20491_v24 = vpack.i.bf16 %v14151_v63, %v14132_v22 }
 0x6bc   : > { %9463 = vrot.lane.b32.xlu1 %v14161_v20, %s10253_s13  ;;  %9488 = vrot.lane.b32.xlu0 %v14159_v6, %s20487_s20 }
 0x6be   : > { %v14854_v55 = vpop.permute.xlu1 %9173  ;;  %v14856_v17 = vpop.permute.xlu0 %9213 }
 0x6bf   : > { %20488 = vst [vmem:[#allocation93_spill] sm:$0xff] %v14854_v55  ;;  %20489 = vst [vmem:[#allocation30_spill] sm:$0xff] %v14856_v17 }
 0x6c0   : > { %9473 = vrot.lane.b32.xlu1 %v14366_v39, %s20474_s18  ;;  %9498 = vrot.lane.b32.xlu0 %v20491_v24, %s20490_s21 }
 0x6c2   : > { %v14864_v54 = vpop.permute.xlu1 %9188  ;;  %v14866_v19 = vpop.permute.xlu0 %9223 }
 0x6c3   : > { %20492 = vst [vmem:[#allocation45_spill] sm:$0xff] %v14864_v54  ;;  %20493 = vst [vmem:[#allocation82_spill] sm:$0xff] %v14866_v19 }
 0x6c4   : > { %9483 = vrot.lane.b32.xlu1 %v14155_v34, %s20487_s20  ;;  %9508 = vrot.lane.b32.xlu0 %v14167_v42, %s20490_s21  ;;  %v19400_v34 = vunpack.i.h.bf16 %v14854_v55 }
 0x6c6   : > { %v14872_v6 = vpop.permute.xlu1 %9198  ;;  %v14874_v48 = vpop.permute.xlu0 %9228 }
 0x6c7   : > { %20494 = vst [vmem:[#allocation167_spill] sm:$0xff] %v14872_v6  ;;  %20495 = vst [vmem:[#allocation74_spill] sm:$0xff] %v14874_v48 }
 0x6c8   : > { %9493 = vrot.lane.b32.xlu1 %v20496_v28, %s20490_s21  ;;  %9518 = vrot.lane.b32.xlu0 %v14247_v5, %s10244_s23 }
 0x6ca   : > { %v14882_v22 = vpop.permute.xlu1 %9208  ;;  %v14884_v63 = vpop.permute.xlu0 %9238 }
 0x6cb   : > { %20497 = vst [vmem:[#allocation173_spill] sm:$0xff] %v14882_v22  ;;  %20498 = vst [vmem:[#allocation77_spill] sm:$0xff] %v14884_v63  ;;  %v20516_v22 = vunpack.i.h.bf16 %v20511_v40 }
 0x6cc   : > { %9503 = vrot.lane.b32.xlu1 %v14161_v20, %s20487_s20  ;;  %9528 = vrot.lane.b32.xlu0 %v14378_v44, %s10257_s11  ;;  %v4289_v20 = vsel %vm20501_vm3, %v19400_v34, %v19399_v58  ;;  %vm20555_vm3 = vmmov %vm20515_vm9 }
 0x6ce   : > { %v14891_v42 = vpop.permute.xlu1 %9218  ;;  %v14893_v24 = vpop.permute.xlu0 %9248 }
 0x6cf   : > { %20499 = vst [vmem:[#allocation158_spill] sm:$0xff] %v14891_v42  ;;  %20500 = vst [vmem:[#allocation69_spill] sm:$0xff] %v14893_v24  ;;  %v19401_v16 = vunpack.i.h.bf16 %v14891_v42  ;;  %v19402_v5 = vunpack.i.l.bf16 %v14891_v42 }
 0x6d0   : > { %9513 = vrot.lane.b32.xlu1 %v14280_v30, %s10257_s11  ;;  %9538 = vrot.lane.b32.xlu0 %v14202_v14, %s10253_s13 }
 0x6d1   : > { %v4383_v28 = vsel %vm20502_vm6, %v19402_v5, %v19401_v16  ;;  %vm20558_vm6 = vmmov %vm20448_vm7 }
 0x6d2   : > { %v14912_v41 = vpop.permute.xlu1 %9233  ;;  %v14914_v24 = vpop.permute.xlu0 %9258  ;;  %v14917_v63 = vsel %vm1413_vm1, %v4289_v20, %v4383_v28 }
 0x6d3   : > { %20503 = vst [vmem:[#allocation160_spill] sm:$0xff] %v14912_v41  ;;  %20504 = vst [vmem:[#allocation56_spill] sm:$0xff] %v14914_v24  ;;  %v20512_v24 = vld [vmem:[#allocation53_spill] sm:$0xff] }
 0x6d4   : > { %20505 = vst [vmem:[#allocation37_spill] sm:$0xff] %v14917_v63  ;;  %9523 = vrot.lane.b32.xlu1 %v14434_v26, %s10245_s24  ;;  %9548 = vrot.lane.b32.xlu0 %v14280_v30, %s20474_s18  ;;  %v20510_v26 = vld [vmem:[#allocation126_spill] sm:$0xff]  ;;  %v8789_v41 = vunpack.i.l.bf16 %v20512_v24  ;;  %v20521_v30 = vld [vmem:[#allocation75_spill] sm:$0xff] }
 0x6d5   : > { %v19423_v28 = vunpack.i.h.bf16 %v20510_v26  ;;  %v8779_v5 = vunpack.i.l.bf16 %v20510_v26 }
 0x6d6   : > { %v14923_v58 = vpop.permute.xlu1 %9243  ;;  %v14925_v34 = vpop.permute.xlu0 %9268 }
 0x6d7   : > { %20506 = vst [vmem:[#allocation65_spill] sm:$0xff] %v14923_v58  ;;  %20507 = vst [vmem:[#allocation72_spill] sm:$0xff] %v14925_v34  ;;  %v3903_v58 = vsel %vm564_vm12, %v8779_v5, %v19423_v28  ;;  %v7884_v5 = vunpack.i.h.bf16 %v20521_v30  ;;  %v20522_v28 = vld [vmem:[#allocation137_spill] sm:$0xff]  ;;  %v8810_v30 = vunpack.i.l.bf16 %v14459_v21 }
 0x6d8   : > { %9533 = vrot.lane.b32.xlu1 %v14347_v33, %s10244_s23  ;;  %9558 = vrot.lane.b32.xlu0 %v14491_v9, %s10245_s24  ;;  %v8784_v33 = vunpack.i.l.bf16 %v20511_v40  ;;  %v19425_v9 = vunpack.i.h.bf16 %v14086_v15  ;;  %v8164_v39 = vunpack.i.h.bf16 %v20522_v28 }
 0x6da   : > { %v14931_v16 = vpop.permute.xlu1 %9253  ;;  %v14933_v20 = vpop.permute.xlu0 %9278  ;;  %v3977_v48 = vsel %vm628_vm13, %v8784_v33, %v20516_v22 }
 0x6db   : > { %20508 = vst [vmem:[#allocation70_spill] sm:$0xff] %v14931_v16  ;;  %20509 = vst [vmem:[#allocation159_spill] sm:$0xff] %v14933_v20  ;;  %v8774_v16 = vunpack.i.l.bf16 %v14086_v15 }
 0x6dc   : > { %9543 = vrot.lane.b32.xlu1 %v14414_v10, %s20471_s16  ;;  %9568 = vrot.lane.b32.xlu0 %v14324_v13, %s20471_s16 }
 0x6dd   : > { %v3828_v20 = vsel %vm20515_vm9, %v8774_v16, %v19425_v9  ;;  %v8830_v9 = vunpack.i.l.bf16 %v14487_v49  ;;  %vm20562_vm9 = vmmov %vm20555_vm3 }
 0x6de   : > { %v14947_v42 = vpop.permute.xlu1 %9263  ;;  %v14949_v34 = vpop.permute.xlu0 %9288 }
 0x6df   : > { %20513 = vst [vmem:[#allocation26_spill] sm:$0xff] %v14947_v42  ;;  %20514 = vst [vmem:[#allocation155_spill] sm:$0xff] %v14949_v34  ;;  %v20517_v34 = vunpack.i.h.bf16 %v20512_v24 }
 0x6e0   : > { %9553 = vrot.lane.b32.xlu1 %v14414_v10, %s20477_s19  ;;  %9578 = vrot.lane.b32.xlu0 %v14324_v13, %s20477_s19  ;;  %v20520_v13 = vld [vmem:[#allocation57_spill] sm:$0xff]  ;;  %v20564_v10 = vunpack.i.h.bf16 %v20512_v24 }
 0x6e1   : > { %v4051_v6 = vsel %vm692_vm14, %v8789_v41, %v20517_v34  ;;  %v7794_v55 = vunpack.i.h.bf16 %v20520_v13  ;;  %v14982_v41 = vsel %vm1413_vm1, %v3828_v20, %v3903_v58  ;;  %v8805_v13 = vunpack.i.l.bf16 %v14450_v29 }
 0x6e2   : > { %v14967_v17 = vpop.permute.xlu1 %9273  ;;  %v14969_v54 = vpop.permute.xlu0 %9298  ;;  %v14979_v22 = vsel %vm1413_vm1, %v3977_v48, %v4051_v6  ;;  %20524 = vst [vmem:[#allocation33_spill] sm:$0xff] %v14982_v41  ;;  %v14995_v48 = vld [vmem:[#allocation2 + $0x48] sm:$0xff] }
 0x6e3   : > { %20518 = vst [vmem:[#allocation35_spill] sm:$0xff] %v14967_v17  ;;  %20519 = vst [vmem:[#allocation54_spill] sm:$0xff] %v14969_v54  ;;  %v14999_v6 = vpack.i.bf16 %v14995_v48, %v14382_v36  ;;  %v15007_v33 = vsel %vm759_vm15, %v7794_v55, %v8805_v13  ;;  %v20531_v55 = vunpack.i.h.bf16 %v14450_v29  ;;  %v8845_v54 = vunpack.i.l.bf16 %v14485_v32 }
 0x6e4   : > { %9563 = vrot.lane.b32.xlu1 %v14206_v2, %s10253_s13  ;;  %9588 = vrot.lane.b32.xlu0 %v14208_v11, %s20490_s21  ;;  %20523 = vst [vmem:[#allocation143_spill] sm:$0xff] %v14979_v22  ;;  %v15016_v11 = vsel %vm20530_vm0, %v7884_v5, %v8810_v30  ;;  %v20537_v5 = vunpack.i.h.bf16 %v14459_v21  ;;  %vm20582_vm0 = vmmov %vm20558_vm6  ;;  %v20613_v22 = vld [vmem:[#allocation46_spill] sm:$0xff] }
 0x6e5   : > { %20527 = vst [vmem:[#allocation142_spill] sm:$0xff] %v14999_v6 }
 0x6e6   : > { %v14984_v34 = vpop.permute.xlu1 %9283  ;;  %v14986_v16 = vpop.permute.xlu0 %9308 }
 0x6e7   : > { %20525 = vst [vmem:[#allocation32_spill] sm:$0xff] %v14984_v34  ;;  %20526 = vst [vmem:[#allocation21_spill] sm:$0xff] %v14986_v16 }
 0x6e8   : > { %9573 = vrot.lane.b32.xlu1 %v14378_v44, %s20474_s18  ;;  %9598 = vrot.lane.b32.xlu0 %v14210_v61, %s20490_s21  ;;  %v20532_v61 = vunpack.i.h.bf16 %v14467_v12 }
 0x6ea   : > { %v15002_v20 = vpop.permute.xlu1 %9293  ;;  %v15004_v28 = vpop.permute.xlu0 %9318 }
 0x6eb   : > { %20528 = vst [vmem:[#allocation16_spill] sm:$0xff] %v15002_v20  ;;  %20529 = vst [vmem:[#allocation9_spill] sm:$0xff] %v15004_v28  ;;  %v15023_v28 = vsel %vm759_vm15, %v8805_v13, %v20531_v55  ;;  %v8835_v13 = vunpack.i.l.bf16 %v14499_v1  ;;  %v3757_v20 = vsel %vm20448_vm7, %v8164_v39, %v8830_v9  ;;  %v20541_v39 = vunpack.i.l.bf16 %v14947_v42 }
 0x6ec   : > { %9583 = vrot.lane.b32.xlu1 %v14202_v14, %s20487_s20  ;;  %9608 = vrot.lane.b32.xlu0 %v14258_v3, %s10244_s23  ;;  %v5003_v14 = vsel %vm20533_vm11, %v14643_v0, %v20532_v61  ;;  %v8840_v3 = vunpack.i.l.bf16 %v14473_v47  ;;  %v20536_v0 = vld [vmem:[#allocation108_spill] sm:$0xff]  ;;  %v20540_v61 = vunpack.i.h.bf16 %v14947_v42  ;;  %vm20602_vm11 = vmmov %vm20538_vm8 }
 0x6ed   : > { %v8850_v55 = vunpack.i.l.bf16 %v20536_v0  ;;  %v15073_v16 = vsel %vm1413_vm1, %v14382_v36, %v5003_v14  ;;  %v20556_v36 = vld [vmem:[#allocation64_spill] sm:$0xff]  ;;  %vm20606_vm7 = vmmov %vm20582_vm0 }
 0x6ee   : > { %v15032_v34 = vpop.permute.xlu1 %9303  ;;  %v15034_v58 = vpop.permute.xlu0 %9328  ;;  %v4466_v17 = vsel %vm20542_vm10, %v20541_v39, %v20540_v61  ;;  %20549 = vst [vmem:[#allocation8_spill] sm:$0xff] %v15073_v16  ;;  %v20550_v61 = vunpack.i.h.bf16 %v20510_v26  ;;  %v7839_v16 = vunpack.i.h.bf16 %v20556_v36  ;;  %v15099_v26 = vsel %vm1413_vm1, %v14772_v46, %v3757_v20  ;;  %v20588_v20 = vld [vmem:[#allocation111_spill] sm:$0xff]  ;;  %vm20612_vm10 = vmmov %vm20582_vm0 }
 0x6ef   : > { %20534 = vst [vmem:[#allocation144_spill] sm:$0xff] %v15032_v34  ;;  %20535 = vst [vmem:[#allocation11_spill] sm:$0xff] %v15034_v58  ;;  %v15050_v58 = vsel %vm20538_vm8, %v8810_v30, %v20537_v5  ;;  %v20544_v12 = vunpack.i.l.bf16 %v15032_v34  ;;  %v3905_v30 = vsel %vm564_vm12, %v8840_v3, %v20546_v43  ;;  %v20553_v43 = vld [vmem:[#allocation61_spill] sm:$0xff]  ;;  %vm20609_vm8 = vcmask 31744  }
 0x6f0   : > { %9593 = vrot.lane.b32.xlu1 %v14206_v2, %s20487_s20  ;;  %9618 = vrot.lane.b32.xlu0 %v14390_v56, %s10257_s11  ;;  %20539 = vst [vmem:[#allocation3_spill] sm:$0xff] %v15050_v58  ;;  %v20543_v2 = vunpack.i.h.bf16 %v15032_v34  ;;  %v3904_v39 = vsel %vm564_vm12, %v20550_v61, %v8840_v3  ;;  %20559 = vst [vmem:[#allocation10_spill] sm:$0xff] %v15099_v26  ;;  %v20561_v3 = vunpack.i.h.bf16 %v14499_v1  ;;  %v20570_v24 = vunpack.i.h.bf16 %v20553_v43  ;;  %v20591_v26 = vld [vmem:[#allocation40_spill] sm:$0xff] }
 0x6f2   : > { %v4540_v44 = vsel %vm20545_vm5, %v20544_v12, %v20543_v2  ;;  %v15067_v5 = vpop.permute.xlu1 %9313  ;;  %v15069_v58 = vpop.permute.xlu0 %9338  ;;  %v20552_v12 = vunpack.i.h.bf16 %v14485_v32  ;;  %v3830_v61 = vsel %vm20562_vm9, %v8835_v13, %v20561_v3  ;;  %vm20630_vm9 = vmmov %vm20602_vm11 }
 0x6f3   : > { %20547 = vst [vmem:[#allocation6_spill] sm:$0xff] %v15067_v5  ;;  %20548 = vst [vmem:[#allocation5_spill] sm:$0xff] %v15069_v58  ;;  %v15079_v34 = vsel %vm1413_vm1, %v4466_v17, %v4540_v44  ;;  %v8860_v5 = vunpack.i.l.bf16 %v20553_v43  ;;  %v20554_v58 = vunpack.i.h.bf16 %v14086_v15  ;;  %v20557_v44 = vunpack.i.h.bf16 %v14487_v49 }
 0x6f4   : > { %20551 = vst [vmem:[#allocation7_spill] sm:$0xff] %v15079_v34  ;;  %v3979_v2 = vsel %vm628_vm13, %v8845_v54, %v20552_v12  ;;  %9603 = vrot.lane.b32.xlu1 %v14291_v18, %s10257_s11  ;;  %9628 = vrot.lane.b32.xlu0 %v14212_v37, %s10253_s13  ;;  %v20563_v12 = vld [vmem:[#allocation80_spill] sm:$0xff]  ;;  %v20590_v34 = vld [vmem:[#allocation85_spill] sm:$0xff] }
 0x6f5   : > { %v3829_v14 = vsel %vm20555_vm3, %v20554_v58, %v8835_v13  ;;  %v3758_v17 = vsel %vm20558_vm6, %v8830_v9, %v20557_v44  ;;  %v20560_v58 = vunpack.i.h.bf16 %v20536_v0  ;;  %v8855_v42 = vunpack.i.l.bf16 %v20563_v12  ;;  %v20565_v44 = vld [vmem:[#allocation44_spill] sm:$0xff] }
 0x6f6   : > { %v4052_v9 = vsel %vm692_vm14, %v20564_v10, %v8850_v55  ;;  %v15115_v52 = vpop.permute.xlu1 %9323  ;;  %v15117_v15 = vpop.permute.xlu0 %9348  ;;  %v15123_v13 = vsel %vm1413_vm1, %v3829_v14, %v3904_v39  ;;  %v4199_v3 = vsel %vm827_vm2, %v7839_v16, %v8860_v5  ;;  %v4200_v10 = vsel %vm827_vm2, %v8860_v5, %v20570_v24  ;;  %v20589_v24 = vld [vmem:[#allocation128_spill] sm:$0xff] }
 0x6f7   : > { %v4053_v36 = vsel %vm692_vm14, %v8850_v55, %v20560_v58  ;;  %20566 = vst [vmem:[#allocation47_spill] sm:$0xff] %v15115_v52  ;;  %20567 = vst [vmem:[#allocation109_spill] sm:$0xff] %v15117_v15  ;;  %v20568_v58 = vunpack.i.h.bf16 %v20511_v40  ;;  %v20571_v55 = vld [vmem:[#allocation131_spill] sm:$0xff]  ;;  %v15147_v39 = vsel %vm1413_vm1, %v3830_v61, %v3905_v30  ;;  %v20577_v14 = vunpack.i.h.bf16 %v14450_v29  ;;  %v20583_v30 = vld [vmem:[#allocation118_spill] sm:$0xff] }
 0x6f8   : > { %20569 = vst [vmem:[#allocation112_spill] sm:$0xff] %v15123_v13  ;;  %v15131_v38 = vsel %vm1413_vm1, %v20571_v55, %v3758_v17  ;;  %9638 = vrot.lane.b32.xlu0 %v14291_v18, %s20474_s18  ;;  %v15144_v5 = vsel %vm1413_vm1, %v3979_v2, %v4053_v36  ;;  %20576 = vst [vmem:[#allocation113_spill] sm:$0xff] %v15147_v39  ;;  %v20581_v2 = vunpack.i.l.bf16 %v20565_v44  ;;  %v8865_v61 = vunpack.i.l.bf16 %v20583_v30  ;;  %v20595_v40 = vld [vmem:[#allocation60_spill] sm:$0xff]  ;;  %v20599_v15 = vld [vmem:[#allocation27_spill] sm:$0xff] }
 0x6f9   : > { %v3978_v63 = vsel %vm628_vm13, %v20568_v58, %v8845_v54  ;;  %20572 = vst [vmem:[#allocation114_spill] sm:$0xff] %v15131_v38  ;;  %v20573_v54 = vld [vmem:[#allocation83_spill] sm:$0xff]  ;;  %20575 = vst [vmem:[#allocation119_spill] sm:$0xff] %v15144_v5  ;;  %v15152_v17 = vsel %vm759_vm15, %v20577_v14, %v8855_v42  ;;  %v20579_v58 = vld [vmem:[#allocation133_spill] sm:$0xff]  ;;  %v15174_v14 = vsel %vm1413_vm1, %v15007_v33, %v4199_v3  ;;  %v20596_v52 = vunpack.i.h.bf16 %v20563_v12 }
 0x6fa   : > { %9613 = vrot.lane.b32.xlu1 %v20573_v54, %s10245_s24  ;;  %v15141_v16 = vsel %vm1413_vm1, %v3978_v63, %v4052_v9  ;;  %20578 = vst [vmem:[#allocation55_spill] sm:$0xff] %v15152_v17  ;;  %v8890_v55 = vunpack.i.l.bf16 %v20579_v58  ;;  %v20580_v63 = vunpack.i.h.bf16 %v20565_v44  ;;  %v15164_v9 = vpop.permute.xlu1 %9333  ;;  %v15166_v29 = vpop.permute.xlu0 %9358  ;;  %v15170_v54 = vsel %vm1413_vm1, %v15023_v28, %v4200_v10  ;;  %20587 = vst [vmem:[#allocation81_spill] sm:$0xff] %v15174_v14  ;;  %v20592_v10 = vld [vmem:[#allocation134_spill] sm:$0xff]  ;;  %v20593_v33 = vld [vmem:[#allocation175_spill] sm:$0xff] }
 0x6fb   : > { %20574 = vst [vmem:[#allocation120_spill] sm:$0xff] %v15141_v16  ;;  %20584 = vst [vmem:[#allocation78_spill] sm:$0xff] %v15164_v9  ;;  %v8880_v28 = vunpack.i.l.bf16 %v20591_v26  ;;  %v20594_v3 = vunpack.i.h.bf16 %v20579_v58  ;;  %v8875_v9 = vunpack.i.l.bf16 %v20595_v40  ;;  %v15196_v41 = vsel %vm759_vm15, %v8855_v42, %v20596_v52  ;;  %v20618_v14 = vld [vmem:[#allocation63_spill] sm:$0xff]  ;;  %v20727_v17 = vld [vmem:[#allocation176_spill] sm:$0xff] }
 0x6fc   : > { %v3762_v36 = vsel %vm20582_vm0, %v20581_v2, %v20580_v63  ;;  %20585 = vst [vmem:[#allocation39_spill] sm:$0xff] %v15166_v29  ;;  %20586 = vst [vmem:[#allocation126_spill] sm:$0xff] %v15170_v54  ;;  %v8870_v2 = vunpack.i.l.bf16 %v20589_v24  ;;  %9648 = vrot.lane.b32.xlu0 %v20593_v33, %s10245_s24  ;;  %v20601_v18 = vunpack.i.h.bf16 %v14459_v21  ;;  %v20604_v42 = vunpack.i.h.bf16 %v20588_v20 }
 0x6fd   : > { %v4670_v63 = vsel %vm1253_vm4, %v8890_v55, %v20594_v3  ;;  %v15205_v58 = vsel %vm1413_vm1, %v20599_v15, %v3762_v36  ;;  %v20605_v38 = vunpack.i.l.bf16 %v20588_v20  ;;  %v20608_v55 = vunpack.i.h.bf16 %v20589_v24  ;;  %v20617_v15 = vld [vmem:[#allocation66_spill] sm:$0xff] }
 0x6fe   : > { %9623 = vrot.lane.b32.xlu1 %v20592_v10, %s10244_s23  ;;  %v15199_v13 = vpop.permute.xlu1 %9343  ;;  %v15201_v29 = vpop.permute.xlu0 %9368  ;;  %20600 = vst [vmem:[#allocation75_spill] sm:$0xff] %v15205_v58  ;;  %v15214_v52 = vsel %vm20602_vm11, %v20601_v18, %v8865_v61  ;;  %v20610_v3 = vunpack.i.h.bf16 %v20590_v34  ;;  %v20611_v21 = vunpack.i.l.bf16 %v20590_v34  ;;  %v20614_v54 = vunpack.i.h.bf16 %v20591_v26 }
 0x6ff   : > { %20597 = vst [vmem:[#allocation53_spill] sm:$0xff] %v15199_v13  ;;  %20598 = vst [vmem:[#allocation57_spill] sm:$0xff] %v15201_v29  ;;  %v3766_v29 = vsel %vm20606_vm7, %v20605_v38, %v20604_v42  ;;  %v20607_v13 = vld [vmem:[#allocation31_spill] sm:$0xff]  ;;  %v4367_v16 = vsel %vm20609_vm8, %v8870_v2, %v20608_v55  ;;  %v20615_v2 = vunpack.i.h.bf16 %v20595_v40  ;;  %vm20616_vm3 = vcmask 23552   ;;  %v20624_v42 = vld [vmem:[#allocation14_spill] sm:$0xff] }
 0x700   : > { %20603 = vst [vmem:[#allocation137_spill] sm:$0xff] %v15214_v52  ;;  %v8885_v36 = vunpack.i.l.bf16 %v20607_v13  ;;  %v3770_v18 = vsel %vm20612_vm10, %v20611_v21, %v20610_v3  ;;  %v4524_v38 = vsel %vm20545_vm5, %v8880_v28, %v20614_v54  ;;  %9653 = vrot.lane.b32.xlu0 %v14216_v57, %s10253_s13  ;;  %v8895_v54 = vunpack.i.l.bf16 %v20618_v14  ;;  %v20619_v28 = vld [vmem:[#allocation48_spill] sm:$0xff]  ;;  %v20626_v40 = vld [vmem:[#allocation154_spill] sm:$0xff]  ;;  %vm20650_vm8 = vmmov %vm20612_vm10 }
 0x701   : > { %v4450_v55 = vsel %vm20616_vm3, %v8875_v9, %v20615_v2  ;;  %v8975_v10 = vunpack.i.l.bf16 %v20619_v28  ;;  %v20622_v9 = vunpack.i.h.bf16 %v20607_v13  ;;  %vm20623_vm6 = vcmask 932864   ;;  %vm20651_vm10 = vmmov %vm20650_vm8 }
 0x702   : > { %9633 = vrot.lane.b32.xlu1 %v14422_v25, %s20471_s16  ;;  %v15249_v52 = vpop.permute.xlu1 %9353  ;;  %v15251_v24 = vpop.permute.xlu0 %9378  ;;  %v8906_v3 = vunpack.i.h.bf16 %v20624_v42  ;;  %v8905_v21 = vunpack.i.l.bf16 %v20624_v42  ;;  %v15259_v26 = vsel %vm1413_vm1, %v4450_v55, %v4524_v38  ;;  %v8916_v62 = vunpack.i.h.bf16 %v20626_v40  ;;  %vm20653_vm5 = vmmov %vm20650_vm8 }
 0x703   : > { %20620 = vst [vmem:[#allocation108_spill] sm:$0xff] %v15249_v52  ;;  %20621 = vst [vmem:[#allocation61_spill] sm:$0xff] %v15251_v24  ;;  %v4598_v2 = vsel %vm20623_vm6, %v8885_v36, %v20622_v9  ;;  %v8915_v33 = vunpack.i.l.bf16 %v20626_v40  ;;  %v20627_v52 = vld [vmem:[#allocation15_spill] sm:$0xff]  ;;  %v20629_v9 = vunpack.i.h.bf16 %v20583_v30  ;;  %v20632_v38 = vunpack.i.h.bf16 %v20613_v22  ;;  %v20699_v30 = vld [vmem:[#allocation136_spill] sm:$0xff] }
 0x704   : > { %20625 = vst [vmem:[#allocation64_spill] sm:$0xff] %v15259_v26  ;;  %9663 = vrot.lane.b32.xlu0 %v14390_v56, %s20474_s18  ;;  %v15269_v36 = vsel %vm1413_vm1, %v20627_v52, %v3766_v29  ;;  %v20633_v55 = vunpack.i.l.bf16 %v20613_v22  ;;  %vm20634_vm0 = vcmask 1031168   ;;  %v20636_v56 = vunpack.i.l.bf16 %v20617_v15  ;;  %v20638_v29 = vld [vmem:[#allocation105_spill] sm:$0xff]  ;;  %vm20655_vm3 = vmmov %vm20653_vm5 }
 0x705   : > { %20628 = vst [vmem:[#allocation80_spill] sm:$0xff] %v15269_v36  ;;  %v15274_v42 = vsel %vm20630_vm9, %v8865_v61, %v20629_v9  ;;  %vm20637_vm11 = vmmov %vm20634_vm0  ;;  %v15292_v52 = vsel %vm1413_vm1, %v20638_v29, %v3770_v18  ;;  %v15296_v61 = vsel %vm1413_vm1, %v15016_v11, %v4367_v16  ;;  %v20641_v9 = vunpack.i.h.bf16 %v20618_v14  ;;  %v20648_v16 = vld [vmem:[#allocation145_spill] sm:$0xff] }
 0x706   : > { %9643 = vrot.lane.b32.xlu1 %v14422_v25, %s20477_s19  ;;  %20631 = vst [vmem:[#allocation44_spill] sm:$0xff] %v15274_v42  ;;  %v15281_v40 = vsel %vm20634_vm0, %v20633_v55, %v20632_v38  ;;  %v20635_v25 = vunpack.i.h.bf16 %v20617_v15  ;;  %20639 = vst [vmem:[#allocation131_spill] sm:$0xff] %v15292_v52  ;;  %vm20642_vm7 = vcmask 916480   ;;  %v20644_v55 = vunpack.i.h.bf16 %v20619_v28  ;;  %v10213_v26 = vld [vmem:[#allocation2 + $0x10] sm:$0xff]  ;;  %v20791_v52 = vld [vmem:[#allocation55_spill] sm:$0xff] }
 0x707   : > { %20640 = vst [vmem:[#allocation83_spill] sm:$0xff] %v15296_v61  ;;  %v15301_v38 = vsel %vm20642_vm7, %v8895_v54, %v20641_v9  ;;  %v15313_v18 = vsel %vm1413_vm1, %v4598_v2, %v4670_v63  ;;  %v20649_v54 = vunpack.i.h.bf16 %v14487_v49  ;;  %v20654_v14 = vunpack.i.h.bf16 %v20565_v44  ;;  %vm20656_vm6 = vmmov %vm20655_vm3  ;;  %v10214_v49 = vld [vmem:[#allocation2 + $0x8] sm:$0xff] }
 0x708   : > { %v15288_v24 = vsel %vm20637_vm11, %v20636_v56, %v20635_v25  ;;  %20643 = vst [vmem:[#allocation111_spill] sm:$0xff] %v15301_v38  ;;  %v15306_v13 = vsel %vm564_vm12, %v8975_v10, %v20644_v55  ;;  %v15308_v25 = vpop.permute.xlu1 %9363  ;;  %v15310_v56 = vpop.permute.xlu0 %9388  ;;  %20647 = vst [vmem:[#allocation46_spill] sm:$0xff] %v15313_v18  ;;  %v3760_v38 = vsel %vm20651_vm10, %v8905_v21, %v8906_v3  ;;  %v20652_v55 = vunpack.i.l.bf16 %v20565_v44  ;;  %v20657_v18 = vld [vmem:[#allocation43_spill] sm:$0xff] }
 0x709   : > { %20645 = vst [vmem:[#allocation85_spill] sm:$0xff] %v15308_v25  ;;  %20646 = vst [vmem:[#allocation27_spill] sm:$0xff] %v15310_v56  ;;  %v3759_v9 = vsel %vm20650_vm8, %v20649_v54, %v8905_v21  ;;  %v3763_v63 = vsel %vm20655_vm3, %v20654_v14, %v8915_v33  ;;  %v3764_v2 = vsel %vm20656_vm6, %v8915_v33, %v8916_v62  ;;  %v8926_v11 = vunpack.i.h.bf16 %v20657_v18  ;;  %v20658_v21 = vld [vmem:[#allocation161_spill] sm:$0xff] }
 0x70a   : > { %v3761_v25 = vsel %vm20653_vm5, %v8906_v3, %v20652_v55  ;;  %v8925_v29 = vunpack.i.l.bf16 %v20657_v18  ;;  %9658 = vrot.lane.b32.xlu1 %v14336_v53, %s20471_s16  ;;  %9673 = vrot.lane.b32.xlu0 %v14212_v37, %s20487_s20  ;;  %v20659_v14 = vunpack.i.l.bf16 %v20588_v20  ;;  %vm20660_vm9 = vmmov %vm20655_vm3  ;;  %v20663_v18 = vld [vmem:[#allocation58_spill] sm:$0xff]  ;;  %v15353_v3 = vsel %vm1413_vm1, %v10214_v49, %v3759_v9  ;;  %v20675_v49 = vld [vmem:[#allocation19_spill] sm:$0xff] }
 0x70b   : > { %v15347_v61 = vsel %vm1413_vm1, %v20663_v18, %v3760_v38  ;;  %v15350_v37 = vsel %vm1413_vm1, %v10213_v26, %v3761_v25  ;;  %20666 = vst [vmem:[#allocation15_spill] sm:$0xff] %v15353_v3  ;;  %v20667_v44 = vunpack.i.h.bf16 %v14473_v47  ;;  %v15361_v38 = vsel %vm1413_vm1, %v10215_v51, %v3763_v63  ;;  %v20670_v18 = vld [vmem:[#allocation59_spill] sm:$0xff]  ;;  %vm20673_vm0 = vmmov %vm20655_vm3  ;;  %v20695_v3 = vld [vmem:[#allocation102_spill] sm:$0xff] }
 0x70c   : > { %v3765_v33 = vsel %vm20660_vm9, %v8916_v62, %v20659_v14  ;;  %v15341_v54 = vpop.permute.xlu1 %9373  ;;  %v15343_v55 = vpop.permute.xlu0 %9398  ;;  %20664 = vst [vmem:[#allocation14_spill] sm:$0xff] %v15347_v61  ;;  %20665 = vst [vmem:[#allocation154_spill] sm:$0xff] %v15350_v37  ;;  %v20668_v14 = vld [vmem:[#allocation147_spill] sm:$0xff]  ;;  %v15365_v26 = vsel %vm1413_vm1, %v20670_v18, %v3764_v2  ;;  %v20672_v25 = vunpack.i.h.bf16 %v20588_v20  ;;  %v20678_v2 = vunpack.i.h.bf16 %v20648_v16  ;;  %v20703_v56 = vld [vmem:[#allocation17_spill] sm:$0xff] }
 0x70d   : > { %20661 = vst [vmem:[#allocation66_spill] sm:$0xff] %v15341_v54  ;;  %20662 = vst [vmem:[#allocation48_spill] sm:$0xff] %v15343_v55  ;;  %v3906_v62 = vsel %vm564_vm12, %v20667_v44, %v8975_v10  ;;  %v9010_v42 = vunpack.i.l.bf16 %v20668_v14  ;;  %v8935_v10 = vunpack.i.l.bf16 %v20675_v49  ;;  %v20676_v44 = vld [vmem:[#allocation42_spill] sm:$0xff]  ;;  %v10216_v51 = vld [vmem:[#allocation2 + $0x20] sm:$0xff]  ;;  %v20679_v20 = vunpack.i.l.bf16 %v20648_v16 }
 0x70e   : > { %20669 = vst [vmem:[#allocation105_spill] sm:$0xff] %v15361_v38  ;;  %20671 = vst [vmem:[#allocation145_spill] sm:$0xff] %v15365_v26  ;;  %v3767_v9 = vsel %vm20673_vm0, %v20672_v25, %v8925_v29  ;;  %9668 = vrot.lane.b32.xlu1 %v14336_v53, %s20477_s19  ;;  %9688 = vrot.lane.b32.xlu0 %v20676_v44, %s20490_s21  ;;  %v15377_v63 = vsel %vm1413_vm1, %v10216_v51, %v3765_v33  ;;  %v20681_v25 = vunpack.i.l.bf16 %v20658_v21  ;;  %vm20701_vm5 = vcmask 1031168  }
 0x70f   : > { %vm20674_vm11 = vmmov %vm20673_vm0  ;;  %20677 = vst [vmem:[#allocation43_spill] sm:$0xff] %v15377_v63  ;;  %v3911_v18 = vsel %vm564_vm12, %v20679_v20, %v20678_v2  ;;  %v20682_v53 = vunpack.i.l.bf16 %v20590_v34  ;;  %v8940_v33 = vunpack.i.l.bf16 %v20684_v7  ;;  %v8941_v51 = vunpack.i.h.bf16 %v20684_v7  ;;  %v20696_v7 = vld [vmem:[#allocation12_spill] sm:$0xff] }
 0x710   : > { %v3768_v47 = vsel %vm20674_vm11, %v8925_v29, %v8926_v11  ;;  %v20680_v29 = vunpack.i.h.bf16 %v20658_v21  ;;  %vm20683_vm7 = vmmov %vm20673_vm0  ;;  %v15396_v59 = vpop.permute.xlu1 %9383  ;;  %v15398_v4 = vpop.permute.xlu0 %9408  ;;  %v20691_v20 = vunpack.i.h.bf16 %v20590_v34  ;;  %v20693_v39 = vunpack.i.h.bf16 %v20675_v49  ;;  %v20748_v63 = vld [vmem:[#allocation168_spill] sm:$0xff] }
 0x711   : > { %v3769_v44 = vsel %vm20683_vm7, %v8926_v11, %v20682_v53  ;;  %20685 = vst [vmem:[#allocation161_spill] sm:$0xff] %v15396_v59  ;;  %20686 = vst [vmem:[#allocation58_spill] sm:$0xff] %v15398_v4  ;;  %v10217_v53 = vld [vmem:[#allocation2 + $0x28] sm:$0xff]  ;;  %v8951_v34 = vunpack.i.h.bf16 %v20699_v30  ;;  %v20700_v49 = vunpack.i.h.bf16 %v14499_v1  ;;  %v8961_v5 = vunpack.i.h.bf16 %v20720_v50 }
 0x712   : > { %v15389_v54 = vsel %vm564_vm12, %v20681_v25, %v20680_v29  ;;  %v20687_v25 = vunpack.i.h.bf16 %v20668_v14  ;;  %v15414_v59 = vsel %vm1413_vm1, %v10217_v53, %v3767_v9  ;;  %v20689_v4 = vld [vmem:[#allocation41_spill] sm:$0xff]  ;;  %vm20692_vm8 = vmmov %vm20673_vm0  ;;  %9678 = vrot.lane.b32.xlu1 %v20695_v3, %s20490_s21  ;;  %9693 = vrot.lane.b32.xlu0 %v20696_v7, %s10250_s29  ;;  %v8980_v61 = vunpack.i.l.bf16 %v14669_v8 }
 0x713   : > { %20688 = vst [vmem:[#allocation147_spill] sm:$0xff] %v15414_v59  ;;  %v15418_v2 = vsel %vm1413_vm1, %v20689_v4, %v3768_v47  ;;  %v3771_v29 = vsel %vm20692_vm8, %v20691_v20, %v8935_v10  ;;  %vm20694_vm10 = vmmov %vm20673_vm0  ;;  %v10218_v9 = vld [vmem:[#allocation2 + $0x30] sm:$0xff]  ;;  %v20698_v4 = vld [vmem:[#allocation68_spill] sm:$0xff]  ;;  %v8950_v20 = vunpack.i.l.bf16 %v20699_v30 }
 0x714   : > { %v15409_v11 = vsel %vm628_vm13, %v9010_v42, %v20687_v25  ;;  %20690 = vst [vmem:[#allocation59_spill] sm:$0xff] %v15418_v2  ;;  %v3772_v25 = vsel %vm20694_vm10, %v8935_v10, %v20693_v39  ;;  %v15431_v53 = vsel %vm1413_vm1, %v10218_v9, %v3769_v44  ;;  %v3831_v39 = vsel %vm20701_vm5, %v20700_v49, %v8940_v33  ;;  %vm20702_vm3 = vmmov %vm20701_vm5  ;;  %v15443_v44 = vpop.permute.xlu1 %9393  ;;  %v15445_v9 = vpop.permute.xlu0 %9418  ;;  %v10219_v30 = vld [vmem:[#allocation2 + $0x38] sm:$0xff]  ;;  %v20707_v49 = vld [vmem:[#allocation36_spill] sm:$0xff] }
 0x715   : > { %20697 = vst [vmem:[#allocation19_spill] sm:$0xff] %v15431_v53  ;;  %v3832_v3 = vsel %vm20702_vm3, %v8940_v33, %v8941_v51  ;;  %20704 = vst [vmem:[#allocation42_spill] sm:$0xff] %v15443_v44  ;;  %v15450_v1 = vsel %vm1413_vm1, %v10219_v30, %v3771_v29  ;;  %v15454_v10 = vsel %vm1413_vm1, %v20707_v49, %v3772_v25  ;;  %v20709_v33 = vunpack.i.h.bf16 %v14485_v32  ;;  %v20710_v47 = vld [vmem:[#allocation101_spill] sm:$0xff]  ;;  %v20713_v30 = vld [vmem:[#allocation100_spill] sm:$0xff] }
 0x716   : > { %20705 = vst [vmem:[#allocation146_spill] sm:$0xff] %v15445_v9  ;;  %20706 = vst [vmem:[#allocation41_spill] sm:$0xff] %v15450_v1  ;;  %9683 = vrot.lane.b32.xlu1 %v14216_v57, %s20487_s20  ;;  %9698 = vrot.lane.b32.xlu0 %v14406_v31, %s10250_s29  ;;  %v15465_v19 = vpack.i.bf16 %v20710_v47, %v14995_v48  ;;  %v15470_v25 = vsel %vm1413_vm1, %v3831_v39, %v3906_v62  ;;  %v9045_v49 = vunpack.i.l.bf16 %v20713_v30  ;;  %v15475_v57 = vld [vmem:[#allocation2 + $0x50] sm:$0xff] }
 0x717   : > { %20708 = vst [vmem:[#allocation102_spill] sm:$0xff] %v15454_v10  ;;  %v3980_v7 = vsel %vm628_vm13, %v20709_v33, %v9010_v42  ;;  %20711 = vst [vmem:[#allocation12_spill] sm:$0xff] %v15470_v25  ;;  %v15479_v31 = vsel %vm1413_vm1, %v3832_v3, %v15306_v13  ;;  %v20715_v33 = vunpack.i.h.bf16 %v20698_v4  ;;  %v20716_v9 = vunpack.i.l.bf16 %v20698_v4  ;;  %v20724_v13 = vld [vmem:[#allocation20_spill] sm:$0xff] }
 0x718   : > { %vm20712_vm6 = vmmov %vm20702_vm3  ;;  %20714 = vst [vmem:[#allocation68_spill] sm:$0xff] %v15479_v31  ;;  %v20717_v62 = vunpack.i.h.bf16 %v20703_v56  ;;  %v20718_v39 = vunpack.i.l.bf16 %v20703_v56  ;;  %v15493_v44 = vpop.permute.xlu1 %9403  ;;  %v15495_v55 = vpop.permute.xlu0 %9428  ;;  %v15515_v3 = vcombine.low %v15475_v57, %v15475_v57  ;;  %v8981_v1 = vunpack.i.h.bf16 %v14669_v8 }
 0x719   : > { %v3836_v32 = vsel %vm20712_vm6, %v8950_v20, %v8951_v34  ;;  %v3985_v29 = vsel %vm628_vm13, %v20716_v9, %v20715_v33  ;;  %20719 = vst [vmem:[#allocation136_spill] sm:$0xff] %v15493_v44  ;;  %v8960_v9 = vunpack.i.l.bf16 %v20720_v50  ;;  %vm20722_vm9 = vmmov %vm20702_vm3  ;;  %v20723_v44 = vld [vmem:[#allocation18_spill] sm:$0xff]  ;;  %v8991_v10 = vunpack.i.h.bf16 %v14686_v45 }
 0x71a   : > { %v15491_v42 = vsel %vm628_vm13, %v20718_v39, %v20717_v62  ;;  %v20721_v62 = vunpack.i.l.bf16 %v20613_v22  ;;  %9703 = vrot.lane.b32.xlu1 %v15465_v19, %s10257_s11  ;;  %9708 = vrot.lane.b32.xlu0 %v20724_v13, %s10244_s23  ;;  %v15520_v33 = vsel %vm1413_vm1, %v3836_v32, %v3911_v18  ;;  %v20728_v13 = vunpack.i.h.bf16 %v20536_v0  ;;  %vm20729_vm0 = vmmov %vm20702_vm3 }
 0x71b   : > { %20725 = vst [vmem:[#allocation17_spill] sm:$0xff] %v15520_v33  ;;  %v8990_v0 = vunpack.i.l.bf16 %v14686_v45  ;;  %vm20731_vm11 = vmmov %vm20729_vm0  ;;  %v9717_v18 = vpack.i.bf16 %v15515_v3, %v14995_v48  ;;  %v20732_v50 = vunpack.i.l.bf16 %v20617_v15  ;;  %vm20839_vm3 = vcmask 23552  }
 0x71c   : > { %v3833_v39 = vsel %vm20722_vm9, %v8941_v51, %v20721_v62  ;;  %v20726_v51 = vunpack.i.h.bf16 %v20713_v30  ;;  %v4054_v60 = vsel %vm692_vm14, %v20728_v13, %v9045_v49  ;;  %v15534_v32 = vpop.permute.xlu1 %9413  ;;  %v15536_v31 = vpop.permute.xlu0 %9438  ;;  %vm20733_vm7 = vmmov %vm20729_vm0  ;;  %vm20854_vm9 = vcmask 736256  }
 0x71d   : > { %v3837_v25 = vsel %vm20733_vm7, %v8951_v34, %v20732_v50  ;;  %vm20737_vm8 = vmmov %vm20729_vm0  ;;  %v20740_v34 = vunpack.i.h.bf16 %v20727_v17  ;;  %v20741_v50 = vunpack.i.l.bf16 %v20727_v17 }
 0x71e   : > { %v4055_v62 = vsel %vm692_vm14, %v9045_v49, %v20726_v51  ;;  %v3840_v51 = vsel %vm20729_vm0, %v8960_v9, %v8961_v5  ;;  %v20730_v49 = vunpack.i.h.bf16 %v20613_v22  ;;  %9713 = vrot.lane.b32.xlu1 %v14999_v6, %s10245_s24  ;;  %5492 = vrot.lane.b32.xlu0 %v15475_v57, %s10257_s11  ;;  %v15557_v22 = vsel %vm1413_vm1, %v3980_v7, %v4054_v60  ;;  %vm20739_vm10 = vmmov %vm20729_vm0 }
 0x71f   : > { %20734 = vst [vmem:[#allocation36_spill] sm:$0xff] %v15557_v22  ;;  %v20738_v6 = vunpack.i.l.bf16 %v20723_v44  ;;  %v4059_v45 = vsel %vm692_vm14, %v20741_v50, %v20740_v34  ;;  %v3909_v60 = vsel %vm564_vm12, %v8980_v61, %v8981_v1  ;;  %v20742_v7 = vunpack.i.h.bf16 %v14671_v23  ;;  %vm20754_vm5 = vmmov %vm20729_vm0  ;;  %v20823_v22 = vld [vmem:[#allocation165_spill] sm:$0xff] }
 0x720   : > { %v3835_v13 = vsel %vm20731_vm11, %v20730_v49, %v8950_v20  ;;  %v15561_v20 = vsel %vm1413_vm1, %v15409_v11, %v4055_v62  ;;  %v20736_v49 = vunpack.i.h.bf16 %v20617_v15  ;;  %v20743_v11 = vunpack.i.l.bf16 %v14671_v23  ;;  %v15580_v62 = vpop.permute.xlu1 %9423  ;;  %vm20840_vm6 = vmmov %vm20839_vm3 }
 0x721   : > { %20735 = vst [vmem:[#allocation100_spill] sm:$0xff] %v15561_v20  ;;  %v3841_v37 = vsel %vm20739_vm10, %v8961_v5, %v20738_v6  ;;  %v15586_v6 = vsel %vm1413_vm1, %v3840_v51, %v15389_v54  ;;  %v3913_v5 = vsel %vm564_vm12, %v8990_v0, %v8991_v10  ;;  %v20746_v50 = vunpack.i.l.bf16 %v20648_v16  ;;  %v20749_v54 = vld [vmem:[#allocation96_spill] sm:$0xff]  ;;  %vm20858_vm11 = vmmov %vm20839_vm3 }
 0x722   : > { %v3839_v8 = vsel %vm20737_vm8, %v20736_v49, %v8960_v9  ;;  %v4063_v15 = vsel %vm692_vm14, %v20743_v11, %v20742_v7  ;;  %v15582_v9 = vpop.permute.xlu0 %9448  ;;  %20744 = vst [vmem:[#allocation92_spill] sm:$0xff] %v15586_v6  ;;  %v20745_v49 = vunpack.i.h.bf16 %v20619_v28  ;;  %v20747_v7 = vunpack.i.h.bf16 %v20648_v16  ;;  %9718 = vrot.lane.b32.xlu1 %v9717_v18, %s10244_s23  ;;  %9723 = vrot.lane.b32.xlu0 %v20748_v63, %s10253_s13  ;;  %vm20860_vm7 = vmmov %vm20839_vm3 }
 0x723   : > { %v3910_v33 = vsel %vm564_vm12, %v8981_v1, %v20746_v50  ;;  %v9727_v51 = vpack.i.bf16 %v14995_v48, %v20749_v54  ;;  %v20750_v28 = vunpack.i.l.bf16 %v20658_v21  ;;  %v15608_v1 = vsel %vm1413_vm1, %v3985_v29, %v4059_v45  ;;  %vm20864_vm8 = vmmov %vm20854_vm9 }
 0x724   : > { %v3908_v34 = vsel %vm564_vm12, %v20745_v49, %v8980_v61  ;;  %v3912_v11 = vsel %vm564_vm12, %v20747_v7, %v8990_v0  ;;  %v9000_v49 = vunpack.i.l.bf16 %v14694_v27  ;;  %20751 = vst [vmem:[#allocation176_spill] sm:$0xff] %v15608_v1  ;;  %v20752_v18 = vunpack.i.l.bf16 %v14645_v35  ;;  %v15619_v7 = vpop.permute.xlu1 %9433  ;;  %vm20868_vm10 = vmmov %vm20864_vm8 }
 0x725   : > { %v3914_v61 = vsel %vm564_vm12, %v8991_v10, %v20750_v28  ;;  %v20753_v0 = vunpack.i.h.bf16 %v20723_v44  ;;  %v15624_v10 = vsel %vm1413_vm1, %v3833_v39, %v3908_v34  ;;  %v15627_v29 = vsel %vm1413_vm1, %v3835_v13, %v3910_v33 }
 0x726   : > { %v15621_v54 = vpop.permute.xlu0 %9458  ;;  %20756 = vst [vmem:[#allocation96_spill] sm:$0xff] %v15624_v10  ;;  %20757 = vst [vmem:[#allocation178_spill] sm:$0xff] %v15627_v29  ;;  %v15631_v45 = vsel %vm1413_vm1, %v15281_v40, %v3909_v60  ;;  %v15635_v28 = vsel %vm1413_vm1, %v15491_v42, %v4063_v15  ;;  %v15642_v16 = vsel %vm1413_vm1, %v3839_v8, %v3914_v61  ;;  %9728 = vrot.lane.b32.xlu1 %v9727_v51, %s20471_s16  ;;  %v20766_v61 = vld [vmem:[#allocation170_spill] sm:$0xff]  ;;  %v20767_v15 = vld [vmem:[#allocation164_spill] sm:$0xff]  ;;  %vm20857_vm0 = vcmask 31744  }
 0x727   : > { %v15617_v50 = vsel %vm20754_vm5, %v20753_v0, %v20752_v18  ;;  %20758 = vst [vmem:[#allocation179_spill] sm:$0xff] %v15631_v45  ;;  %20759 = vst [vmem:[#allocation180_spill] sm:$0xff] %v15635_v28  ;;  %v9001_v18 = vunpack.i.h.bf16 %v14694_v27  ;;  %v15639_v0 = vsel %vm1413_vm1, %v3837_v25, %v3912_v11  ;;  %v15646_v33 = vsel %vm1413_vm1, %v15288_v24, %v3913_v5  ;;  %v20763_v25 = vld [vmem:[#allocation127_spill] sm:$0xff]  ;;  %v20777_v28 = vld [vmem:[#allocation49_spill] sm:$0xff] }
 0x728   : > { %20755 = vst [vmem:[#allocation168_spill] sm:$0xff] %v15617_v50  ;;  %20760 = vst [vmem:[#allocation181_spill] sm:$0xff] %v15639_v0  ;;  %9733 = vrot.lane.b32.xlu0 %v15465_v19, %s20474_s18  ;;  %v9742_v40 = vpack.i.bf16 %v15475_v57, %v20710_v47  ;;  %v5012_v27 = vcombine.high %v14772_v46, %v14772_v46  ;;  %v9080_v39 = vunpack.i.l.bf16 %v20763_v25  ;;  %v20764_v24 = vunpack.i.h.bf16 %v20658_v21  ;;  %v15662_v60 = vpop.permute.xlu1 %9443  ;;  %v20770_v42 = vld [vmem:[#allocation171_spill] sm:$0xff] }
 0x729   : > { %20761 = vst [vmem:[#allocation182_spill] sm:$0xff] %v15642_v16  ;;  %20762 = vst [vmem:[#allocation183_spill] sm:$0xff] %v15646_v33  ;;  %v15675_v21 = vsel %vm564_vm12, %v9000_v49, %v9001_v18  ;;  %v9015_v13 = vunpack.i.l.bf16 %v20766_v61  ;;  %v9115_v5 = vunpack.i.l.bf16 %v20767_v15  ;;  %v20769_v34 = vunpack.i.h.bf16 %v20563_v12  ;;  %v20778_v33 = vld [vmem:[#allocation99_spill] sm:$0xff] }
 0x72a   : > { %v3916_v8 = vsel %vm564_vm12, %v20764_v24, %v9000_v49  ;;  %v15664_v19 = vpop.permute.xlu0 %9468  ;;  %20765 = vst [vmem:[#allocation127_spill] sm:$0xff] %v15675_v21  ;;  %v9016_v24 = vunpack.i.h.bf16 %v20766_v61  ;;  %9738 = vrot.lane.b32.xlu1 %v9727_v51, %s20477_s19  ;;  %v15686_v11 = vpack.i.bf16 %v5012_v27, %v14772_v46  ;;  %v20771_v21 = vunpack.i.h.bf16 %v20763_v25 }
 0x72b   : > { %v15689_v49 = vsel %vm1413_vm1, %v3841_v37, %v3916_v8  ;;  %v15694_v61 = vsel %vm759_vm15, %v20769_v34, %v9080_v39  ;;  %v20773_v37 = vld [vmem:[#allocation86_spill] sm:$0xff]  ;;  %v20774_v34 = vld [vmem:[#allocation29_spill] sm:$0xff]  ;;  %v20779_v45 = vunpack.i.h.bf16 %v20553_v43  ;;  %v20782_v43 = vunpack.i.l.bf16 %v20698_v4 }
 0x72c   : > { %9743 = vrot.lane.b32.xlu0 %v9742_v40, %s10245_s24  ;;  %20768 = vst [vmem:[#allocation170_spill] sm:$0xff] %v15689_v49  ;;  %v15701_v51 = vsel %vm759_vm15, %v9080_v39, %v20771_v21  ;;  %v20772_v40 = vld [vmem:[#allocation163_spill] sm:$0xff]  ;;  %v9050_v8 = vunpack.i.l.bf16 %v20773_v37  ;;  %v15706_v44 = vpop.permute.xlu1 %9453  ;;  %v20775_v50 = vunpack.i.l.bf16 %v20774_v34  ;;  %v3983_v35 = vsel %vm628_vm13, %v9015_v13, %v9016_v24 }
 0x72d   : > { %v9026_v27 = vunpack.i.h.bf16 %v20772_v40  ;;  %v9025_v6 = vunpack.i.l.bf16 %v20772_v40  ;;  %v9051_v0 = vunpack.i.h.bf16 %v20773_v37  ;;  %v4201_v34 = vsel %vm827_vm2, %v20779_v45, %v9115_v5 }
 0x72e   : > { %v15708_v12 = vpop.permute.xlu0 %9478  ;;  %v15713_v47 = vsel %vm564_vm12, %v9001_v18, %v20775_v50  ;;  %9748 = vrot.lane.b32.xlu1 %v15686_v11, %s10253_s13  ;;  %v20780_v50 = vunpack.i.h.bf16 %v20767_v15  ;;  %v20781_v21 = vunpack.i.h.bf16 %v20668_v14  ;;  %v3984_v45 = vsel %vm628_vm13, %v9016_v24, %v20782_v43 }
 0x72f   : > { %20776 = vst [vmem:[#allocation164_spill] sm:$0xff] %v15713_v47  ;;  %v20783_v39 = vunpack.i.h.bf16 %v20770_v42  ;;  %v20784_v16 = vunpack.i.l.bf16 %v20770_v42  ;;  %v3987_v49 = vsel %vm628_vm13, %v9025_v6, %v9026_v27  ;;  %v20786_v14 = vunpack.i.h.bf16 %v20713_v30 }
 0x730   : > { %5274 = vrot.lane.b32.xlu0 %v15515_v3, %s20471_s16  ;;  %v4202_v18 = vsel %vm827_vm2, %v9115_v5, %v20780_v50  ;;  %v3982_v37 = vsel %vm628_vm13, %v20781_v21, %v9015_v13  ;;  %v15747_v5 = vpop.permute.xlu1 %9463  ;;  %v20787_v21 = vunpack.i.h.bf16 %v20698_v4  ;;  %v20788_v43 = vunpack.i.l.bf16 %v20703_v56 }
 0x731   : > { %v15744_v47 = vsel %vm759_vm15, %v20784_v16, %v20783_v39  ;;  %20785 = vst [vmem:[#allocation171_spill] sm:$0xff] %v15747_v5  ;;  %v4056_v13 = vsel %vm692_vm14, %v20786_v14, %v9050_v8  ;;  %v20789_v16 = vld [vmem:[#allocation50_spill] sm:$0xff]  ;;  %v15764_v10 = vsel %vm1413_vm1, %v15196_v41, %v4202_v18  ;;  %v15768_v30 = vsel %vm1413_vm1, %v20791_v52, %v4201_v34 }
 0x732   : > { %v15749_v50 = vpop.permute.xlu0 %9488  ;;  %v3986_v24 = vsel %vm628_vm13, %v20787_v21, %v9025_v6  ;;  %v3988_v40 = vsel %vm628_vm13, %v9026_v27, %v20788_v43  ;;  %v9061_v39 = vunpack.i.h.bf16 %v20789_v16  ;;  %v9060_v29 = vunpack.i.l.bf16 %v20789_v16  ;;  %20790 = vst [vmem:[#allocation163_spill] sm:$0xff] %v15764_v10  ;;  %20792 = vst [vmem:[#allocation86_spill] sm:$0xff] %v15768_v30  ;;  %v20793_v14 = vld [vmem:[#allocation90_spill] sm:$0xff]  ;;  %5347 = vrot.lane.b32.xlu1 %v15475_v57, %s20474_s18  ;;  %v20808_v16 = vld [vmem:[#allocation140_spill] sm:$0xff] }
 0x733   : > { %v20794_v6 = vunpack.i.l.bf16 %v20727_v17  ;;  %v20795_v21 = vunpack.i.l.bf16 %v20778_v33  ;;  %v20796_v41 = vunpack.i.h.bf16 %v20703_v56  ;;  %v20797_v52 = vunpack.i.h.bf16 %v20777_v28 }
 0x734   : > { %5419 = vrot.lane.b32.xlu0 %v15515_v3, %s20477_s19  ;;  %v20798_v34 = vunpack.i.l.bf16 %v20777_v28  ;;  %v4057_v57 = vsel %vm692_vm14, %v9050_v8, %v9051_v0  ;;  %v20800_v3 = vld [vmem:[#allocation51_spill] sm:$0xff]  ;;  %v20803_v53 = vunpack.i.h.bf16 %v20778_v33  ;;  %v15801_v36 = vpop.permute.xlu1 %9473  ;;  %v4061_v4 = vsel %vm692_vm14, %v9060_v29, %v9061_v39 }
 0x735   : > { %v4058_v27 = vsel %vm692_vm14, %v9051_v0, %v20794_v6  ;;  %v3990_v18 = vsel %vm628_vm13, %v20796_v41, %v20795_v21  ;;  %v20801_v6 = vld [vmem:[#allocation28_spill] sm:$0xff]  ;;  %v20805_v21 = vld [vmem:[#allocation71_spill] sm:$0xff]  ;;  %v20814_v0 = vunpack.i.l.bf16 %v20800_v3  ;;  %vm20871_vm5 = vcmask 39936  }
 0x736   : > { %v15788_v43 = vsel %vm759_vm15, %v20798_v34, %v20797_v52  ;;  %v20802_v2 = vunpack.i.l.bf16 %v20801_v6  ;;  %v15803_v59 = vpop.permute.xlu0 %9498  ;;  %v15810_v34 = vsel %vm1413_vm1, %v3982_v37, %v4056_v13  ;;  %v15816_v41 = vsel %vm1413_vm1, %v3984_v45, %v4058_v27  ;;  %v20810_v6 = vld [vmem:[#allocation148_spill] sm:$0xff]  ;;  %9753 = vrot.lane.b32.xlu1 %v20748_v63, %s20487_s20 }
 0x737   : > { %20799 = vst [vmem:[#allocation50_spill] sm:$0xff] %v15788_v43  ;;  %20807 = vst [vmem:[#allocation51_spill] sm:$0xff] %v15810_v34  ;;  %v20811_v52 = vld [vmem:[#allocation24_spill] sm:$0xff]  ;;  %v5088_v37 = vcombine.low %v14772_v46, %v14772_v46  ;;  %v20812_v13 = vunpack.i.h.bf16 %v20727_v17  ;;  %v20813_v27 = vunpack.i.h.bf16 %v20800_v3  ;;  %v15836_v63 = vsel %vm1413_vm1, %v3983_v35, %v4057_v57  ;;  %v20817_v46 = vld [vmem:[#allocation157_spill] sm:$0xff] }
 0x738   : > { %v15798_v56 = vsel %vm628_vm13, %v20803_v53, %v20802_v2  ;;  %v9086_v2 = vunpack.i.h.bf16 %v20808_v16  ;;  %v9085_v53 = vunpack.i.l.bf16 %v20808_v16  ;;  %20809 = vst [vmem:[#allocation140_spill] sm:$0xff] %v15816_v41  ;;  %9758 = vrot.lane.b32.xlu0 %v20811_v52, %s20490_s21  ;;  %20815 = vst [vmem:[#allocation148_spill] sm:$0xff] %v15836_v63  ;;  %v20816_v52 = vunpack.i.l.bf16 %v14671_v23  ;;  %v20861_v41 = vld [vmem:[#allocation151_spill] sm:$0xff] }
 0x739   : > { %20804 = vst [vmem:[#allocation55_spill] sm:$0xff] %v15798_v56  ;;  %v4060_v16 = vsel %vm692_vm14, %v20812_v13, %v9060_v29  ;;  %v4206_v56 = vsel %vm827_vm2, %v20814_v0, %v20813_v27  ;;  %v9096_v8 = vunpack.i.h.bf16 %v20817_v46  ;;  %v9095_v17 = vunpack.i.l.bf16 %v20817_v46  ;;  %v15843_v29 = vpop.permute.xlu1 %9483  ;;  %v20821_v27 = vld [vmem:[#allocation136_spill] sm:$0xff] }
 0x73a   : > { %v4062_v33 = vsel %vm692_vm14, %v9061_v39, %v20816_v52  ;;  %v15845_v13 = vpop.permute.xlu0 %9508  ;;  %v15848_v45 = vsel %vm1413_vm1, %v3987_v49, %v4061_v4  ;;  %v20819_v0 = vunpack.i.l.bf16 %v20805_v21  ;;  %v20820_v35 = vunpack.i.h.bf16 %v14671_v23  ;;  %4999 = vrot.lane.b32.xlu1 %v14995_v48, %s10236_s15  ;;  %v10220_v23 = vld [vmem:[#allocation2] sm:$0xff] }
 0x73b   : > { %20818 = vst [vmem:[#allocation24_spill] sm:$0xff] %v15848_v45  ;;  %v9406_v30 = vunpack.i.h.bf16 %v20821_v27  ;;  %v9405_v39 = vunpack.i.l.bf16 %v20821_v27  ;;  %v4132_v52 = vsel %vm759_vm15, %v9085_v53, %v9086_v2  ;;  %v15859_v46 = vsel %vm1413_vm1, %v3986_v24, %v4060_v16 }
 0x73c   : > { %v4064_v57 = vsel %vm692_vm14, %v20820_v35, %v20819_v0  ;;  %20822 = vst [vmem:[#allocation157_spill] sm:$0xff] %v15859_v46  ;;  %9763 = vrot.lane.b32.xlu0 %v15686_v11, %s20487_s20  ;;  %v9767_v49 = vpack.i.bf16 %v10220_v23, %v5088_v37  ;;  %v20824_v4 = vunpack.i.h.bf16 %v20810_v6  ;;  %v20825_v0 = vunpack.i.l.bf16 %v20810_v6  ;;  %v20830_v23 = vld [vmem:[#allocation166_spill] sm:$0xff] }
 0x73d   : > { %v15872_v27 = vsel %vm1413_vm1, %v3988_v40, %v4062_v33  ;;  %v20827_v24 = vunpack.i.h.bf16 %v20763_v25  ;;  %v20828_v48 = vunpack.i.l.bf16 %v20770_v42  ;;  %v15885_v37 = vsel %vm1413_vm1, %v3990_v18, %v4064_v57  ;;  %v20834_v40 = vld [vmem:[#allocation174_spill] sm:$0xff] }
 0x73e   : > { %v4210_v35 = vsel %vm827_vm2, %v20825_v0, %v20824_v4  ;;  %20826 = vst [vmem:[#allocation136_spill] sm:$0xff] %v15872_v27  ;;  %20829 = vst [vmem:[#allocation184_spill] sm:$0xff] %v15885_v37  ;;  %v20831_v10 = vunpack.i.l.bf16 %v20830_v23  ;;  %v20832_v4 = vunpack.i.h.bf16 %v20805_v21  ;;  %v9150_v25 = vunpack.i.l.bf16 %v20834_v40  ;;  %v20835_v0 = vld [vmem:[#allocation48_spill] sm:$0xff]  ;;  %v15898_v43 = vpop.permute.xlu0 %9518  ;;  %9768 = vrot.lane.b32.xlu1 %v9767_v49, %s20490_s21 }
 0x73f   : > { %v15877_v16 = vsel %vm759_vm15, %v20827_v24, %v9085_v53  ;;  %v15882_v11 = vsel %vm759_vm15, %v9086_v2, %v20828_v48  ;;  %v15896_v24 = vpop.permute.xlu1 %9493  ;;  %20836 = vst [vmem:[#allocation48_spill] sm:$0xff] %v15898_v43  ;;  %v15901_v2 = vsel %vm1413_vm1, %v4132_v52, %v4206_v56  ;;  %v4136_v18 = vsel %vm759_vm15, %v9095_v17, %v9096_v8 }
 0x740   : > { %v15892_v33 = vsel %vm692_vm14, %v20832_v4, %v20831_v10  ;;  %20837 = vst [vmem:[#allocation186_spill] sm:$0xff] %v15901_v2  ;;  %v20838_v57 = vunpack.i.h.bf16 %v20793_v14  ;;  %v5650_v10 = vsel %vm20840_vm6, %v9405_v39, %v9406_v30  ;;  %v9460_v23 = vunpack.i.l.bf16 %v15621_v54  ;;  %v20846_v4 = vld [vmem:[#allocation27_spill] sm:$0xff] }
 0x741   : > { %20833 = vst [vmem:[#allocation185_spill] sm:$0xff] %v15892_v33  ;;  %v20841_v33 = vld [vmem:[#allocation139_spill] sm:$0xff]  ;;  %v20842_v56 = vunpack.i.h.bf16 %v20823_v22  ;;  %v20843_v52 = vunpack.i.l.bf16 %v20823_v22  ;;  %v9390_v45 = vunpack.i.l.bf16 %v20846_v4  ;;  %v20847_v37 = vunpack.i.h.bf16 %v20770_v42 }
 0x742   : > { %v5649_v48 = vsel %vm20839_vm3, %v20838_v57, %v9405_v39  ;;  %v20845_v39 = vld [vmem:[#allocation82_spill] sm:$0xff]  ;;  %v20848_v53 = vunpack.i.l.bf16 %v20777_v28  ;;  %vm20877_vm3 = vcmask 171008  }
 0x743   : > { %v15919_v57 = vsel %vm827_vm2, %v20843_v52, %v20842_v56  ;;  %v9226_v26 = vunpack.i.h.bf16 %v20845_v39  ;;  %v15929_v49 = vsel %vm759_vm15, %v20847_v37, %v9095_v17  ;;  %v15936_v56 = vpop.permute.xlu1 %9503  ;;  %v15938_v52 = vpop.permute.xlu0 %9528  ;;  %v9772_v43 = vpack.i.bf16 %v5650_v10, %v5649_v48  ;;  %vm20879_vm6 = vmmov %vm20877_vm3 }
 0x744   : > { %20844 = vst [vmem:[#allocation187_spill] sm:$0xff] %v15919_v57  ;;  %v15934_v22 = vsel %vm759_vm15, %v9096_v8, %v20848_v53  ;;  %20850 = vst [vmem:[#allocation188_spill] sm:$0xff] %v15938_v52  ;;  %v15941_v39 = vsel %vm1413_vm1, %v4136_v18, %v4210_v35  ;;  %v20852_v57 = vld [vmem:[#allocation118_spill] sm:$0xff]  ;;  %v20856_v17 = vunpack.i.l.bf16 %v20835_v0  ;;  %v5651_v8 = vsel %vm20858_vm11, %v9406_v30, %v9460_v23 }
 0x745   : > { %20849 = vst [vmem:[#allocation27_spill] sm:$0xff] %v15934_v22  ;;  %20851 = vst [vmem:[#allocation189_spill] sm:$0xff] %v15941_v39  ;;  %v20853_v21 = vunpack.i.h.bf16 %v20852_v57  ;;  %v20859_v53 = vunpack.i.h.bf16 %v15621_v54  ;;  %9773 = vrot.lane.b32.xlu1 %v9772_v43, %s20862_s22  ;;  %v20863_v18 = vunpack.i.h.bf16 %v20834_v40  ;;  %v20866_v10 = vunpack.i.h.bf16 %v20841_v33 }
 0x746   : > { %v5574_v37 = vsel %vm20857_vm0, %v9226_v26, %v20856_v17  ;;  %v20867_v57 = vunpack.i.l.bf16 %v20841_v33  ;;  %v5728_v43 = vsel %vm1413_vm1, %v9390_v45, %v9226_v26  ;;  %v9441_v33 = vunpack.i.h.bf16 %v15536_v31 }
 0x747   : > { %v15946_v42 = vsel %vm20854_vm9, %v20853_v21, %v9150_v25  ;;  %v5652_v28 = vsel %vm20860_vm7, %v9460_v23, %v20859_v53  ;;  %v15961_v21 = vsel %vm20864_vm8, %v9150_v25, %v20863_v18  ;;  %v20870_v23 = vunpack.i.h.bf16 %v20846_v4  ;;  %v20872_v25 = vld [vmem:[#allocation67_spill] sm:$0xff]  ;;  %v15979_v2 = vpop.permute.xlu1 %9513 }
 0x748   : > { %20855 = vst [vmem:[#allocation118_spill] sm:$0xff] %v15946_v42  ;;  %20865 = vst [vmem:[#allocation190_spill] sm:$0xff] %v15961_v21  ;;  %v15968_v30 = vsel %vm20868_vm10, %v20867_v57, %v20866_v10  ;;  %v9451_v53 = vunpack.i.h.bf16 %v15582_v9  ;;  %v15981_v42 = vpop.permute.xlu0 %9538  ;;  %v9777_v10 = vpack.i.bf16 %v5652_v28, %v5651_v8  ;;  %v20876_v18 = vunpack.i.l.bf16 %v15706_v44 }
 0x749   : > { %20869 = vst [vmem:[#allocation191_spill] sm:$0xff] %v15968_v30  ;;  %v5498_v17 = vsel %vm20871_vm5, %v9390_v45, %v20870_v23  ;;  %20873 = vst [vmem:[#allocation67_spill] sm:$0xff] %v15979_v2  ;;  %v9120_v23 = vunpack.i.l.bf16 %v20872_v25  ;;  %v20875_v30 = vld [vmem:[#allocation156_spill] sm:$0xff]  ;;  %v9465_v28 = vunpack.i.l.bf16 %v15747_v5  ;;  %v20878_v26 = vunpack.i.l.bf16 %v15582_v9 }
 0x74a   : > { %20874 = vst [vmem:[#allocation192_spill] sm:$0xff] %v15981_v42  ;;  %v5729_v57 = vsel %vm1413_vm1, %v5498_v17, %v5574_v37  ;;  %v5424_v35 = vsel %vm20877_vm3, %v9451_v53, %v20876_v18  ;;  %9778 = vrot.lane.b32.xlu1 %v9777_v10, %s20862_s22  ;;  %v9436_v21 = vunpack.i.h.bf16 %v15619_v7  ;;  %v20880_v18 = vunpack.i.l.bf16 %v15662_v60 }
 0x74b   : > { %v5423_v45 = vsel %vm20879_vm6, %v20878_v26, %v9451_v53  ;;  %v9792_v17 = vpack.i.bf16 %v5729_v57, %v5728_v43  ;;  %vm20881_vm9 = vcmask 179200   ;;  %v9524_v10 = vpop.permute.xlu1 %9523  ;;  %v20883_v37 = vunpack.i.h.bf16 %v20767_v15  ;;  %v20884_v26 = vld [vmem:[#allocation42_spill] sm:$0xff] }
 0x74c   : > { %v5352_v27 = vsel %vm20881_vm9, %v9441_v33, %v20880_v18  ;;  %v16006_v22 = vpop.permute.xlu0 %9548  ;;  %v9526_v53 = vunpack.i.h.bf16 %v9524_v10  ;;  %v9525_v43 = vunpack.i.l.bf16 %v9524_v10  ;;  %v9395_v48 = vunpack.i.l.bf16 %v20884_v26  ;;  %vm20886_vm0 = vmmov %vm20881_vm9 }
 0x74d   : > { %20882 = vst [vmem:[#allocation156_spill] sm:$0xff] %v16006_v22  ;;  %v16011_v8 = vsel %vm827_vm2, %v20883_v37, %v9120_v23  ;;  %v5711_v57 = vsel %vm1413_vm1, %v5352_v27, %v5424_v35  ;;  %v20885_v40 = vunpack.i.l.bf16 %v15536_v31  ;;  %v20887_v39 = vunpack.i.l.bf16 %v15580_v62 }
 0x74e   : > { %vm20888_vm11 = vcmask 318464   ;;  %v20889_v22 = vunpack.i.h.bf16 %v15747_v5  ;;  %9793 = vrot.lane.b32.xlu1 %v9792_v17, %s20862_s22  ;;  %v9401_v37 = vunpack.i.h.bf16 %v20835_v0  ;;  %v20891_v27 = vunpack.i.h.bf16 %v15621_v54 }
 0x74f   : > { %v5351_v18 = vsel %vm20886_vm0, %v20885_v40, %v9441_v33  ;;  %v5206_v52 = vsel %vm20888_vm11, %v20887_v39, %v9465_v28  ;;  %vm20890_vm7 = vmmov %vm20888_vm11  ;;  %vm20892_vm8 = vcmask 23552   ;;  %v20894_v40 = vunpack.i.l.bf16 %v15619_v7 }
 0x750   : > { %v5207_v15 = vsel %vm20890_vm7, %v9465_v28, %v20889_v22  ;;  %v5653_v35 = vsel %vm20892_vm8, %v20891_v27, %v9525_v43  ;;  %vm20893_vm10 = vmmov %vm20892_vm8  ;;  %v5710_v33 = vsel %vm1413_vm1, %v5351_v18, %v5423_v45  ;;  %vm20895_vm5 = vcmask 187392   ;;  %v16037_v28 = vpop.permute.xlu1 %9533  ;;  %v16039_v17 = vpop.permute.xlu0 %9558 }
 0x751   : > { %v5654_v10 = vsel %vm20893_vm10, %v9525_v43, %v9526_v53  ;;  %v5280_v39 = vsel %vm20895_vm5, %v20894_v40, %v9436_v21  ;;  %v20896_v5 = vunpack.i.l.bf16 %v15664_v19  ;;  %vm20897_vm3 = vmmov %vm20895_vm5  ;;  %20898 = vst [vmem:[#allocation42_spill] sm:$0xff] %v16037_v28  ;;  %v9812_v54 = vpack.i.bf16 %v5711_v57, %v5710_v33 }
 0x752   : > { %v9782_v42 = vpack.i.bf16 %v5654_v10, %v5653_v35  ;;  %v19557_v27 = vunpack.i.h.bf16 %v16039_v17  ;;  %v9560_v43 = vunpack.i.l.bf16 %v16039_v17  ;;  %v5693_v45 = vsel %vm1413_vm1, %v5206_v52, %v5280_v39  ;;  %vm20903_vm0 = vmmov %vm20892_vm8 }
 0x753   : > { %v5281_v22 = vsel %vm20897_vm3, %v9436_v21, %v20896_v5  ;;  %v20899_v40 = vunpack.i.h.bf16 %v20846_v4  ;;  %vm20900_vm6 = vcmask 39936   ;;  %v19559_v5 = vunpack.i.h.bf16 %v15534_v32  ;;  %9813 = vrot.lane.b32.xlu1 %v9812_v54, %s20862_s22  ;;  %vm20904_vm11 = vmmov %vm20903_vm0  ;;  %v20907_v54 = vld [vmem:[#allocation52_spill] sm:$0xff] }
 0x754   : > { %v5694_v18 = vsel %vm1413_vm1, %v5207_v15, %v5281_v22  ;;  %v9415_v21 = vunpack.i.l.bf16 %v15534_v32  ;;  %9783 = vrot.lane.b32.xlu0 %v9782_v42, %s20862_s22  ;;  %v20901_v57 = vunpack.i.l.bf16 %v20835_v0  ;;  %vm20902_vm9 = vcmask 31744   ;;  %v16063_v39 = vpop.permute.xlu1 %9543  ;;  %v16065_v42 = vpop.permute.xlu0 %9568  ;;  %vm20914_vm5 = vmmov %vm20900_vm6  ;;  %v21001_v46 = vld [vmem:[#allocation156_spill] sm:$0xff] }
 0x755   : > { %v5499_v2 = vsel %vm20900_vm6, %v20899_v40, %v9395_v48  ;;  %v9396_v15 = vunpack.i.h.bf16 %v20884_v26  ;;  %v5655_v4 = vsel %vm20903_vm0, %v9526_v53, %v9560_v43  ;;  %v5656_v35 = vsel %vm20904_vm11, %v9560_v43, %v19557_v27  ;;  %20905 = vst [vmem:[#allocation193_spill] sm:$0xff] %v16063_v39  ;;  %20906 = vst [vmem:[#allocation194_spill] sm:$0xff] %v16065_v42 }
 0x756   : > { %v5575_v52 = vsel %vm20902_vm9, %v20901_v57, %v9401_v37  ;;  %v9501_v10 = vunpack.i.h.bf16 %v15803_v59  ;;  %v9787_v22 = vpack.i.bf16 %v5656_v35, %v5655_v4  ;;  %v9822_v0 = vpack.i.bf16 %v5694_v18, %v5693_v45  ;;  %v20908_v57 = vld [vmem:[#allocation58_spill] sm:$0xff]  ;;  %vm20910_vm7 = vmmov %vm20902_vm9 }
 0x757   : > { %v9131_v40 = vunpack.i.h.bf16 %v20907_v54  ;;  %v19560_v26 = vunpack.i.l.bf16 %v20908_v57  ;;  %v5730_v53 = vsel %vm1413_vm1, %v5499_v2, %v5575_v52  ;;  %v20909_v28 = vunpack.i.h.bf16 %v20872_v25  ;;  %vm20911_vm8 = vmmov %vm20910_vm7 }
 0x758   : > { %v5576_v27 = vsel %vm20910_vm7, %v9401_v37, %v9415_v21  ;;  %v5577_v33 = vsel %vm20911_vm8, %v9415_v21, %v19559_v5  ;;  %v9491_v42 = vunpack.i.h.bf16 %v15749_v50  ;;  %v20912_v45 = vunpack.i.l.bf16 %v15896_v24  ;;  %9788 = vrot.lane.b32.xlu0 %v9787_v22, %s20862_s22  ;;  %9823 = vrot.lane.b32.xlu1 %v9822_v0, %s20862_s22  ;;  %vm20915_vm3 = vmmov %vm20914_vm5  ;;  %v16096_v22 = vpop.permute.xlu0 %9578 }
 0x759   : > { %v4204_v43 = vsel %vm827_vm2, %v9120_v23, %v20909_v28  ;;  %vm20913_vm10 = vcmask 326656   ;;  %v9130_v2 = vunpack.i.l.bf16 %v20907_v54  ;;  %v5500_v23 = vsel %vm20914_vm5, %v9395_v48, %v9396_v15  ;;  %20918 = vst [vmem:[#allocation52_spill] sm:$0xff] %v16096_v22 }
 0x75a   : > { %v5128_v18 = vsel %vm20913_vm10, %v9501_v10, %v20912_v45  ;;  %v9431_v37 = vunpack.i.h.bf16 %v15495_v55  ;;  %v9430_v28 = vunpack.i.l.bf16 %v15495_v55  ;;  %v5501_v21 = vsel %vm20915_vm3, %v9396_v15, %v19560_v26  ;;  %v16094_v10 = vpop.permute.xlu1 %9553 }
 0x75b   : > { %v9426_v52 = vunpack.i.h.bf16 %v15580_v62  ;;  %v20916_v4 = vunpack.i.l.bf16 %v15843_v29  ;;  %vm20917_vm6 = vcmask 334848   ;;  %v20919_v48 = vunpack.i.h.bf16 %v20793_v14  ;;  %v20926_v14 = vld [vmem:[#allocation14_spill] sm:$0xff] }
 0x75c   : > { %v20920_v54 = vunpack.i.l.bf16 %v20800_v3  ;;  %v20921_v55 = vunpack.i.h.bf16 %v20872_v25  ;;  %v5731_v5 = vsel %vm1413_vm1, %v5500_v23, %v5576_v27  ;;  %v5732_v26 = vsel %vm1413_vm1, %v5501_v21, %v5577_v33  ;;  %v21008_v63 = vld [vmem:[#allocation193_spill] sm:$0xff] }
 0x75d   : > { %v5051_v35 = vsel %vm20917_vm6, %v9491_v42, %v20916_v4  ;;  %v9797_v0 = vpack.i.bf16 %v20919_v48, %v5730_v53  ;;  %v20922_v42 = vld [vmem:[#allocation146_spill] sm:$0xff]  ;;  %v20923_v22 = vunpack.i.l.bf16 %v15619_v7  ;;  %vm20924_vm9 = vcmask 187392  }
 0x75e   : > { %v4205_v45 = vsel %vm827_vm2, %v20921_v55, %v20920_v54  ;;  %v5671_v15 = vsel %vm1413_vm1, %v5051_v35, %v5128_v18  ;;  %v9421_v4 = vunpack.i.h.bf16 %v20922_v42  ;;  %v9420_v39 = vunpack.i.l.bf16 %v20922_v42  ;;  %v20925_v48 = vld [vmem:[#allocation154_spill] sm:$0xff]  ;;  %vm20929_vm0 = vmmov %vm20924_vm9 }
 0x75f   : > { %v5279_v53 = vsel %vm20924_vm9, %v9431_v37, %v20923_v22  ;;  %v20927_v25 = vpack.i.bf16 %v20925_v48, %v20926_v14  ;;  %9798 = vrot.lane.b32.xlu0 %v9797_v0, %s20862_s22  ;;  %v16120_v27 = vsel %vm1413_vm1, %v15701_v51, %v4204_v43  ;;  %v5278_v33 = vsel %vm20929_vm0, %v9430_v28, %v9431_v37  ;;  %v16140_v37 = vpop.permute.xlu1 %9563  ;;  %v16142_v0 = vpop.permute.xlu0 %9588 }
 0x760   : > { %20928 = vst [vmem:[#allocation58_spill] sm:$0xff] %v16120_v27  ;;  %v16126_v18 = vsel %vm1413_vm1, %v15694_v61, %v16011_v8  ;;  %v4208_v7 = vsel %vm827_vm2, %v9130_v2, %v9131_v40  ;;  %v20931_v23 = vunpack.i.h.bf16 %v20861_v41  ;;  %v20932_v21 = vunpack.i.l.bf16 %v20861_v41  ;;  %v20937_v61 = vld [vmem:[#allocation15_spill] sm:$0xff] }
 0x761   : > { %9833 = vrot.lane.b32.xlu1 %v20927_v25, %s20862_s22  ;;  %20930 = vst [vmem:[#allocation146_spill] sm:$0xff] %v16126_v18  ;;  %vm20934_vm11 = vcmask 318464   ;;  %v20935_v51 = vunpack.i.l.bf16 %v15580_v62  ;;  %v9842_v8 = vpack.i.bf16 %v5671_v15, %v20937_v61  ;;  %v9802_v54 = vpack.i.bf16 %v5732_v26, %v5731_v5 }
 0x762   : > { %v16134_v35 = vsel %vm759_vm15, %v20932_v21, %v20931_v23  ;;  %v5203_v22 = vsel %vm20934_vm11, %v9426_v52, %v9420_v39  ;;  %vm20936_vm7 = vmmov %vm20934_vm11  ;;  %v16150_v25 = vsel %vm1413_vm1, %v15877_v16, %v4205_v45  ;;  %v20939_v62 = vunpack.i.h.bf16 %v20875_v30 }
 0x763   : > { %20933 = vst [vmem:[#allocation14_spill] sm:$0xff] %v16134_v35  ;;  %v5205_v43 = vsel %vm20936_vm7, %v9421_v4, %v20935_v51  ;;  %20938 = vst [vmem:[#allocation15_spill] sm:$0xff] %v16150_v25  ;;  %v20940_v52 = vunpack.i.l.bf16 %v20875_v30  ;;  %vm20941_vm8 = vcmask 736256   ;;  %v20942_v21 = vunpack.i.h.bf16 %v20800_v3  ;;  %9803 = vrot.lane.b32.xlu0 %v9802_v54, %s20862_s22  ;;  %v16183_v54 = vpop.permute.xlu1 %9573 }
 0x764   : > { %v5692_v55 = vsel %vm1413_vm1, %v5205_v43, %v5279_v53  ;;  %v20943_v26 = vunpack.i.l.bf16 %v20810_v6  ;;  %vm20944_vm10 = vmmov %vm20936_vm7  ;;  %v19565_v16 = vunpack.i.l.bf16 %v15801_v36  ;;  %v20945_v45 = vunpack.i.l.bf16 %v15582_v9  ;;  %v16185_v9 = vpop.permute.xlu0 %9598 }
 0x765   : > { %v16157_v23 = vsel %vm20941_vm8, %v20940_v52, %v20939_v62  ;;  %v4207_v5 = vsel %vm827_vm2, %v20942_v21, %v9130_v2  ;;  %v5204_v53 = vsel %vm20944_vm10, %v9420_v39, %v9421_v4  ;;  %9843 = vrot.lane.b32.xlu1 %v9842_v8, %s20862_s22  ;;  %v20946_v51 = vunpack.i.l.bf16 %v15536_v31 }
 0x766   : > { %v4209_v15 = vsel %vm827_vm2, %v9131_v40, %v20943_v26  ;;  %v5691_v2 = vsel %vm1413_vm1, %v5204_v53, %v5278_v33  ;;  %v5690_v43 = vsel %vm1413_vm1, %v5203_v22, %v9430_v28  ;;  %v16178_v40 = vsel %vm1413_vm1, %v15744_v47, %v4208_v7  ;;  %v20950_v22 = vld [vmem:[#allocation138_spill] sm:$0xff] }
 0x767   : > { %v5709_v3 = vsel %vm1413_vm1, %v20946_v51, %v20945_v45  ;;  %20947 = vst [vmem:[#allocation195_spill] sm:$0xff] %v16178_v40  ;;  %v9446_v39 = vunpack.i.h.bf16 %v15662_v60  ;;  %v9456_v4 = vunpack.i.h.bf16 %v15706_v44  ;;  %v19564_v8 = vunpack.i.l.bf16 %v15708_v12  ;;  %v16222_v28 = vpop.permute.xlu1 %9583 }
 0x768   : > { %v9807_v31 = vpack.i.bf16 %v5692_v55, %v5691_v2  ;;  %v16193_v47 = vsel %vm1413_vm1, %v15882_v11, %v4207_v5  ;;  %v16197_v7 = vsel %vm1413_vm1, %v15929_v49, %v4209_v15  ;;  %v19567_v52 = vunpack.i.l.bf16 %v20950_v22  ;;  %v20953_v11 = vld [vmem:[#allocation73_spill] sm:$0xff]  ;;  %v16224_v33 = vpop.permute.xlu0 %9608 }
 0x769   : > { %20948 = vst [vmem:[#allocation196_spill] sm:$0xff] %v16193_v47  ;;  %20949 = vst [vmem:[#allocation197_spill] sm:$0xff] %v16197_v7  ;;  %vm20951_vm5 = vcmask 179200   ;;  %v9496_v21 = vunpack.i.h.bf16 %v15896_v24  ;;  %v20952_v26 = vpack.i.bf16 %v15361_v38, %v15205_v58  ;;  %v9185_v5 = vunpack.i.l.bf16 %v20953_v11  ;;  %v21021_v58 = vld [vmem:[#allocation194_spill] sm:$0xff] }
 0x76a   : > { %v5354_v55 = vsel %vm20951_vm5, %v9446_v39, %v19565_v16  ;;  %9808 = vrot.lane.b32.xlu0 %v9807_v31, %s20862_s22  ;;  %v9817_v15 = vpack.i.bf16 %v5709_v3, %v5690_v43  ;;  %v20954_v45 = vunpack.i.l.bf16 %v15706_v44  ;;  %vm20955_vm3 = vcmask 171008   ;;  %vm20958_vm9 = vmmov %vm20951_vm5 }
 0x76b   : > { %9848 = vrot.lane.b32.xlu1 %v20952_v26, %s20862_s22  ;;  %vm20956_vm6 = vmmov %vm20955_vm3  ;;  %v9500_v26 = vunpack.i.l.bf16 %v15803_v59  ;;  %v9486_v31 = vunpack.i.h.bf16 %v15843_v29  ;;  %v20957_v3 = vunpack.i.l.bf16 %v15662_v60  ;;  %v9490_v44 = vunpack.i.l.bf16 %v15749_v50  ;;  %v20962_v60 = vld [vmem:[#allocation25_spill] sm:$0xff] }
 0x76c   : > { %v5425_v51 = vsel %vm20955_vm3, %v20954_v45, %v9456_v4  ;;  %v5426_v2 = vsel %vm20956_vm6, %v9456_v4, %v19564_v8  ;;  %v20959_v4 = vunpack.i.l.bf16 %v15896_v24  ;;  %vm20960_vm0 = vcmask 326656   ;;  %vm20976_vm6 = vmmov %vm20958_vm9 }
 0x76d   : > { %v5353_v43 = vsel %vm20958_vm9, %v20957_v3, %v9446_v39  ;;  %v5713_v45 = vsel %vm1413_vm1, %v5354_v55, %v5426_v2  ;;  %vm20961_vm11 = vmmov %vm20960_vm0  ;;  %v19566_v62 = vunpack.i.h.bf16 %v15936_v56  ;;  %v9505_v8 = vunpack.i.l.bf16 %v15936_v56  ;;  %v20968_v2 = vld [vmem:[#allocation128_spill] sm:$0xff] }
 0x76e   : > { %v5129_v59 = vsel %vm20960_vm0, %v20959_v4, %v9496_v21  ;;  %v5130_v42 = vsel %vm20961_vm11, %v9496_v21, %v9500_v26  ;;  %9818 = vrot.lane.b32.xlu0 %v9817_v15, %s20862_s22  ;;  %v5712_v55 = vsel %vm1413_vm1, %v5353_v43, %v5425_v51  ;;  %v20964_v21 = vunpack.i.l.bf16 %v15843_v29  ;;  %v16254_v15 = vpop.permute.xlu0 %9618  ;;  %vm20978_vm9 = vmmov %vm20960_vm0 }
 0x76f   : > { %9863 = vrot.lane.b32.xlu1 %v20962_v60, %s10250_s29  ;;  %vm20965_vm7 = vcmask 334848   ;;  %v9510_v53 = vunpack.i.l.bf16 %v15845_v13  ;;  %v16252_v60 = vpop.permute.xlu1 %9593  ;;  %v9827_v49 = vpack.i.bf16 %v5713_v45, %v5712_v55  ;;  %v20967_v51 = vunpack.i.h.bf16 %v20810_v6  ;;  %v20973_v55 = vld [vmem:[#allocation117_spill] sm:$0xff] }
 0x770   : > { %v5052_v3 = vsel %vm20965_vm7, %v20964_v21, %v9486_v31  ;;  %vm20966_vm8 = vmmov %vm20965_vm7  ;;  %vm20970_vm10 = vcmask 31744   ;;  %v9411_v16 = vunpack.i.h.bf16 %v20908_v57  ;;  %v9481_v50 = vunpack.i.h.bf16 %v15708_v12 }
 0x771   : > { %v5053_v4 = vsel %vm20966_vm8, %v9486_v31, %v9490_v44  ;;  %v16261_v43 = vsel %vm827_vm2, %v20967_v51, %v19567_v52  ;;  %v5672_v29 = vsel %vm1413_vm1, %v5052_v3, %v5129_v59  ;;  %v20969_v31 = vunpack.i.h.bf16 %v20968_v2  ;;  %vm20971_vm5 = vmmov %vm20965_vm7 }
 0x772   : > { %v5673_v21 = vsel %vm1413_vm1, %v5053_v4, %v5130_v42  ;;  %v5054_v45 = vsel %vm20971_vm5, %v9490_v44, %v9505_v8  ;;  %vm20972_vm3 = vmmov %vm20971_vm5  ;;  %9828 = vrot.lane.b32.xlu0 %v9827_v49, %s20862_s22  ;;  %v20974_v59 = vunpack.i.h.bf16 %v15801_v36  ;;  %v20975_v2 = vunpack.i.l.bf16 %v15801_v36  ;;  %v20977_v4 = vld [vmem:[#allocation48_spill] sm:$0xff]  ;;  %v16292_v42 = vpop.permute.xlu0 %9628 }
 0x773   : > { %v4368_v39 = vsel %vm20970_vm10, %v20969_v31, %v9185_v5  ;;  %v5055_v6 = vsel %vm20972_vm3, %v9505_v8, %v19566_v62  ;;  %9873 = vrot.lane.b32.xlu1 %v20973_v55, %s10250_s29  ;;  %v9521_v51 = vunpack.i.h.bf16 %v20977_v4  ;;  %v9520_v44 = vunpack.i.l.bf16 %v20977_v4  ;;  %v20980_v62 = vld [vmem:[#allocation67_spill] sm:$0xff]  ;;  %v16290_v52 = vpop.permute.xlu1 %9603  ;;  %vm20982_vm11 = vmmov %vm20970_vm10 }
 0x774   : > { %v5355_v3 = vsel %vm20976_vm6, %v20975_v2, %v20974_v59  ;;  %v5131_v31 = vsel %vm20978_vm9, %v9500_v26, %v9510_v53  ;;  %v20979_v8 = vunpack.i.h.bf16 %v15845_v13  ;;  %v9515_v49 = vunpack.i.l.bf16 %v20980_v62  ;;  %v20983_v4 = vld [vmem:[#allocation3_spill] sm:$0xff]  ;;  %vm20995_vm5 = vmmov %vm20982_vm11 }
 0x775   : > { %v9837_v41 = vpack.i.bf16 %v5673_v21, %v5672_v29  ;;  %v20981_v35 = vunpack.i.h.bf16 %v20953_v11  ;;  %v5674_v2 = vsel %vm1413_vm1, %v5054_v45, %v5131_v31  ;;  %v16303_v24 = vsel %vm1413_vm1, %v20983_v4, %v4368_v39  ;;  %vm20996_vm3 = vmmov %vm20995_vm5  ;;  %v20998_v4 = vld [vmem:[#allocation42_spill] sm:$0xff] }
 0x776   : > { %v5132_v55 = vsel %vm20960_vm0, %v9510_v53, %v20979_v8  ;;  %v20984_v53 = vld [vmem:[#allocation153_spill] sm:$0xff]  ;;  %v20985_v7 = vunpack.i.l.bf16 %v20908_v57  ;;  %vm20986_vm7 = vcmask 39936   ;;  %v20987_v29 = vunpack.i.l.bf16 %v15708_v12  ;;  %v16337_v8 = vpop.permute.xlu0 %9638 }
 0x777   : > { %v16297_v59 = vsel %vm20982_vm11, %v9185_v5, %v20981_v35  ;;  %v5675_v26 = vsel %vm1413_vm1, %v5055_v6, %v5132_v55  ;;  %vm20988_vm8 = vcmask 171008   ;;  %9838 = vrot.lane.b32.xlu0 %v9837_v41, %s20862_s22  ;;  %v20989_v35 = vunpack.i.h.bf16 %v20950_v22  ;;  %vm20997_vm6 = vmmov %vm20986_vm7 }
 0x778   : > { %v5502_v1 = vsel %vm20986_vm7, %v20985_v7, %v9411_v16  ;;  %v5427_v21 = vsel %vm20988_vm8, %v20987_v29, %v9481_v50  ;;  %v20990_v5 = vunpack.i.l.bf16 %v20950_v22  ;;  %v20991_v39 = vunpack.i.h.bf16 %v15664_v19  ;;  %vm21005_vm11 = vmmov %vm20996_vm3 }
 0x779   : > { %v20992_v6 = vunpack.i.l.bf16 %v15664_v19  ;;  %vm20993_vm10 = vcmask 187392   ;;  %v20994_v7 = vunpack.i.h.bf16 %v15534_v32  ;;  %v5579_v31 = vsel %vm20996_vm3, %v9520_v44, %v9521_v51  ;;  %vm21007_vm7 = vmmov %vm20996_vm3 }
 0x77a   : > { %v16318_v45 = vsel %vm827_vm2, %v20990_v5, %v20989_v35  ;;  %v16330_v41 = vsel %vm1413_vm1, %v5355_v3, %v5427_v21  ;;  %v5503_v55 = vsel %vm20997_vm6, %v9411_v16, %v9515_v49  ;;  %v9535_v35 = vunpack.i.l.bf16 %v20998_v4  ;;  %v16335_v5 = vpop.permute.xlu1 %9613  ;;  %v21000_v21 = vld [vmem:[#allocation188_spill] sm:$0xff]  ;;  %v16363_v25 = vpop.permute.xlu0 %9648  ;;  %vm21009_vm8 = vmmov %vm20997_vm6 }
 0x77b   : > { %v5282_v57 = vsel %vm20993_vm10, %v20992_v6, %v20991_v39  ;;  %v5578_v12 = vsel %vm20995_vm5, %v20994_v7, %v9520_v44  ;;  %v9852_v39 = vpack.i.bf16 %v5675_v26, %v5674_v2  ;;  %v9516_v32 = vunpack.i.h.bf16 %v20980_v62  ;;  %v20999_v6 = vld [vmem:[#allocation192_spill] sm:$0xff]  ;;  %vm21010_vm10 = vmmov %vm20997_vm6 }
 0x77c   : > { %v9540_v7 = vunpack.i.l.bf16 %v20999_v6  ;;  %v19578_v44 = vunpack.i.h.bf16 %v16335_v5  ;;  %v9615_v3 = vunpack.i.l.bf16 %v16335_v5  ;;  %v9530_v16 = vunpack.i.l.bf16 %v21000_v21 }
 0x77d   : > { %9853 = vrot.lane.b32.xlu0 %v9852_v39, %s20862_s22  ;;  %v5733_v47 = vsel %vm1413_vm1, %v5502_v1, %v5578_v12  ;;  %v9550_v2 = vunpack.i.l.bf16 %v21001_v46  ;;  %v21002_v62 = vunpack.i.h.bf16 %v16039_v17  ;;  %vm21003_vm9 = vcmask 23552  }
 0x77e   : > { %vm21004_vm0 = vmmov %vm21003_vm9  ;;  %v5734_v22 = vsel %vm1413_vm1, %v5503_v55, %v5579_v31  ;;  %v5580_v38 = vsel %vm21005_vm11, %v9521_v51, %v9535_v35  ;;  %v21006_v29 = vunpack.i.h.bf16 %v20998_v4  ;;  %v9545_v1 = vunpack.i.l.bf16 %v21008_v63  ;;  %v16361_v12 = vpop.permute.xlu1 %9623  ;;  %v21011_v31 = vld [vmem:[#allocation171_spill] sm:$0xff] }
 0x77f   : > { %v5657_v26 = vsel %vm21003_vm9, %v21002_v62, %v9615_v3  ;;  %v5658_v40 = vsel %vm21004_vm0, %v9615_v3, %v19578_v44  ;;  %v5504_v62 = vsel %vm21009_vm8, %v9515_v49, %v9516_v32  ;;  %v5505_v48 = vsel %vm21010_vm10, %v9516_v32, %v9530_v16  ;;  %v21016_v49 = vld [vmem:[#allocation22_spill] sm:$0xff]  ;;  %vm21023_vm0 = vmmov %vm21009_vm8 }
 0x780   : > { %v5581_v39 = vsel %vm21007_vm7, %v9535_v35, %v21006_v29  ;;  %v9877_v17 = vpack.i.bf16 %v5658_v40, %v5657_v26  ;;  %v9541_v3 = vunpack.i.h.bf16 %v20999_v6  ;;  %v21012_v55 = vunpack.i.h.bf16 %v21011_v31 }
 0x781   : > { %vm21013_vm5 = vcmask 318464   ;;  %v9551_v44 = vunpack.i.h.bf16 %v21001_v46  ;;  %v21014_v29 = vunpack.i.l.bf16 %v16094_v10  ;;  %vm21015_vm3 = vcmask 171008   ;;  %9858 = vrot.lane.b32.xlu0 %v21016_v49, %s10249_s28 }
 0x782   : > { %v5208_v51 = vsel %vm21013_vm5, %v21012_v55, %v9540_v7  ;;  %v9565_v40 = vunpack.i.l.bf16 %v16140_v37  ;;  %9878 = vrot.lane.b32.xlu1 %v9877_v17, %s20862_s22  ;;  %v21017_v32 = vunpack.i.h.bf16 %v15801_v36  ;;  %vm21018_vm6 = vcmask 179200   ;;  %v16391_v49 = vpop.permute.xlu1 %9633  ;;  %v16393_v36 = vpop.permute.xlu0 %9653  ;;  %vm21024_vm11 = vmmov %vm21013_vm5 }
 0x783   : > { %v5428_v35 = vsel %vm21015_vm3, %v9481_v50, %v21014_v29  ;;  %v9882_v26 = vpack.i.bf16 %v5734_v22, %v5733_v47  ;;  %v5735_v46 = vsel %vm1413_vm1, %v5504_v62, %v5580_v38  ;;  %v5736_v31 = vsel %vm1413_vm1, %v5505_v48, %v5581_v39  ;;  %vm21025_vm7 = vmmov %vm21018_vm6 }
 0x784   : > { %v5356_v6 = vsel %vm21018_vm6, %v21017_v32, %v9550_v2  ;;  %v9546_v50 = vunpack.i.h.bf16 %v21008_v63  ;;  %v21019_v55 = vunpack.i.h.bf16 %v15664_v19  ;;  %vm21020_vm9 = vcmask 187392   ;;  %vm21026_vm8 = vmmov %vm21013_vm5 }
 0x785   : > { %v19581_v17 = vunpack.i.h.bf16 %v21021_v58  ;;  %v9570_v20 = vunpack.i.l.bf16 %v21021_v58  ;;  %v21022_v47 = vunpack.i.h.bf16 %v21000_v21  ;;  %v5209_v48 = vsel %vm21024_vm11, %v9540_v7, %v9541_v3  ;;  %vm21028_vm10 = vmmov %vm21013_vm5 }
 0x786   : > { %v5283_v29 = vsel %vm21020_vm9, %v21019_v55, %v9545_v1  ;;  %v5715_v63 = vsel %vm1413_vm1, %v5356_v6, %v5428_v35  ;;  %v5695_v19 = vsel %vm1413_vm1, %v5208_v51, %v5282_v57  ;;  %v5357_v22 = vsel %vm21025_vm7, %v9550_v2, %v9551_v44  ;;  %9883 = vrot.lane.b32.xlu1 %v9882_v26, %s20862_s22  ;;  %v21030_v35 = vld [vmem:[#allocation52_spill] sm:$0xff]  ;;  %vm21031_vm5 = vmmov %vm21020_vm9  ;;  %v16422_v26 = vpop.permute.xlu1 %9643 }
 0x787   : > { %v16398_v38 = vsel %vm21023_vm0, %v9530_v16, %v21022_v47  ;;  %v5210_v39 = vsel %vm21026_vm8, %v9541_v3, %v9565_v40  ;;  %v21027_v62 = vunpack.i.h.bf16 %v16140_v37  ;;  %v9575_v55 = vunpack.i.l.bf16 %v16183_v54  ;;  %v21029_v16 = vld [vmem:[#allocation23_spill] sm:$0xff]  ;;  %vm21032_vm3 = vmmov %vm21031_vm5  ;;  %v16424_v47 = vpop.permute.xlu0 %9663 }
 0x788   : > { %9868 = vrot.lane.b32.xlu0 %v21029_v16, %s10249_s28  ;;  %v9556_v7 = vunpack.i.h.bf16 %v16094_v10  ;;  %v9580_v6 = vunpack.i.l.bf16 %v21030_v35  ;;  %v9887_v57 = vpack.i.bf16 %v5736_v31, %v5735_v46  ;;  %v5696_v2 = vsel %vm1413_vm1, %v5209_v48, %v5283_v29  ;;  %vm21033_vm6 = vmmov %vm21032_vm3 }
 0x789   : > { %v5211_v32 = vsel %vm21028_vm10, %v9565_v40, %v21027_v62  ;;  %v5284_v3 = vsel %vm21031_vm5, %v9545_v1, %v9546_v50  ;;  %v5285_v51 = vsel %vm21032_vm3, %v9546_v50, %v9570_v20  ;;  %v16420_v40 = vsel %vm21033_vm6, %v9570_v20, %v19581_v17  ;;  %vm21034_vm9 = vmmov %vm21025_vm7 }
 0x78a   : > { %v9897_v62 = vpack.i.bf16 %v5715_v63, %v16330_v41  ;;  %v9586_v16 = vunpack.i.h.bf16 %v16222_v28  ;;  %v9585_v46 = vunpack.i.l.bf16 %v16222_v28  ;;  %v5697_v31 = vsel %vm1413_vm1, %v5210_v39, %v5284_v3  ;;  %9888 = vrot.lane.b32.xlu1 %v9887_v57, %s20862_s22  ;;  %v16445_v57 = vpop.permute.xlu1 %9658  ;;  %vm21042_vm5 = vmmov %vm21034_vm9 }
 0x78b   : > { %v5698_v1 = vsel %vm1413_vm1, %v5211_v32, %v5285_v51  ;;  %v19583_v50 = vunpack.i.h.bf16 %v21030_v35  ;;  %v19582_v29 = vunpack.i.h.bf16 %v16183_v54  ;;  %v5358_v20 = vsel %vm21034_vm9, %v9551_v44, %v9575_v55 }
 0x78c   : > { %9898 = vrot.lane.b32.xlu0 %v9897_v62, %s20862_s22  ;;  %v9892_v48 = vpack.i.bf16 %v5696_v2, %v5695_v19  ;;  %v21035_v41 = vunpack.i.l.bf16 %v16094_v10  ;;  %vm21036_vm0 = vcmask 171008   ;;  %v9591_v39 = vunpack.i.h.bf16 %v16142_v0  ;;  %v16447_v62 = vpop.permute.xlu0 %9673 }
 0x78d   : > { %vm21037_vm11 = vmmov %vm21036_vm0  ;;  %v9590_v32 = vunpack.i.l.bf16 %v16142_v0  ;;  %v9600_v51 = vunpack.i.l.bf16 %v16185_v9  ;;  %v9595_v44 = vunpack.i.l.bf16 %v16252_v60  ;;  %v9902_v19 = vpack.i.bf16 %v5698_v1, %v5697_v31 }
 0x78e   : > { %v5429_v63 = vsel %vm21036_vm0, %v21035_v41, %v9556_v7  ;;  %v5430_v28 = vsel %vm21037_vm11, %v9556_v7, %v9580_v6  ;;  %v21038_v10 = vunpack.i.h.bf16 %v15936_v56  ;;  %vm21039_vm7 = vcmask 334848   ;;  %vm21041_vm10 = vmmov %vm21036_vm0  ;;  %9893 = vrot.lane.b32.xlu1 %v9892_v48, %s20862_s22 }
 0x78f   : > { %vm21040_vm8 = vmmov %vm21039_vm7  ;;  %v19584_v41 = vunpack.i.h.bf16 %v16252_v60  ;;  %v5717_v0 = vsel %vm1413_vm1, %v5358_v20, %v5430_v28  ;;  %v5431_v17 = vsel %vm21041_vm10, %v9580_v6, %v19583_v50  ;;  %v5359_v3 = vsel %vm21042_vm5, %v9575_v55, %v19582_v29 }
 0x790   : > { %v5056_v2 = vsel %vm21039_vm7, %v21038_v10, %v9585_v46  ;;  %v5057_v7 = vsel %vm21040_vm8, %v9585_v46, %v9586_v16  ;;  %v9610_v31 = vunpack.i.l.bf16 %v16224_v33  ;;  %v9605_v56 = vunpack.i.l.bf16 %v16290_v52  ;;  %9903 = vrot.lane.b32.xlu0 %v9902_v19, %s20862_s22  ;;  %vm21046_vm9 = vmmov %vm21039_vm7  ;;  %v16472_v10 = vpop.permute.xlu1 %9668  ;;  %v16474_v29 = vpop.permute.xlu0 %9688 }
 0x791   : > { %v21043_v46 = vunpack.i.h.bf16 %v15845_v13  ;;  %vm21044_vm3 = vcmask 326656   ;;  %v9611_v6 = vunpack.i.h.bf16 %v16224_v33  ;;  %v5716_v28 = vsel %vm1413_vm1, %v5357_v22, %v5429_v63 }
 0x792   : > { %vm21045_vm6 = vmmov %vm21044_vm3  ;;  %v5058_v55 = vsel %vm21046_vm9, %v9586_v16, %v9595_v44  ;;  %v9907_v50 = vpack.i.bf16 %v5717_v0, %v5716_v28  ;;  %v5059_v33 = vsel %vm21039_vm7, %v9595_v44, %v19584_v41  ;;  %v16486_v22 = vsel %vm1413_vm1, %v5359_v3, %v5431_v17  ;;  %v21055_v44 = vld [vmem:[#allocation145_spill] sm:$0xff] }
 0x793   : > { %v5133_v1 = vsel %vm21044_vm3, %v21043_v46, %v9590_v32  ;;  %v5134_v20 = vsel %vm21045_vm6, %v9590_v32, %v9591_v39  ;;  %vm21047_vm0 = vmmov %vm21044_vm3  ;;  %v21048_v46 = vunpack.i.h.bf16 %v16185_v9  ;;  %v21050_v16 = vunpack.i.h.bf16 %v20998_v4 }
 0x794   : > { %v5676_v48 = vsel %vm1413_vm1, %v5056_v2, %v5133_v1  ;;  %v5677_v19 = vsel %vm1413_vm1, %v5057_v7, %v5134_v20  ;;  %v5135_v13 = vsel %vm21047_vm0, %v9591_v39, %v9600_v51  ;;  %vm21049_vm11 = vmmov %vm21047_vm0  ;;  %vm21051_vm8 = vcmask 31744   ;;  %9908 = vrot.lane.b32.xlu1 %v9907_v50, %s20862_s22  ;;  %v16509_v50 = vpop.permute.xlu0 %9693 }
 0x795   : > { %v5136_v32 = vsel %vm21049_vm11, %v9600_v51, %v21048_v46  ;;  %v5582_v63 = vsel %vm21051_vm8, %v21050_v16, %v9610_v31  ;;  %v21052_v2 = vunpack.i.h.bf16 %v21000_v21  ;;  %vm21053_vm10 = vcmask 39936   ;;  %v21054_v51 = vld [vmem:[#allocation43_spill] sm:$0xff]  ;;  %vm21057_vm5 = vmmov %vm21051_vm8  ;;  %v16507_v16 = vpop.permute.xlu1 %9678 }
 0x796   : > { %v19585_v39 = vunpack.i.h.bf16 %v16361_v12  ;;  %v9625_v0 = vunpack.i.l.bf16 %v16361_v12  ;;  %v21056_v1 = vpack.i.bf16 %v21054_v51, %v21055_v44  ;;  %v5583_v17 = vsel %vm21057_vm5, %v9610_v31, %v9611_v6  ;;  %vm21058_vm3 = vmmov %vm21057_vm5 }
 0x797   : > { %v5507_v7 = vsel %vm21053_vm10, %v21052_v2, %v9605_v56  ;;  %v9606_v4 = vunpack.i.h.bf16 %v16290_v52  ;;  %v9917_v3 = vpack.i.bf16 %v5677_v19, %v5676_v48  ;;  %v5678_v21 = vsel %vm1413_vm1, %v5058_v55, %v5135_v13  ;;  %vm21059_vm6 = vmmov %vm21058_vm3 }
 0x798   : > { %9913 = vrot.lane.b32.xlu0 %v21056_v1, %s20862_s22  ;;  %v9630_v20 = vunpack.i.l.bf16 %v16292_v42  ;;  %v9650_v46 = vunpack.i.l.bf16 %v16363_v25  ;;  %v5679_v2 = vsel %vm1413_vm1, %v5059_v33, %v5136_v32  ;;  %v19586_v1 = vunpack.i.l.bf16 %v16254_v15  ;;  %v21060_v32 = vld [vmem:[#allocation147_spill] sm:$0xff]  ;;  %v21061_v33 = vld [vmem:[#allocation80_spill] sm:$0xff]  ;;  %vm21063_vm9 = vmmov %vm21053_vm10 }
 0x799   : > { %v9635_v31 = vunpack.i.l.bf16 %v16391_v49  ;;  %v5737_v52 = vsel %vm1413_vm1, %v16398_v38, %v5582_v63  ;;  %v5738_v55 = vsel %vm1413_vm1, %v5507_v7, %v5583_v17  ;;  %v9631_v48 = vunpack.i.h.bf16 %v16292_v42  ;;  %9918 = vrot.lane.b32.xlu1 %v9917_v3, %s20862_s22  ;;  %vm21064_vm0 = vmmov %vm21063_vm9 }
 0x79a   : > { %v5584_v19 = vsel %vm21058_vm3, %v9611_v6, %v9625_v0  ;;  %v5585_v13 = vsel %vm21059_vm6, %v9625_v0, %v19585_v39  ;;  %v9645_v41 = vunpack.i.l.bf16 %v16422_v26  ;;  %v21062_v28 = vpack.i.bf16 %v21060_v32, %v21061_v33  ;;  %v16544_v32 = vpop.permute.xlu0 %9698 }
 0x79b   : > { %v5508_v38 = vsel %vm21063_vm9, %v9605_v56, %v9606_v4  ;;  %v5509_v42 = vsel %vm21064_vm0, %v9606_v4, %v19586_v1  ;;  %v9640_v6 = vunpack.i.l.bf16 %v16337_v8  ;;  %v9927_v63 = vpack.i.bf16 %v5679_v2, %v5678_v21  ;;  %v16542_v56 = vpop.permute.xlu1 %9683 }
 0x79c   : > { %9923 = vrot.lane.b32.xlu0 %v21062_v28, %s20862_s22  ;;  %v21065_v7 = vunpack.i.h.bf16 %v16140_v37  ;;  %vm21066_vm11 = vcmask 318464   ;;  %v21067_v17 = vunpack.i.h.bf16 %v16335_v5  ;;  %vm21068_vm7 = vcmask 23552  }
 0x79d   : > { %v21069_v39 = vunpack.i.h.bf16 %v16363_v25  ;;  %vm21070_vm8 = vmmov %vm21068_vm7  ;;  %v9937_v4 = vpack.i.bf16 %v5738_v55, %v5737_v52  ;;  %v9636_v1 = vunpack.i.h.bf16 %v16391_v49  ;;  %v21071_v21 = vunpack.i.h.bf16 %v21021_v58  ;;  %9928 = vrot.lane.b32.xlu1 %v9927_v63, %s20862_s22 }
 0x79e   : > { %v5212_v0 = vsel %vm21066_vm11, %v21065_v7, %v9630_v20  ;;  %v5659_v3 = vsel %vm21068_vm7, %v21067_v17, %v9650_v46  ;;  %vm21072_vm10 = vcmask 187392   ;;  %v5739_v2 = vsel %vm1413_vm1, %v5508_v38, %v5584_v19  ;;  %vm21073_vm5 = vmmov %vm21066_vm11 }
 0x79f   : > { %v5660_v28 = vsel %vm21070_vm8, %v9650_v46, %v21069_v39  ;;  %v5287_v37 = vsel %vm21072_vm10, %v21071_v21, %v9635_v31  ;;  %v5740_v5 = vsel %vm1413_vm1, %v5509_v42, %v5585_v13  ;;  %v5213_v7 = vsel %vm21073_vm5, %v9630_v20, %v9631_v48  ;;  %v16567_v38 = vpop.permute.xlu1 %9703  ;;  %v16569_v42 = vpop.permute.xlu0 %9708  ;;  %vm21078_vm9 = vmmov %vm21072_vm10 }
 0x7a0   : > { %v21074_v17 = vunpack.i.h.bf16 %v21030_v35  ;;  %vm21075_vm3 = vcmask 171008   ;;  %v19591_v46 = vunpack.i.l.bf16 %v16445_v57  ;;  %v19590_v52 = vunpack.i.l.bf16 %v16472_v10  ;;  %9938 = vrot.lane.b32.xlu0 %v9937_v4, %s20862_s22  ;;  %vm21079_vm0 = vmmov %vm21078_vm9 }
 0x7a1   : > { %v21076_v58 = vunpack.i.h.bf16 %v16183_v54  ;;  %vm21077_vm6 = vcmask 179200   ;;  %v19589_v55 = vunpack.i.h.bf16 %v16393_v36  ;;  %v9655_v20 = vunpack.i.l.bf16 %v16393_v36  ;;  %vm21080_vm11 = vmmov %vm21075_vm3 }
 0x7a2   : > { %v5432_v39 = vsel %vm21075_vm3, %v21074_v17, %v9645_v41  ;;  %v9932_v19 = vpack.i.bf16 %v5660_v28, %v5659_v3  ;;  %v9646_v35 = vunpack.i.h.bf16 %v16422_v26  ;;  %v19595_v13 = vunpack.i.l.bf16 %v16424_v47  ;;  %vm21081_vm7 = vmmov %vm21073_vm5 }
 0x7a3   : > { %v5360_v49 = vsel %vm21077_vm6, %v21076_v58, %v9640_v6  ;;  %v9942_v63 = vpack.i.bf16 %v5740_v5, %v5739_v2  ;;  %v5700_v4 = vsel %vm1413_vm1, %v5213_v7, %v5287_v37  ;;  %v9641_v54 = vunpack.i.h.bf16 %v16337_v8  ;;  %vm21082_vm8 = vmmov %vm21073_vm5  ;;  %v16597_v7 = vpop.permute.xlu1 %9713 }
 0x7a4   : > { %v5288_v21 = vsel %vm21078_vm9, %v9635_v31, %v9636_v1  ;;  %v5719_v17 = vsel %vm1413_vm1, %v5360_v49, %v5432_v39  ;;  %v5699_v3 = vsel %vm1413_vm1, %v5212_v0, %v16420_v40  ;;  %v5289_v26 = vsel %vm21079_vm0, %v9636_v1, %v19591_v46  ;;  %9933 = vrot.lane.b32.xlu1 %v9932_v19, %s20862_s22  ;;  %vm21083_vm10 = vmmov %vm21075_vm3  ;;  %v16599_v39 = vpop.permute.xlu0 %5492  ;;  %v21086_v49 = vld [vmem:[#allocation141_spill] sm:$0xff] }
 0x7a5   : > { %v5434_v28 = vsel %vm21080_vm11, %v9646_v35, %v19590_v52  ;;  %v9681_v2 = vunpack.i.h.bf16 %v16507_v16  ;;  %v9680_v37 = vunpack.i.l.bf16 %v16507_v16  ;;  %9943 = vrot.lane.b32.xlu0 %v9942_v63, %s20862_s22  ;;  %v5214_v8 = vsel %vm21081_vm7, %v9631_v48, %v9655_v20  ;;  %vm21084_vm5 = vmmov %vm21077_vm6  ;;  %21085 = vst [vmem:[#allocation73_spill] sm:$0xff] %v16599_v39 }
 0x7a6   : > { %v5215_v40 = vsel %vm21082_vm8, %v9655_v20, %v19589_v55  ;;  %v9675_v1 = vunpack.i.l.bf16 %v16447_v62  ;;  %v9947_v31 = vpack.i.bf16 %v5700_v4, %v5699_v3  ;;  %v5433_v0 = vsel %vm21083_vm10, %v9645_v41, %v9646_v35  ;;  %vm21087_vm3 = vmmov %vm21084_vm5 }
 0x7a7   : > { %v5362_v5 = vsel %vm21084_vm5, %v9641_v54, %v19595_v13  ;;  %v9676_v16 = vunpack.i.h.bf16 %v16447_v62  ;;  %v9952_v48 = vpack.i.bf16 %v5719_v17, %v16486_v22  ;;  %v9155_v58 = vunpack.i.l.bf16 %v20984_v53 }
 0x7a8   : > { %v19587_v20 = vunpack.i.h.bf16 %v21086_v49  ;;  %v5721_v19 = vsel %vm1413_vm1, %v5362_v5, %v5434_v28  ;;  %v5702_v41 = vsel %vm1413_vm1, %v5215_v40, %v5289_v26  ;;  %v19588_v35 = vunpack.i.l.bf16 %v21086_v49  ;;  %v16626_v40 = vpop.permute.xlu1 %9718 }
 0x7a9   : > { %v5361_v63 = vsel %vm21087_vm3, %v9640_v6, %v9641_v54  ;;  %v21088_v62 = vunpack.i.h.bf16 %v16185_v9  ;;  %vm21089_vm6 = vcmask 326656   ;;  %9953 = vrot.lane.b32.xlu1 %v9952_v48, %s20862_s22  ;;  %9948 = vrot.lane.b32.xlu0 %v9947_v31, %s20862_s22  ;;  %v21091_v22 = vunpack.i.h.bf16 %v16252_v60  ;;  %v21093_v6 = vld [vmem:[#allocation50_spill] sm:$0xff]  ;;  %21096 = vst [vmem:[#allocation128_spill] sm:$0xff] %v16626_v40  ;;  %v16628_v31 = vpop.permute.xlu0 %9723 }
 0x7aa   : > { %vm21090_vm9 = vmmov %vm21089_vm6  ;;  %vm21092_vm0 = vcmask 334848   ;;  %v5720_v26 = vsel %vm1413_vm1, %v5361_v63, %v5433_v0  ;;  %v5701_v28 = vsel %vm1413_vm1, %v5214_v8, %v5288_v21  ;;  %v16622_v9 = vsel %vm1413_vm1, %v21093_v6, %v16318_v45  ;;  %v21097_v48 = vld [vmem:[#allocation174_spill] sm:$0xff]  ;;  %v21104_v6 = vld [vmem:[#allocation27_spill] sm:$0xff] }
 0x7ab   : > { %v5137_v4 = vsel %vm21089_vm6, %v21088_v62, %v9680_v37  ;;  %v5138_v3 = vsel %vm21090_vm9, %v9680_v37, %v9681_v2  ;;  %v5060_v17 = vsel %vm21092_vm0, %v21091_v22, %v9675_v1  ;;  %21094 = vst [vmem:[#allocation25_spill] sm:$0xff] %v16622_v9  ;;  %vm21095_vm11 = vmmov %vm21092_vm0  ;;  %v9685_v37 = vunpack.i.l.bf16 %v16542_v56  ;;  %v21101_v63 = vld [vmem:[#allocation150_spill] sm:$0xff] }
 0x7ac   : > { %v5061_v54 = vsel %vm21095_vm11, %v9675_v1, %v9676_v16  ;;  %v9962_v60 = vpack.i.bf16 %v5721_v19, %v5720_v26  ;;  %v9957_v5 = vpack.i.bf16 %v5702_v41, %v5701_v28  ;;  %v21098_v62 = vunpack.i.h.bf16 %v21097_v48  ;;  %v21102_v19 = vld [vmem:[#allocation172_spill] sm:$0xff]  ;;  %v21106_v48 = vld [vmem:[#allocation139_spill] sm:$0xff]  ;;  %vm21110_vm5 = vmmov %vm21092_vm0 }
 0x7ad   : > { %vm21099_vm7 = vcmask 736256   ;;  %v19594_v21 = vunpack.i.h.bf16 %v16542_v56  ;;  %v5680_v8 = vsel %vm1413_vm1, %v5060_v17, %v5137_v4  ;;  %v5681_v45 = vsel %vm1413_vm1, %v5061_v54, %v5138_v3  ;;  %v21103_v17 = vld [vmem:[#allocation137_spill] sm:$0xff]  ;;  %v16668_v55 = vpop.permute.xlu0 %9733  ;;  %vm21113_vm6 = vmmov %vm21092_vm0 }
 0x7ae   : > { %v4279_v0 = vsel %vm21099_vm7, %v21098_v62, %v9155_v58  ;;  %vm21100_vm8 = vcmask 31744   ;;  %v9165_v22 = vunpack.i.l.bf16 %v21101_v63  ;;  %v19592_v41 = vunpack.i.h.bf16 %v21102_v19  ;;  %9963 = vrot.lane.b32.xlu1 %v9962_v60, %s20862_s22  ;;  %9958 = vrot.lane.b32.xlu0 %v9957_v5, %s20862_s22  ;;  %vm21109_vm10 = vmmov %vm21099_vm7 }
 0x7af   : > { %v4373_v1 = vsel %vm21100_vm8, %v19588_v35, %v19587_v20  ;;  %v19593_v26 = vunpack.i.l.bf16 %v21102_v19  ;;  %v19596_v4 = vunpack.i.h.bf16 %v16474_v29  ;;  %v9690_v3 = vunpack.i.l.bf16 %v16474_v29  ;;  %v16666_v35 = vpop.permute.xlu1 %9728  ;;  %vm21112_vm3 = vmmov %vm21099_vm7 }
 0x7b0   : > { %v16651_v28 = vsel %vm1413_vm1, %v21103_v17, %v16297_v59  ;;  %v16656_v54 = vsel %vm1413_vm1, %v21104_v6, %v16261_v43  ;;  %v21107_v62 = vunpack.i.l.bf16 %v21106_v48  ;;  %v21108_v60 = vunpack.i.h.bf16 %v20984_v53  ;;  %vm21117_vm9 = vmmov %vm21112_vm3 }
 0x7b1   : > { %21105 = vst [vmem:[#allocation117_spill] sm:$0xff] %v16656_v54  ;;  %v5062_v20 = vsel %vm21110_vm5, %v9676_v16, %v9685_v37  ;;  %v9972_v59 = vpack.i.bf16 %v5681_v45, %v5680_v8  ;;  %v9166_v43 = vunpack.i.h.bf16 %v21101_v63  ;;  %v5063_v6 = vsel %vm21113_vm6, %v9685_v37, %v19594_v21  ;;  %vm21118_vm0 = vmmov %vm21100_vm8  ;;  %v16710_v13 = vpop.permute.xlu0 %9743  ;;  %v21135_v54 = vld [vmem:[#allocation162_spill] sm:$0xff] }
 0x7b2   : > { %v16663_v5 = vsel %vm21109_vm10, %v21108_v60, %v21107_v62  ;;  %v21111_v17 = vmov %v21108_v60  ;;  %v16680_v62 = vsel %vm1413_vm1, %v4279_v0, %v4373_v1  ;;  %v21116_v46 = vunpack.i.h.bf16 %v21106_v48  ;;  %v21121_v0 = vld [vmem:[#allocation19_spill] sm:$0xff]  ;;  %v21124_v48 = vld [vmem:[#allocation45_spill] sm:$0xff]  ;;  %21126 = vst [vmem:[#allocation67_spill] sm:$0xff] %v16710_v13  ;;  %vm21128_vm8 = vmmov %vm21112_vm3 }
 0x7b3   : > { %v16673_v52 = vsel %vm21112_vm3, %v9155_v58, %v21111_v17  ;;  %21114 = vst [vmem:[#allocation48_spill] sm:$0xff] %v16680_v62  ;;  %v4377_v53 = vsel %vm21118_vm0, %v19593_v26, %v19592_v41  ;;  %v21119_v58 = vld [vmem:[#allocation93_spill] sm:$0xff]  ;;  %vm21120_vm11 = vcmask 326656   ;;  %9973 = vrot.lane.b32.xlu1 %v9972_v59, %s20862_s22  ;;  %v21122_v1 = vld [vmem:[#allocation59_spill] sm:$0xff]  ;;  %v9705_v26 = vunpack.i.l.bf16 %v16567_v38  ;;  %v16708_v21 = vpop.permute.xlu1 %9738  ;;  %vm21129_vm10 = vmmov %vm21112_vm3 }
 0x7b4   : > { %v4283_v8 = vsel %vm21117_vm9, %v21116_v46, %v9165_v22  ;;  %v5139_v37 = vsel %vm21120_vm11, %v9681_v2, %v9690_v3  ;;  %v21123_v63 = vpack.i.bf16 %v21121_v0, %v21122_v1  ;;  %v9190_v46 = vunpack.i.l.bf16 %v21124_v48  ;;  %vm21125_vm7 = vmmov %vm21120_vm11 }
 0x7b5   : > { %v5140_v60 = vsel %vm21125_vm7, %v9690_v3, %v19596_v4  ;;  %v5682_v41 = vsel %vm1413_vm1, %v5062_v20, %v5139_v37  ;;  %v9711_v2 = vunpack.i.h.bf16 %v16569_v42  ;;  %v9710_v59 = vunpack.i.l.bf16 %v16569_v42  ;;  %vm21133_vm5 = vmmov %vm21112_vm3  ;;  %v16754_v9 = vpop.permute.xlu0 %5274 }
 0x7b6   : > { %9968 = vrot.lane.b32.xlu0 %v21123_v63, %s20862_s22  ;;  %v5683_v63 = vsel %vm1413_vm1, %v5063_v6, %v5140_v60  ;;  %v21127_v17 = vunpack.i.l.bf16 %v20875_v30  ;;  %v9621_v3 = vunpack.i.h.bf16 %v16254_v15  ;;  %v16720_v20 = vsel %vm21129_vm10, %v9165_v22, %v9166_v43  ;;  %v21136_v22 = vld [vmem:[#allocation84_spill] sm:$0xff]  ;;  %vm21138_vm3 = vmmov %vm21118_vm0  ;;  %21143 = vst [vmem:[#allocation192_spill] sm:$0xff] %v16754_v9 }
 0x7b7   : > { %v16723_v37 = vsel %vm1413_vm1, %v4283_v8, %v4377_v53  ;;  %v21131_v42 = vunpack.i.l.bf16 %v21119_v58  ;;  %v21132_v4 = vunpack.i.h.bf16 %v20875_v30  ;;  %v9661_v60 = vunpack.i.h.bf16 %v16445_v57  ;;  %9983 = vrot.lane.b32.xlu1 %v21135_v54, %s10250_s29  ;;  %vm21141_vm9 = vmmov %vm21118_vm0  ;;  %v16752_v16 = vpop.permute.xlu1 %9748 }
 0x7b8   : > { %v16716_v45 = vsel %vm21128_vm8, %v9166_v43, %v21127_v17  ;;  %21130 = vst [vmem:[#allocation3_spill] sm:$0xff] %v16723_v37  ;;  %v9671_v17 = vunpack.i.h.bf16 %v16472_v10  ;;  %v21137_v43 = vunpack.i.h.bf16 %v21124_v48  ;;  %v9706_v30 = vunpack.i.h.bf16 %v16567_v38  ;;  %21142 = vst [vmem:[#allocation42_spill] sm:$0xff] %v16752_v16 }
 0x7b9   : > { %v16730_v0 = vsel %vm21133_vm5, %v21132_v4, %v21131_v42  ;;  %v9720_v4 = vunpack.i.l.bf16 %v16626_v40  ;;  %v9992_v53 = vpack.i.bf16 %v5683_v63, %v5682_v41  ;;  %vm21139_vm6 = vcmask 39936   ;;  %vm21147_vm7 = vmmov %vm21118_vm0 }
 0x7ba   : > { %21134 = vst [vmem:[#allocation153_spill] sm:$0xff] %v16730_v0  ;;  %9978 = vrot.lane.b32.xlu0 %v21136_v22, %s10249_s28  ;;  %v16742_v8 = vsel %vm21138_vm3, %v9190_v46, %v21137_v43  ;;  %v5511_v42 = vsel %vm21139_vm6, %v9621_v3, %v9705_v26  ;;  %v21140_v6 = vunpack.i.h.bf16 %v16361_v12  ;;  %v5587_v54 = vsel %vm21118_vm0, %v9710_v59, %v9711_v2  ;;  %vm21145_vm11 = vmmov %vm21139_vm6 }
 0x7bb   : > { %v21144_v43 = vunpack.i.l.bf16 %v16254_v15  ;;  %v9716_v41 = vunpack.i.h.bf16 %v16597_v7  ;;  %v9715_v63 = vunpack.i.l.bf16 %v16597_v7  ;;  %v21146_v12 = vunpack.i.h.bf16 %v20953_v11  ;;  %9993 = vrot.lane.b32.xlu1 %v9992_v53, %s20862_s22  ;;  %vm21159_vm3 = vmmov %vm21139_vm6 }
 0x7bc   : > { %v5586_v0 = vsel %vm21141_vm9, %v21140_v6, %v9710_v59  ;;  %v21148_v59 = vld [vmem:[#allocation30_spill] sm:$0xff]  ;;  %v21149_v22 = vunpack.i.h.bf16 %v16424_v47  ;;  %v21150_v51 = vunpack.i.l.bf16 %v16424_v47  ;;  %vm21151_vm8 = vcmask 179200   ;;  %vm21160_vm6 = vmmov %vm21118_vm0 }
 0x7bd   : > { %v5510_v38 = vsel %vm21145_vm11, %v21144_v43, %v9621_v3  ;;  %v16764_v6 = vsel %vm21147_vm7, %v21146_v12, %v9190_v46  ;;  %v21152_v15 = vunpack.i.l.bf16 %v16445_v57  ;;  %vm21153_vm10 = vcmask 187392   ;;  %v21156_v46 = vld [vmem:[#allocation41_spill] sm:$0xff]  ;;  %v21157_v43 = vld [vmem:[#allocation131_spill] sm:$0xff]  ;;  %vm21161_vm9 = vmmov %vm21159_vm3 }
 0x7be   : > { %v16772_v33 = vsel %vm21151_vm8, %v21150_v51, %v21149_v22  ;;  %v21154_v7 = vunpack.i.l.bf16 %v16472_v10  ;;  %vm21155_vm5 = vcmask 171008   ;;  %v21158_v12 = vpack.i.bf16 %v21156_v46, %v21157_v43  ;;  %v10221_v43 = vld [vmem:[#allocation2 + $0x38] sm:$0xff]  ;;  %vm21169_vm8 = vmmov %vm21153_vm10 }
 0x7bf   : > { %v16777_v3 = vsel %vm21153_vm10, %v21152_v15, %v9661_v60  ;;  %v5512_v51 = vsel %vm21159_vm3, %v9705_v26, %v9706_v30  ;;  %v5588_v22 = vsel %vm21160_vm6, %v9711_v2, %v9720_v4  ;;  %v5741_v57 = vsel %vm1413_vm1, %v5510_v38, %v5586_v0  ;;  %vm21170_vm10 = vmmov %vm21155_vm5 }
 0x7c0   : > { %v16782_v11 = vsel %vm21155_vm5, %v21154_v7, %v9671_v17  ;;  %9988 = vrot.lane.b32.xlu0 %v21158_v12, %s20862_s22  ;;  %v5742_v15 = vsel %vm1413_vm1, %v5511_v42, %v5587_v54  ;;  %v5513_v10 = vsel %vm21161_vm9, %v9706_v30, %v16599_v39  ;;  %v21162_v7 = vunpack.i.h.bf16 %v16626_v40  ;;  %v16800_v12 = vpop.permute.xlu1 %5347  ;;  %v16808_v54 = vpop.permute.xlu0 %5419 }
 0x7c1   : > { %v9730_v1 = vunpack.i.l.bf16 %v16666_v35  ;;  %v9740_v46 = vunpack.i.l.bf16 %v16708_v21  ;;  %21163 = vst [vmem:[#allocation188_spill] sm:$0xff] %v16800_v12  ;;  %v21164_v26 = vunpack.i.h.bf16 %v16363_v25  ;;  %vm21165_vm11 = vcmask 23552   ;;  %21167 = vst [vmem:[#allocation156_spill] sm:$0xff] %v16808_v54 }
 0x7c2   : > { %v5589_v53 = vsel %vm21118_vm0, %v9720_v4, %v21162_v7  ;;  %vm21166_vm7 = vmmov %vm21165_vm11  ;;  %v9745_v30 = vunpack.i.l.bf16 %v16710_v13  ;;  %v9726_v4 = vunpack.i.h.bf16 %v16628_v31  ;;  %v9725_v38 = vunpack.i.l.bf16 %v16628_v31  ;;  %v21168_v7 = vld [vmem:[#allocation13_spill] sm:$0xff] }
 0x7c3   : > { %v5661_v2 = vsel %vm21165_vm11, %v21164_v26, %v9715_v63  ;;  %v5662_v0 = vsel %vm21166_vm7, %v9715_v63, %v9716_v41  ;;  %4802 = vrot.lane.b32.xlu1 %v21168_v7, %s10250_s29  ;;  %v9997_v25 = vpack.i.bf16 %v5742_v15, %v5741_v57  ;;  %v5743_v26 = vsel %vm1413_vm1, %v5512_v51, %v5588_v22  ;;  %vm21171_vm5 = vmmov %vm21166_vm7 }
 0x7c4   : > { %4729 = vrot.lane.b32.xlu0 %v10221_v43, %s10249_s28  ;;  %v9731_v63 = vunpack.i.h.bf16 %v16666_v35  ;;  %v9736_v42 = vunpack.i.h.bf16 %v16668_v55  ;;  %v9735_v39 = vunpack.i.l.bf16 %v16668_v55  ;;  %v5744_v40 = vsel %vm1413_vm1, %v5513_v10, %v5589_v53  ;;  %v16823_v44 = vpop.permute.xlu1 %9753  ;;  %vm21173_vm3 = vmmov %vm21171_vm5 }
 0x7c5   : > { %v5291_v37 = vsel %vm21169_vm8, %v9661_v60, %v9730_v1  ;;  %v9741_v31 = vunpack.i.h.bf16 %v16708_v21  ;;  %v5436_v7 = vsel %vm21170_vm10, %v9671_v17, %v9740_v46  ;;  %v10002_v43 = vpack.i.bf16 %v5662_v0, %v5661_v2  ;;  %vm21177_vm0 = vmmov %vm21169_vm8 }
 0x7c6   : > { %v5663_v57 = vsel %vm21171_vm5, %v9716_v41, %v9745_v30  ;;  %v21172_v51 = vunpack.i.h.bf16 %v16710_v13  ;;  %v19600_v22 = vunpack.i.h.bf16 %v16752_v16  ;;  %v9750_v55 = vunpack.i.l.bf16 %v16752_v16  ;;  %vm21181_vm8 = vmmov %vm21170_vm10  ;;  %v21277_v13 = vld [vmem:[#allocation20_spill] sm:$0xff] }
 0x7c7   : > { %v9215_v15 = vunpack.i.l.bf16 %v21148_v59  ;;  %v21174_v60 = vunpack.i.h.bf16 %v16393_v36  ;;  %vm21175_vm6 = vcmask 318464   ;;  %10003 = vrot.lane.b32.xlu1 %v10002_v43, %s20862_s22  ;;  %v10007_v41 = vpack.i.bf16 %v5744_v40, %v5743_v26  ;;  %vm21182_vm10 = vmmov %vm21177_vm0 }
 0x7c8   : > { %v5664_v35 = vsel %vm21173_vm3, %v9745_v30, %v21172_v51  ;;  %vm21176_vm9 = vmmov %vm21175_vm6  ;;  %9998 = vrot.lane.b32.xlu0 %v9997_v25, %s20862_s22  ;;  %v5292_v10 = vsel %vm21177_vm0, %v9730_v1, %v9731_v63  ;;  %v21178_v53 = vunpack.i.h.bf16 %v16424_v47  ;;  %vm21179_vm11 = vcmask 179200   ;;  %v16843_v30 = vpop.permute.xlu0 %9758  ;;  %v16849_v43 = vpop.permute.xlu1 %4999 }
 0x7c9   : > { %v5216_v21 = vsel %vm21175_vm6, %v21174_v60, %v9725_v38  ;;  %v5217_v17 = vsel %vm21176_vm9, %v9725_v38, %v9726_v4  ;;  %vm21180_vm7 = vmmov %vm21179_vm11  ;;  %v5437_v51 = vsel %vm21181_vm8, %v9740_v46, %v9741_v31  ;;  %v5293_v38 = vsel %vm21182_vm10, %v9731_v63, %v16754_v9  ;;  %21183 = vst [vmem:[#allocation193_spill] sm:$0xff] %v16849_v43 }
 0x7ca   : > { %v5364_v2 = vsel %vm21179_vm11, %v21178_v53, %v9735_v39  ;;  %v5365_v0 = vsel %vm21180_vm7, %v9735_v39, %v9736_v42  ;;  %v5704_v36 = vsel %vm1413_vm1, %v5217_v17, %v5291_v37  ;;  %v10012_v40 = vpack.i.bf16 %v5664_v35, %v5663_v57  ;;  %vm21184_vm5 = vmmov %vm21175_vm6 }
 0x7cb   : > { %v5723_v1 = vsel %vm1413_vm1, %v5364_v2, %v5436_v7  ;;  %v5218_v47 = vsel %vm21184_vm5, %v9726_v4, %v9750_v55  ;;  %vm21185_vm3 = vmmov %vm21184_vm5  ;;  %v9755_v37 = vunpack.i.l.bf16 %v16823_v44  ;;  %v9756_v26 = vunpack.i.h.bf16 %v16823_v44  ;;  %v21188_v4 = vld [vmem:[#allocation167_spill] sm:$0xff] }
 0x7cc   : > { %v5219_v39 = vsel %vm21185_vm3, %v9750_v55, %v19600_v22  ;;  %vm21186_vm6 = vmmov %vm21180_vm7  ;;  %v9761_v63 = vunpack.i.h.bf16 %v16843_v30  ;;  %v9760_v7 = vunpack.i.l.bf16 %v16843_v30  ;;  %10013 = vrot.lane.b32.xlu1 %v10012_v40, %s20862_s22  ;;  %10008 = vrot.lane.b32.xlu0 %v10007_v41, %s20862_s22  ;;  %v9201_v57 = vunpack.i.h.bf16 %v21188_v4  ;;  %v16879_v41 = vpop.permute.xlu1 %9768  ;;  %v21241_v44 = vld [vmem:[#allocation175_spill] sm:$0xff] }
 0x7cd   : > { %v5366_v25 = vsel %vm21186_vm6, %v9736_v42, %v16800_v12  ;;  %vm21187_vm9 = vmmov %vm21181_vm8  ;;  %v5722_v42 = vsel %vm1413_vm1, %v16772_v33, %v16782_v11  ;;  %v5703_v35 = vsel %vm1413_vm1, %v5216_v21, %v16777_v3  ;;  %v21190_v55 = vunpack.i.h.bf16 %v21124_v48  ;;  %21192 = vst [vmem:[#allocation171_spill] sm:$0xff] %v16879_v41 }
 0x7ce   : > { %v5438_v46 = vsel %vm21187_vm9, %v9741_v31, %v16808_v54  ;;  %v21189_v31 = vunpack.i.l.bf16 %v21086_v49  ;;  %vm21191_vm0 = vcmask 31744   ;;  %v9200_v17 = vunpack.i.l.bf16 %v21188_v4 }
 0x7cf   : > { %v5724_v53 = vsel %vm1413_vm1, %v5365_v0, %v5437_v51  ;;  %v10022_v2 = vpack.i.bf16 %v5723_v1, %v5722_v42  ;;  %v10017_v30 = vpack.i.bf16 %v5704_v36, %v5703_v35  ;;  %v5705_v40 = vsel %vm1413_vm1, %v5218_v47, %v5292_v10  ;;  %vm21200_vm5 = vmmov %vm21191_vm0 }
 0x7d0   : > { %v4372_v60 = vsel %vm21191_vm0, %v21190_v55, %v21189_v31  ;;  %v5706_v33 = vsel %vm1413_vm1, %v5219_v39, %v5293_v38  ;;  %v5725_v3 = vsel %vm1413_vm1, %v5366_v25, %v5438_v46  ;;  %v21193_v11 = vunpack.i.h.bf16 %v16542_v56  ;;  %v21202_v38 = vld [vmem:[#allocation44_spill] sm:$0xff]  ;;  %v21207_v46 = vld [vmem:[#allocation74_spill] sm:$0xff]  ;;  %v16921_v31 = vpop.permute.xlu1 %9773  ;;  %vm21208_vm6 = vmmov %vm21191_vm0  ;;  %v16924_v55 = vpop.permute.xlu0 %9763 }
 0x7d1   : > { %vm21194_vm11 = vcmask 334848   ;;  %v21196_v0 = vunpack.i.h.bf16 %v16474_v29  ;;  %vm21197_vm8 = vcmask 326656   ;;  %10023 = vrot.lane.b32.xlu1 %v10022_v2, %s20862_s22  ;;  %10018 = vrot.lane.b32.xlu0 %v10017_v30, %s20862_s22  ;;  %v21199_v10 = vunpack.i.h.bf16 %v21148_v59  ;;  %v21203_v29 = vld [vmem:[#allocation190_spill] sm:$0xff]  ;;  %21209 = vst [vmem:[#allocation194_spill] sm:$0xff] %v16924_v55  ;;  %vm21212_vm9 = vmmov %vm21191_vm0 }
 0x7d2   : > { %v5064_v48 = vsel %vm21194_vm11, %v21193_v11, %v9755_v37  ;;  %vm21195_vm7 = vmmov %vm21194_vm11  ;;  %v16906_v1 = vsel %vm1413_vm1, %v21202_v38, %v16764_v6  ;;  %v16910_v47 = vsel %vm1413_vm1, %v21203_v29, %v4372_v60  ;;  %v21204_v39 = vunpack.i.h.bf16 %v21119_v58 }
 0x7d3   : > { %v5065_v21 = vsel %vm21195_vm7, %v9755_v37, %v9756_v26  ;;  %v5141_v51 = vsel %vm21197_vm8, %v21196_v0, %v9760_v7  ;;  %vm21198_vm10 = vmmov %vm21197_vm8  ;;  %v16901_v56 = vsel %vm21200_vm5, %v9215_v15, %v21199_v10  ;;  %v21205_v25 = vunpack.i.l.bf16 %v21119_v58  ;;  %v21210_v58 = vld [vmem:[#allocation118_spill] sm:$0xff] }
 0x7d4   : > { %v5142_v36 = vsel %vm21198_vm10, %v9760_v7, %v9761_v63  ;;  %21201 = vst [vmem:[#allocation22_spill] sm:$0xff] %v16901_v56  ;;  %vm21206_vm3 = vcmask 736256   ;;  %v19605_v7 = vunpack.i.h.bf16 %v21207_v46  ;;  %v9230_v4 = vunpack.i.l.bf16 %v21207_v46  ;;  %v16951_v29 = vpop.permute.xlu1 %9778  ;;  %vm21217_vm11 = vmmov %vm21200_vm5 }
 0x7d5   : > { %v16917_v37 = vsel %vm21206_vm3, %v21205_v25, %v21204_v39  ;;  %v10027_v42 = vpack.i.bf16 %v5706_v33, %v5705_v40  ;;  %v10032_v35 = vpack.i.bf16 %v5725_v3, %v5724_v53  ;;  %v4375_v6 = vsel %vm21208_vm6, %v9200_v17, %v9201_v57  ;;  %v21218_v25 = vld [vmem:[#allocation115_spill] sm:$0xff] }
 0x7d6   : > { %v5684_v60 = vsel %vm1413_vm1, %v5064_v48, %v5141_v51  ;;  %v5685_v2 = vsel %vm1413_vm1, %v5065_v21, %v5142_v36  ;;  %v16931_v30 = vsel %vm1413_vm1, %v21210_v58, %v16742_v8  ;;  %v19601_v11 = vunpack.i.h.bf16 %v16924_v55  ;;  %v21213_v48 = vld [vmem:[#allocation173_spill] sm:$0xff]  ;;  %v21221_v58 = vld [vmem:[#allocation60_spill] sm:$0xff] }
 0x7d7   : > { %v19602_v40 = vunpack.i.h.bf16 %v16879_v41  ;;  %v9770_v53 = vunpack.i.l.bf16 %v16879_v41  ;;  %10033 = vrot.lane.b32.xlu1 %v10032_v35, %s20862_s22  ;;  %10028 = vrot.lane.b32.xlu0 %v10027_v42, %s20862_s22  ;;  %v21211_v33 = vunpack.i.h.bf16 %v21086_v49  ;;  %v9211_v21 = vunpack.i.h.bf16 %v21213_v48  ;;  %v21214_v8 = vld [vmem:[#allocation77_spill] sm:$0xff] }
 0x7d8   : > { %v9210_v0 = vunpack.i.l.bf16 %v21213_v48  ;;  %v19603_v51 = vunpack.i.h.bf16 %v21214_v8  ;;  %v19604_v36 = vunpack.i.l.bf16 %v21214_v8  ;;  %vm21215_vm0 = vcmask 23552  }
 0x7d9   : > { %v4374_v3 = vsel %vm21212_vm9, %v21211_v33, %v9200_v17  ;;  %v16948_v10 = vsel %vm21215_vm0, %v9230_v4, %v19605_v7  ;;  %v9765_v38 = vunpack.i.l.bf16 %v16924_v55  ;;  %v10042_v49 = vpack.i.bf16 %v5685_v2, %v5684_v60  ;;  %vm21223_vm8 = vmmov %vm21215_vm0  ;;  %v21249_v7 = vld [vmem:[#allocation56_spill] sm:$0xff] }
 0x7da   : > { %v21216_v17 = vunpack.i.l.bf16 %v21102_v19  ;;  %v21219_v42 = vunpack.i.h.bf16 %v21218_v25  ;;  %vm21220_vm7 = vcmask 1039360   ;;  %v21222_v33 = vunpack.i.h.bf16 %v21221_v58  ;;  %vm21231_vm9 = vmmov %vm21215_vm0  ;;  %v21240_v58 = vld [vmem:[#allocation134_spill] sm:$0xff] }
 0x7db   : > { %v16965_v22 = vsel %vm1413_vm1, %v16673_v52, %v4374_v3  ;;  %v16969_v60 = vsel %vm1413_vm1, %v16663_v5, %v4375_v6  ;;  %vm21225_vm10 = vcmask 334848   ;;  %vm21226_vm5 = vcmask 326656   ;;  %10043 = vrot.lane.b32.xlu1 %v10042_v49, %s20862_s22  ;;  %v21229_v52 = vld [vmem:[#allocation102_spill] sm:$0xff]  ;;  %vm21235_vm0 = vmmov %vm21208_vm6 }
 0x7dc   : > { %v4376_v39 = vsel %vm21217_vm11, %v9201_v57, %v21216_v17  ;;  %v5004_v35 = vsel %vm21220_vm7, %v21219_v42, %v16849_v43  ;;  %v4451_v48 = vsel %vm21223_vm8, %v21222_v33, %v9230_v4  ;;  %21224 = vst [vmem:[#allocation23_spill] sm:$0xff] %v16969_v60  ;;  %v5067_v57 = vsel %vm21225_vm10, %v9765_v38, %v19601_v11  ;;  %vm21227_vm3 = vmmov %vm21226_vm5  ;;  %v21228_v4 = vld [vmem:[#allocation107_spill] sm:$0xff]  ;;  %v21236_v42 = vld [vmem:[#allocation69_spill] sm:$0xff] }
 0x7dd   : > { %v5143_v2 = vsel %vm21226_vm5, %v9761_v63, %v9770_v53  ;;  %v5144_v17 = vsel %vm21227_vm3, %v9770_v53, %v19602_v40  ;;  %v21230_v3 = vpack.i.bf16 %v21228_v4, %v21229_v52  ;;  %v4379_v5 = vsel %vm21208_vm6, %v9210_v0, %v9211_v21  ;;  %v21232_v63 = vld [vmem:[#allocation191_spill] sm:$0xff]  ;;  %vm21238_vm11 = vmmov %vm21225_vm10 }
 0x7de   : > { %v16989_v6 = vsel %vm21231_vm9, %v19604_v36, %v19603_v51  ;;  %v16993_v25 = vsel %vm1413_vm1, %v21232_v63, %v4376_v39  ;;  %v21234_v53 = vunpack.i.h.bf16 %v21102_v19  ;;  %v9250_v33 = vunpack.i.l.bf16 %v21236_v42  ;;  %v17004_v51 = vpop.permute.xlu1 %9793  ;;  %v10222_v39 = vld [vmem:[#allocation2 + $0x48] sm:$0xff]  ;;  %vm21243_vm7 = vmmov %vm21235_vm0 }
 0x7df   : > { %10038 = vrot.lane.b32.xlu0 %v21230_v3, %s20862_s22  ;;  %21233 = vst [vmem:[#allocation52_spill] sm:$0xff] %v16993_v25  ;;  %v21237_v3 = vld [vmem:[#allocation72_spill] sm:$0xff]  ;;  %v5066_v40 = vsel %vm21238_vm11, %v9756_v26, %v9765_v38  ;;  %v5668_v63 = vsel %vm1413_vm1, %v10222_v39, %v5004_v35  ;;  %10053 = vrot.lane.b32.xlu1 %v21240_v58, %s10250_s29  ;;  %v21244_v35 = vld [vmem:[#allocation158_spill] sm:$0xff]  ;;  %vm21247_vm8 = vmmov %vm21235_vm0  ;;  %vm21255_vm5 = vcmask 15360   ;;  %v21275_v43 = vunpack.i.h.bf16 %v21214_v8 }
 0x7e0   : > { %v4378_v49 = vsel %vm21235_vm0, %v21234_v53, %v9210_v0  ;;  %v9270_v36 = vunpack.i.l.bf16 %v21237_v3  ;;  %v5686_v19 = vsel %vm1413_vm1, %v5066_v40, %v5143_v2  ;;  %v5687_v0 = vsel %vm1413_vm1, %v5067_v57, %v5144_v17  ;;  %v21248_v17 = vld [vmem:[#allocation160_spill] sm:$0xff]  ;;  %vm21253_vm10 = vmmov %vm21231_vm9  ;;  %v21330_v25 = vld [vmem:[#allocation161_spill] sm:$0xff] }
 0x7e1   : > { %v17017_v26 = vsel %vm1413_vm1, %v16720_v20, %v4378_v49  ;;  %v4380_v38 = vsel %vm21243_vm7, %v9211_v21, %v9215_v15  ;;  %v21245_v40 = vunpack.i.l.bf16 %v21244_v35  ;;  %v21246_v57 = vunpack.i.h.bf16 %v21148_v59  ;;  %v3684_v20 = vld [vmem:[#allocation2 + $0x58] sm:$0xf]  ;;  %v21250_v49 = vld [vmem:[#allocation65_spill] sm:$0xff]  ;;  %v21251_v15 = vld [vmem:[#allocation8_spill] sm:$0xff]  ;;  %v17034_v35 = vpop.permute.xlu0 %9783 }
 0x7e2   : > { %21242 = vst [vmem:[#allocation141_spill] sm:$0xff] %v17017_v26  ;;  %v9236_v39 = vunpack.i.h.bf16 %v21248_v17  ;;  %v9235_v58 = vunpack.i.l.bf16 %v21248_v17  ;;  %v9246_v4 = vunpack.i.h.bf16 %v21250_v49  ;;  %v9245_v55 = vunpack.i.l.bf16 %v21250_v49  ;;  %v17036_v59 = vpop.permute.xlu1 %9813  ;;  %v21258_v49 = vld [vmem:[#allocation91_spill] sm:$0xff]  ;;  %vm21261_vm3 = vmmov %vm21255_vm5 }
 0x7e3   : > { %10048 = vrot.lane.b32.xlu0 %v21241_v44, %s10249_s28  ;;  %v4382_v2 = vsel %vm21247_vm8, %v21246_v57, %v21245_v40  ;;  %v10057_v21 = vpack.i.bf16 %v5668_v63, %v21251_v15  ;;  %v10062_v40 = vpack.i.bf16 %v5687_v0, %v5686_v19  ;;  %v21252_v57 = vunpack.i.h.bf16 %v21236_v42  ;;  %v17057_v0 = vld [vmem:[#allocation2 + $0x50] sm:$0xff]  ;;  %vm21262_vm6 = vmmov %vm21231_vm9 }
 0x7e4   : > { %v21254_v44 = vunpack.i.h.bf16 %v21237_v3  ;;  %v17048_v41 = vsel %vm1413_vm1, %v16157_v23, %v4380_v38  ;;  %v17052_v63 = vsel %vm1413_vm1, %v16716_v45, %v4379_v5  ;;  %v5535_v19 = vcombine.low %v3684_v20, %v3684_v20  ;;  %vm21265_vm9 = vmmov %vm21262_vm6 }
 0x7e5   : > { %v17041_v17 = vsel %vm21253_vm10, %v9250_v33, %v21252_v57  ;;  %21256 = vst [vmem:[#allocation50_spill] sm:$0xff] %v17048_v41  ;;  %21257 = vst [vmem:[#allocation174_spill] sm:$0xff] %v17052_v63  ;;  %10063 = vrot.lane.b32.xlu1 %v10062_v40, %s20862_s22  ;;  %v21259_v57 = vld [vmem:[#allocation40_spill] sm:$0xff]  ;;  %v17067_v45 = vsel %vm21262_vm6, %v9235_v58, %v9236_v39  ;;  %v21263_v5 = vunpack.i.h.bf16 %v21249_v7  ;;  %v21264_v40 = vunpack.i.l.bf16 %v21249_v7  ;;  %v17090_v52 = vpop.permute.xlu0 %9788  ;;  %v17151_v63 = vld [vmem:[#allocation2 + $0x54] sm:$0xf] }
 0x7e6   : > { %v4526_v11 = vsel %vm21255_vm5, %v9270_v36, %v21254_v44  ;;  %v17061_v44 = vcombine.high %v17057_v0, %v17057_v0  ;;  %v21260_v23 = vunpack.i.h.bf16 %v21259_v57  ;;  %v21267_v15 = vunpack.i.h.bf16 %v21207_v46  ;;  %vm21268_vm0 = vmmov %vm21262_vm6 }
 0x7e7   : > { %10058 = vrot.lane.b32.xlu0 %v10057_v21, %s20862_s22  ;;  %v17074_v21 = vsel %vm21265_vm9, %v21264_v40, %v21263_v5  ;;  %v17083_v57 = vsel %vm1413_vm1, %v16917_v37, %v4382_v2  ;;  %vm21270_vm11 = vmmov %vm21268_vm0  ;;  %v17092_v5 = vpop.permute.xlu1 %9823  ;;  %v21272_v46 = vunpack.i.l.bf16 %v21214_v8  ;;  %v17105_v2 = vsel %vm1413_vm1, %v16948_v10, %v4526_v11 }
 0x7e8   : > { %v4525_v38 = vsel %vm21261_vm3, %v21260_v23, %v9270_v36  ;;  %21266 = vst [vmem:[#allocation150_spill] sm:$0xff] %v17074_v21  ;;  %v17079_v54 = vsel %vm21268_vm0, %v21267_v15, %v9235_v58  ;;  %21269 = vst [vmem:[#allocation172_spill] sm:$0xff] %v17083_v57  ;;  %v17086_v36 = vsel %vm21270_vm11, %v9245_v55, %v9246_v4  ;;  %v21271_v23 = vld [vmem:[#allocation159_spill] sm:$0xff]  ;;  %v21274_v15 = vld [vmem:[#allocation70_spill] sm:$0xff]  ;;  %v9776_v8 = vunpack.i.h.bf16 %v16921_v31 }
 0x7e9   : > { %v9280_v12 = vunpack.i.l.bf16 %v21271_v23  ;;  %vm21273_vm7 = vmmov %vm21268_vm0  ;;  %v17101_v37 = vsel %vm1413_vm1, %v4451_v48, %v4525_v38  ;;  %10073 = vrot.lane.b32.xlu1 %v21277_v13, %s10250_s29  ;;  %v10082_v48 = vpack.i.bf16 %v5535_v19, %v17057_v0  ;;  %v10077_v38 = vpack.i.bf16 %v3684_v20, %v17061_v44  ;;  %v9799_v20 = vpop.permute.xlu0 %9798 }
 0x7ea   : > { %v17097_v58 = vsel %vm21273_vm7, %v9236_v39, %v21272_v46  ;;  %vm21276_vm8 = vmmov %vm21268_vm0  ;;  %v21278_v39 = vld [vmem:[#allocation142_spill] sm:$0xff]  ;;  %v9795_v10 = vunpack.i.l.bf16 %v17004_v51  ;;  %v21280_v46 = vunpack.i.h.bf16 %v21271_v23  ;;  %v9801_v40 = vunpack.i.h.bf16 %v9799_v20 }
 0x7eb   : > { %v17110_v9 = vsel %vm21276_vm8, %v21275_v43, %v9245_v55  ;;  %10068 = vrot.lane.b32.xlu0 %v21278_v39, %s10249_s28  ;;  %vm21279_vm10 = vmmov %vm21268_vm0  ;;  %v9775_v43 = vunpack.i.l.bf16 %v16921_v31  ;;  %v9796_v55 = vunpack.i.h.bf16 %v17004_v51  ;;  %v17130_v19 = vpop.permute.xlu1 %9833  ;;  %v21282_v31 = vld [vmem:[#allocation35_spill] sm:$0xff]  ;;  %v9800_v56 = vunpack.i.l.bf16 %v9799_v20 }
 0x7ec   : > { %v17120_v11 = vsel %vm21279_vm10, %v9246_v4, %v9250_v33  ;;  %vm21281_vm5 = vmmov %vm21261_vm3  ;;  %v9275_v16 = vunpack.i.l.bf16 %v21282_v31  ;;  %v21283_v51 = vunpack.i.l.bf16 %v21274_v15  ;;  %v21284_v13 = vunpack.i.h.bf16 %v21236_v42 }
 0x7ed   : > { %v4530_v39 = vsel %vm21281_vm5, %v9280_v12, %v21280_v46  ;;  %vm21285_vm3 = vmmov %vm21268_vm0  ;;  %v9276_v46 = vunpack.i.h.bf16 %v21282_v31  ;;  %v9780_v4 = vunpack.i.l.bf16 %v16951_v29  ;;  %10083 = vrot.lane.b32.xlu1 %v10082_v48, %s10244_s23  ;;  %vm21287_vm6 = vcmask 777216   ;;  %v17156_v53 = vpop.permute.xlu0 %9803 }
 0x7ee   : > { %v17142_v57 = vsel %vm21285_vm3, %v21284_v13, %v21283_v51  ;;  %v6161_v33 = vsel %vm21287_vm6, %v9775_v43, %v9776_v8  ;;  %vm21288_vm9 = vmmov %vm21287_vm6  ;;  %v21291_v51 = vld [vmem:[#allocation155_spill] sm:$0xff]  ;;  %v17160_v48 = vsel %vm1413_vm1, %v16989_v6, %v4530_v39  ;;  %v19616_v60 = vunpack.i.h.bf16 %v17156_v53 }
 0x7ef   : > { %21286 = vst [vmem:[#allocation137_spill] sm:$0xff] %v17142_v57  ;;  %10078 = vrot.lane.b32.xlu0 %v10077_v38, %s10257_s11  ;;  %v6143_v20 = vsel %vm21288_vm9, %v9796_v55, %v9800_v56  ;;  %vm21289_vm0 = vmmov %vm21287_vm6  ;;  %v19617_v31 = vunpack.i.h.bf16 %v21291_v51  ;;  %v19618_v26 = vunpack.i.l.bf16 %v21291_v51  ;;  %v9805_v7 = vunpack.i.l.bf16 %v17156_v53 }
 0x7f0   : > { %v6142_v42 = vsel %vm21289_vm0, %v9795_v10, %v9796_v55  ;;  %vm21290_vm11 = vmmov %vm21289_vm0  ;;  %v6396_v21 = vpack.c.bf16 %v6161_v33, %v6143_v20  ;;  %21292 = vst [vmem:[#allocation27_spill] sm:$0xff] %v17160_v48  ;;  %v21293_v55 = vunpack.i.h.bf16 %v21237_v3  ;;  %v17171_v33 = vpop.permute.xlu1 %9843  ;;  %vm21297_vm10 = vcmask 1045504   ;;  %v21332_v48 = vld [vmem:[#allocation63_spill] sm:$0xff] }
 0x7f1   : > { %v6160_v13 = vsel %vm21290_vm11, %v9801_v40, %v9775_v43  ;;  %vm21294_vm7 = vmmov %vm21281_vm5  ;;  %v21295_v43 = vunpack.i.h.bf16 %v16951_v29  ;;  %5201 = vrot.lane.b32.xlu1 %v17151_v63, %s10253_s13  ;;  %v19619_v3 = vunpack.i.h.bf16 %v17036_v59 }
 0x7f2   : > { %v6395_v41 = vpack.c.bf16 %v6160_v13, %v6142_v42  ;;  %v4527_v40 = vsel %vm21294_vm7, %v21293_v55, %v9275_v16  ;;  %vm21296_vm8 = vmmov %vm21289_vm0  ;;  %7493 = vmatprep.subr.msk.bf16.mxu0 %vm21297_vm10, %v6396_v21  ;;  %v9815_v42 = vunpack.i.l.bf16 %v17036_v59  ;;  %v6144_v55 = vsel %vm21289_vm0, %v9800_v56, %v9805_v7  ;;  %v3680_v21 = vld [vmem:[#allocation2 + $0x50] sm:$0xf] }
 0x7f3   : > { %v6163_v10 = vsel %vm21296_vm8, %v9780_v4, %v21295_v43  ;;  %vm21298_vm5 = vmmov %vm21297_vm10  ;;  %10088 = vrot.lane.b32.xlu0 %v10077_v38, %s10245_s24  ;;  %v9809_v43 = vpop.permute.xlu0 %9808  ;;  %v17198_v56 = vsel %vm1413_vm1, %v17079_v54, %v4527_v40 }
 0x7f4   : > { %v6417_v6 = vsel %vm21298_vm5, %v6395_v41, 0  ;;  %vm21299_vm3 = vmmov %vm21289_vm0  ;;  %v9811_v38 = vunpack.i.h.bf16 %v9809_v43 }
 0x7f5   : > { %v6162_v39 = vsel %vm21299_vm3, %v9776_v8, %v9780_v4  ;;  %vm21300_vm6 = vmmov %vm21294_vm7  ;;  %6473 = vmatpush1.bf16.msra.mxu0 %v6417_v6  ;;  %v9810_v6 = vunpack.i.l.bf16 %v9809_v43  ;;  %5349 = vrot.lane.b32.xlu1 %v17061_v44, %s20474_s18  ;;  %s18533_s18 = scalar_lea.vmem %s18953_s8, %s7513_s14 }
 0x7f6   : > { %v4529_v20 = vsel %vm21300_vm6, %v9276_v46, %v9280_v12  ;;  %vm21301_vm9 = vmmov %vm21289_vm0  ;;  %v6397_v4 = vpack.c.bf16 %v6162_v39, %v6144_v55  ;;  %v9695_v12 = vunpack.i.l.bf16 %v16509_v50 }
 0x7f7   : > { %v6145_v13 = vsel %vm21301_vm9, %v9805_v7, %v19616_v60  ;;  %vm21302_vm11 = vmmov %vm21300_vm6  ;;  %v17209_v39 = vsel %vm1413_vm1, %v17097_v58, %v4529_v20  ;;  %5276 = vrot.lane.b32.xlu0 %v17057_v0, %s20471_s16  ;;  %v21311_v20 = vld [vmem:[#allocation53_spill] sm:$0xff]  ;;  %v9825_v7 = vunpack.i.l.bf16 %v17092_v5 }
 0x7f8   : > { %v4528_v41 = vsel %vm21302_vm11, %v9275_v16, %v9276_v46  ;;  %v6398_v8 = vpack.c.bf16 %v6163_v10, %v6145_v13  ;;  %vm21303_vm7 = vmmov %vm21300_vm6  ;;  %v21304_v16 = vld [vmem:[#allocation21_spill] sm:$0xff]  ;;  %v17205_v10 = vcombine.low %v3680_v21, %v3680_v21  ;;  %v21308_v13 = vld [vmem:[#allocation32_spill] sm:$0xff]  ;;  %vm21316_vm6 = vcmask 932864  }
 0x7f9   : > { %v17194_v60 = vsel %vm21303_vm7, %v19618_v26, %v19617_v31  ;;  %vm21305_vm8 = vmmov %vm21298_vm5  ;;  %v17220_v40 = vsel %vm1413_vm1, %v17067_v45, %v4528_v41  ;;  %v5089_v45 = vcombine.low %v17151_v63, %v17151_v63  ;;  %v21313_v41 = vunpack.i.l.bf16 %v21304_v16  ;;  %v21314_v21 = vld [vmem:[#allocation31_spill] sm:$0xff] }
 0x7fa   : > { %7495 = vmatprep.subr.msk.bf16.mxu1 %vm21305_vm8, %v6398_v8  ;;  %vm21306_vm10 = vmmov %vm21298_vm5  ;;  %21307 = vst [vmem:[#allocation139_spill] sm:$0xff] %v17205_v10  ;;  %v17225_v8 = vpop.permute.xlu1 %9848  ;;  %5001 = vrot.lane.b32.xlu1 %v17205_v10, %s10236_s15  ;;  %v21315_v58 = vunpack.i.h.bf16 %v21314_v21  ;;  %v21318_v10 = vld [vmem:[#allocation61_spill] sm:$0xff]  ;;  %vm21323_vm11 = vcmask 785408  }
 0x7fb   : > { %v6423_v46 = vsel %vm21306_vm10, %v6397_v4, 0  ;;  %vm21309_vm5 = vmmov %vm21289_vm0  ;;  %v9819_v4 = vpop.permute.xlu0 %9818  ;;  %5421 = vrot.lane.b32.xlu0 %v17057_v0, %s20477_s19  ;;  %v21322_v0 = vunpack.i.h.bf16 %v16509_v50  ;;  %s18892_s19 = scalar_lea.vmem %s18954_s9, %s7513_s14 }
 0x7fc   : > { %6514 = vmatpush1.bf16.msra.mxu1 %v6423_v46  ;;  %v6107_v54 = vsel %vm21309_vm5, %v9810_v6, %v9811_v38  ;;  %vm21310_vm3 = vmmov %vm21289_vm0  ;;  %v9821_v26 = vunpack.i.h.bf16 %v9819_v4  ;;  %v9820_v55 = vunpack.i.l.bf16 %v9819_v4 }
 0x7fd   : > { %v6125_v44 = vsel %vm21310_vm3, %v9815_v42, %v19619_v3  ;;  %v21312_v3 = vld [vmem:[#allocation109_spill] sm:$0xff]  ;;  %vm21317_vm9 = vmmov %vm21289_vm0  ;;  %vm21334_vm3 = vcmask 916480  }
 0x7fe   : > { %v6378_v46 = vpack.c.bf16 %v6125_v44, %v6107_v54  ;;  %v4599_v54 = vsel %vm21316_vm6, %v21315_v58, %v21313_v41  ;;  %v6124_v31 = vsel %vm21317_vm9, %v9821_v26, %v9815_v42  ;;  %v6106_v43 = vsel %vm21289_vm0, %v9820_v55, %v9810_v6  ;;  %v21320_v44 = vld [vmem:[#allocation133_spill] sm:$0xff]  ;;  %v17266_v21 = vpop.permute.xlu1 %9863  ;;  %5126 = vrot.lane.b32.xlu1 %v5089_v45, %s20490_s21  ;;  %vm21324_vm7 = vmmov %vm21289_vm0 }
 0x7ff   : > { %v17249_v15 = vpop.permute.xlu0 %9828  ;;  %v6377_v58 = vpack.c.bf16 %v6124_v31, %v6106_v43  ;;  %v21319_v41 = vunpack.i.l.bf16 %v21311_v20  ;;  %v21321_v4 = vunpack.i.h.bf16 %v21320_v44  ;;  %v4817_v55 = vsel %vm21323_vm11, %v9695_v12, %v21322_v0  ;;  %vm21326_vm8 = vmmov %vm21289_vm0  ;;  %5049 = vrot.lane.b32.xlu0 %v17151_v63, %s20487_s20 }
 0x800   : > { %6474 = vmatprep.subr.bf16.mxu0 %v6378_v46  ;;  %v19627_v42 = vunpack.i.h.bf16 %v17249_v15  ;;  %v9830_v6 = vunpack.i.l.bf16 %v17249_v15  ;;  %v9836_v31 = vunpack.i.h.bf16 %v17130_v19  ;;  %v9835_v43 = vunpack.i.l.bf16 %v17130_v19  ;;  %vm21328_vm10 = vmmov %vm21289_vm0 }
 0x801   : > { %v4671_v57 = vsel %vm1253_vm4, %v21321_v4, %v21319_v41  ;;  %v9845_v44 = vunpack.i.l.bf16 %v17171_v33  ;;  %6475 = vmatpush1.bf16.msra.mxu0 %v6377_v58  ;;  %v6108_v4 = vsel %vm21324_vm7, %v9811_v38, %v9825_v7  ;;  %v21325_v41 = vunpack.i.h.bf16 %v17036_v59  ;;  %vm21329_vm5 = vmmov %vm21289_vm0 }
 0x802   : > { %v21327_v0 = vunpack.i.h.bf16 %v17092_v5  ;;  %v6127_v46 = vsel %vm21329_vm5, %v9830_v6, %v19627_v42  ;;  %v9385_v45 = vunpack.i.l.bf16 %v21330_v25  ;;  %v21331_v59 = vunpack.i.l.bf16 %v21318_v10  ;;  %vm21336_vm6 = vmmov %vm21323_vm11 }
 0x803   : > { %v6126_v26 = vsel %vm21326_vm8, %v21325_v41, %v9830_v6  ;;  %v9839_v58 = vpop.permute.xlu0 %9838  ;;  %v21333_v41 = vunpack.i.h.bf16 %v21332_v48  ;;  %v21335_v63 = vunpack.i.l.bf16 %v21258_v49  ;;  %vm21337_vm9 = vmmov %vm21289_vm0  ;;  %v21339_v48 = vunpack.i.h.bf16 %v21258_v49 }
 0x804   : > { %v6109_v19 = vsel %vm21328_vm10, %v9825_v7, %v21327_v0  ;;  %v6379_v38 = vpack.c.bf16 %v6126_v26, %v6108_v4  ;;  %v9846_v7 = vunpack.i.h.bf16 %v17171_v33  ;;  %v9841_v0 = vunpack.i.h.bf16 %v9839_v58  ;;  %vm21340_vm11 = vmmov %vm21336_vm6 }
 0x805   : > { %v6380_v62 = vpack.c.bf16 %v6127_v46, %v6109_v19  ;;  %v4742_v18 = vsel %vm21334_vm3, %v21333_v41, %v21331_v59  ;;  %v4816_v34 = vsel %vm21336_vm6, %v21335_v63, %v9695_v12  ;;  %v9840_v27 = vunpack.i.l.bf16 %v9839_v58  ;;  %vm21341_vm7 = vmmov %vm21289_vm0 }
 0x806   : > { %v6070_v6 = vsel %vm21337_vm9, %v9845_v44, %v9835_v43  ;;  %v6071_v46 = vsel %vm21289_vm0, %v9835_v43, %v9836_v31  ;;  %v4979_v26 = vsel %vm1413_vm1, %v4742_v18, %v4817_v55  ;;  %v21338_v4 = vunpack.i.l.bf16 %v16544_v32  ;;  %vm21342_vm8 = vmmov %vm21289_vm0  ;;  %v17304_v43 = vpop.permute.xlu1 %9873 }
 0x807   : > { %6515 = vmatprep.subr.bf16.mxu1 %v6380_v62  ;;  %v19629_v59 = vunpack.i.h.bf16 %v17225_v8  ;;  %v9850_v12 = vunpack.i.l.bf16 %v17225_v8  ;;  %v6088_v33 = vsel %vm21341_vm7, %v9846_v7, %v9840_v27  ;;  %v6089_v44 = vsel %vm21342_vm8, %v9840_v27, %v9841_v0  ;;  %v21343_v62 = vld [vmem:[#allocation6_spill] sm:$0xff]  ;;  %v17306_v18 = vpop.permute.xlu0 %9853  ;;  %vm21347_vm10 = vmmov %vm21334_vm3 }
 0x808   : > { %v4819_v19 = vsel %vm21340_vm11, %v21339_v48, %v21338_v4  ;;  %6516 = vmatpush1.bf16.msra.mxu1 %v6379_v38  ;;  %v6360_v55 = vpack.c.bf16 %v6089_v44, %v6071_v46  ;;  %v6359_v41 = vpack.c.bf16 %v6088_v33, %v6070_v6  ;;  %v21344_v63 = vunpack.i.l.bf16 %v21312_v3  ;;  %vm21350_vm5 = vmmov %vm21336_vm6 }
 0x809   : > { %v21345_v4 = vunpack.i.h.bf16 %v21311_v20  ;;  %v9855_v38 = vunpack.i.l.bf16 %v17306_v18  ;;  %v4961_v27 = vsel %vm1413_vm1, %v4599_v54, %v4671_v57  ;;  %v21346_v7 = vunpack.i.h.bf16 %v21318_v10  ;;  %vm21352_vm3 = vmmov %vm21289_vm0 }
 0x80a   : > { %v21348_v6 = vunpack.i.h.bf16 %v21258_v49  ;;  %v21349_v46 = vunpack.i.h.bf16 %v16509_v50  ;;  %6476 = vmatprep.subr.bf16.mxu0 %v6360_v55  ;;  %v6342_v44 = vpack.c.bf16 %v4979_v26, %v4961_v27  ;;  %v6072_v57 = vsel %vm21352_vm3, %v9836_v31, %v9850_v12  ;;  %vm21353_vm6 = vmmov %vm21289_vm0  ;;  %v17337_v55 = vpop.permute.xlu1 %9878 }
 0x80b   : > { %v4673_v48 = vsel %vm1253_vm4, %v21345_v4, %v21344_v63  ;;  %v4744_v58 = vsel %vm21347_vm10, %v21346_v7, %v9385_v45  ;;  %v21351_v63 = vld [vmem:[#allocation111_spill] sm:$0xff]  ;;  %v6090_v54 = vsel %vm21353_vm6, %v9841_v0, %v9855_v38  ;;  %6477 = vmatpush1.bf16.msra.mxu0 %v6359_v41  ;;  %vm21354_vm9 = vmmov %vm21289_vm0  ;;  %v21355_v50 = vunpack.i.h.bf16 %v17306_v18  ;;  %v17339_v26 = vpop.permute.xlu0 %9858 }
 0x80c   : > { %v4818_v33 = vsel %vm21350_vm5, %v21349_v46, %v21348_v6  ;;  %v4978_v4 = vsel %vm1413_vm1, %v21351_v63, %v4816_v34  ;;  %v4981_v42 = vsel %vm1413_vm1, %v4744_v58, %v4819_v19  ;;  %v6073_v49 = vsel %vm21354_vm9, %v9850_v12, %v19629_v59  ;;  %6478 = vmatprep.subr.bf16.mxu0 %v6342_v44  ;;  %vm21366_vm8 = vmmov %vm21347_vm10  ;;  %v21387_v59 = vld [vmem:[#allocation126_spill] sm:$0xff] }
 0x80d   : > { %v6091_v7 = vsel %vm21289_vm0, %v9855_v38, %v21355_v50  ;;  %v6361_v19 = vpack.c.bf16 %v6090_v54, %v6072_v57  ;;  %v21356_v31 = vunpack.i.l.bf16 %v21343_v62  ;;  %v21357_v0 = vunpack.i.h.bf16 %v21304_v16  ;;  %v21367_v54 = vld [vmem:[#allocation46_spill] sm:$0xff] }
 0x80e   : > { %v6362_v34 = vpack.c.bf16 %v6091_v7, %v6073_v49  ;;  %vm21358_vm11 = vcmask 932864   ;;  %v21359_v41 = vunpack.i.l.bf16 %v21308_v13  ;;  %v21360_v12 = vunpack.i.h.bf16 %v21271_v23  ;;  %v21368_v7 = vld [vmem:[#allocation108_spill] sm:$0xff] }
 0x80f   : > { %v4601_v58 = vsel %vm21358_vm11, %v21357_v0, %v21356_v31  ;;  %vm21361_vm7 = vcmask 15360   ;;  %v21362_v38 = vunpack.i.h.bf16 %v21311_v20  ;;  %v21363_v6 = vunpack.i.l.bf16 %v21311_v20  ;;  %vm21374_vm5 = vmmov %vm21358_vm11 }
 0x810   : > { %v4531_v27 = vsel %vm21361_vm7, %v21360_v12, %v21359_v41  ;;  %v21364_v44 = vunpack.i.h.bf16 %v21318_v10  ;;  %v21365_v63 = vunpack.i.l.bf16 %v21318_v10  ;;  %v6341_v49 = vpack.c.bf16 %v4978_v4, %v21367_v54  ;;  %6517 = vmatprep.subr.bf16.mxu1 %v6362_v34  ;;  %vm21371_vm10 = vmmov %vm21361_vm7 }
 0x811   : > { %v4672_v46 = vsel %vm1253_vm4, %v21363_v6, %v21362_v38  ;;  %v4963_v50 = vsel %vm1413_vm1, %v4601_v58, %v4673_v48  ;;  %v19628_v23 = vunpack.i.l.bf16 %v21368_v7  ;;  %v21369_v41 = vunpack.i.h.bf16 %v21308_v13  ;;  %6518 = vmatpush1.bf16.msra.mxu1 %v6361_v19  ;;  %v9884_v6 = vpop.permute.xlu1 %9883  ;;  %vm21378_vm3 = vmmov %vm21361_vm7 }
 0x812   : > { %v4743_v57 = vsel %vm21366_vm8, %v21365_v63, %v21364_v44  ;;  %v6344_v31 = vpack.c.bf16 %v4981_v42, %v4963_v50  ;;  %v21370_v12 = vunpack.i.l.bf16 %v21308_v13  ;;  %v21372_v4 = vunpack.i.h.bf16 %v21304_v16  ;;  %6479 = vmatpush1.bf16.msra.mxu0 %v6341_v49  ;;  %v17386_v44 = vpop.permute.xlu0 %9868  ;;  %v21380_v49 = vld [vmem:[#allocation9_spill] sm:$0xff]  ;;  %vm21391_vm9 = vmmov %vm21374_vm5 }
 0x813   : > { %v4980_v0 = vsel %vm1413_vm1, %v4743_v57, %v4818_v33  ;;  %v21373_v48 = vunpack.i.l.bf16 %v21304_v16  ;;  %v19630_v42 = vunpack.i.h.bf16 %v16544_v32  ;;  %v17382_v33 = vsel %vm1413_vm1, %v17110_v9, %v4531_v27  ;;  %v21379_v27 = vld [vmem:[#allocation16_spill] sm:$0xff]  ;;  %vm21393_vm0 = vmmov %vm21374_vm5 }
 0x814   : > { %v17372_v10 = vsel %vm21371_vm10, %v21370_v12, %v21369_v41  ;;  %v9316_v34 = vunpack.i.h.bf16 %v21343_v62  ;;  %v9351_v38 = vunpack.i.h.bf16 %v21312_v3  ;;  %v21375_v16 = vpack.c.bf16 %v17101_v37, %v16303_v24  ;;  %6519 = vmatprep.subr.bf16.mxu1 %v6344_v31  ;;  %v21388_v24 = vld [vmem:[#allocation120_spill] sm:$0xff]  ;;  %vm21395_vm11 = vmmov %vm21366_vm8 }
 0x815   : > { %v4600_v58 = vsel %vm21374_vm5, %v21373_v48, %v21372_v4  ;;  %v21376_v19 = vunpack.i.l.bf16 %v21291_v51  ;;  %v21377_v57 = vmov %v21369_v41  ;;  %v19633_v50 = vunpack.i.l.bf16 %v21380_v49 }
 0x816   : > { %6480 = vmatprep.subr.bf16.mxu0 %v21375_v16  ;;  %v4962_v63 = vsel %vm1413_vm1, %v4600_v58, %v4672_v46  ;;  %v9386_v41 = vunpack.i.h.bf16 %v21330_v25  ;;  %v9786_v37 = vunpack.i.h.bf16 %v17034_v35  ;;  %v9785_v46 = vunpack.i.l.bf16 %v17034_v35  ;;  %v21383_v16 = vld [vmem:[#allocation64_spill] sm:$0xff]  ;;  %v21386_v35 = vld [vmem:[#allocation39_spill] sm:$0xff]  ;;  %v17422_v31 = vpop.permute.xlu0 %9898 }
 0x817   : > { %v17397_v9 = vsel %vm21378_vm3, %v21377_v57, %v21376_v19  ;;  %v6343_v12 = vpack.c.bf16 %v4980_v0, %v4962_v63  ;;  %v4675_v13 = vsel %vm1253_vm4, %v9351_v38, %v19628_v23  ;;  %v21381_v4 = vunpack.i.l.bf16 %v16544_v32  ;;  %v21384_v63 = vld [vmem:[#allocation83_spill] sm:$0xff]  ;;  %v17420_v23 = vpop.permute.xlu1 %9888 }
 0x818   : > { %vm21382_vm6 = vcmask 785408   ;;  %v9886_v58 = vunpack.i.h.bf16 %v9884_v6  ;;  %v9885_v0 = vunpack.i.l.bf16 %v9884_v6  ;;  %v21385_v19 = vpack.c.bf16 %v21383_v16, %v21384_v63 }
 0x819   : > { %v4820_v48 = vsel %vm21382_vm6, %v21381_v4, %v19630_v42  ;;  %6520 = vmatpush1.bf16.msra.mxu1 %v6343_v12  ;;  %v19631_v57 = vunpack.i.l.bf16 %v21386_v35  ;;  %v19632_v54 = vunpack.i.h.bf16 %v17090_v52  ;;  %v9790_v20 = vunpack.i.l.bf16 %v17090_v52 }
 0x81a   : > { %6481 = vmatpush1.bf16.msra.mxu0 %v21385_v19  ;;  %v21389_v4 = vpack.c.bf16 %v21387_v59, %v21388_v24  ;;  %v21390_v6 = vpack.c.bf16 %v17198_v56, %v16906_v1  ;;  %v4603_v12 = vsel %vm21391_vm9, %v9316_v34, %v19633_v50  ;;  %v21392_v16 = vunpack.i.l.bf16 %v21343_v62 }
 0x81b   : > { %v21394_v19 = vunpack.i.l.bf16 %v21312_v3  ;;  %v4745_v59 = vsel %vm21395_vm11, %v9385_v45, %v9386_v41  ;;  %v17447_v1 = vsel %vm1413_vm1, %v4603_v12, %v4675_v13  ;;  %vm21396_vm7 = vcmask 777216   ;;  %v21399_v13 = vld [vmem:[#allocation81_spill] sm:$0xff] }
 0x81c   : > { %6482 = vmatprep.subr.bf16.mxu0 %v21389_v4  ;;  %6521 = vmatprep.subr.bf16.mxu1 %v21390_v6  ;;  %v17436_v63 = vsel %vm21393_vm0, %v21392_v16, %v9316_v34  ;;  %v6165_v56 = vsel %vm21396_vm7, %v9785_v46, %v9786_v37  ;;  %v9890_v24 = vunpack.i.l.bf16 %v17420_v23  ;;  %v17452_v62 = vsel %vm1413_vm1, %v4745_v59, %v4820_v48  ;;  %vm21398_vm8 = vmmov %vm21396_vm7  ;;  %v21400_v4 = vld [vmem:[#allocation143_spill] sm:$0xff] }
 0x81d   : > { %v17441_v42 = vsel %vm1253_vm4, %v21394_v19, %v9351_v38  ;;  %v21397_v3 = vunpack.i.h.bf16 %v21368_v7  ;;  %v6147_v45 = vsel %vm21398_vm8, %v9885_v0, %v9886_v58  ;;  %v21401_v6 = vpack.c.bf16 %v21399_v13, %v21400_v4  ;;  %vm21404_vm10 = vmmov %vm21396_vm7  ;;  %v17480_v13 = vpop.permute.xlu0 %9903  ;;  %v21406_v4 = vld [vmem:[#allocation112_spill] sm:$0xff] }
 0x81e   : > { %v21402_v48 = vpack.c.bf16 %v17105_v2, %v16651_v28  ;;  %v21403_v12 = vunpack.i.h.bf16 %v17156_v53  ;;  %vm21405_vm5 = vmmov %vm21396_vm7  ;;  %v9901_v59 = vunpack.i.h.bf16 %v17422_v31  ;;  %v21409_v2 = vld [vmem:[#allocation163_spill] sm:$0xff]  ;;  %v21410_v53 = vld [vmem:[#allocation36_spill] sm:$0xff]  ;;  %v9865_v38 = vunpack.i.l.bf16 %v17266_v21 }
 0x81f   : > { %v17459_v34 = vsel %vm1253_vm4, %v21397_v3, %v19631_v57  ;;  %6483 = vmatpush1.bf16.msra.mxu0 %v21401_v6  ;;  %v6167_v19 = vsel %vm21405_vm5, %v9790_v20, %v19632_v54  ;;  %v9900_v3 = vunpack.i.l.bf16 %v17422_v31  ;;  %v17478_v57 = vpop.permute.xlu1 %9893  ;;  %v21407_v6 = vld [vmem:[#allocation114_spill] sm:$0xff]  ;;  %vm21413_vm3 = vmmov %vm21405_vm5  ;;  %v21422_v31 = vld [vmem:[#allocation119_spill] sm:$0xff]  ;;  %vm21427_vm7 = vcmask 916480  }
 0x820   : > { %6522 = vmatpush1.bf16.msra.mxu1 %v21402_v48  ;;  %v6146_v16 = vsel %vm21404_vm10, %v21403_v12, %v9885_v0  ;;  %v21408_v28 = vpack.c.bf16 %v21406_v4, %v21407_v6  ;;  %v21411_v48 = vpack.c.bf16 %v21409_v2, %v21410_v53  ;;  %v21412_v0 = vunpack.i.h.bf16 %v16951_v29  ;;  %vm21414_vm6 = vmmov %vm21413_vm3  ;;  %v21418_v53 = vld [vmem:[#allocation33_spill] sm:$0xff]  ;;  %v21421_v54 = vld [vmem:[#allocation86_spill] sm:$0xff] }
 0x821   : > { %v9895_v50 = vunpack.i.l.bf16 %v17478_v57  ;;  %v6166_v25 = vsel %vm21414_vm6, %v9786_v37, %v9790_v20  ;;  %v6400_v4 = vpack.c.bf16 %v6165_v56, %v6147_v45  ;;  %vm21415_vm9 = vmmov %vm21413_vm3  ;;  %v21416_v29 = vunpack.i.h.bf16 %v17420_v23  ;;  %v17510_v20 = vld [vmem:[%s18948_s3] sm:$0xf]  ;;  %v21437_v45 = vld [vmem:[#allocation113_spill] sm:$0xff] }
 0x822   : > { %6484 = vmatprep.subr.bf16.mxu0 %v21408_v28  ;;  %6523 = vmatprep.subr.bf16.mxu1 %v21411_v48  ;;  %v6164_v12 = vsel %vm21413_vm3, %v21412_v0, %v9785_v46  ;;  %v6148_v28 = vsel %vm21415_vm9, %v9886_v58, %v9890_v24  ;;  %vm21417_vm0 = vmmov %vm21413_vm3  ;;  %v21419_v48 = vld [vmem:[#allocation10_spill] sm:$0xff]  ;;  %v21423_v51 = vpack.c.bf16 %v21421_v54, %v21422_v31  ;;  %v21424_v37 = vunpack.i.h.bf16 %v17478_v57  ;;  %v21428_v31 = vld [vmem:[#allocation12_spill] sm:$0xff] }
 0x823   : > { %v6399_v6 = vpack.c.bf16 %v6164_v12, %v6146_v16  ;;  %v6149_v46 = vsel %vm21417_vm0, %v9890_v24, %v21416_v29  ;;  %v21420_v0 = vpack.c.bf16 %v21418_v53, %v21419_v48  ;;  %vm21425_vm11 = vmmov %vm21417_vm0  ;;  %v21426_v56 = vunpack.i.l.bf16 %v17339_v26  ;;  %v9914_v12 = vpop.permute.xlu0 %9913 }
 0x824   : > { %6524 = vmatpush1.bf16.msra.mxu1 %v21423_v51  ;;  %v6111_v58 = vsel %vm21425_vm11, %v9895_v50, %v21424_v37  ;;  %v9905_v54 = vunpack.i.l.bf16 %v17480_v13  ;;  %v17521_v51 = vpop.permute.xlu1 %9908  ;;  %v21429_v29 = vpack.c.bf16 %v21428_v31, %v20926_v14  ;;  %vm21430_vm8 = vcmask 1045504   ;;  %vm21431_vm10 = vmmov %vm21417_vm0 }
 0x825   : > { %6485 = vmatpush1.bf16.msra.mxu0 %v21420_v0  ;;  %v4746_v24 = vsel %vm21427_vm7, %v9386_v41, %v21426_v56  ;;  %v6129_v53 = vsel %vm21431_vm10, %v9900_v3, %v9901_v59  ;;  %v21432_v48 = vunpack.i.h.bf16 %v17092_v5  ;;  %vm21433_vm5 = vmmov %vm21417_vm0  ;;  %v9911_v0 = vunpack.i.h.bf16 %v17521_v51 }
 0x826   : > { %6525 = vmatprep.subr.bf16.mxu1 %v21429_v29  ;;  %7497 = vmatprep.subr.msk.bf16.mxu0 %vm21430_vm8, %v6400_v4  ;;  %v9910_v37 = vunpack.i.l.bf16 %v17521_v51  ;;  %v6401_v56 = vpack.c.bf16 %v6166_v25, %v6148_v28  ;;  %v9915_v16 = vunpack.i.l.bf16 %v9914_v12  ;;  %vm21434_vm3 = vmmov %vm21430_vm8  ;;  %v6382_v31 = vpack.c.bf16 %v6129_v53, %v6111_v58 }
 0x827   : > { %v6110_v41 = vsel %vm21433_vm5, %v21432_v48, %v9895_v50  ;;  %v6429_v14 = vsel %vm21434_vm3, %v6399_v6, 0  ;;  %v6402_v29 = vpack.c.bf16 %v6167_v19, %v6149_v46  ;;  %v21435_v4 = vunpack.i.h.bf16 %v17249_v15  ;;  %vm21436_vm6 = vmmov %vm21417_vm0 }
 0x828   : > { %7494 = vmatmul.mubr.msk.bf16.vlgmr.msra.gmra.mxu0 %vm692_vm14, %v17510_v20  ;;  %v9916_v5 = vunpack.i.h.bf16 %v9914_v12  ;;  %v21438_v50 = vpack.c.bf16 %v21437_v45, %v20937_v61  ;;  %vm21439_vm9 = vmmov %vm21417_vm0  ;;  %v21440_v6 = vunpack.i.h.bf16 %v16544_v32  ;;  %vm21441_vm0 = vcmask 785408   ;;  %v9919_v28 = vpop.permute.xlu1 %9918 }
 0x829   : > { %v6128_v2 = vsel %vm21436_vm6, %v21435_v4, %v9900_v3  ;;  %6555 = vmatpush1.bf16.msra.mxu0 %v6429_v14  ;;  %v6131_v25 = vsel %vm21439_vm9, %v9910_v37, %v9911_v0  ;;  %v9875_v15 = vunpack.i.l.bf16 %v17304_v43  ;;  %v17551_v3 = vpop.permute.xlu0 %9923  ;;  %vm21442_vm11 = vmmov %vm21434_vm3  ;;  %v21443_v58 = vunpack.i.l.bf16 %v17386_v44 }
 0x82a   : > { %6526 = vmatpush1.bf16.msra.mxu1 %v21438_v50  ;;  %v4821_v19 = vsel %vm21441_vm0, %v21440_v6, %v9865_v38  ;;  %6556 = vmatprep.subr.bf16.mxu0 %v6382_v31  ;;  %v6381_v61 = vpack.c.bf16 %v6128_v2, %v6110_v41  ;;  %v21444_v45 = vunpack.i.h.bf16 %v17339_v26  ;;  %v9921_v32 = vunpack.i.h.bf16 %v9919_v28  ;;  %vm21445_vm8 = vmmov %vm21434_vm3 }
 0x82b   : > { %7499 = vmatprep.subr.msk.bf16.mxu1 %vm21442_vm11, %v6402_v29  ;;  %v4983_v46 = vsel %vm1413_vm1, %v4746_v24, %v4821_v19  ;;  %v9920_v53 = vunpack.i.l.bf16 %v9919_v28  ;;  %v6435_v48 = vsel %vm21445_vm8, %v6401_v56, 0  ;;  %v21446_v14 = vunpack.i.h.bf16 %v17480_v13  ;;  %vm21447_vm10 = vmmov %vm21433_vm5 }
 0x82c   : > { %v4748_v12 = vsel %vm21427_vm7, %v21444_v45, %v21443_v58  ;;  %v21448_v31 = vmov 0   ;;  %v6130_v2 = vsel %vm21433_vm5, %v9901_v59, %v9910_v37  ;;  %v21449_v24 = vunpack.i.h.bf16 %v17225_v8  ;;  %vm21450_vm3 = vmmov %vm21433_vm5  ;;  %v21455_v37 = vld [vmem:[#allocation47_spill] sm:$0xff] }
 0x82d   : > { %v6113_v4 = vsel %vm21447_vm10, %v9905_v54, %v21446_v14  ;;  %6584 = vmatprep.mubr.bf16.mxu0 %v21448_v31  ;;  %v9925_v29 = vunpack.i.l.bf16 %v17551_v3  ;;  %7496 = vmatmul.mubr.msk.bf16.vlgmr.msra.gmra.mxu1 %vm692_vm14, %v17510_v20  ;;  %v21451_v56 = vunpack.i.h.bf16 %v17306_v18  ;;  %vm21452_vm6 = vmmov %vm21450_vm3  ;;  %v9926_v19 = vunpack.i.h.bf16 %v17551_v3  ;;  %v17582_v14 = vpop.permute.xlu1 %9928 }
 0x82e   : > { %v6074_v41 = vsel %vm21450_vm3, %v21449_v24, %v9915_v16  ;;  %v6384_v50 = vpack.c.bf16 %v6131_v25, %v6113_v4  ;;  %6557 = vmatpush1.bf16.msra.mxu0 %v6381_v61  ;;  %6596 = vmatpush1.bf16.msra.mxu1 %v6435_v48  ;;  %vm21453_vm9 = vmmov %vm21450_vm3  ;;  %v9325_v28 = vunpack.i.l.bf16 %v21455_v37  ;;  %v21456_v58 = vunpack.i.h.bf16 %v17478_v57  ;;  %v17584_v25 = vpop.permute.xlu0 %9938 }
 0x82f   : > { %v6092_v6 = vsel %vm21452_vm6, %v21451_v56, %v9920_v53  ;;  %v6075_v59 = vsel %vm21453_vm9, %v9915_v16, %v9916_v5  ;;  %vm21454_vm0 = vmmov %vm21450_vm3  ;;  %6625 = vmatprep.mubr.bf16.mxu1 %v21448_v31  ;;  %v9931_v61 = vunpack.i.h.bf16 %v17582_v14  ;;  %v9930_v16 = vunpack.i.l.bf16 %v17582_v14 }
 0x830   : > { %v6093_v8 = vsel %vm21454_vm0, %v9920_v53, %v9921_v32  ;;  %vm21457_vm11 = vmmov %vm21454_vm0  ;;  %6597 = vmatprep.subr.bf16.mxu1 %v6384_v50  ;;  %v6363_v4 = vpack.c.bf16 %v6092_v6, %v6074_v41  ;;  %v21458_v57 = vunpack.i.h.bf16 %v17266_v21  ;;  %vm21459_vm7 = vcmask 785408  }
 0x831   : > { %v6112_v45 = vsel %vm21457_vm11, %v21456_v58, %v9905_v54  ;;  %v6364_v18 = vpack.c.bf16 %v6093_v8, %v6075_v59  ;;  %v21460_v48 = vunpack.i.h.bf16 %v17339_v26  ;;  %v21461_v24 = vunpack.i.l.bf16 %v17339_v26  ;;  %vm21463_vm10 = vmmov %vm21454_vm0 }
 0x832   : > { %v6383_v53 = vpack.c.bf16 %v6130_v2, %v6112_v45  ;;  %v4823_v54 = vsel %vm21459_vm7, %v21458_v57, %v9875_v15  ;;  %vm21462_vm8 = vcmask 916480   ;;  %v6076_v41 = vsel %vm21463_vm10, %v9916_v5, %v9925_v29  ;;  %vm21464_vm5 = vmmov %vm21454_vm0  ;;  %v17610_v5 = vpop.permute.xlu1 %9933  ;;  %v17612_v58 = vpop.permute.xlu0 %9943 }
 0x833   : > { %v4747_v50 = vsel %vm21462_vm8, %v21461_v24, %v21460_v48  ;;  %6558 = vmatprep.subr.bf16.mxu0 %v6364_v18  ;;  %v6346_v56 = vpack.c.bf16 %v4983_v46, %v17447_v1  ;;  %v4985_v6 = vsel %vm1413_vm1, %v4748_v12, %v4823_v54  ;;  %v19639_v2 = vunpack.i.l.bf16 %v21379_v27  ;;  %vm21465_vm3 = vmmov %vm21454_vm0 }
 0x834   : > { %v6094_v59 = vsel %vm21464_vm5, %v9921_v32, %v9930_v16  ;;  %6559 = vmatpush1.bf16.msra.mxu0 %v6363_v4  ;;  %6598 = vmatpush1.bf16.msra.mxu1 %v6383_v53  ;;  %v6077_v8 = vsel %vm21465_vm3, %v9925_v29, %v9926_v19  ;;  %vm21466_vm6 = vmmov %vm21454_vm0  ;;  %v4964_v46 = vsel %vm1413_vm1, %v17436_v63, %v17441_v42  ;;  %v21467_v32 = vunpack.i.h.bf16 %v21380_v49 }
 0x835   : > { %v6095_v26 = vsel %vm21466_vm6, %v9930_v16, %v9931_v61  ;;  %6560 = vmatprep.subr.bf16.mxu0 %v6346_v56  ;;  %v6365_v12 = vpack.c.bf16 %v6094_v59, %v6076_v41  ;;  %vm21468_vm9 = vcmask 932864   ;;  %v21469_v45 = vunpack.i.h.bf16 %v21368_v7  ;;  %vm21472_vm0 = vmmov %vm21459_vm7  ;;  %v21477_v59 = vld [vmem:[#allocation11_spill] sm:$0xff] }
 0x836   : > { %v6366_v1 = vpack.c.bf16 %v6095_v26, %v6077_v8  ;;  %v4605_v29 = vsel %vm21468_vm9, %v21467_v32, %v9325_v28  ;;  %v21470_v18 = vunpack.i.l.bf16 %v21368_v7  ;;  %v21471_v16 = vmov %v21458_v57  ;;  %vm21475_vm11 = vmmov %vm21468_vm9  ;;  %v17647_v8 = vpop.permute.xlu1 %9953  ;;  %v17649_v26 = vpop.permute.xlu0 %9948 }
 0x837   : > { %v4822_v53 = vsel %vm21472_vm0, %v9865_v38, %v21471_v16  ;;  %v6345_v42 = vpack.c.bf16 %v17452_v62, %v4964_v46  ;;  %v4967_v63 = vsel %vm1413_vm1, %v4605_v29, %v17459_v34  ;;  %v21473_v57 = vmov %v21467_v32  ;;  %v21476_v38 = vld [vmem:[#allocation85_spill] sm:$0xff]  ;;  %vm21481_vm8 = vmmov %vm21468_vm9  ;;  %v21485_v16 = vld [vmem:[#allocation58_spill] sm:$0xff] }
 0x838   : > { %v4676_v4 = vsel %vm1253_vm4, %v21470_v18, %v21469_v45  ;;  %v21474_v54 = vunpack.i.l.bf16 %v21380_v49  ;;  %v9326_v7 = vunpack.i.h.bf16 %v21455_v37  ;;  %6599 = vmatprep.subr.bf16.mxu1 %v6366_v1  ;;  %v6348_v24 = vpack.c.bf16 %v4985_v6, %v4967_v63  ;;  %vm21484_vm10 = vmmov %vm21465_vm3  ;;  %v21488_v63 = vld [vmem:[#allocation57_spill] sm:$0xff] }
 0x839   : > { %v4984_v41 = vsel %vm1413_vm1, %v4747_v50, %v4822_v53  ;;  %v9361_v21 = vunpack.i.h.bf16 %v21386_v35  ;;  %v19638_v56 = vunpack.i.l.bf16 %v21476_v38  ;;  %v9941_v62 = vunpack.i.h.bf16 %v17584_v25  ;;  %6561 = vmatpush1.bf16.msra.mxu0 %v6345_v42  ;;  %6600 = vmatpush1.bf16.msra.mxu1 %v6365_v12  ;;  %v21486_v53 = vld [vmem:[#allocation51_spill] sm:$0xff]  ;;  %vm21490_vm5 = vmmov %vm21465_vm3 }
 0x83a   : > { %v4604_v48 = vsel %vm21475_vm11, %v21474_v54, %v21473_v57  ;;  %v9940_v34 = vunpack.i.l.bf16 %v17584_v25  ;;  %v19637_v49 = vunpack.i.l.bf16 %v21477_v59  ;;  %v21478_v6 = vpack.c.bf16 %v17209_v39, %v16910_v47  ;;  %6601 = vmatprep.subr.bf16.mxu1 %v6348_v24  ;;  %vm21498_vm6 = vmmov %vm21465_vm3 }
 0x83b   : > { %v6327_v50 = vpack.c.bf16 %v17220_v40, %v16931_v30  ;;  %v4966_v1 = vsel %vm1413_vm1, %v4604_v48, %v4676_v4  ;;  %v17660_v25 = vsel %vm1413_vm1, %v17041_v17, %v17194_v60  ;;  %v6330_v12 = vpack.c.bf16 %v17382_v33, %v16965_v22  ;;  %v21482_v40 = vld [vmem:[#allocation54_spill] sm:$0xff]  ;;  %v17704_v4 = vpop.permute.xlu0 %9958  ;;  %vm21499_vm9 = vmmov %vm21465_vm3 }
 0x83c   : > { %6562 = vmatprep.subr.bf16.mxu0 %v21478_v6  ;;  %v6347_v46 = vpack.c.bf16 %v4984_v41, %v4966_v1  ;;  %v17667_v47 = vsel %vm1413_vm1, %v17120_v11, %v17397_v9  ;;  %v17672_v30 = vsel %vm1413_vm1, %v17086_v36, %v17372_v10  ;;  %v21479_v39 = vunpack.i.h.bf16 %v21379_v27  ;;  %vm21500_vm0 = vmmov %vm21465_vm3 }
 0x83d   : > { %vm21480_vm7 = vcmask 15360   ;;  %v9881_v17 = vunpack.i.h.bf16 %v17337_v55  ;;  %v9880_v22 = vunpack.i.l.bf16 %v17337_v55  ;;  %v4607_v11 = vsel %vm21481_vm8, %v9326_v7, %v19637_v49  ;;  %6563 = vmatpush1.bf16.msra.mxu0 %v6327_v50  ;;  %vm21507_vm11 = vmmov %vm21500_vm0 }
 0x83e   : > { %v17679_v60 = vsel %vm21480_vm7, %v19639_v2, %v21479_v39  ;;  %v21483_v10 = vunpack.i.l.bf16 %v21386_v35  ;;  %v6151_v9 = vsel %vm21484_vm10, %v9940_v34, %v9941_v62  ;;  %6602 = vmatpush1.bf16.msra.mxu1 %v6347_v46  ;;  %v4679_v55 = vsel %vm1253_vm4, %v9361_v21, %v19638_v56  ;;  %v17702_v35 = vpop.permute.xlu1 %9963  ;;  %v21492_v39 = vld [vmem:[#allocation100_spill] sm:$0xff]  ;;  %vm21509_vm7 = vmmov %vm21500_vm0  ;;  %v21521_v56 = vld [vmem:[#allocation178_spill] sm:$0xff] }
 0x83f   : > { %v19636_v32 = vunpack.i.h.bf16 %v17610_v5  ;;  %v9935_v29 = vunpack.i.l.bf16 %v17610_v5  ;;  %v19635_v45 = vunpack.i.h.bf16 %v17612_v58  ;;  %v9945_v18 = vunpack.i.l.bf16 %v17612_v58  ;;  %6603 = vmatprep.subr.bf16.mxu1 %v6330_v12  ;;  %v21491_v12 = vld [vmem:[#allocation146_spill] sm:$0xff]  ;;  %vm21510_vm8 = vmmov %vm21500_vm0  ;;  %v21522_v2 = vld [vmem:[#allocation145_spill] sm:$0xff] }
 0x840   : > { %v17692_v33 = vsel %vm1253_vm4, %v21483_v10, %v9361_v21  ;;  %v21487_v42 = vpack.c.bf16 %v21485_v16, %v21486_v53  ;;  %v9370_v57 = vunpack.i.l.bf16 %v21488_v63  ;;  %v9955_v54 = vunpack.i.l.bf16 %v17647_v8  ;;  %v21494_v16 = vld [vmem:[#allocation27_spill] sm:$0xff]  ;;  %v21495_v53 = vld [vmem:[#allocation48_spill] sm:$0xff]  ;;  %vm21511_vm10 = vmmov %vm21500_vm0 }
 0x841   : > { %v9950_v48 = vunpack.i.l.bf16 %v17649_v26  ;;  %v21489_v24 = vunpack.i.h.bf16 %v17420_v23  ;;  %v9366_v21 = vunpack.i.h.bf16 %v21476_v38  ;;  %v6169_v6 = vsel %vm21465_vm3, %v9880_v22, %v9881_v17  ;;  %vm21513_vm3 = vmmov %vm21500_vm0 }
 0x842   : > { %6564 = vmatprep.subr.bf16.mxu0 %v21487_v42  ;;  %v9956_v50 = vunpack.i.h.bf16 %v17647_v8  ;;  %v9951_v1 = vunpack.i.h.bf16 %v17649_v26  ;;  %v9876_v46 = vunpack.i.h.bf16 %v17304_v43  ;;  %v21493_v10 = vpack.c.bf16 %v21491_v12, %v21492_v39  ;;  %v17739_v39 = vpop.permute.xlu1 %9973 }
 0x843   : > { %v6150_v41 = vsel %vm21490_vm5, %v21489_v24, %v9940_v34  ;;  %v21496_v42 = vpack.c.bf16 %v21494_v16, %v21495_v53  ;;  %v6404_v23 = vpack.c.bf16 %v6169_v6, %v6151_v9  ;;  %v21497_v34 = vunpack.i.h.bf16 %v17090_v52  ;;  %v17741_v9 = vpop.permute.xlu0 %9968  ;;  %v21501_v52 = vld [vmem:[#allocation96_spill] sm:$0xff]  ;;  %v21502_v6 = vld [vmem:[#allocation75_spill] sm:$0xff]  ;;  %vm21512_vm5 = vmmov %vm21500_vm0 }
 0x844   : > { %6565 = vmatpush1.bf16.msra.mxu0 %v21493_v10  ;;  %v17730_v36 = vsel %vm1413_vm1, %v4607_v11, %v4679_v55  ;;  %v9871_v8 = vunpack.i.h.bf16 %v17386_v44  ;;  %v6171_v26 = vsel %vm21499_vm9, %v9935_v29, %v19636_v32  ;;  %v6153_v12 = vsel %vm21500_vm0, %v9945_v18, %v19635_v45  ;;  %v21504_v11 = vld [vmem:[#allocation186_spill] sm:$0xff]  ;;  %v21505_v55 = vld [vmem:[#allocation140_spill] sm:$0xff] }
 0x845   : > { %6604 = vmatpush1.bf16.msra.mxu1 %v21496_v42  ;;  %v6168_v24 = vsel %vm21498_vm6, %v21497_v34, %v9880_v22  ;;  %v21503_v22 = vpack.c.bf16 %v21501_v52, %v21502_v6  ;;  %v21506_v10 = vpack.c.bf16 %v21504_v11, %v21505_v55  ;;  %v6132_v53 = vsel %vm21507_vm11, %v9911_v0, %v9955_v54  ;;  %v21514_v11 = vld [vmem:[#allocation68_spill] sm:$0xff] }
 0x846   : > { %v6403_v16 = vpack.c.bf16 %v6168_v24, %v6150_v41  ;;  %v21508_v42 = vunpack.i.h.bf16 %v17480_v13  ;;  %v6152_v45 = vsel %vm21510_vm8, %v9941_v62, %v9945_v18  ;;  %v6170_v32 = vsel %vm21511_vm10, %v9881_v17, %v9935_v29  ;;  %v21515_v62 = vld [vmem:[#allocation154_spill] sm:$0xff]  ;;  %v21517_v17 = vld [vmem:[#allocation15_spill] sm:$0xff]  ;;  %v21518_v29 = vld [vmem:[#allocation148_spill] sm:$0xff] }
 0x847   : > { %6566 = vmatprep.subr.bf16.mxu0 %v21503_v22  ;;  %6605 = vmatprep.subr.bf16.mxu1 %v21506_v10  ;;  %v9966_v52 = vunpack.i.h.bf16 %v17702_v35  ;;  %v9965_v6 = vunpack.i.l.bf16 %v17702_v35  ;;  %v6115_v22 = vsel %vm21512_vm5, %v9950_v48, %v9951_v1  ;;  %v6133_v41 = vsel %vm21513_vm3, %v9955_v54, %v9956_v50  ;;  %v17778_v49 = vpop.permute.xlu0 %9978  ;;  %vm21529_vm8 = vmmov %vm21513_vm3  ;;  %v21612_v35 = vld [vmem:[#allocation24_spill] sm:$0xff] }
 0x848   : > { %v6114_v34 = vsel %vm21509_vm7, %v21508_v42, %v9950_v48  ;;  %v9961_v51 = vunpack.i.h.bf16 %v17704_v4  ;;  %v9960_v0 = vunpack.i.l.bf16 %v17704_v4  ;;  %v9971_v13 = vunpack.i.h.bf16 %v17741_v9  ;;  %v17776_v42 = vpop.permute.xlu1 %9983  ;;  %vm21528_vm7 = vmmov %vm21513_vm3 }
 0x849   : > { %v9970_v24 = vunpack.i.l.bf16 %v17741_v9  ;;  %v21516_v18 = vpack.c.bf16 %v21514_v11, %v21515_v62  ;;  %v21519_v55 = vpack.c.bf16 %v21517_v17, %v21518_v29  ;;  %vm21520_vm6 = vcmask 785408   ;;  %vm21533_vm10 = vmmov %vm21513_vm3 }
 0x84a   : > { %v4824_v54 = vsel %vm21520_vm6, %v9875_v15, %v9876_v46  ;;  %v9976_v48 = vunpack.i.h.bf16 %v17739_v39  ;;  %v9975_v10 = vunpack.i.l.bf16 %v17739_v39  ;;  %v21523_v11 = vpack.c.bf16 %v21521_v56, %v21522_v2  ;;  %vm21534_vm5 = vmmov %vm21513_vm3 }
 0x84b   : > { %6567 = vmatpush1.bf16.msra.mxu0 %v21516_v18  ;;  %6606 = vmatpush1.bf16.msra.mxu1 %v21519_v55  ;;  %vm21524_vm9 = vcmask 1045504   ;;  %v6405_v62 = vpack.c.bf16 %v6170_v32, %v6152_v45  ;;  %v21525_v18 = vunpack.i.l.bf16 %v17386_v44  ;;  %vm21526_vm0 = vcmask 916480   ;;  %v21530_v45 = vld [vmem:[#allocation179_spill] sm:$0xff]  ;;  %v21531_v44 = vld [vmem:[#allocation105_spill] sm:$0xff] }
 0x84c   : > { %6607 = vmatprep.subr.bf16.mxu1 %v21523_v11  ;;  %7501 = vmatprep.subr.msk.bf16.mxu0 %vm21524_vm9, %v6404_v23  ;;  %v9985_v15 = vunpack.i.l.bf16 %v17776_v42  ;;  %v9980_v17 = vunpack.i.l.bf16 %v17778_v49  ;;  %vm21527_vm11 = vmmov %vm21524_vm9  ;;  %v6134_v29 = vsel %vm21528_vm7, %v9956_v50, %v9965_v6  ;;  %v6386_v2 = vpack.c.bf16 %v6133_v41, %v6115_v22 }
 0x84d   : > { %v4749_v43 = vsel %vm21526_vm0, %v21525_v18, %v9871_v8  ;;  %v6441_v39 = vsel %vm21527_vm11, %v6403_v16, 0  ;;  %v6406_v56 = vpack.c.bf16 %v6171_v26, %v6153_v12  ;;  %v6385_v55 = vpack.c.bf16 %v6132_v53, %v6114_v34  ;;  %vm21535_vm9 = vmmov %vm21526_vm0  ;;  %v17808_v12 = vpop.permute.xlu1 %9993  ;;  %v17810_v53 = vpop.permute.xlu0 %9988 }
 0x84e   : > { %7498 = vmatmul.mubr.msk.bf16.vlgmr.msra.gmra.mxu0 %vm692_vm14, %v17510_v20  ;;  %v6116_v32 = vsel %vm21529_vm8, %v9951_v1, %v9960_v0  ;;  %v21532_v23 = vpack.c.bf16 %v21530_v45, %v21531_v44  ;;  %v6079_v11 = vsel %vm21533_vm10, %v9970_v24, %v9971_v13  ;;  %v6117_v50 = vsel %vm21534_vm5, %v9960_v0, %v9961_v51  ;;  %vm21536_vm0 = vmmov %vm21527_vm11 }
 0x84f   : > { %v6135_v16 = vsel %vm21513_vm3, %v9965_v6, %v9966_v52  ;;  %v4825_v26 = vsel %vm21520_vm6, %v9876_v46, %v9985_v15  ;;  %v4750_v1 = vsel %vm21535_vm9, %v9871_v8, %v9980_v17  ;;  %6637 = vmatpush1.bf16.msra.mxu0 %v6441_v39  ;;  %vm21537_vm11 = vmmov %vm21536_vm0  ;;  %v9996_v41 = vunpack.i.h.bf16 %v17808_v12  ;;  %6666 = vmatprep.mubr.bf16.mxu0 %v21448_v31 }
 0x850   : > { %6608 = vmatpush1.bf16.msra.mxu1 %v21532_v23  ;;  %v6447_v34 = vsel %vm21537_vm11, %v6405_v62, 0  ;;  %vm21538_vm7 = vmmov %vm21513_vm3  ;;  %v9995_v0 = vunpack.i.l.bf16 %v17808_v12  ;;  %v9991_v6 = vunpack.i.h.bf16 %v17810_v53  ;;  %v9990_v46 = vunpack.i.l.bf16 %v17810_v53  ;;  %6638 = vmatprep.subr.bf16.mxu0 %v6386_v2 }
 0x851   : > { %7503 = vmatprep.subr.msk.bf16.mxu1 %vm21536_vm0, %v6406_v56  ;;  %v6097_v22 = vsel %vm21538_vm7, %v9975_v10, %v9976_v48  ;;  %vm21539_vm8 = vmmov %vm21513_vm3  ;;  %v9986_v18 = vunpack.i.h.bf16 %v17776_v42  ;;  %v6388_v39 = vpack.c.bf16 %v6135_v16, %v6117_v50  ;;  %v9981_v56 = vunpack.i.h.bf16 %v17778_v49 }
 0x852   : > { %v6096_v8 = vsel %vm21539_vm8, %v9931_v61, %v9975_v10  ;;  %vm21540_vm10 = vmmov %vm21513_vm3  ;;  %v6368_v2 = vpack.c.bf16 %v6097_v22, %v6079_v11  ;;  %v6099_v3 = vsel %vm21513_vm3, %v9995_v0, %v9996_v41  ;;  %v21542_v61 = vld [vmem:[#allocation78_spill] sm:$0xff]  ;;  %v17839_v10 = vpop.permute.xlu0 %4729  ;;  %v4987_v49 = vsel %vm1413_vm1, %v4750_v1, %v4825_v26 }
 0x853   : > { %v6078_v62 = vsel %vm21540_vm10, %v9926_v19, %v9970_v24  ;;  %7500 = vmatmul.mubr.msk.bf16.vlgmr.msra.gmra.mxu1 %vm692_vm14, %v17510_v20  ;;  %vm21541_vm5 = vmmov %vm21513_vm3  ;;  %v9335_v19 = vunpack.i.l.bf16 %v21542_v61  ;;  %6639 = vmatpush1.bf16.msra.mxu0 %v6385_v55  ;;  %v17837_v24 = vpop.permute.xlu1 %4802  ;;  %v4986_v42 = vsel %vm1413_vm1, %v4749_v43, %v4824_v54  ;;  %v4681_v45 = vsel %vm1253_vm4, %v9366_v21, %v9370_v57 }
 0x854   : > { %6678 = vmatpush1.bf16.msra.mxu1 %v6447_v34  ;;  %v6081_v14 = vsel %vm21541_vm5, %v9990_v46, %v9991_v6  ;;  %v9331_v44 = vunpack.i.h.bf16 %v21477_v59  ;;  %v4827_v55 = vsel %vm21520_vm6, %v9986_v18, %v17837_v24  ;;  %v4752_v23 = vsel %vm21535_vm9, %v9981_v56, %v17839_v10  ;;  %6640 = vmatprep.subr.bf16.mxu0 %v6368_v2  ;;  %vm21543_vm0 = vmmov %vm21513_vm3 }
 0x855   : > { %6679 = vmatprep.subr.bf16.mxu1 %v6388_v39  ;;  %v6387_v11 = vpack.c.bf16 %v6134_v29, %v6116_v32  ;;  %6707 = vmatprep.mubr.bf16.mxu1 %v21448_v31  ;;  %v6098_v54 = vsel %vm21543_vm0, %v9976_v48, %v9995_v0  ;;  %vm21544_vm11 = vmmov %vm21543_vm0  ;;  %v6367_v50 = vpack.c.bf16 %v6096_v8, %v6078_v62  ;;  %v9300_v29 = vunpack.i.l.bf16 %v21482_v40 }
 0x856   : > { %v6080_v43 = vsel %vm21544_vm11, %v9971_v13, %v9990_v46  ;;  %v6370_v16 = vpack.c.bf16 %v6099_v3, %v6081_v14  ;;  %vm21545_vm7 = vmmov %vm21520_vm6  ;;  %v4989_v34 = vsel %vm1413_vm1, %v4752_v23, %v4827_v55  ;;  %v6350_v22 = vpack.c.bf16 %v4987_v49, %v17730_v36  ;;  %v17870_v48 = vpop.permute.xlu0 %9998  ;;  %v21557_v3 = vld [vmem:[#allocation137_spill] sm:$0xff] }
 0x857   : > { %v4826_v26 = vsel %vm21545_vm7, %v9985_v15, %v9986_v18  ;;  %vm21546_vm8 = vmmov %vm21535_vm9  ;;  %vm21547_vm10 = vcmask 932864   ;;  %6641 = vmatpush1.bf16.msra.mxu0 %v6367_v50  ;;  %v17868_v13 = vpop.permute.xlu1 %10003  ;;  %v21549_v36 = vunpack.i.l.bf16 %v21379_v27  ;;  %vm21552_vm3 = vcmask 15360   ;;  %v21554_v18 = vld [vmem:[#allocation52_spill] sm:$0xff] }
 0x858   : > { %v4751_v1 = vsel %vm21546_vm8, %v9980_v17, %v9981_v56  ;;  %6680 = vmatpush1.bf16.msra.mxu1 %v6387_v11  ;;  %v4606_v9 = vsel %vm21547_vm10, %v9325_v28, %v9326_v7  ;;  %vm21548_vm5 = vmmov %vm21547_vm10  ;;  %v21550_v17 = vld [vmem:[#allocation155_spill] sm:$0xff]  ;;  %v21553_v37 = vunpack.i.l.bf16 %v21476_v38  ;;  %v6369_v7 = vpack.c.bf16 %v6098_v54, %v6080_v43  ;;  %6642 = vmatprep.subr.bf16.mxu0 %v6350_v22  ;;  %v21560_v11 = vld [vmem:[#allocation70_spill] sm:$0xff] }
 0x859   : > { %6681 = vmatprep.subr.bf16.mxu1 %v6370_v16  ;;  %v4609_v15 = vsel %vm21548_vm5, %v9331_v44, %v9335_v19  ;;  %v21551_v32 = vunpack.i.h.bf16 %v21550_v17  ;;  %v4968_v46 = vsel %vm1413_vm1, %v4606_v9, %v17692_v33  ;;  %v6332_v39 = vpack.c.bf16 %v17667_v47, %v21554_v18  ;;  %vm21556_vm6 = vmmov %vm21548_vm5  ;;  %v21564_v16 = vld [vmem:[#allocation56_spill] sm:$0xff]  ;;  %v21568_v22 = vld [vmem:[#allocation26_spill] sm:$0xff] }
 0x85a   : > { %v4680_v28 = vsel %vm1253_vm4, %v21553_v37, %v9366_v21  ;;  %v4971_v8 = vsel %vm1413_vm1, %v4609_v15, %v4681_v45  ;;  %v6349_v62 = vpack.c.bf16 %v4986_v42, %v4968_v46  ;;  %v4988_v2 = vsel %vm1413_vm1, %v4751_v1, %v4826_v26  ;;  %vm21559_vm9 = vmmov %vm21552_vm3  ;;  %v21574_v17 = vld [vmem:[#allocation23_spill] sm:$0xff] }
 0x85b   : > { %v4535_v0 = vsel %vm21552_vm3, %v21551_v32, %v21549_v36  ;;  %v6352_v56 = vpack.c.bf16 %v4989_v34, %v4971_v8  ;;  %v21555_v14 = vunpack.i.l.bf16 %v21477_v59  ;;  %v10005_v21 = vunpack.i.l.bf16 %v17868_v13  ;;  %v17903_v59 = vpop.permute.xlu1 %10013  ;;  %vm21573_vm8 = vmmov %vm21552_vm3 }
 0x85c   : > { %6682 = vmatpush1.bf16.msra.mxu1 %v6369_v7  ;;  %v4953_v49 = vsel %vm1413_vm1, %v21557_v3, %v4535_v0  ;;  %v21558_v33 = vunpack.i.h.bf16 %v21379_v27  ;;  %v10006_v45 = vunpack.i.h.bf16 %v17868_v13  ;;  %v10001_v47 = vunpack.i.h.bf16 %v17870_v48  ;;  %6643 = vmatpush1.bf16.msra.mxu0 %v6349_v62  ;;  %v21575_v0 = vld [vmem:[#allocation141_spill] sm:$0xff] }
 0x85d   : > { %v4608_v38 = vsel %vm21556_vm6, %v21555_v14, %v9331_v44  ;;  %v10000_v55 = vunpack.i.l.bf16 %v17870_v48  ;;  %v17905_v44 = vpop.permute.xlu0 %10008  ;;  %6683 = vmatprep.subr.bf16.mxu1 %v6352_v56  ;;  %v21561_v54 = vunpack.i.h.bf16 %v21560_v11  ;;  %v21562_v27 = vunpack.i.l.bf16 %v21560_v11  ;;  %6644 = vmatprep.subr.bf16.mxu0 %v6332_v39 }
 0x85e   : > { %v4537_v42 = vsel %vm21559_vm9, %v21558_v33, %v9300_v29  ;;  %v4970_v23 = vsel %vm1413_vm1, %v4608_v38, %v4680_v28  ;;  %vm21563_vm0 = vcmask 23552   ;;  %v21565_v26 = vunpack.i.l.bf16 %v21564_v16  ;;  %v21576_v28 = vld [vmem:[#allocation3_spill] sm:$0xff] }
 0x85f   : > { %v4462_v43 = vsel %vm21563_vm0, %v21562_v27, %v21561_v54  ;;  %v6351_v50 = vpack.c.bf16 %v4988_v2, %v4970_v23  ;;  %v21566_v1 = vmov %v21561_v54  ;;  %vm21567_vm11 = vmmov %vm21563_vm0  ;;  %v21569_v9 = vunpack.i.l.bf16 %v21568_v22  ;;  %v17954_v14 = vpop.permute.xlu1 %10023  ;;  %v21584_v33 = vld [vmem:[#allocation195_spill] sm:$0xff]  ;;  %v21587_v27 = vld [vmem:[#allocation5_spill] sm:$0xff] }
 0x860   : > { %v4463_v34 = vsel %vm21567_vm11, %v21566_v1, %v21565_v26  ;;  %v21570_v13 = vunpack.i.h.bf16 %v21564_v16  ;;  %vm21571_vm7 = vmmov %vm21563_vm0  ;;  %v21572_v15 = vunpack.i.h.bf16 %v21482_v40  ;;  %v6331_v32 = vpack.c.bf16 %v17672_v30, %v21574_v17  ;;  %v21579_v30 = vld [vmem:[#allocation4_spill] sm:$0xff]  ;;  %v21589_v16 = vld [vmem:[#allocation50_spill] sm:$0xff] }
 0x861   : > { %v6334_v37 = vpack.c.bf16 %v4953_v49, %v21575_v0  ;;  %v6333_v7 = vpack.c.bf16 %v17660_v25, %v21576_v28  ;;  %v9336_v46 = vunpack.i.h.bf16 %v21542_v61  ;;  %v21577_v8 = vunpack.i.h.bf16 %v17610_v5  ;;  %6684 = vmatpush1.bf16.msra.mxu1 %v6351_v50  ;;  %v17956_v38 = vpop.permute.xlu0 %10018  ;;  %v21590_v1 = vld [vmem:[#allocation144_spill] sm:$0xff]  ;;  %vm21593_vm0 = vmmov %vm21573_vm8  ;;  %v21594_v17 = vld [vmem:[#allocation66_spill] sm:$0xff] }
 0x862   : > { %v17923_v48 = vsel %vm21571_vm7, %v21570_v13, %v21569_v9  ;;  %v17928_v36 = vsel %vm21573_vm8, %v9300_v29, %v21572_v15  ;;  %vm21578_vm10 = vcmask 777216   ;;  %v17942_v18 = vsel %vm1413_vm1, %v4463_v34, %v4537_v42  ;;  %6645 = vmatpush1.bf16.msra.mxu0 %v6331_v32  ;;  %v21595_v61 = vld [vmem:[#allocation196_spill] sm:$0xff] }
 0x863   : > { %v17939_v62 = vsel %vm21578_vm10, %v21577_v8, %v10005_v21  ;;  %v17946_v29 = vsel %vm1413_vm1, %v4462_v43, %v17679_v60  ;;  %v8794_v39 = vunpack.i.l.bf16 %v21579_v30  ;;  %vm21580_vm5 = vmmov %vm21578_vm10  ;;  %v21581_v25 = vunpack.i.h.bf16 %v17612_v58  ;;  %6685 = vmatprep.subr.bf16.mxu1 %v6334_v37  ;;  %v21585_v58 = vld [vmem:[#allocation157_spill] sm:$0xff]  ;;  %v21596_v37 = vld [vmem:[#allocation176_spill] sm:$0xff]  ;;  %v17989_v28 = vpop.permute.xlu1 %10033 }
 0x864   : > { %v6173_v56 = vsel %vm21580_vm5, %v10005_v21, %v10006_v45  ;;  %vm21582_vm3 = vmmov %vm21580_vm5  ;;  %v10016_v3 = vunpack.i.h.bf16 %v17903_v59  ;;  %v10015_v60 = vunpack.i.l.bf16 %v17903_v59  ;;  %v10011_v49 = vunpack.i.h.bf16 %v17905_v44  ;;  %v21598_v8 = vld [vmem:[#allocation189_spill] sm:$0xff] }
 0x865   : > { %v6154_v2 = vsel %vm21582_vm3, %v21581_v25, %v10000_v55  ;;  %vm21583_vm6 = vmmov %vm21582_vm3  ;;  %v10010_v21 = vunpack.i.l.bf16 %v17905_v44  ;;  %v21586_v42 = vpack.c.bf16 %v21584_v33, %v21585_v58  ;;  %v10025_v23 = vunpack.i.l.bf16 %v17954_v14  ;;  %6686 = vmatpush1.bf16.msra.mxu1 %v6333_v7  ;;  %v17991_v7 = vpop.permute.xlu0 %10028  ;;  %v21599_v25 = vld [vmem:[#allocation136_spill] sm:$0xff]  ;;  %v21605_v58 = vld [vmem:[#allocation181_spill] sm:$0xff] }
 0x866   : > { %v6155_v5 = vsel %vm21583_vm6, %v10000_v55, %v10001_v47  ;;  %v10026_v55 = vunpack.i.h.bf16 %v17954_v14  ;;  %v10021_v11 = vunpack.i.h.bf16 %v17956_v38  ;;  %v10020_v54 = vunpack.i.l.bf16 %v17956_v38  ;;  %vm21601_vm11 = vmmov %vm21582_vm3 }
 0x867   : > { %6646 = vmatprep.subr.bf16.mxu0 %v21586_v42  ;;  %v9340_v43 = vunpack.i.l.bf16 %v21587_v27  ;;  %vm21588_vm9 = vcmask 932864   ;;  %v6336_v26 = vpack.c.bf16 %v17942_v18, %v21589_v16  ;;  %v21591_v34 = vunpack.i.l.bf16 %v21590_v1  ;;  %vm21602_vm7 = vmmov %vm21582_vm3  ;;  %v21606_v42 = vld [vmem:[#allocation80_spill] sm:$0xff] }
 0x868   : > { %v17973_v50 = vsel %vm21588_vm9, %v9335_v19, %v9336_v46  ;;  %v21592_v9 = vmov %v21572_v15  ;;  %v9371_v15 = vunpack.i.h.bf16 %v21488_v63  ;;  %v9375_v32 = vunpack.i.l.bf16 %v21594_v17  ;;  %vm21603_vm8 = vmmov %vm21582_vm3  ;;  %v21658_v16 = vld [vmem:[#allocation172_spill] sm:$0xff] }
 0x869   : > { %v17982_v13 = vsel %vm21593_vm0, %v21592_v9, %v21591_v34  ;;  %v6408_v0 = vpack.c.bf16 %v6173_v56, %v6155_v5  ;;  %v21597_v19 = vpack.c.bf16 %v21595_v61, %v21596_v37  ;;  %v21600_v14 = vpack.c.bf16 %v21598_v8, %v21599_v25  ;;  %vm21604_vm10 = vmmov %vm21582_vm3  ;;  %v21611_v37 = vld [vmem:[#allocation197_spill] sm:$0xff]  ;;  %v18032_v8 = vpop.permute.xlu1 %10043  ;;  %v18034_v25 = vpop.permute.xlu0 %10038 }
 0x86a   : > { %v6407_v40 = vpack.c.bf16 %v17939_v62, %v6154_v2  ;;  %v6174_v38 = vsel %vm21601_vm11, %v10006_v45, %v10015_v60  ;;  %v6175_v56 = vsel %vm21602_vm7, %v10015_v60, %v10016_v3  ;;  %v6156_v5 = vsel %vm21603_vm8, %v10001_v47, %v10010_v21  ;;  %vm21608_vm5 = vmmov %vm21582_vm3 }
 0x86b   : > { %6647 = vmatpush1.bf16.msra.mxu0 %v21597_v19  ;;  %6687 = vmatprep.subr.bf16.mxu1 %v21600_v14  ;;  %v6157_v33 = vsel %vm21604_vm10, %v10010_v21, %v10011_v49  ;;  %v21607_v34 = vpack.c.bf16 %v21605_v58, %v21606_v42  ;;  %v6136_v62 = vsel %vm21608_vm5, %v9966_v52, %v10025_v23  ;;  %vm21609_vm6 = vmmov %vm21582_vm3  ;;  %v10036_v60 = vunpack.i.h.bf16 %v17989_v28  ;;  %v21617_v14 = vld [vmem:[#allocation182_spill] sm:$0xff]  ;;  %v21618_v58 = vld [vmem:[#allocation59_spill] sm:$0xff] }
 0x86c   : > { %v6118_v45 = vsel %vm21582_vm3, %v9961_v51, %v10020_v54  ;;  %v6119_v2 = vsel %vm21609_vm6, %v10020_v54, %v10021_v11  ;;  %vm21610_vm9 = vmmov %vm21582_vm3  ;;  %v10035_v21 = vunpack.i.l.bf16 %v17989_v28  ;;  %v10031_v9 = vunpack.i.h.bf16 %v17991_v7  ;;  %v21614_v51 = vld [vmem:[#allocation17_spill] sm:$0xff] }
 0x86d   : > { %6648 = vmatprep.subr.bf16.mxu0 %v21607_v34  ;;  %v6137_v47 = vsel %vm21610_vm9, %v10025_v23, %v10026_v55  ;;  %v10030_v61 = vunpack.i.l.bf16 %v17991_v7  ;;  %v21613_v19 = vpack.c.bf16 %v21611_v37, %v21612_v35  ;;  %v9341_v4 = vunpack.i.h.bf16 %v21587_v27  ;;  %v21615_v23 = vld [vmem:[#allocation43_spill] sm:$0xff]  ;;  %vm21626_vm8 = vmmov %vm21582_vm3 }
 0x86e   : > { %v18027_v52 = vsel %vm1253_vm4, %v9370_v57, %v9371_v15  ;;  %v21616_v54 = vpack.c.bf16 %v21614_v51, %v21615_v23  ;;  %v21619_v42 = vpack.c.bf16 %v21617_v14, %v21618_v58  ;;  %v6409_v34 = vpack.c.bf16 %v6174_v38, %v6156_v5  ;;  %v21623_v5 = vld [vmem:[#allocation147_spill] sm:$0xff]  ;;  %vm21627_vm10 = vmmov %vm21582_vm3 }
 0x86f   : > { %6688 = vmatpush1.bf16.msra.mxu1 %v21613_v19  ;;  %vm21620_vm0 = vcmask 932864   ;;  %v10046_v57 = vunpack.i.h.bf16 %v18032_v8  ;;  %v10045_v37 = vunpack.i.l.bf16 %v18032_v8  ;;  %v10041_v35 = vunpack.i.h.bf16 %v18034_v25  ;;  %vm21628_vm5 = vmmov %vm21582_vm3 }
 0x870   : > { %6649 = vmatpush1.bf16.msra.mxu0 %v21616_v54  ;;  %6689 = vmatprep.subr.bf16.mxu1 %v21619_v42  ;;  %v4611_v63 = vsel %vm21620_vm0, %v9336_v46, %v9340_v43  ;;  %v10040_v19 = vunpack.i.l.bf16 %v18034_v25  ;;  %vm21621_vm11 = vcmask 1045504   ;;  %v6410_v51 = vpack.c.bf16 %v6175_v56, %v6157_v33  ;;  %v21622_v46 = vld [vmem:[#allocation183_spill] sm:$0xff]  ;;  %vm21629_vm6 = vmmov %vm21582_vm3 }
 0x871   : > { %7505 = vmatprep.subr.msk.bf16.mxu0 %vm21621_vm11, %v6408_v0  ;;  %v6389_v23 = vpack.c.bf16 %v6136_v62, %v6118_v45  ;;  %v6390_v54 = vpack.c.bf16 %v6137_v47, %v6119_v2  ;;  %v4683_v38 = vsel %vm1253_vm4, %v9371_v15, %v9375_v32  ;;  %v21624_v14 = vpack.c.bf16 %v21622_v46, %v21623_v5  ;;  %vm21625_vm7 = vmmov %vm21621_vm11  ;;  %v18065_v62 = vpop.permute.xlu1 %10053  ;;  %v18067_v45 = vpop.permute.xlu0 %10048 }
 0x872   : > { %v6453_v8 = vsel %vm21625_vm7, %v6407_v40, 0  ;;  %v6083_v25 = vsel %vm21626_vm8, %v10040_v19, %v10041_v35  ;;  %v6121_v0 = vsel %vm21627_vm10, %v10030_v61, %v10031_v9  ;;  %v6139_v56 = vsel %vm21628_vm5, %v10035_v21, %v10036_v60  ;;  %vm21630_vm9 = vmmov %vm21625_vm7 }
 0x873   : > { %7502 = vmatmul.mubr.msk.bf16.vlgmr.msra.gmra.mxu0 %vm692_vm14, %v17510_v20  ;;  %6690 = vmatpush1.bf16.msra.mxu1 %v21624_v14  ;;  %v6138_v15 = vsel %vm21582_vm3, %v10026_v55, %v10035_v21  ;;  %v6120_v33 = vsel %vm21629_vm6, %v10021_v11, %v10030_v61  ;;  %vm21631_vm0 = vmmov %vm21625_vm7  ;;  %v10056_v47 = vunpack.i.h.bf16 %v18065_v62  ;;  %v10055_v58 = vunpack.i.l.bf16 %v18065_v62 }
 0x874   : > { %6719 = vmatpush1.bf16.msra.mxu0 %v6453_v8  ;;  %7507 = vmatprep.subr.msk.bf16.mxu1 %vm21630_vm9, %v6410_v51  ;;  %v6459_v40 = vsel %vm21631_vm0, %v6409_v34, 0  ;;  %vm21632_vm11 = vmmov %vm21582_vm3  ;;  %v10051_v42 = vunpack.i.h.bf16 %v18067_v45  ;;  %v10050_v55 = vunpack.i.l.bf16 %v18067_v45  ;;  %v6392_v34 = vpack.c.bf16 %v6139_v56, %v6121_v0  ;;  %v21643_v45 = vld [vmem:[#allocation110_spill] sm:$0xff] }
 0x875   : > { %v6101_v2 = vsel %vm21632_vm11, %v10045_v37, %v10046_v57  ;;  %6720 = vmatprep.subr.bf16.mxu0 %v6390_v54  ;;  %6748 = vmatprep.mubr.bf16.mxu0 %v21448_v31  ;;  %vm21633_vm7 = vmmov %vm21582_vm3  ;;  %vm21635_vm10 = vcmask 785408   ;;  %v9376_v53 = vunpack.i.h.bf16 %v21594_v17  ;;  %v4972_v0 = vsel %vm1413_vm1, %v17973_v50, %v18027_v52 }
 0x876   : > { %v6100_v11 = vsel %vm21633_vm7, %v9996_v41, %v10045_v37  ;;  %vm21634_vm8 = vmmov %vm21582_vm3  ;;  %7504 = vmatmul.mubr.msk.bf16.vlgmr.msra.gmra.mxu1 %vm692_vm14, %v17510_v20  ;;  %v6372_v61 = vpack.c.bf16 %v6101_v2, %v6083_v25  ;;  %v4828_v51 = vsel %vm21635_vm10, %v17837_v24, %v10055_v58  ;;  %vm21637_vm3 = vcmask 916480   ;;  %v18094_v37 = vpop.permute.xlu0 %10058 }
 0x877   : > { %v6082_v21 = vsel %vm21634_vm8, %v9991_v6, %v10040_v19  ;;  %vm21636_vm5 = vmmov %vm21635_vm10  ;;  %v4753_v46 = vsel %vm21637_vm3, %v17839_v10, %v10050_v55  ;;  %6760 = vmatpush1.bf16.msra.mxu1 %v6459_v40  ;;  %v6391_v41 = vpack.c.bf16 %v6138_v15, %v6120_v33  ;;  %v18092_v6 = vpop.permute.xlu1 %10063  ;;  %v4973_v19 = vsel %vm1413_vm1, %v4611_v63, %v4683_v38 }
 0x878   : > { %v4829_v54 = vsel %vm21636_vm5, %v10055_v58, %v10056_v47  ;;  %vm21638_vm6 = vmmov %vm21637_vm3  ;;  %6721 = vmatpush1.bf16.msra.mxu0 %v6389_v23  ;;  %6761 = vmatprep.subr.bf16.mxu1 %v6392_v34  ;;  %v10066_v5 = vunpack.i.h.bf16 %v18092_v6  ;;  %v10065_v10 = vunpack.i.l.bf16 %v18092_v6  ;;  %v10061_v14 = vunpack.i.h.bf16 %v18094_v37  ;;  %v21746_v6 = vld [vmem:[#allocation125_spill] sm:$0xff] }
 0x879   : > { %v4754_v12 = vsel %vm21638_vm6, %v10050_v55, %v10051_v42  ;;  %v10060_v8 = vunpack.i.l.bf16 %v18094_v37  ;;  %6722 = vmatprep.subr.bf16.mxu0 %v6372_v61  ;;  %6789 = vmatprep.mubr.bf16.mxu1 %v21448_v31  ;;  %v6371_v23 = vpack.c.bf16 %v6100_v11, %v6082_v21  ;;  %v4990_v63 = vsel %vm1413_vm1, %v4753_v46, %v4828_v51  ;;  %vm21639_vm9 = vmmov %vm21633_vm7  ;;  %v21743_v37 = vld [vmem:[#allocation38_spill] sm:$0xff] }
 0x87a   : > { %v4991_v24 = vsel %vm1413_vm1, %v4754_v12, %v4829_v54  ;;  %v6102_v38 = vsel %vm21639_vm9, %v10046_v57, %v10065_v10  ;;  %vm21640_vm0 = vmmov %vm21633_vm7  ;;  %v4684_v62 = vsel %vm1253_vm4, %v9375_v32, %v9376_v53  ;;  %v18120_v57 = vpop.permute.xlu0 %10068  ;;  %v21644_v40 = vunpack.i.l.bf16 %v21643_v45 }
 0x87b   : > { %v6354_v25 = vpack.c.bf16 %v4991_v24, %v4973_v19  ;;  %v6084_v56 = vsel %vm21640_vm0, %v10041_v35, %v10060_v8  ;;  %6762 = vmatpush1.bf16.msra.mxu1 %v6391_v41  ;;  %vm21641_vm11 = vmmov %vm21640_vm0  ;;  %v18118_v52 = vpop.permute.xlu1 %10073  ;;  %v10071_v11 = vunpack.i.h.bf16 %v18120_v57  ;;  %v10070_v17 = vunpack.i.l.bf16 %v18120_v57  ;;  %v21649_v24 = vld [vmem:[#allocation174_spill] sm:$0xff] }
 0x87c   : > { %v6085_v15 = vsel %vm21641_vm11, %v10060_v8, %v10061_v14  ;;  %vm21642_vm7 = vmmov %vm21640_vm0  ;;  %v6373_v50 = vpack.c.bf16 %v6102_v38, %v6084_v56  ;;  %6723 = vmatpush1.bf16.msra.mxu0 %v6371_v23  ;;  %v4685_v2 = vsel %vm1253_vm4, %v9376_v53, %v21644_v40  ;;  %v10076_v58 = vunpack.i.h.bf16 %v18118_v52 }
 0x87d   : > { %v6103_v33 = vsel %vm21642_vm7, %v10065_v10, %v10066_v5  ;;  %v10075_v55 = vunpack.i.l.bf16 %v18118_v52  ;;  %6724 = vmatprep.subr.bf16.mxu0 %v6354_v25  ;;  %vm21645_vm8 = vcmask 932864   ;;  %v6353_v21 = vpack.c.bf16 %v4990_v63, %v4972_v0  ;;  %vm21647_vm3 = vmmov %vm21636_vm5  ;;  %v21650_v25 = vld [vmem:[#allocation150_spill] sm:$0xff]  ;;  %v21651_v63 = vld [vmem:[#allocation128_spill] sm:$0xff] }
 0x87e   : > { %v6374_v35 = vpack.c.bf16 %v6103_v33, %v6085_v15  ;;  %v4612_v32 = vsel %vm21645_vm8, %v9340_v43, %v9341_v4  ;;  %vm21646_vm10 = vmmov %vm21645_vm8  ;;  %v4957_v34 = vsel %vm1413_vm1, %v17923_v48, %v17982_v13  ;;  %v4755_v43 = vsel %vm21638_vm6, %v10051_v42, %v10070_v17  ;;  %v21655_v33 = vld [vmem:[#allocation73_spill] sm:$0xff] }
 0x87f   : > { %v4613_v61 = vsel %vm21646_vm10, %v9341_v4, %v8794_v39  ;;  %v4830_v51 = vsel %vm21636_vm5, %v10056_v47, %v10075_v55  ;;  %v4831_v54 = vsel %vm21647_vm3, %v10075_v55, %v10076_v58  ;;  %vm21648_vm9 = vmmov %vm21638_vm6  ;;  %v10084_v27 = vpop.permute.xlu1 %10083  ;;  %v10079_v4 = vpop.permute.xlu0 %10078  ;;  %v4974_v13 = vsel %vm1413_vm1, %v4612_v32, %v4684_v62 }
 0x880   : > { %6763 = vmatprep.subr.bf16.mxu1 %v6374_v35  ;;  %v4756_v46 = vsel %vm21648_vm9, %v10070_v17, %v10071_v11  ;;  %6725 = vmatpush1.bf16.msra.mxu0 %v6353_v21  ;;  %v4975_v12 = vsel %vm1413_vm1, %v4613_v61, %v4685_v2  ;;  %v4992_v47 = vsel %vm1413_vm1, %v4755_v43, %v4830_v51  ;;  %v10086_v53 = vunpack.i.h.bf16 %v10084_v27  ;;  %v21659_v35 = vld [vmem:[#allocation165_spill] sm:$0xff]  ;;  %v21661_v2 = vld [vmem:[#allocation138_spill] sm:$0xff]  ;;  %v21664_v61 = vld [vmem:[#allocation184_spill] sm:$0xff] }
 0x881   : > { %6764 = vmatpush1.bf16.msra.mxu1 %v6373_v50  ;;  %v4993_v48 = vsel %vm1413_vm1, %v4756_v46, %v4831_v54  ;;  %v10085_v41 = vunpack.i.l.bf16 %v10084_v27  ;;  %v10081_v19 = vunpack.i.h.bf16 %v10079_v4  ;;  %v10080_v42 = vunpack.i.l.bf16 %v10079_v4  ;;  %6726 = vmatprep.subr.bf16.mxu0 %v6336_v26  ;;  %v21663_v21 = vld [vmem:[#allocation25_spill] sm:$0xff]  ;;  %v21666_v43 = vld [vmem:[#allocation187_spill] sm:$0xff]  ;;  %v21667_v46 = vld [vmem:[#allocation14_spill] sm:$0xff] }
 0x882   : > { %v6335_v10 = vpack.c.bf16 %v17946_v29, %v21649_v24  ;;  %v6356_v8 = vpack.c.bf16 %v4993_v48, %v4975_v12  ;;  %v6355_v23 = vpack.c.bf16 %v4992_v47, %v4974_v13  ;;  %v4956_v0 = vsel %vm1413_vm1, %v21650_v25, %v17928_v36  ;;  %v21668_v12 = vld [vmem:[#allocation180_spill] sm:$0xff]  ;;  %v21669_v48 = vld [vmem:[#allocation117_spill] sm:$0xff]  ;;  %v21670_v47 = vld [vmem:[#allocation22_spill] sm:$0xff] }
 0x883   : > { %v21652_v38 = vunpack.i.h.bf16 %v21651_v63  ;;  %vm21653_vm0 = vcmask 31744   ;;  %vm21656_vm7 = vcmask 39936   ;;  %v5202_v29 = vpop.permute.xlu1 %5201  ;;  %v6338_v26 = vpack.c.bf16 %v4957_v34, %v21658_v16  ;;  %v10089_v32 = vpop.permute.xlu0 %10088  ;;  %v21677_v25 = vld [vmem:[#allocation49_spill] sm:$0xff] }
 0x884   : > { %vm21654_vm11 = vmmov %vm21653_vm0  ;;  %v5514_v62 = vsel %vm21656_vm7, %v21655_v33, %v10080_v42  ;;  %6727 = vmatpush1.bf16.msra.mxu0 %v6335_v10  ;;  %6765 = vmatprep.subr.bf16.mxu1 %v6356_v8  ;;  %v21660_v40 = vunpack.i.l.bf16 %v21659_v35  ;;  %v21662_v55 = vunpack.i.h.bf16 %v21661_v2  ;;  %v21665_v51 = vpack.c.bf16 %v21663_v21, %v21664_v61  ;;  %v21675_v8 = vld [vmem:[#allocation151_spill] sm:$0xff] }
 0x885   : > { %v5590_v56 = vsel %vm21653_vm0, %v21652_v38, %v10085_v41  ;;  %v5591_v15 = vsel %vm21654_vm11, %v10085_v41, %v10086_v53  ;;  %vm21657_vm8 = vmmov %vm21656_vm7  ;;  %6766 = vmatpush1.bf16.msra.mxu1 %v6355_v23  ;;  %v4921_v34 = vsel %vm1413_vm1, %v21667_v46, %v21666_v43  ;;  %v10091_v27 = vunpack.i.h.bf16 %v10089_v32  ;;  %v21671_v53 = vld [vmem:[#allocation153_spill] sm:$0xff]  ;;  %v21680_v33 = vld [vmem:[#allocation55_spill] sm:$0xff] }
 0x886   : > { %v5515_v18 = vsel %vm21657_vm8, %v10080_v42, %v10081_v19  ;;  %v5745_v50 = vsel %vm1413_vm1, %v5514_v62, %v5590_v56  ;;  %v4213_v17 = vsel %vm827_vm2, %v21662_v55, %v21660_v40  ;;  %6728 = vmatprep.subr.bf16.mxu0 %v21665_v51  ;;  %v10090_v4 = vunpack.i.l.bf16 %v10089_v32  ;;  %6767 = vmatprep.subr.bf16.mxu1 %v6338_v26  ;;  %v21672_v19 = vld [vmem:[#allocation71_spill] sm:$0xff]  ;;  %v21688_v51 = vld [vmem:[#allocation170_spill] sm:$0xff]  ;;  %v21691_v46 = vld [vmem:[#allocation164_spill] sm:$0xff] }
 0x887   : > { %v5746_v36 = vsel %vm1413_vm1, %v5515_v18, %v5591_v15  ;;  %v6317_v13 = vpack.c.bf16 %v21669_v48, %v21668_v12  ;;  %v4938_v41 = vsel %vm1413_vm1, %v21671_v53, %v21670_v47  ;;  %v21673_v42 = vunpack.i.h.bf16 %v21672_v19  ;;  %v21679_v15 = vld [vmem:[#allocation185_spill] sm:$0xff]  ;;  %v21681_v18 = vld [vmem:[#allocation67_spill] sm:$0xff]  ;;  %v5277_v61 = vpop.permute.xlu0 %5276  ;;  %v21696_v48 = vld [vmem:[#allocation192_spill] sm:$0xff] }
 0x888   : > { %v10092_v54 = vpack.i.bf16 %v5746_v36, %v5745_v50  ;;  %v21674_v24 = vunpack.i.l.bf16 %v21672_v19  ;;  %v21676_v23 = vunpack.i.l.bf16 %v21675_v8  ;;  %v21678_v63 = vunpack.i.h.bf16 %v21677_v25  ;;  %v5350_v36 = vpop.permute.xlu1 %5349  ;;  %v21685_v2 = vld [vmem:[#allocation99_spill] sm:$0xff] }
 0x889   : > { %v6337_v56 = vpack.c.bf16 %v4956_v0, %v4938_v41  ;;  %v4903_v62 = vsel %vm1413_vm1, %v21680_v33, %v21679_v15  ;;  %v21682_v16 = vunpack.i.h.bf16 %v21681_v18  ;;  %vm21683_vm10 = vcmask 23552   ;;  %6729 = vmatpush1.bf16.msra.mxu0 %v6317_v13  ;;  %v21698_v41 = vld [vmem:[#allocation18_spill] sm:$0xff]  ;;  %v21707_v18 = vld [vmem:[#allocation188_spill] sm:$0xff] }
 0x88a   : > { %v4065_v10 = vsel %vm692_vm14, %v21674_v24, %v21673_v42  ;;  %v4139_v38 = vsel %vm759_vm15, %v21678_v63, %v21676_v23  ;;  %10093 = vrot.lane.b32.xlu0 %v10092_v54, %s20862_s22  ;;  %vm21684_vm5 = vmmov %vm21683_vm10  ;;  %v6320_v35 = vpack.c.bf16 %v4921_v34, %v4903_v62  ;;  %v21686_v55 = vunpack.i.h.bf16 %v21685_v2  ;;  %v21689_v54 = vld [vmem:[#allocation131_spill] sm:$0xff]  ;;  %v21693_v34 = vld [vmem:[#allocation42_spill] sm:$0xff] }
 0x88b   : > { %v5665_v26 = vsel %vm21683_vm10, %v21682_v16, %v10090_v4  ;;  %v5666_v50 = vsel %vm21684_vm5, %v10090_v4, %v10091_v27  ;;  %v4920_v40 = vsel %vm1413_vm1, %v4139_v38, %v4213_v17  ;;  %v21687_v32 = vunpack.i.l.bf16 %v21685_v2  ;;  %6768 = vmatpush1.bf16.msra.mxu1 %v6337_v56  ;;  %v21692_v27 = vld [vmem:[#allocation168_spill] sm:$0xff]  ;;  %v21703_v38 = vld [vmem:[#allocation19_spill] sm:$0xff]  ;;  %v21705_v15 = vld [vmem:[#allocation102_spill] sm:$0xff]  ;;  %v5422_v2 = vpop.permute.xlu0 %5421 }
 0x88c   : > { %v10097_v21 = vpack.i.bf16 %v5666_v50, %v5665_v26  ;;  %v21690_v43 = vpack.c.bf16 %v21688_v51, %v21689_v54  ;;  %v4885_v4 = vsel %vm1413_vm1, %v21692_v27, %v21691_v46  ;;  %v21694_v12 = vunpack.i.h.bf16 %v21693_v34  ;;  %6769 = vmatprep.subr.bf16.mxu1 %v6320_v35  ;;  %v21702_v63 = vld [vmem:[#allocation92_spill] sm:$0xff]  ;;  %v21709_v26 = vld [vmem:[#allocation193_spill] sm:$0xff]  ;;  %v21715_v34 = vld [vmem:[#allocation171_spill] sm:$0xff] }
 0x88d   : > { %v3991_v0 = vsel %vm628_vm13, %v21687_v32, %v21686_v55  ;;  %vm21695_vm3 = vcmask 318464   ;;  %vm21697_vm6 = vcmask 187392   ;;  %v5708_v47 = vsel %vm1413_vm1, %v5202_v29, %v5277_v61  ;;  %v10224_v35 = vld [vmem:[#allocation2 + $0x50] sm:$0xf] }
 0x88e   : > { %6730 = vmatprep.subr.bf16.mxu0 %v21690_v43  ;;  %v5220_v17 = vsel %vm21695_vm3, %v21694_v12, %v5202_v29  ;;  %v5294_v13 = vsel %vm21697_vm6, %v21696_v48, %v5277_v61  ;;  %v4902_v53 = vsel %vm1413_vm1, %v3991_v0, %v4065_v10  ;;  %v21699_v19 = vunpack.i.h.bf16 %v21698_v41  ;;  %10098 = vrot.lane.b32.xlu1 %v10097_v21, %s20862_s22  ;;  %v5002_v29 = vpop.permute.xlu1 %5001  ;;  %v21706_v10 = vld [vmem:[#allocation127_spill] sm:$0xff]  ;;  %v21711_v55 = vld [vmem:[#allocation101_spill] sm:$0xff]  ;;  %v21712_v0 = vld [vmem:[#allocation156_spill] sm:$0xff] }
 0x88f   : > { %v21700_v42 = vunpack.i.l.bf16 %v21698_v41  ;;  %vm21701_vm9 = vcmask 1031168   ;;  %v5707_v8 = vsel %vm1413_vm1, %v5220_v17, %v5294_v13  ;;  %v6319_v23 = vpack.c.bf16 %v4920_v40, %v4902_v53  ;;  %v21714_v43 = vld [vmem:[#allocation41_spill] sm:$0xff]  ;;  %v21718_v48 = vld [vmem:[#allocation194_spill] sm:$0xff] }
 0x890   : > { %v10102_v25 = vpack.i.bf16 %v5708_v47, %v5707_v8  ;;  %v21704_v56 = vpack.c.bf16 %v21702_v63, %v21703_v38  ;;  %v6302_v33 = vpack.c.bf16 %v4885_v4, %v21705_v15  ;;  %vm21708_vm0 = vcmask 179200   ;;  %v10225_v41 = vld [vmem:[#allocation2 + $0x48] sm:$0xff] }
 0x891   : > { %v3842_v24 = vsel %vm21701_vm9, %v21700_v42, %v21699_v19  ;;  %v5367_v16 = vsel %vm21708_vm0, %v21707_v18, %v5350_v36  ;;  %vm21710_vm11 = vcmask 1039360   ;;  %v5670_v40 = vsel %vm1413_vm1, %v10224_v35, %v5002_v29  ;;  %6770 = vmatpush1.bf16.msra.mxu1 %v6319_v23  ;;  %v21721_v19 = vld [vmem:[#allocation139_spill] sm:$0xff] }
 0x892   : > { %6731 = vmatpush1.bf16.msra.mxu0 %v21704_v56  ;;  %v4884_v62 = vsel %vm1413_vm1, %v3842_v24, %v21706_v10  ;;  %v5005_v50 = vsel %vm21710_vm11, %v21709_v26, %v5002_v29  ;;  %vm21713_vm7 = vcmask 171008   ;;  %v5727_v61 = vsel %vm1413_vm1, %v5350_v36, %v5422_v2  ;;  %10103 = vrot.lane.b32.xlu0 %v10102_v25, %s20862_s22  ;;  %v5127_v4 = vpop.permute.xlu1 %5126  ;;  %v5050_v36 = vpop.permute.xlu0 %5049 }
 0x893   : > { %v5669_v32 = vsel %vm1413_vm1, %v21711_v55, %v5005_v50  ;;  %v5439_v21 = vsel %vm21713_vm7, %v21712_v0, %v5422_v2  ;;  %6771 = vmatprep.subr.bf16.mxu1 %v6302_v33  ;;  %v6301_v46 = vpack.c.bf16 %v4884_v62, %v21714_v43  ;;  %v21716_v12 = vunpack.i.h.bf16 %v21715_v34 }
 0x894   : > { %v10112_v51 = vpack.i.bf16 %v5670_v40, %v5669_v32  ;;  %v5726_v54 = vsel %vm1413_vm1, %v5367_v16, %v5439_v21  ;;  %vm21717_vm8 = vcmask 326656   ;;  %v21719_v13 = vunpack.i.h.bf16 %v21718_v48 }
 0x895   : > { %7506 = vmatmul.mubr.msk.bf16.vlgmr.msra.gmra.mxu0 %vm692_vm14, %v17510_v20  ;;  %v10107_v27 = vpack.i.bf16 %v5727_v61, %v5726_v54  ;;  %v5145_v17 = vsel %vm21717_vm8, %v21716_v12, %v5127_v4  ;;  %6772 = vmatpush1.bf16.msra.mxu1 %v6301_v46  ;;  %vm21720_vm10 = vcmask 334848   ;;  %v5689_v53 = vsel %vm1413_vm1, %v5050_v36, %v5127_v4 }
 0x896   : > { %6830 = vmatprep.mubr.bf16.mxu0 %v21448_v31  ;;  %v5068_v47 = vsel %vm21720_vm10, %v21719_v13, %v5050_v36  ;;  %10113 = vrot.lane.b32.xlu0 %v10112_v51, %s20862_s22  ;;  %v10122_v42 = vpack.i.bf16 %v21721_v19, %v10225_v41  ;;  %vm21722_vm5 = vcmask 777216   ;;  %v8800_v2 = vunpack.i.h.bf16 %v21643_v45 }
 0x897   : > { %10108 = vrot.lane.b32.xlu1 %v10107_v27, %s20862_s22  ;;  %v5688_v31 = vsel %vm1413_vm1, %v5068_v47, %v5145_v17  ;;  %vm21723_vm3 = vmmov %vm21722_vm5  ;;  %vm21726_vm0 = vcmask 1045504   ;;  %v8795_v59 = vunpack.i.h.bf16 %v21579_v30  ;;  %v21728_v43 = vunpack.i.l.bf16 %v21643_v45 }
 0x898   : > { %v10117_v24 = vpack.i.bf16 %v5689_v53, %v5688_v31  ;;  %7508 = vmatmul.mubr.msk.bf16.vlgmr.msra.gmra.mxu1 %vm692_vm14, %v17510_v20  ;;  %vm21724_vm6 = vmmov %vm21723_vm3  ;;  %v21735_v31 = vld [vmem:[#allocation135_spill] sm:$0xff] }
 0x899   : > { %vm21725_vm9 = vmmov %vm21723_vm3  ;;  %v4686_v46 = vsel %vm1253_vm4, %v21728_v43, %v8800_v2 }
 0x89a   : > { %10123 = vrot.lane.b32.xlu0 %v10122_v42, %s10250_s29  ;;  %vm21727_vm11 = vmmov %vm21726_vm0 }
 0x89b   : > { %10118 = vrot.lane.b32.xlu1 %v10117_v24, %s20862_s22  ;;  %vm21729_vm7 = vmmov %vm21723_vm3  ;;  %v9111_v24 = vunpack.i.h.bf16 %v21735_v31 }
 0x89c   : > { %vm21730_vm8 = vmmov %vm21723_vm3 }
 0x89d   : > { %vm21731_vm10 = vmmov %vm21723_vm3 }
 0x89f   : > { %4739 = vrot.lane.b32.xlu1 %v21711_v55, %s10249_s28 }
 0x8e8   : > { %v18271_v23 = vpop.f32.mrf.mxu0 }
 0x8ea   : > { %v18273_v38 = vpop.f32.mrf.mxu0 }
 0x8ec   : > { %v6508_v33 = vpop.f32.mrf.mxu0 }
 0x8ed   : > { %v18275_v10 = vpop.f32.mrf.mxu1 }
 0x8ee   : > { %v6509_v26 = vpop.f32.mrf.mxu0 }
 0x8ef   : > { %v18285_v40 = vpop.f32.mrf.mxu1  ;;  %v8821_v26 = vunpack.i.h.bf16 %v21746_v6 }
 0x8f1   : > { %v6549_v21 = vpop.f32.mrf.mxu1 }
 0x8f2   : > { %v21752_v21 = vunpack.i.h.bf16 %v21568_v22 }
 0x8fc   : > { %v10094_v8 = vpop.permute.xlu0 %10093 }
 0x8fd   : > { %v10096_v25 = vunpack.i.h.bf16 %v10094_v8  ;;  %v10095_v63 = vunpack.i.l.bf16 %v10094_v8  ;;  %v21736_v8 = vld [vmem:[#allocation152_spill] sm:$0xff] }
 0x8ff   : > { %v6159_v20 = vsel %vm21722_vm5, %v10095_v63, %v10096_v25  ;;  %v6158_v50 = vsel %vm21725_vm9, %v10011_v49, %v10095_v63  ;;  %v6550_v49 = vpop.f32.mrf.mxu1  ;;  %vm21732_vm5 = vmmov %vm21723_vm3  ;;  %v9181_v25 = vunpack.i.h.bf16 %v21736_v8  ;;  %vm21739_vm9 = vcmask 785408  }
 0x900   : > { %v10099_v56 = vpop.permute.xlu1 %10098  ;;  %vm21737_vm4 = vmmov %vm21732_vm5  ;;  %v21758_v49 = vld [vmem:[#allocation166_spill] sm:$0xff] }
 0x901   : > { %v10101_v29 = vunpack.i.h.bf16 %v10099_v56  ;;  %v10100_v15 = vunpack.i.l.bf16 %v10099_v56  ;;  %v21759_v43 = vunpack.i.h.bf16 %v21758_v49 }
 0x903   : > { %v6176_v62 = vsel %vm21723_vm3, %v10016_v3, %v10100_v15  ;;  %v6177_v18 = vsel %vm21724_vm6, %v10100_v15, %v10101_v29  ;;  %vm21733_vm3 = vcmask 932864   ;;  %vm21738_vm6 = vmmov %vm21737_vm4  ;;  %v21742_v15 = vld [vmem:[#allocation82_spill] sm:$0xff] }
 0x904   : > { %v10104_v16 = vpop.permute.xlu0 %10103  ;;  %v6412_v35 = vpack.c.bf16 %v6177_v18, %v6159_v20  ;;  %v6411_v32 = vpack.c.bf16 %v6176_v62, %v6158_v50  ;;  %v4614_v45 = vsel %vm21733_vm3, %v8794_v39, %v8795_v59  ;;  %v9225_v33 = vunpack.i.l.bf16 %v21742_v15  ;;  %v21774_v15 = vld [vmem:[#allocation149_spill] sm:$0xff] }
 0x905   : > { %v10105_v55 = vunpack.i.l.bf16 %v10104_v16  ;;  %v10106_v0 = vunpack.i.h.bf16 %v10104_v16  ;;  %vm21753_vm3 = vcmask 23552   ;;  %v4976_v52 = vsel %vm1413_vm1, %v4614_v45, %v4686_v46 }
 0x906   : > { %7509 = vmatprep.subr.msk.bf16.mxu0 %vm21726_vm0, %v6412_v35  ;;  %v6465_v51 = vsel %vm21727_vm11, %v6411_v32, 0  ;;  %vm21740_vm0 = vmmov %vm21737_vm4  ;;  %v21749_v32 = vld [vmem:[#allocation158_spill] sm:$0xff]  ;;  %v21760_v46 = vunpack.i.l.bf16 %v21746_v6 }
 0x907   : > { %6801 = vmatpush1.bf16.msra.mxu0 %v6465_v51  ;;  %v6122_v27 = vsel %vm21729_vm7, %v10031_v9, %v10105_v55  ;;  %v6123_v17 = vsel %vm21731_vm10, %v10105_v55, %v10106_v0  ;;  %v4977_v9 = vsel %vm1413_vm1, %v8795_v59, %v8800_v2  ;;  %vm21741_vm11 = vmmov %vm21740_vm0  ;;  %vm21745_vm7 = vcmask 15360  }
 0x908   : > { %v10114_v61 = vpop.permute.xlu0 %10113  ;;  %vm21748_vm10 = vmmov %vm21739_vm9 }
 0x909   : > { %v10109_v3 = vpop.permute.xlu1 %10108  ;;  %v10115_v4 = vunpack.i.l.bf16 %v10114_v61  ;;  %v10116_v12 = vunpack.i.h.bf16 %v10114_v61 }
 0x90a   : > { %v10111_v44 = vunpack.i.h.bf16 %v10109_v3  ;;  %v10110_v54 = vunpack.i.l.bf16 %v10109_v3  ;;  %v21756_v3 = vunpack.i.l.bf16 %v21735_v31 }
 0x90b   : > { %v6086_v30 = vsel %vm21737_vm4, %v10061_v14, %v10115_v4  ;;  %v6087_v56 = vsel %vm21740_vm0, %v10115_v4, %v10116_v12  ;;  %v21744_v14 = vunpack.i.h.bf16 %v21590_v1  ;;  %v21750_v1 = vunpack.i.h.bf16 %v21749_v32  ;;  %v21761_v12 = vld [vmem:[#allocation34_spill] sm:$0xff] }
 0x90c   : > { %v6140_v34 = vsel %vm21730_vm8, %v10036_v60, %v10110_v54  ;;  %v6141_v36 = vsel %vm21732_vm5, %v10110_v54, %v10111_v44  ;;  %v10124_v47 = vpop.permute.xlu0 %10123  ;;  %v21734_v60 = vld [vmem:[#allocation90_spill] sm:$0xff]  ;;  %vm21747_vm8 = vcmask 916480   ;;  %vm21751_vm5 = vcmask 31744  }
 0x90d   : > { %v6393_v48 = vpack.c.bf16 %v6140_v34, %v6122_v27  ;;  %v10119_v13 = vpop.permute.xlu1 %10118  ;;  %v6394_v7 = vpack.c.bf16 %v6141_v36, %v6123_v17  ;;  %v10126_v28 = vunpack.i.h.bf16 %v10124_v47  ;;  %v10125_v19 = vunpack.i.l.bf16 %v10124_v47  ;;  %v21757_v54 = vld [vmem:[#allocation62_spill] sm:$0xff]  ;;  %v21762_v17 = vld [vmem:[#allocation28_spill] sm:$0xff] }
 0x90e   : > { %v10121_v53 = vunpack.i.h.bf16 %v10119_v13  ;;  %v10120_v41 = vunpack.i.l.bf16 %v10119_v13  ;;  %v8825_v42 = vunpack.i.l.bf16 %v21734_v60  ;;  %v4541_v16 = vsel %vm21745_vm7, %v21744_v14, %v21743_v37  ;;  %v18360_v13 = vpop.f32.mrf.mxu0  ;;  %v21777_v14 = vld [vmem:[#allocation94_spill] sm:$0xff] }
 0x90f   : > { %6802 = vmatprep.subr.bf16.mxu0 %v6394_v7  ;;  %v4833_v63 = vsel %vm21739_vm9, %v10125_v19, %v10126_v28  ;;  %v4832_v50 = vsel %vm21748_vm10, %v10076_v58, %v10125_v19  ;;  %v4384_v0 = vsel %vm21751_vm5, %v21750_v1, %v9225_v33  ;;  %v21754_v58 = vunpack.i.l.bf16 %v21736_v8  ;;  %v21764_v7 = vld [vmem:[#allocation79_spill] sm:$0xff]  ;;  %v21768_v19 = vld [vmem:[#allocation37_spill] sm:$0xff] }
 0x910   : > { %v6104_v39 = vsel %vm21738_vm6, %v10066_v5, %v10120_v41  ;;  %6803 = vmatpush1.bf16.msra.mxu0 %v6393_v48  ;;  %v6105_v29 = vsel %vm21741_vm11, %v10120_v41, %v10121_v53  ;;  %v4467_v57 = vsel %vm21753_vm3, %v21752_v21, %v8825_v42  ;;  %vm21755_vm4 = vcmask 736256   ;;  %v21767_v28 = vld [vmem:[#allocation7_spill] sm:$0xff]  ;;  %v21770_v42 = vld [vmem:[#allocation89_spill] sm:$0xff]  ;;  %v18372_v8 = vpop.f32.mrf.mxu0 }
 0x911   : > { %v6375_v20 = vpack.c.bf16 %v6104_v39, %v6086_v30  ;;  %v4740_v62 = vpop.permute.xlu1 %4739  ;;  %v6376_v18 = vpack.c.bf16 %v6105_v29, %v6087_v56  ;;  %v4290_v59 = vsel %vm21755_vm4, %v21754_v58, %v9181_v25  ;;  %v4142_v61 = vsel %vm759_vm15, %v21756_v3, %v9111_v24  ;;  %v21772_v25 = vld [vmem:[#allocation169_spill] sm:$0xff]  ;;  %v21773_v30 = vld [vmem:[#allocation95_spill] sm:$0xff]  ;;  %v21783_v58 = vld [vmem:[#allocation130_spill] sm:$0xff] }
 0x912   : > { %v4757_v5 = vsel %vm21747_vm8, %v10071_v11, %v4740_v62  ;;  %v4995_v35 = vsel %vm1413_vm1, %v4740_v62, %v4833_v63  ;;  %v4959_v11 = vsel %vm1413_vm1, %v4467_v57, %v4541_v16  ;;  %v4941_v44 = vsel %vm1413_vm1, %v4290_v59, %v4384_v0  ;;  %v6590_v63 = vpop.f32.mrf.mxu0  ;;  %v21775_v33 = vld [vmem:[#allocation177_spill] sm:$0xff]  ;;  %v21778_v16 = vld [vmem:[#allocation107_spill] sm:$0xff] }
 0x913   : > { %v4994_v2 = vsel %vm1413_vm1, %v4757_v5, %v4832_v50  ;;  %v6358_v55 = vpack.c.bf16 %v4995_v35, %v4977_v9  ;;  %6804 = vmatprep.subr.bf16.mxu0 %v6376_v18  ;;  %v6340_v22 = vpack.c.bf16 %v4959_v11, %v4941_v44  ;;  %v4068_v27 = vsel %vm692_vm14, %v21759_v43, %v21757_v54  ;;  %v21765_v9 = vld [vmem:[#allocation29_spill] sm:$0xff]  ;;  %v18377_v56 = vpop.f32.mrf.mxu1  ;;  %v10226_v5 = vld [vmem:[%s18948_s3] sm:$0xf]  ;;  %v21780_v50 = vld [vmem:[#allocation122_spill] sm:$0xff] }
 0x914   : > { %6805 = vmatpush1.bf16.msra.mxu0 %v6375_v20  ;;  %v6357_v51 = vpack.c.bf16 %v4994_v2, %v4976_v52  ;;  %v4216_v4 = vsel %vm827_vm2, %v21760_v46, %v8821_v26  ;;  %v21763_v36 = vunpack.i.h.bf16 %v21762_v17  ;;  %v21766_v53 = vunpack.i.h.bf16 %v21765_v9  ;;  %v6591_v62 = vpop.f32.mrf.mxu0  ;;  %v21781_v2 = vld [vmem:[#allocation121_spill] sm:$0xff] }
 0x915   : > { %6806 = vmatprep.subr.bf16.mxu0 %v6358_v55  ;;  %v4923_v34 = vsel %vm1413_vm1, %v4142_v61, %v4216_v4  ;;  %v21769_v60 = vpack.c.bf16 %v21767_v28, %v21768_v19  ;;  %v21771_v31 = vunpack.i.h.bf16 %v21770_v42  ;;  %v4869_v39 = vsel %vm1413_vm1, %v21773_v30, %v21772_v25  ;;  %v18382_v18 = vpop.f32.mrf.mxu1  ;;  %v21782_v0 = vld [vmem:[#allocation129_spill] sm:$0xff]  ;;  %v21784_v61 = vld [vmem:[#allocation104_spill] sm:$0xff]  ;;  %v21787_v42 = vld [vmem:[#allocation103_spill] sm:$0xff] }
 0x916   : > { %v3994_v45 = vsel %vm628_vm13, %v21763_v36, %v21761_v12  ;;  %v3920_v41 = vsel %vm564_vm12, %v21766_v53, %v21764_v7  ;;  %v21776_v20 = vpack.c.bf16 %v21774_v15, %v21775_v33  ;;  %v21779_v6 = vpack.c.bf16 %v21777_v14, %v21778_v16  ;;  %v21788_v30 = vld [vmem:[#allocation97_spill] sm:$0xff] }
 0x917   : > { %v4905_v48 = vsel %vm1413_vm1, %v3994_v45, %v4068_v27  ;;  %v4887_v24 = vsel %vm1413_vm1, %v21771_v31, %v3920_v41  ;;  %v6631_v37 = vpop.f32.mrf.mxu1  ;;  %v6841_v35 = vmul.f32 %v18271_v23, %v21780_v50  ;;  %v6842_v55 = vmul.f32 %v18273_v38, %v21781_v2  ;;  %v21785_v27 = vld [vmem:[#allocation124_spill] sm:$0xff]  ;;  %vm21796_vm1 = vmmov %vm21739_vm9 }
 0x918   : > { %6807 = vmatpush1.bf16.msra.mxu0 %v6357_v51  ;;  %v6322_v47 = vpack.c.bf16 %v4923_v34, %v4905_v48  ;;  %v6304_v29 = vpack.c.bf16 %v4887_v24, %v4869_v39  ;;  %v6843_v21 = vmul.f32 %v18275_v10, %v21782_v0  ;;  %v6844_v59 = vmul.f32 %v18285_v40, %v21783_v58  ;;  %vm21797_vm2 = vmmov %vm21796_vm1 }
 0x919   : > { %6808 = vmatprep.subr.bf16.mxu0 %v6340_v22  ;;  %v6632_v26 = vpop.f32.mrf.mxu1  ;;  %v6875_v32 = vmul.f32 %v6841_v35, %v18271_v23  ;;  %v6876_v1 = vmul.f32 %v6842_v55, %v18273_v38  ;;  %v6857_v57 = vadd.f32 %v6842_v55, %v6841_v35  ;;  %v6845_v51 = vmul.f32 %v18360_v13, %v21784_v61  ;;  %v21791_v55 = vld [vmem:[#allocation123_spill] sm:$0xff] }
 0x91a   : > { %v6877_v52 = vmul.f32 %v6843_v21, %v18275_v10  ;;  %v6878_v22 = vmul.f32 %v6844_v59, %v18285_v40  ;;  %v6846_v46 = vmul.f32 %v18372_v8, %v21785_v27  ;;  %v6848_v31 = vmul.f32 %v18382_v18, %v21787_v42  ;;  %v21790_v26 = vld [vmem:[#allocation116_spill] sm:$0xff] }
 0x91b   : > { %v6891_v11 = vadd.f32 %v6876_v1, %v6875_v32  ;;  %v6858_v3 = vadd.f32 %v6857_v57, %v6843_v21  ;;  %v6879_v43 = vmul.f32 %v6845_v51, %v18360_v13 }
 0x91c   : > { %6809 = vmatpush1.bf16.msra.mxu0 %v21769_v60  ;;  %v6880_v48 = vmul.f32 %v6846_v46, %v18372_v8 }
 0x91d   : > { %6810 = vmatprep.subr.bf16.mxu0 %v6322_v47  ;;  %v6892_v44 = vadd.f32 %v6891_v11, %v6877_v52  ;;  %v6859_v49 = vadd.f32 %v6858_v3, %v6844_v59  ;;  %v21786_v47 = vld [vmem:[#allocation132_spill] sm:$0xff] }
 0x91e   : > { %v6847_v7 = vmul.f32 %v18377_v56, %v21786_v47  ;;  %v21792_v52 = vld [vmem:[#allocation88_spill] sm:$0xff] }
 0x91f   : > { %v6893_v34 = vadd.f32 %v6892_v44, %v6878_v22  ;;  %v6860_v12 = vadd.f32 %v6859_v49, %v6845_v51  ;;  %v21793_v44 = vld [vmem:[#allocation106_spill] sm:$0xff] }
 0x920   : > { %6811 = vmatpush1.bf16.msra.mxu0 %v21776_v20  ;;  %v6881_v60 = vmul.f32 %v6847_v7, %v18377_v56  ;;  %v21789_v20 = vld [vmem:[#allocation98_spill] sm:$0xff] }
 0x921   : > { %6812 = vmatprep.subr.bf16.mxu0 %v6304_v29  ;;  %v6894_v45 = vadd.f32 %v6893_v34, %v6879_v43  ;;  %v6861_v41 = vadd.f32 %v6860_v12, %v6846_v46  ;;  %v6882_v29 = vmul.f32 %v6848_v31, %v18382_v18  ;;  %v21794_v12 = vld [vmem:[#allocation87_spill] sm:$0xff] }
 0x923   : > { %v6895_v19 = vadd.f32 %v6894_v45, %v6880_v48  ;;  %v6862_v25 = vadd.f32 %v6861_v41, %v6847_v7  ;;  %v21795_v41 = vld [vmem:[#allocation76_spill] sm:$0xff] }
 0x924   : > { %6813 = vmatpush1.bf16.msra.mxu0 %v21779_v6 }
 0x925   : > { %v6896_v63 = vadd.f32 %v6895_v19, %v6881_v60  ;;  %v6863_v15 = vadd.f32 %v6862_v25, %v6848_v31 }
 0x927   : > { %7510 = vmatmul.mubr.msk.bf16.vlgmr.msra.gmra.mxu0 %vm692_vm14, %v10226_v5  ;;  %v6897_v37 = vadd.f32 %v6896_v63, %v6882_v29  ;;  %v6840_v63 = vld [vmem:[%s18952_s7] sm:$0xff] }
 0x933   : > { %v18405_v54 = vpop.f32.mrf.mxu0 }
 0x934   : > { %v6849_v39 = vmul.f32 %v18405_v54, %v21788_v30 }
 0x935   : > { %v18410_v4 = vpop.f32.mrf.mxu0 }
 0x936   : > { %v18412_v17 = vpop.f32.mrf.mxu1  ;;  %v6883_v33 = vmul.f32 %v6849_v39, %v18405_v54  ;;  %v6850_v62 = vmul.f32 %v18410_v4, %v21789_v20  ;;  %v6864_v14 = vadd.f32 %v6863_v15, %v6849_v39 }
 0x937   : > { %v6672_v36 = vpop.f32.mrf.mxu0  ;;  %v6851_v5 = vmul.f32 %v18412_v17, %v21790_v26 }
 0x938   : > { %v18417_v9 = vpop.f32.mrf.mxu1  ;;  %v6898_v16 = vadd.f32 %v6897_v37, %v6883_v33  ;;  %v6884_v6 = vmul.f32 %v6850_v62, %v18410_v4  ;;  %v6865_v50 = vadd.f32 %v6864_v14, %v6850_v62 }
 0x939   : > { %v6673_v53 = vpop.f32.mrf.mxu0  ;;  %v6885_v2 = vmul.f32 %v6851_v5, %v18412_v17  ;;  %v6852_v32 = vmul.f32 %v18417_v9, %v21791_v55 }
 0x93a   : > { %v6713_v28 = vpop.f32.mrf.mxu1  ;;  %v6899_v35 = vadd.f32 %v6898_v16, %v6884_v6  ;;  %v6866_v1 = vadd.f32 %v6865_v50, %v6851_v5 }
 0x93b   : > { %v6886_v21 = vmul.f32 %v6852_v32, %v18417_v9 }
 0x93c   : > { %v6714_v24 = vpop.f32.mrf.mxu1  ;;  %v6900_v0 = vadd.f32 %v6899_v35, %v6885_v2  ;;  %v6867_v11 = vadd.f32 %v6866_v1, %v6852_v32  ;;  %v6839_v2 = vld [vmem:[%s18951_s6] sm:$0xff] }
 0x93e   : > { %v6901_v3 = vadd.f32 %v6900_v0, %v6886_v21 }
 0x955   : > { %v18435_v57 = vpop.f32.mrf.mxu0 }
 0x956   : > { %v6853_v58 = vmul.f32 %v18435_v57, %v21792_v52 }
 0x957   : > { %v18439_v59 = vpop.f32.mrf.mxu0 }
 0x958   : > { %v6868_v61 = vadd.f32 %v6867_v11, %v6853_v58  ;;  %v6887_v51 = vmul.f32 %v6853_v58, %v18435_v57  ;;  %v6854_v22 = vmul.f32 %v18439_v59, %v21793_v44  ;;  %v18445_v34 = vpop.f32.mrf.mxu1 }
 0x959   : > { %v6754_v49 = vpop.f32.mrf.mxu0  ;;  %v6855_v36 = vmul.f32 %v18445_v34, %v21794_v12 }
 0x95a   : > { %v6902_v43 = vadd.f32 %v6901_v3, %v6887_v51  ;;  %v6869_v27 = vadd.f32 %v6868_v61, %v6854_v22  ;;  %v6888_v46 = vmul.f32 %v6854_v22, %v18439_v59  ;;  %v18449_v47 = vpop.f32.mrf.mxu1 }
 0x95b   : > { %v6755_v45 = vpop.f32.mrf.mxu0  ;;  %v6889_v53 = vmul.f32 %v6855_v36, %v18445_v34  ;;  %v6856_v28 = vmul.f32 %v18449_v47, %v21795_v41 }
 0x95c   : > { %v6903_v48 = vadd.f32 %v6902_v43, %v6888_v46  ;;  %v6870_v7 = vadd.f32 %v6869_v27, %v6855_v36  ;;  %v6795_v19 = vpop.f32.mrf.mxu1 }
 0x95d   : > { %v6890_v42 = vmul.f32 %v6856_v28, %v18449_v47  ;;  %v6871_v31 = vsel %vm21796_vm1, %v6856_v28, 0.0 }
 0x95e   : > { %v6904_v60 = vadd.f32 %v6903_v48, %v6889_v53  ;;  %v6796_v24 = vpop.f32.mrf.mxu1  ;;  %v6872_v25 = vadd.f32 %v6871_v31, %v6870_v7 }
 0x95f   : > { %v6905_v30 = vsel %vm21797_vm2, %v6890_v42, 0.0 }
 0x960   : > { %6873 = vadd.xlane.f32.xlu0 %v6872_v25  ;;  %v6906_v39 = vadd.f32 %v6905_v30, %v6904_v60 }
 0x962   : > { %6907 = vadd.xlane.f32.xlu1 %v6906_v39 }
 0x973   : > { %6959 = vperm.xlu1 %8770, %v6840_v63  }
 0x9e7   : > { %v18460_v29 = vpop.f32.mrf.mxu0 }
 0x9e9   : > { %v18462_v15 = vpop.f32.mrf.mxu0  ;;  %v6874_v33 = vpop.xlane.xlu0 %6873 }
 0x9ea   : > { %v18464_v20 = vmul.f32 0.0006510417, %v6874_v33 }
 0x9eb   : > { %v6836_v62 = vpop.f32.mrf.mxu0  ;;  %v6908_v37 = vpop.xlane.xlu1 %6907 }
 0x9ec   : > { %v6931_v14 = vsub.f32 %v18460_v29, %v18464_v20  ;;  %v6910_v16 = vmul.f32 0.0006510417, %v6908_v37  ;;  %v6911_v6 = vmul.f32 %v18464_v20, %v18464_v20  ;;  %v6932_v26 = vsub.f32 %v18462_v15, %v18464_v20 }
 0x9ed   : > { %v6837_v5 = vpop.f32.mrf.mxu0  ;;  %v6917_v1 = vsub.f32 %v18275_v10, %v18464_v20  ;;  %v6916_v0 = vsub.f32 %v18273_v38, %v18464_v20  ;;  %v6919_v21 = vsub.f32 %v18360_v13, %v18464_v20  ;;  %v6918_v11 = vsub.f32 %v18285_v40, %v18464_v20 }
 0x9ee   : > { %v6912_v50 = vsub.f32 %v6910_v16, %v6911_v6  ;;  %v6921_v52 = vsub.f32 %v18377_v56, %v18464_v20  ;;  %v6920_v58 = vsub.f32 %v18372_v8, %v18464_v20  ;;  %v6923_v3 = vsub.f32 %v18405_v54, %v18464_v20 }
 0x9ef   : > { %v6922_v10 = vsub.f32 %v18382_v18, %v18464_v20  ;;  %v6925_v38 = vsub.f32 %v18412_v17, %v18464_v20  ;;  %v6924_v13 = vsub.f32 %v18410_v4, %v18464_v20  ;;  %v6927_v40 = vsub.f32 %v18435_v57, %v18464_v20  ;;  %v18513_v44 = vpop.permute.xlu1 %6959 }
 0x9f0   : > { %v6913_v35 = vadd.f32 1e-05, %v6912_v50  ;;  %v6926_v56 = vsub.f32 %v18417_v9, %v18464_v20  ;;  %v6929_v54 = vsub.f32 %v18445_v34, %v18464_v20  ;;  %v6928_v18 = vsub.f32 %v18439_v59, %v18464_v20 }
 0x9f1   : > { %v6930_v17 = vsub.f32 %v18449_v47, %v18464_v20  ;;  %v6915_v4 = vsub.f32 %v18271_v23, %v18464_v20 }
 0x9f2   : > { %10200 = vrsqrt.f32 %v6913_v35 }
 0x9ff   : > { %v10201_v55 = vpop.eup %10200 }
 0xa00   : > { %v6933_v32 = vmul.f32 %v10201_v55, %v6839_v2 }
 0xa02   : > { %6936 = vperm.xlu0 %8801, %v6933_v32  }
 0xa7d   : > { %v18499_v8 = vpop.permute.xlu0 %6936 }
 0xa7e   : > { %v6941_v61 = vmul.f32 %v18499_v8, %v6917_v1  ;;  %v6940_v57 = vmul.f32 %v18499_v8, %v6916_v0  ;;  %v6943_v9 = vmul.f32 %v18499_v8, %v6919_v21  ;;  %v6942_v51 = vmul.f32 %v18499_v8, %v6918_v11 }
 0xa7f   : > { %v6945_v22 = vmul.f32 %v18499_v8, %v6921_v52  ;;  %v6944_v49 = vmul.f32 %v18499_v8, %v6920_v58  ;;  %v6947_v43 = vmul.f32 %v18499_v8, %v6923_v3  ;;  %v6946_v27 = vmul.f32 %v18499_v8, %v6922_v10 }
 0xa80   : > { %v6964_v46 = vadd.f32 %v18513_v44, %v6941_v61  ;;  %v6963_v34 = vadd.f32 %v18513_v44, %v6940_v57  ;;  %v6966_v12 = vadd.f32 %v18513_v44, %v6943_v9  ;;  %v6965_v36 = vadd.f32 %v18513_v44, %v6942_v51 }
 0xa81   : > { %v6968_v45 = vadd.f32 %v18513_v44, %v6945_v22  ;;  %v6967_v48 = vadd.f32 %v18513_v44, %v6944_v49  ;;  %v6970_v7 = vadd.f32 %v18513_v44, %v6947_v43  ;;  %v6969_v53 = vadd.f32 %v18513_v44, %v6946_v27 }
 0xa82   : > { %vm6982_vm13 = vcmp.ge.f32.partialorder %v6964_v46, 0.0  ;;  %v7000_v41 = vmul.f32 0.01, %v6964_v46  ;;  %vm6981_vm14 = vcmp.ge.f32.partialorder %v6963_v34, 0.0  ;;  %v6999_v28 = vmul.f32 0.01, %v6963_v34 }
 0xa83   : > { %vm6984_vm15 = vcmp.ge.f32.partialorder %v6966_v12, 0.0  ;;  %v7002_v19 = vmul.f32 0.01, %v6966_v12  ;;  %vm6983_vm6 = vcmp.ge.f32.partialorder %v6965_v36, 0.0  ;;  %v7001_v60 = vmul.f32 0.01, %v6965_v36 }
 0xa84   : > { %v18535_v42 = vsel %vm6982_vm13, %v6964_v46, %v7000_v41  ;;  %v18537_v31 = vsel %vm6981_vm14, %v6963_v34, %v6999_v28  ;;  %vm6986_vm9 = vcmp.ge.f32.partialorder %v6968_v45, 0.0  ;;  %v7004_v24 = vmul.f32 0.01, %v6968_v45 }
 0xa85   : > { %7072 = vrot.lane.b32.xlu1 %v18535_v42, %s10236_s15  ;;  %7036 = vst [vmem:[%s18533_s18 + $0x10] sm:$0xff] %v18535_v42  ;;  %7070 = vrot.lane.b32.xlu0 %v18537_v31, %s10236_s15  ;;  %7035 = vst [vmem:[%s18533_s18 + $0x8] sm:$0xff] %v18537_v31  ;;  %v18547_v25 = vsel %vm6984_vm15, %v6966_v12, %v7002_v19  ;;  %v18549_v30 = vsel %vm6983_vm6, %v6965_v36, %v7001_v60  ;;  %vm6985_vm0 = vcmp.ge.f32.partialorder %v6967_v48, 0.0  ;;  %vm21798_vm14 = vcmask 785408  }
 0xa86   : > { %v7003_v39 = vmul.f32 0.01, %v6967_v48  ;;  %7038 = vst [vmem:[%s18533_s18 + $0x20] sm:$0xff] %v18547_v25  ;;  %7037 = vst [vmem:[%s18533_s18 + $0x18] sm:$0xff] %v18549_v30  ;;  %v18555_v63 = vsel %vm6986_vm9, %v6968_v45, %v7004_v24  ;;  %vm6988_vm11 = vcmp.ge.f32.partialorder %v6970_v7, 0.0  ;;  %vm6987_vm7 = vcmp.ge.f32.partialorder %v6969_v53, 0.0 }
 0xa87   : > { %v7006_v33 = vmul.f32 0.01, %v6970_v7  ;;  %7040 = vst [vmem:[%s18533_s18 + $0x30] sm:$0xff] %v18555_v63  ;;  %v7005_v37 = vmul.f32 0.01, %v6969_v53  ;;  %v6949_v16 = vmul.f32 %v18499_v8, %v6925_v38  ;;  %v6948_v6 = vmul.f32 %v18499_v8, %v6924_v13 }
 0xa88   : > { %v18559_v62 = vsel %vm6985_vm0, %v6967_v48, %v7003_v39  ;;  %v6951_v50 = vmul.f32 %v18499_v8, %v6927_v40  ;;  %v6950_v35 = vmul.f32 %v18499_v8, %v6926_v56  ;;  %v6953_v2 = vmul.f32 %v18499_v8, %v6929_v54 }
 0xa89   : > { %7039 = vst [vmem:[%s18533_s18 + $0x28] sm:$0xff] %v18559_v62  ;;  %v18565_v5 = vsel %vm6988_vm11, %v6970_v7, %v7006_v33  ;;  %7076 = vrot.lane.b32.xlu1 %v18547_v25, %s10236_s15  ;;  %7074 = vrot.lane.b32.xlu0 %v18549_v30, %s10236_s15  ;;  %v18576_v55 = vsel %vm6987_vm7, %v6969_v53, %v7005_v37  ;;  %vm21799_vm9 = vcmask 1039360  }
 0xa8a   : > { %7042 = vst [vmem:[%s18533_s18 + $0x40] sm:$0xff] %v18565_v5  ;;  %v6972_v32 = vadd.f32 %v18513_v44, %v6949_v16  ;;  %v6971_v1 = vadd.f32 %v18513_v44, %v6948_v6  ;;  %7041 = vst [vmem:[%s18533_s18 + $0x38] sm:$0xff] %v18576_v55  ;;  %v6974_v0 = vadd.f32 %v18513_v44, %v6951_v50 }
 0xa8b   : > { %v6973_v21 = vadd.f32 %v18513_v44, %v6950_v35  ;;  %v6976_v11 = vadd.f32 %v18513_v44, %v6953_v2  ;;  %v6952_v52 = vmul.f32 %v18499_v8, %v6928_v18  ;;  %v6954_v61 = vmul.f32 %v18499_v8, %v6930_v17  ;;  %vm21800_vm0 = vmmov %vm21799_vm9 }
 0xa8c   : > { %vm6990_vm8 = vcmp.ge.f32.partialorder %v6972_v32, 0.0  ;;  %v7008_v58 = vmul.f32 0.01, %v6972_v32  ;;  %vm6989_vm10 = vcmp.ge.f32.partialorder %v6971_v1, 0.0  ;;  %v7007_v3 = vmul.f32 0.01, %v6971_v1  ;;  %vm21801_vm11 = vmmov %vm21800_vm0 }
 0xa8d   : > { %vm6992_vm5 = vcmp.ge.f32.partialorder %v6974_v0, 0.0  ;;  %v7010_v10 = vmul.f32 0.01, %v6974_v0  ;;  %vm6991_vm3 = vcmp.ge.f32.partialorder %v6973_v21, 0.0  ;;  %v7009_v38 = vmul.f32 0.01, %v6973_v21  ;;  %7080 = vrot.lane.b32.xlu1 %v18555_v63, %s10236_s15  ;;  %7078 = vrot.lane.b32.xlu0 %v18559_v62, %s10236_s15  ;;  %vm21802_vm7 = vmmov %vm21800_vm0 }
 0xa8e   : > { %v18593_v59 = vsel %vm6990_vm8, %v6972_v32, %v7008_v58  ;;  %v18595_v13 = vsel %vm6989_vm10, %v6971_v1, %v7007_v3  ;;  %vm6994_vm4 = vcmp.ge.f32.partialorder %v6976_v11, 0.0  ;;  %v7012_v40 = vmul.f32 0.01, %v6976_v11  ;;  %vm21803_vm8 = vmmov %vm21800_vm0 }
 0xa8f   : > { %7044 = vst [vmem:[%s18533_s18 + $0x50] sm:$0xff] %v18593_v59  ;;  %7043 = vst [vmem:[%s18533_s18 + $0x48] sm:$0xff] %v18595_v13  ;;  %v18601_v56 = vsel %vm6992_vm5, %v6974_v0, %v7010_v10  ;;  %v18603_v54 = vsel %vm6991_vm3, %v6973_v21, %v7009_v38  ;;  %v6975_v18 = vadd.f32 %v18513_v44, %v6952_v52 }
 0xa90   : > { %7046 = vst [vmem:[%s18533_s18 + $0x60] sm:$0xff] %v18601_v56  ;;  %7045 = vst [vmem:[%s18533_s18 + $0x58] sm:$0xff] %v18603_v54  ;;  %v18614_v57 = vsel %vm6994_vm4, %v6976_v11, %v7012_v40  ;;  %v6939_v9 = vmul.f32 %v18499_v8, %v6915_v4  ;;  %v6977_v47 = vadd.f32 %v18513_v44, %v6954_v61 }
 0xa91   : > { %7048 = vst [vmem:[%s18533_s18 + $0x70] sm:$0xff] %v18614_v57  ;;  %vm6993_vm1 = vcmp.ge.f32.partialorder %v6975_v18, 0.0  ;;  %v7011_v51 = vmul.f32 0.01, %v6975_v18  ;;  %7084 = vrot.lane.b32.xlu1 %v18565_v5, %s10236_s15  ;;  %7082 = vrot.lane.b32.xlu0 %v18576_v55, %s10236_s15  ;;  %v6955_v43 = vmul.f32 %v18499_v8, %v6931_v14  ;;  %v6956_v29 = vmul.f32 %v18499_v8, %v6932_v26  ;;  %vm21804_vm10 = vmmov %vm21800_vm0 }
 0xa92   : > { %v6962_v17 = vadd.f32 %v18513_v44, %v6939_v9  ;;  %vm6995_vm2 = vcmp.ge.f32.partialorder %v6977_v47, 0.0  ;;  %v7013_v23 = vmul.f32 0.01, %v6977_v47  ;;  %vm21805_vm5 = vmmov %vm21800_vm0 }
 0xa93   : > { %v18628_v22 = vsel %vm6993_vm1, %v6975_v18, %v7011_v51  ;;  %v6978_v46 = vadd.f32 %v18513_v44, %v6955_v43  ;;  %v6979_v34 = vadd.f32 %v18513_v44, %v6956_v29  ;;  %vm21806_vm3 = vmmov %vm21800_vm0 }
 0xa94   : > { %7047 = vst [vmem:[%s18533_s18 + $0x68] sm:$0xff] %v18628_v22  ;;  %vm6980_vm13 = vcmp.ge.f32.partialorder %v6962_v17, 0.0  ;;  %v6998_v4 = vmul.f32 0.01, %v6962_v17  ;;  %v18632_v49 = vsel %vm6995_vm2, %v6977_v47, %v7013_v23  ;;  %vm21807_vm4 = vmmov %vm21800_vm0 }
 0xa95   : > { %7088 = vrot.lane.b32.xlu1 %v18593_v59, %s10236_s15  ;;  %7086 = vrot.lane.b32.xlu0 %v18595_v13, %s10236_s15  ;;  %7049 = vst.msk [vmem:[%s18533_s18 + $0x78] sm:$0xff] %vm21798_vm14, %v18632_v49  ;;  %v7014_v14 = vmul.f32 0.01, %v6978_v46  ;;  %vm6996_vm15 = vcmp.ge.f32.partialorder %v6978_v46, 0.0  ;;  %v7015_v15 = vmul.f32 0.01, %v6979_v34  ;;  %vm21808_vm1 = vmmov %vm21800_vm0 }
 0xa96   : > { %v18645_v27 = vsel %vm6980_vm13, %v6962_v17, %v6998_v4  ;;  %vm6997_vm6 = vcmp.ge.f32.partialorder %v6979_v34, 0.0  ;;  %vm21809_vm2 = vmmov %vm21800_vm0 }
 0xa97   : > { %7034 = vst [vmem:[%s18533_s18] sm:$0xff] %v18645_v27  ;;  %v18663_v12 = vsel %vm6996_vm15, %v6978_v46, %v7014_v14  ;;  %v18669_v20 = vsel %vm6997_vm6, %v6979_v34, %v7015_v15  ;;  %vm21810_vm13 = vmmov %vm21800_vm0 }
 0xa98   : > { %vm21811_vm14 = vmmov %vm21800_vm0 }
 0xa99   : > { %7092 = vrot.lane.b32.xlu1 %v18601_v56, %s10236_s15  ;;  %7090 = vrot.lane.b32.xlu0 %v18603_v54, %s10236_s15  ;;  %vm21812_vm15 = vmmov %vm21800_vm0 }
 0xa9a   : > { %vm21813_vm6 = vmmov %vm21800_vm0 }
 0xa9d   : > { %7096 = vrot.lane.b32.xlu1 %v18614_v57, %s10236_s15  ;;  %7094 = vrot.lane.b32.xlu0 %v18628_v22, %s10236_s15 }
 0xaa1   : > { %7098 = vrot.lane.b32.xlu0 %v18632_v49, %s10236_s15  ;;  %7100 = vrot.lane.b32.xlu1 %v18663_v12, %s10236_s15 }
 0xaa5   : > { %7068 = vrot.lane.b32.xlu1 %v18645_v27, %s10236_s15  ;;  %7102 = vrot.lane.b32.xlu0 %v18669_v20, %s10236_s15 }
 0xaf7   : > { %v7073_v26 = vpop.permute.xlu1 %7072  ;;  %v18675_v8 = vpop.permute.xlu0 %7070 }
 0xaf8   : > { %v7105_v44 = vsel %vm21799_vm9, %v18675_v8, %v7073_v26  ;;  %vm21814_vm9 = vmmov %vm21800_vm0 }
 0xaf9   : > { %v18680_v36 = vmax.f32 %v18537_v31, %v7105_v44 }
 0xafb   : > { %v7077_v45 = vpop.permute.xlu1 %7076  ;;  %v7075_v48 = vpop.permute.xlu0 %7074  ;;  %7177 = vrot.lane.b32.xlu0 %v18680_v36, %s10238_s17 }
 0xafc   : > { %v7106_v7 = vsel %vm21800_vm0, %v7073_v26, %v7075_v48  ;;  %v7107_v53 = vsel %vm21801_vm11, %v7075_v48, %v7077_v45  ;;  %vm21815_vm11 = vcmask 31744  }
 0xafd   : > { %v18687_v41 = vmax.f32 %v18535_v42, %v7106_v7  ;;  %v18690_v28 = vmax.f32 %v18549_v30, %v7107_v53 }
 0xaff   : > { %v7081_v19 = vpop.permute.xlu1 %7080  ;;  %v7079_v60 = vpop.permute.xlu0 %7078  ;;  %7179 = vrot.lane.b32.xlu1 %v18687_v41, %s10238_s17  ;;  %7181 = vrot.lane.b32.xlu0 %v18690_v28, %s10238_s17 }
 0xb00   : > { %v7108_v31 = vsel %vm21802_vm7, %v7077_v45, %v7079_v60  ;;  %v7109_v24 = vsel %vm21803_vm8, %v7079_v60, %v7081_v19  ;;  %vm21817_vm7 = vmmov %vm21815_vm11 }
 0xb01   : > { %v18699_v39 = vmax.f32 %v18547_v25, %v7108_v31  ;;  %v18702_v42 = vmax.f32 %v18559_v62, %v7109_v24  ;;  %vm21818_vm8 = vmmov %vm21817_vm7 }
 0xb03   : > { %v7085_v30 = vpop.permute.xlu1 %7084  ;;  %v7083_v33 = vpop.permute.xlu0 %7082  ;;  %7183 = vrot.lane.b32.xlu1 %v18699_v39, %s10238_s17  ;;  %7185 = vrot.lane.b32.xlu0 %v18702_v42, %s10238_s17 }
 0xb04   : > { %v7110_v37 = vsel %vm21804_vm10, %v7081_v19, %v7083_v33  ;;  %v7111_v16 = vsel %vm21805_vm5, %v7083_v33, %v7085_v30  ;;  %vm21819_vm10 = vmmov %vm21817_vm7 }
 0xb05   : > { %v18711_v6 = vmax.f32 %v18555_v63, %v7110_v37  ;;  %v18714_v25 = vmax.f32 %v18576_v55, %v7111_v16  ;;  %vm21820_vm5 = vmmov %vm21817_vm7 }
 0xb07   : > { %v7089_v62 = vpop.permute.xlu1 %7088  ;;  %v7087_v50 = vpop.permute.xlu0 %7086  ;;  %7187 = vrot.lane.b32.xlu1 %v18711_v6, %s10238_s17  ;;  %7189 = vrot.lane.b32.xlu0 %v18714_v25, %s10238_s17 }
 0xb08   : > { %v7112_v35 = vsel %vm21806_vm3, %v7085_v30, %v7087_v50  ;;  %v7113_v2 = vsel %vm21807_vm4, %v7087_v50, %v7089_v62  ;;  %vm21821_vm3 = vmmov %vm21820_vm5 }
 0xb09   : > { %v18723_v32 = vmax.f32 %v18565_v5, %v7112_v35  ;;  %v18726_v63 = vmax.f32 %v18595_v13, %v7113_v2  ;;  %vm21822_vm4 = vmmov %vm21821_vm3 }
 0xb0b   : > { %v7093_v55 = vpop.permute.xlu1 %7092  ;;  %v7091_v1 = vpop.permute.xlu0 %7090  ;;  %7191 = vrot.lane.b32.xlu1 %v18723_v32, %s10238_s17  ;;  %7193 = vrot.lane.b32.xlu0 %v18726_v63, %s10238_s17 }
 0xb0c   : > { %v7114_v0 = vsel %vm21808_vm1, %v7089_v62, %v7091_v1  ;;  %v7115_v21 = vsel %vm21809_vm2, %v7091_v1, %v7093_v55  ;;  %vm21823_vm1 = vmmov %vm21821_vm3 }
 0xb0d   : > { %v18735_v11 = vmax.f32 %v18593_v59, %v7114_v0  ;;  %v18738_v5 = vmax.f32 %v18603_v54, %v7115_v21  ;;  %vm21824_vm2 = vmmov %vm21823_vm1 }
 0xb0f   : > { %v7097_v52 = vpop.permute.xlu1 %7096  ;;  %v7095_v58 = vpop.permute.xlu0 %7094  ;;  %7195 = vrot.lane.b32.xlu1 %v18735_v11, %s10238_s17  ;;  %7197 = vrot.lane.b32.xlu0 %v18738_v5, %s10238_s17 }
 0xb10   : > { %v7116_v3 = vsel %vm21810_vm13, %v7093_v55, %v7095_v58  ;;  %v7117_v10 = vsel %vm21811_vm14, %v7095_v58, %v7097_v52  ;;  %vm21825_vm13 = vmmov %vm21823_vm1 }
 0xb11   : > { %v18747_v38 = vmax.f32 %v18601_v56, %v7116_v3  ;;  %v18750_v59 = vmax.f32 %v18628_v22, %v7117_v10  ;;  %vm21826_vm14 = vmmov %vm21823_vm1 }
 0xb13   : > { %v7099_v13 = vpop.permute.xlu0 %7098  ;;  %7199 = vrot.lane.b32.xlu1 %v18747_v38, %s10238_s17  ;;  %v7101_v40 = vpop.permute.xlu1 %7100  ;;  %7201 = vrot.lane.b32.xlu0 %v18750_v59, %s10238_s17 }
 0xb14   : > { %v7118_v54 = vsel %vm21812_vm15, %v7097_v52, %v7099_v13  ;;  %v7119_v18 = vsel %vm21813_vm6, %v7099_v13, %v7101_v40  ;;  %vm21827_vm15 = vmmov %vm21823_vm1 }
 0xb15   : > { %v18759_v61 = vmax.f32 %v18614_v57, %v7118_v54  ;;  %v18762_v56 = vmax.f32 %v18632_v49, %v7119_v18  ;;  %vm21828_vm6 = vmmov %vm21823_vm1 }
 0xb17   : > { %7203 = vrot.lane.b32.xlu1 %v18759_v61, %s10238_s17  ;;  %v7069_v9 = vpop.permute.xlu1 %7068  ;;  %7205 = vrot.lane.b32.xlu0 %v18762_v56, %s10238_s17  ;;  %v7103_v51 = vpop.permute.xlu0 %7102 }
 0xb18   : > { %v7120_v47 = vsel %vm21814_vm9, %v7101_v40, %v7103_v51  ;;  %v18770_v17 = vmax.f32 %v18669_v20, %v7103_v51  ;;  %v7104_v57 = vsel %vm21800_vm0, %v7069_v9, %v18675_v8  ;;  %vm21829_vm9 = vmmov %vm21823_vm1 }
 0xb19   : > { %v18773_v22 = vmax.f32 %v18663_v12, %v7120_v47  ;;  %v18782_v23 = vmax.f32 %v18645_v27, %v7104_v57  ;;  %vm21830_vm0 = vmmov %vm21823_vm1 }
 0xb1b   : > { %7209 = vrot.lane.b32.xlu0 %v18770_v17, %s10238_s17  ;;  %7207 = vrot.lane.b32.xlu1 %v18773_v22, %s10238_s17 }
 0xb1f   : > { %7175 = vrot.lane.b32.xlu1 %v18782_v23, %s10238_s17 }
 0xb6d   : > { %v18786_v4 = vpop.permute.xlu0 %7177 }
 0xb71   : > { %v7180_v49 = vpop.permute.xlu1 %7179  ;;  %v7182_v43 = vpop.permute.xlu0 %7181 }
 0xb72   : > { %v7212_v46 = vsel %vm564_vm12, %v18786_v4, %v7180_v49  ;;  %v7213_v29 = vsel %vm564_vm12, %v7180_v49, %v7182_v43 }
 0xb73   : > { %v18792_v14 = vmax.f32 %v18680_v36, %v7212_v46  ;;  %v18795_v34 = vmax.f32 %v18687_v41, %v7213_v29 }
 0xb75   : > { %v7184_v27 = vpop.permute.xlu1 %7183  ;;  %7281 = vrot.lane.b32.xlu0 %v18792_v14, %s10244_s23  ;;  %7283 = vrot.lane.b32.xlu1 %v18795_v34, %s10244_s23  ;;  %v7186_v12 = vpop.permute.xlu0 %7185 }
 0xb76   : > { %v7214_v15 = vsel %vm564_vm12, %v7182_v43, %v7184_v27  ;;  %v7215_v20 = vsel %vm564_vm12, %v7184_v27, %v7186_v12 }
 0xb77   : > { %v18804_v26 = vmax.f32 %v18690_v28, %v7214_v15  ;;  %v18807_v8 = vmax.f32 %v18699_v39, %v7215_v20 }
 0xb79   : > { %v7188_v44 = vpop.permute.xlu1 %7187  ;;  %7285 = vrot.lane.b32.xlu0 %v18804_v26, %s10244_s23  ;;  %7287 = vrot.lane.b32.xlu1 %v18807_v8, %s10244_s23  ;;  %v7190_v36 = vpop.permute.xlu0 %7189 }
 0xb7a   : > { %v7216_v45 = vsel %vm564_vm12, %v7186_v12, %v7188_v44  ;;  %v7217_v48 = vsel %vm564_vm12, %v7188_v44, %v7190_v36 }
 0xb7b   : > { %v18816_v7 = vmax.f32 %v18702_v42, %v7216_v45  ;;  %v18819_v53 = vmax.f32 %v18711_v6, %v7217_v48 }
 0xb7d   : > { %v7192_v41 = vpop.permute.xlu1 %7191  ;;  %7289 = vrot.lane.b32.xlu0 %v18816_v7, %s10244_s23  ;;  %7291 = vrot.lane.b32.xlu1 %v18819_v53, %s10244_s23  ;;  %v7194_v28 = vpop.permute.xlu0 %7193 }
 0xb7e   : > { %v7218_v19 = vsel %vm564_vm12, %v7190_v36, %v7192_v41  ;;  %v7219_v60 = vsel %vm564_vm12, %v7192_v41, %v7194_v28 }
 0xb7f   : > { %v18828_v31 = vmax.f32 %v18714_v25, %v7218_v19  ;;  %v18831_v24 = vmax.f32 %v18723_v32, %v7219_v60 }
 0xb81   : > { %v7196_v39 = vpop.permute.xlu1 %7195  ;;  %7293 = vrot.lane.b32.xlu0 %v18828_v31, %s10244_s23  ;;  %7295 = vrot.lane.b32.xlu1 %v18831_v24, %s10244_s23  ;;  %v7198_v42 = vpop.permute.xlu0 %7197 }
 0xb82   : > { %v7220_v30 = vsel %vm564_vm12, %v7194_v28, %v7196_v39  ;;  %v7221_v33 = vsel %vm564_vm12, %v7196_v39, %v7198_v42 }
 0xb83   : > { %v18840_v37 = vmax.f32 %v18726_v63, %v7220_v30  ;;  %v18843_v16 = vmax.f32 %v18735_v11, %v7221_v33 }
 0xb85   : > { %v7200_v6 = vpop.permute.xlu1 %7199  ;;  %7297 = vrot.lane.b32.xlu0 %v18840_v37, %s10244_s23  ;;  %7299 = vrot.lane.b32.xlu1 %v18843_v16, %s10244_s23  ;;  %v7202_v25 = vpop.permute.xlu0 %7201 }
 0xb86   : > { %v7222_v62 = vsel %vm564_vm12, %v7198_v42, %v7200_v6  ;;  %v7223_v50 = vsel %vm564_vm12, %v7200_v6, %v7202_v25 }
 0xb87   : > { %v18852_v35 = vmax.f32 %v18738_v5, %v7222_v62  ;;  %v18855_v2 = vmax.f32 %v18747_v38, %v7223_v50 }
 0xb89   : > { %v7204_v32 = vpop.permute.xlu1 %7203  ;;  %7301 = vrot.lane.b32.xlu0 %v18852_v35, %s10244_s23  ;;  %7303 = vrot.lane.b32.xlu1 %v18855_v2, %s10244_s23  ;;  %v7206_v63 = vpop.permute.xlu0 %7205 }
 0xb8a   : > { %v7224_v55 = vsel %vm564_vm12, %v7202_v25, %v7204_v32  ;;  %v7225_v1 = vsel %vm564_vm12, %v7204_v32, %v7206_v63 }
 0xb8b   : > { %v18864_v0 = vmax.f32 %v18750_v59, %v7224_v55  ;;  %v18867_v21 = vmax.f32 %v18759_v61, %v7225_v1 }
 0xb8d   : > { %v7208_v11 = vpop.permute.xlu1 %7207  ;;  %7305 = vrot.lane.b32.xlu0 %v18864_v0, %s10244_s23  ;;  %7307 = vrot.lane.b32.xlu1 %v18867_v21, %s10244_s23  ;;  %v7210_v5 = vpop.permute.xlu0 %7209 }
 0xb8e   : > { %v7226_v52 = vsel %vm564_vm12, %v7206_v63, %v7208_v11  ;;  %v7227_v58 = vsel %vm564_vm12, %v7208_v11, %v7210_v5  ;;  %v7263_v38 = vmax.f32 %v18770_v17, %v7210_v5 }
 0xb8f   : > { %v18876_v3 = vmax.f32 %v18762_v56, %v7226_v52  ;;  %v7262_v10 = vmax.f32 %v18773_v22, %v7227_v58 }
 0xb91   : > { %7309 = vrot.lane.b32.xlu0 %v18876_v3, %s10244_s23  ;;  %7311 = vrot.lane.b32.xlu1 %v7262_v10, %s10244_s23  ;;  %v7176_v59 = vpop.permute.xlu1 %7175 }
 0xb92   : > { %v7211_v13 = vsel %vm564_vm12, %v7176_v59, %v18786_v4  ;;  %vm21816_vm12 = vmmov %vm21815_vm11 }
 0xb93   : > { %v7246_v40 = vmax.f32 %v18782_v23, %v7211_v13 }
 0xb95   : > { %7313 = vrot.lane.b32.xlu0 %v7263_v38, %s10244_s23 }
 0xbe7   : > { %v7284_v54 = vpop.permute.xlu1 %7283  ;;  %v7282_v18 = vpop.permute.xlu0 %7281 }
 0xbe8   : > { %v7315_v61 = vsel %vm21815_vm11, %v7282_v18, %v7284_v54  ;;  %vm21831_vm11 = vcmask 785408  }
 0xbe9   : > { %v7347_v56 = vmax.f32 %v7246_v40, %v7315_v61 }
 0xbeb   : > { %7363 = vst [vmem:[%s18892_s19] sm:$0xff] %v7347_v56  ;;  %v7288_v9 = vpop.permute.xlu1 %7287  ;;  %v7286_v51 = vpop.permute.xlu0 %7285 }
 0xbec   : > { %v7316_v47 = vsel %vm21816_vm12, %v7284_v54, %v7286_v51  ;;  %v7317_v17 = vsel %vm21817_vm7, %v7286_v51, %v7288_v9 }
 0xbed   : > { %v7348_v22 = vmax.f32 %v18792_v14, %v7316_v47  ;;  %v7349_v57 = vmax.f32 %v18795_v34, %v7317_v17 }
 0xbef   : > { %7364 = vst [vmem:[%s18892_s19 + $0x8] sm:$0xff] %v7348_v22  ;;  %7365 = vst [vmem:[%s18892_s19 + $0x10] sm:$0xff] %v7349_v57  ;;  %v7292_v23 = vpop.permute.xlu1 %7291  ;;  %v7290_v4 = vpop.permute.xlu0 %7289 }
 0xbf0   : > { %v7318_v49 = vsel %vm21818_vm8, %v7288_v9, %v7290_v4  ;;  %v7319_v43 = vsel %vm21819_vm10, %v7290_v4, %v7292_v23 }
 0xbf1   : > { %v7350_v46 = vmax.f32 %v18804_v26, %v7318_v49  ;;  %v7351_v29 = vmax.f32 %v18807_v8, %v7319_v43 }
 0xbf3   : > { %7366 = vst [vmem:[%s18892_s19 + $0x18] sm:$0xff] %v7350_v46  ;;  %7367 = vst [vmem:[%s18892_s19 + $0x20] sm:$0xff] %v7351_v29  ;;  %v7296_v14 = vpop.permute.xlu1 %7295  ;;  %v7294_v34 = vpop.permute.xlu0 %7293 }
 0xbf4   : > { %v7320_v27 = vsel %vm21820_vm5, %v7292_v23, %v7294_v34  ;;  %v7321_v12 = vsel %vm21821_vm3, %v7294_v34, %v7296_v14 }
 0xbf5   : > { %v7352_v15 = vmax.f32 %v18816_v7, %v7320_v27  ;;  %v7353_v20 = vmax.f32 %v18819_v53, %v7321_v12 }
 0xbf7   : > { %7368 = vst [vmem:[%s18892_s19 + $0x28] sm:$0xff] %v7352_v15  ;;  %7369 = vst [vmem:[%s18892_s19 + $0x30] sm:$0xff] %v7353_v20  ;;  %v7300_v26 = vpop.permute.xlu1 %7299  ;;  %v7298_v8 = vpop.permute.xlu0 %7297 }
 0xbf8   : > { %v7322_v44 = vsel %vm21822_vm4, %v7296_v14, %v7298_v8  ;;  %v7323_v36 = vsel %vm21823_vm1, %v7298_v8, %v7300_v26 }
 0xbf9   : > { %v7354_v45 = vmax.f32 %v18828_v31, %v7322_v44  ;;  %v7355_v48 = vmax.f32 %v18831_v24, %v7323_v36 }
 0xbfb   : > { %7370 = vst [vmem:[%s18892_s19 + $0x38] sm:$0xff] %v7354_v45  ;;  %7371 = vst [vmem:[%s18892_s19 + $0x40] sm:$0xff] %v7355_v48  ;;  %v7304_v7 = vpop.permute.xlu1 %7303  ;;  %v7302_v53 = vpop.permute.xlu0 %7301 }
 0xbfc   : > { %v7324_v41 = vsel %vm21824_vm2, %v7300_v26, %v7302_v53  ;;  %v7325_v28 = vsel %vm21825_vm13, %v7302_v53, %v7304_v7 }
 0xbfd   : > { %v7356_v19 = vmax.f32 %v18840_v37, %v7324_v41  ;;  %v7357_v60 = vmax.f32 %v18843_v16, %v7325_v28 }
 0xbff   : > { %7372 = vst [vmem:[%s18892_s19 + $0x48] sm:$0xff] %v7356_v19  ;;  %7373 = vst [vmem:[%s18892_s19 + $0x50] sm:$0xff] %v7357_v60  ;;  %v7308_v31 = vpop.permute.xlu1 %7307  ;;  %v7306_v24 = vpop.permute.xlu0 %7305 }
 0xc00   : > { %v7326_v39 = vsel %vm21826_vm14, %v7304_v7, %v7306_v24  ;;  %v7327_v42 = vsel %vm21827_vm15, %v7306_v24, %v7308_v31 }
 0xc01   : > { %v7358_v30 = vmax.f32 %v18852_v35, %v7326_v39  ;;  %v7359_v33 = vmax.f32 %v18855_v2, %v7327_v42 }
 0xc03   : > { %7374 = vst [vmem:[%s18892_s19 + $0x58] sm:$0xff] %v7358_v30  ;;  %7375 = vst [vmem:[%s18892_s19 + $0x60] sm:$0xff] %v7359_v33  ;;  %v7312_v37 = vpop.permute.xlu1 %7311  ;;  %v7310_v6 = vpop.permute.xlu0 %7309 }
 0xc04   : > { %v7328_v16 = vsel %vm21828_vm6, %v7308_v31, %v7310_v6  ;;  %v7329_v25 = vsel %vm21829_vm9, %v7310_v6, %v7312_v37 }
 0xc05   : > { %v7360_v62 = vmax.f32 %v18864_v0, %v7328_v16  ;;  %v7361_v50 = vmax.f32 %v18867_v21, %v7329_v25 }
 0xc07   : > { %7376 = vst [vmem:[%s18892_s19 + $0x68] sm:$0xff] %v7360_v62  ;;  %7377 = vst [vmem:[%s18892_s19 + $0x70] sm:$0xff] %v7361_v50  ;;  %v7314_v32 = vpop.permute.xlu0 %7313 }
 0xc08   : > { %v7330_v63 = vsel %vm21830_vm0, %v7312_v37, %v7314_v32 }
 0xc09   : > { %v7362_v35 = vmax.f32 %v18876_v3, %v7330_v63 }
 0xc0b   : > { %7378 = vst.msk [vmem:[%s18892_s19 + $0x78] sm:$0xff] %vm21831_vm11, %v7362_v35 }
 0xc0c PF: > { %s20_s30 = sadd.s32 1, %s10233_s30  }
 0xc0d   : > { %p17_p4 = scmp.ge.s32.totalorder %s20_s30, 4  }
 0xc0f   :  { %19 = sbr.rel (!%p17_p4) target bundleno = 1 (0x1), region = 94 }

</bundles_post_ra>
